<compile_context>
chip_gen: v6e
topology: v6e:2x2x1
jax: 0.10.0
libtpu: 0.0.40
codegen_flags: <defaults>
</compile_context>

<pallas_src>
import functools

import jax
import jax.numpy as jnp
from jax.experimental import pallas as pl
from jax.experimental.pallas import tpu as pltpu

_TM = 4096                       # GEMM row-tile (M dimension)
_VMEM_LIMIT = 32 * 1024 * 1024   # modest raise; safe on v5e/v6e/v7x


def _mosaic_params():
    return pltpu.CompilerParams(
        dimension_semantics=("parallel",),
        vmem_limit_bytes=_VMEM_LIMIT)


# ---------------------------------------------------------------------------
# Kernel 1: conv-as-GEMM with fused bias + optional ReLU.
#   o = act(x @ w + b),   x:(tm,K) bf16, w:(K,N) bf16, b:(1,N) f32
# ---------------------------------------------------------------------------
def _conv_gemm_kernel(x_ref, w_ref, b_ref, o_ref, *, relu):
    acc = jnp.dot(x_ref[...], w_ref[...], preferred_element_type=jnp.float32)
    acc = acc + b_ref[...]
    if relu:
        acc = jnp.maximum(acc, 0.0)
    o_ref[...] = acc.astype(o_ref.dtype)


def _conv_gemm(xcol, w, b, *, relu, out_dtype):
    m, k = xcol.shape
    n = w.shape[1]
    tm = m if m <= _TM else _TM
    return pl.pallas_call(
        functools.partial(_conv_gemm_kernel, relu=relu),
        out_shape=jax.ShapeDtypeStruct((m, n), out_dtype),
        grid=(pl.cdiv(m, tm),),
        in_specs=[pl.BlockSpec((tm, k), lambda i: (i, 0)),
                  pl.BlockSpec((k, n), lambda i: (0, 0)),
                  pl.BlockSpec((1, n), lambda i: (0, 0))],
        out_specs=pl.BlockSpec((tm, n), lambda i: (i, 0)),
        compiler_params=_mosaic_params(),
    )(xcol, w, b)


# ---------------------------------------------------------------------------
# Kernel 2: fused residual-block tail + side logit.
#   main = relu(acol @ w1)            (conv_1 + act_1)
#   y    = relu(main + x @ wd)        (1x1 down-sample + add + final ReLU)
#   side = y @ ws + bs                (1x1 side-logit conv, bias=True)
# Two outputs: y (bf16, feeds the next block) and side (f32 logit).
# ---------------------------------------------------------------------------
def _res_tail_kernel(acol_ref, x_ref, w1_ref, wd_ref, ws_ref, bs_ref,
                     y_ref, side_ref):
    main = jnp.dot(acol_ref[...], w1_ref[...],
                   preferred_element_type=jnp.float32)
    main = jnp.maximum(main, 0.0)                          # act_1
    ds = jnp.dot(x_ref[...], wd_ref[...],
                 preferred_element_type=jnp.float32)       # down-sample (no bias)
    y = jnp.maximum(main + ds, 0.0)                        # residual add + ReLU
    y_ref[...] = y.astype(y_ref.dtype)
    side = jnp.dot(y.astype(ws_ref.dtype), ws_ref[...],
                   preferred_element_type=jnp.float32) + bs_ref[...]
    side_ref[...] = side


def _res_tail(acol, xs, w1, wd, ws, bs):
    m, k = acol.shape
    c = xs.shape[1]
    tm = m if m <= _TM else _TM
    return pl.pallas_call(
        _res_tail_kernel,
        out_shape=(jax.ShapeDtypeStruct((m, c), jnp.bfloat16),
                   jax.ShapeDtypeStruct((m, 1), jnp.float32)),
        grid=(pl.cdiv(m, tm),),
        in_specs=[pl.BlockSpec((tm, k), lambda i: (i, 0)),
                  pl.BlockSpec((tm, c), lambda i: (i, 0)),
                  pl.BlockSpec((k, c), lambda i: (0, 0)),
                  pl.BlockSpec((c, c), lambda i: (0, 0)),
                  pl.BlockSpec((c, 1), lambda i: (0, 0)),
                  pl.BlockSpec((1, 1), lambda i: (0, 0))],
        out_specs=(pl.BlockSpec((tm, c), lambda i: (i, 0)),
                   pl.BlockSpec((tm, 1), lambda i: (i, 0))),
        compiler_params=_mosaic_params(),
    )(acol, xs, w1, wd, ws, bs)


# ---------------------------------------------------------------------------
# Kernel 3: deep-supervision combine with fused nearest upsampling.
#   final = sigmoid(w1*out1 + w2*up2(out2) + w3*up4(out3) + w4*up8(out4))
# Upsampling runs in-kernel as A_f @ out_f @ B_f with one-hot expansion
# matrices (MXU work; no upsampled maps in HBM).  Grid is over batch.
# ---------------------------------------------------------------------------
def _combine_kernel(wts_ref, o1_ref, o2_ref, o3_ref, o4_ref,
                    a2_ref, b2_ref, a3_ref, b3_ref, a4_ref, b4_ref,
                    out_ref):
    def up(o_ref, a_ref, b_ref):
        t = jnp.dot(o_ref[0], b_ref[...], preferred_element_type=jnp.float32)
        return jnp.dot(a_ref[...], t, preferred_element_type=jnp.float32)

    z = (wts_ref[0] * o1_ref[0]
         + wts_ref[1] * up(o2_ref, a2_ref, b2_ref)
         + wts_ref[2] * up(o3_ref, a3_ref, b3_ref)
         + wts_ref[3] * up(o4_ref, a4_ref, b4_ref))
    out_ref[0] = 0.5 * (jnp.tanh(0.5 * z) + 1.0)   # stable sigmoid (EUP)


def _expansion_mats(h, w, f):
    """One-hot nearest-upsample matrices: up = A @ x @ B, up[i,j]=x[i//f,j//f]."""
    a = (jnp.arange(h)[:, None] // f == jnp.arange(h // f)[None, :]
         ).astype(jnp.float32)                               # (h, h//f)
    b = (jnp.arange(w // f)[:, None] == jnp.arange(w)[None, :] // f
         ).astype(jnp.float32)                               # (w//f, w)
    return a, b


# ---------------------------------------------------------------------------
# Conv wrappers (JAX glue: padding + static strided slices for im2col).
# ---------------------------------------------------------------------------
def _im2col3x3(x, stride):
    """im2col for a 3x3 / padding=1 conv on NHWC input -> (N*Ho*Wo, 9*C)."""
    n, h, w, c = x.shape
    ho, wo = h // stride, w // stride
    xp = jnp.pad(x, ((0, 0), (1, 1), (1, 1), (0, 0)))
    cols = [xp[:, kh:kh + stride * ho:stride, kw:kw + stride * wo:stride, :]
            for kh in range(3) for kw in range(3)]
    return jnp.concatenate(cols, axis=-1).reshape(n * ho * wo, 9 * c)


def conv3x3(x, w, b, *, stride=1, relu=False, out_dtype=jnp.bfloat16):
    """3x3 conv, padding=1. x:(N,H,W,Cin) bf16, w:(3,3,Cin,Cout), b:(Cout,)|None."""
    n, h, wd_, c = x.shape
    ho, wo = h // stride, wd_ // stride
    cout = w.shape[-1]
    if b is None:
        b = jnp.zeros((cout,), jnp.float32)
    xcol = _im2col3x3(x, stride)
    out = _conv_gemm(xcol,
                     w.reshape(9 * c, cout).astype(jnp.bfloat16),
                     b.reshape(1, cout).astype(jnp.float32),
                     relu=relu, out_dtype=out_dtype)
    return out.reshape(n, ho, wo, cout)


def residual_block(x, p, side_w, side_b, stride):
    """ResidualBlock(batch_norm=False) + fused side_logit 1x1 conv.

    Returns (x_out (N,Ho,Wo,32) bf16, side_logit (N,Ho,Wo) f32)."""
    n, h, w, c = x.shape
    ho, wo = h // stride, w // stride
    # conv_0 (3x3, stride, pad=1, bias=False) + act_0
    a = conv3x3(x, p["w0"], None, stride=stride, relu=True)
    acol = _im2col3x3(a, 1)                                     # (M, 9*32) bf16
    xs = x[:, ::stride, ::stride, :].reshape(n * ho * wo, c)    # 1x1 ds input
    y, side = _res_tail(acol, xs,
                        p["w1"].reshape(9 * c, c).astype(jnp.bfloat16),
                        p["wd"].astype(jnp.bfloat16),
                        side_w.astype(jnp.bfloat16),
                        side_b.reshape(1, 1).astype(jnp.float32))
    return y.reshape(n, ho, wo, c), side.reshape(n, ho, wo)


# ---------------------------------------------------------------------------
# Parameters + forward pass.
# ---------------------------------------------------------------------------
def init_params(key):
    def conv_w(k, kh, kw, cin, cout):
        fan_in = kh * kw * cin
        return jax.random.normal(k, (kh, kw, cin, cout), jnp.float32) / jnp.sqrt(fan_in)

    keys = jax.random.split(key, 32)
    ki = iter(keys)
    params = {
        "conv0_w": conv_w(next(ki), 3, 3, 3, 32),
        "conv0_b": jax.random.normal(next(ki), (32,), jnp.float32) * 0.05,
        # weight_1..weight_4 parameters, each initialised to 1/4
        "weights": jnp.array([0.25, 0.25, 0.25, 0.25], jnp.float32),
    }
    for i in range(1, 5):
        params[f"res{i}"] = {
            "w0": conv_w(next(ki), 3, 3, 32, 32),
            "w1": conv_w(next(ki), 3, 3, 32, 32),
            "wd": conv_w(next(ki), 1, 1, 32, 32).reshape(32, 32),
        }
        params[f"side{i}_w"] = conv_w(next(ki), 1, 1, 32, 1).reshape(32, 1)
        params[f"side{i}_b"] = jax.random.normal(next(ki), (1,), jnp.float32) * 0.05
    return params


def deep_supervision_forward(x_nchw, params):
    """Matches DeepSupervisionNet.forward (batch_norm=False,
    no_deep_supervision=False): returns `final_prob` of shape (N, H, W)."""
    x = jnp.transpose(x_nchw, (0, 2, 3, 1)).astype(jnp.bfloat16)  # NCHW -> NHWC

    x0 = conv3x3(x, params["conv0_w"], params["conv0_b"], stride=1, relu=False)
    x1, out1 = residual_block(x0, params["res1"], params["side1_w"],
                              params["side1_b"], stride=1)
    x2, out2 = residual_block(x1, params["res2"], params["side2_w"],
                              params["side2_b"], stride=2)
    x3, out3 = residual_block(x2, params["res3"], params["side3_w"],
                              params["side3_b"], stride=2)
    x4, out4 = residual_block(x3, params["res4"], params["side4_w"],
                              params["side4_b"], stride=2)

    n, h, w = out1.shape
    a2, b2 = _expansion_mats(h, w, 2)
    a3, b3 = _expansion_mats(h, w, 4)
    a4, b4 = _expansion_mats(h, w, 8)

    final_prob = pl.pallas_call(
        _combine_kernel,
        out_shape=jax.ShapeDtypeStruct((n, h, w), jnp.float32),
        grid=(n,),
        in_specs=[pl.BlockSpec(memory_space=pltpu.MemorySpace.SMEM),
                  pl.BlockSpec((1, h, w), lambda i: (i, 0, 0)),
                  pl.BlockSpec((1, h // 2, w // 2), lambda i: (i, 0, 0)),
                  pl.BlockSpec((1, h // 4, w // 4), lambda i: (i, 0, 0)),
                  pl.BlockSpec((1, h // 8, w // 8), lambda i: (i, 0, 0)),
                  pl.BlockSpec((h, h // 2), lambda i: (0, 0)),
                  pl.BlockSpec((w // 2, w), lambda i: (0, 0)),
                  pl.BlockSpec((h, h // 4), lambda i: (0, 0)),
                  pl.BlockSpec((w // 4, w), lambda i: (0, 0)),
                  pl.BlockSpec((h, h // 8), lambda i: (0, 0)),
                  pl.BlockSpec((w // 8, w), lambda i: (0, 0))],
        out_specs=pl.BlockSpec((1, h, w), lambda i: (i, 0, 0)),
        compiler_params=_mosaic_params(),
    )(params["weights"], out1, out2, out3, out4, a2, b2, a3, b3, a4, b4)
    # TODO(synk): the `project` path (projection_1/2 + MaxPool2d) is not part
    # of forward() and is not implemented here.
    return final_prob


if __name__ == "__main__":
    key = jax.random.PRNGKey(0)
    pkey, xkey = jax.random.split(key)
    params = init_params(pkey)
    # Small analogue of the nominal (3, 200, 200) input: batch=2, 3ch, 16x16
    # (spatial divisible by 8 so the three stride-2 residual blocks work).
    x = jax.random.normal(xkey, (2, 3, 16, 16), jnp.float32)
    out = jax.jit(deep_supervision_forward)(x, params)
    jax.block_until_ready(out)
    assert out.shape == (2, 16, 16)
    assert bool(jnp.all(jnp.isfinite(out)))
    assert bool(jnp.all((out >= 0.0) & (out <= 1.0)))
    print("KERNEL_OK")
</pallas_src>

<mosaic_0001>
module attributes {stable_mosaic.version = 11 : i64} {
  func.func @_conv_gemm_kernel(%arg0: i32, %arg1: memref<512x27xbf16, #tpu.memory_space<vmem>>, %arg2: memref<27x32xbf16, #tpu.memory_space<vmem>>, %arg3: memref<1x32xf32, #tpu.memory_space<vmem>>, %arg4: memref<512x32xbf16, #tpu.memory_space<vmem>>) attributes {dimension_semantics = [#tpu.dimension_semantics<parallel>], iteration_bounds = array<i64: 1>, scalar_prefetch = 0 : i64, scratch_operands = 0 : i64, tpu.core_type = #tpu.core_type<tc>, window_params = [{transform_indices = @transform_0, window_bounds = array<i64: 512, 27>}, {pipeline_mode = #tpu.pipeline_mode<synchronous>, transform_indices = @transform_1, window_bounds = array<i64: 27, 32>}, {pipeline_mode = #tpu.pipeline_mode<synchronous>, transform_indices = @transform_2, window_bounds = array<i64: 1, 32>}, {transform_indices = @transform_3, window_bounds = array<i64: 512, 32>}]} {
    %c0 = arith.constant 0 : index
    %c0_0 = arith.constant 0 : index
    %0 = vector.load %arg1[%c0, %c0_0] : memref<512x27xbf16, #tpu.memory_space<vmem>>, vector<512x27xbf16>
    %c0_1 = arith.constant 0 : index
    %c0_2 = arith.constant 0 : index
    %1 = vector.load %arg2[%c0_1, %c0_2] : memref<27x32xbf16, #tpu.memory_space<vmem>>, vector<27x32xbf16>
    %cst = arith.constant dense<0.000000e+00> : vector<512x32xf32>
    %2 = tpu.matmul %0, %1, %cst {dimension_numbers = #tpu.dot_dimension_numbers<[1], [0], [0], [1], [0, 0, 1, 1], [], []>} : vector<512x27xbf16>, vector<27x32xbf16>, vector<512x32xf32> -> vector<512x32xf32>
    %c0_3 = arith.constant 0 : index
    %c0_4 = arith.constant 0 : index
    %3 = vector.load %arg3[%c0_3, %c0_4] : memref<1x32xf32, #tpu.memory_space<vmem>>, vector<1x32xf32>
    %4 = vector.broadcast %3 : vector<1x32xf32> to vector<512x32xf32>
    %5 = arith.addf %2, %4 : vector<512x32xf32>
    %6 = arith.truncf %5 : vector<512x32xf32> to vector<512x32xbf16>
    %c0_5 = arith.constant 0 : index
    %c0_6 = arith.constant 0 : index
    %7 = vector.load %arg4[%c0_5, %c0_6] : memref<512x32xbf16, #tpu.memory_space<vmem>>, vector<512x32xbf16>
    tpu.vector_store %arg4[%c0_5, %c0_6], %6 {strides = array<i32>} : memref<512x32xbf16, #tpu.memory_space<vmem>>, vector<512x32xbf16>,
    return
  }
  func.func @transform_0(%arg0: i32) -> (i32, i32) {
    %c0_i32 = arith.constant 0 : i32
    %c0_i32_0 = arith.constant 0 : i32
    return %arg0, %c0_i32 : i32, i32
  }
  func.func @transform_1(%arg0: i32) -> (i32, i32) {
    %c0_i32 = arith.constant 0 : i32
    %c0_i32_0 = arith.constant 0 : i32
    %c0_i32_1 = arith.constant 0 : i32
    return %c0_i32, %c0_i32_0 : i32, i32
  }
  func.func @transform_2(%arg0: i32) -> (i32, i32) {
    %c0_i32 = arith.constant 0 : i32
    %c0_i32_0 = arith.constant 0 : i32
    %c0_i32_1 = arith.constant 0 : i32
    return %c0_i32, %c0_i32_0 : i32, i32
  }
  func.func @transform_3(%arg0: i32) -> (i32, i32) {
    %c0_i32 = arith.constant 0 : i32
    %c0_i32_0 = arith.constant 0 : i32
    return %arg0, %c0_i32 : i32, i32
  }
}

module attributes {stable_mosaic.version = 11 : i64} {
  func.func @_conv_gemm_kernel(%arg0: i32, %arg1: memref<512x288xbf16, #tpu.memory_space<vmem>>, %arg2: memref<288x32xbf16, #tpu.memory_space<vmem>>, %arg3: memref<1x32xf32, #tpu.memory_space<vmem>>, %arg4: memref<512x32xbf16, #tpu.memory_space<vmem>>) attributes {dimension_semantics = [#tpu.dimension_semantics<parallel>], iteration_bounds = array<i64: 1>, scalar_prefetch = 0 : i64, scratch_operands = 0 : i64, tpu.core_type = #tpu.core_type<tc>, window_params = [{transform_indices = @transform_0, window_bounds = array<i64: 512, 288>}, {pipeline_mode = #tpu.pipeline_mode<synchronous>, transform_indices = @transform_1, window_bounds = array<i64: 288, 32>}, {pipeline_mode = #tpu.pipeline_mode<synchronous>, transform_indices = @transform_2, window_bounds = array<i64: 1, 32>}, {transform_indices = @transform_3, window_bounds = array<i64: 512, 32>}]} {
    %c0 = arith.constant 0 : index
    %c0_0 = arith.constant 0 : index
    %0 = vector.load %arg1[%c0, %c0_0] : memref<512x288xbf16, #tpu.memory_space<vmem>>, vector<512x288xbf16>
    %c0_1 = arith.constant 0 : index
    %c0_2 = arith.constant 0 : index
    %1 = vector.load %arg2[%c0_1, %c0_2] : memref<288x32xbf16, #tpu.memory_space<vmem>>, vector<288x32xbf16>
    %cst = arith.constant dense<0.000000e+00> : vector<512x32xf32>
    %2 = tpu.matmul %0, %1, %cst {dimension_numbers = #tpu.dot_dimension_numbers<[1], [0], [0], [1], [0, 0, 1, 1], [], []>} : vector<512x288xbf16>, vector<288x32xbf16>, vector<512x32xf32> -> vector<512x32xf32>
    %c0_3 = arith.constant 0 : index
    %c0_4 = arith.constant 0 : index
    %3 = vector.load %arg3[%c0_3, %c0_4] : memref<1x32xf32, #tpu.memory_space<vmem>>, vector<1x32xf32>
    %4 = vector.broadcast %3 : vector<1x32xf32> to vector<512x32xf32>
    %5 = arith.addf %2, %4 : vector<512x32xf32>
    %cst_5 = arith.constant 0.000000e+00 : f32
    %6 = vector.broadcast %cst_5 : f32 to vector<512x32xf32>
    %7 = arith.maximumf %5, %6 : vector<512x32xf32>
    %8 = arith.truncf %7 : vector<512x32xf32> to vector<512x32xbf16>
    %c0_6 = arith.constant 0 : index
    %c0_7 = arith.constant 0 : index
    %9 = vector.load %arg4[%c0_6, %c0_7] : memref<512x32xbf16, #tpu.memory_space<vmem>>, vector<512x32xbf16>
    tpu.vector_store %arg4[%c0_6, %c0_7], %8 {strides = array<i32>} : memref<512x32xbf16, #tpu.memory_space<vmem>>, vector<512x32xbf16>,
    return
  }
  func.func @transform_0(%arg0: i32) -> (i32, i32) {
    %c0_i32 = arith.constant 0 : i32
    %c0_i32_0 = arith.constant 0 : i32
    return %arg0, %c0_i32 : i32, i32
  }
  func.func @transform_1(%arg0: i32) -> (i32, i32) {
    %c0_i32 = arith.constant 0 : i32
    %c0_i32_0 = arith.constant 0 : i32
    %c0_i32_1 = arith.constant 0 : i32
    return %c0_i32, %c0_i32_0 : i32, i32
  }
  func.func @transform_2(%arg0: i32) -> (i32, i32) {
    %c0_i32 = arith.constant 0 : i32
    %c0_i32_0 = arith.constant 0 : i32
    %c0_i32_1 = arith.constant 0 : i32
    return %c0_i32, %c0_i32_0 : i32, i32
  }
  func.func @transform_3(%arg0: i32) -> (i32, i32) {
    %c0_i32 = arith.constant 0 : i32
    %c0_i32_0 = arith.constant 0 : i32
    return %arg0, %c0_i32 : i32, i32
  }
}

module attributes {stable_mosaic.version = 11 : i64} {
  func.func @_res_tail_kernel(%arg0: i32, %arg1: memref<512x288xbf16, #tpu.memory_space<vmem>>, %arg2: memref<512x32xbf16, #tpu.memory_space<vmem>>, %arg3: memref<288x32xbf16, #tpu.memory_space<vmem>>, %arg4: memref<32x32xbf16, #tpu.memory_space<vmem>>, %arg5: memref<32x1xbf16, #tpu.memory_space<vmem>>, %arg6: memref<1x1xf32, #tpu.memory_space<vmem>>, %arg7: memref<512x32xbf16, #tpu.memory_space<vmem>>, %arg8: memref<512x1xf32, #tpu.memory_space<vmem>>) attributes {dimension_semantics = [#tpu.dimension_semantics<parallel>], iteration_bounds = array<i64: 1>, scalar_prefetch = 0 : i64, scratch_operands = 0 : i64, tpu.core_type = #tpu.core_type<tc>, window_params = [{transform_indices = @transform_0, window_bounds = array<i64: 512, 288>}, {transform_indices = @transform_1, window_bounds = array<i64: 512, 32>}, {pipeline_mode = #tpu.pipeline_mode<synchronous>, transform_indices = @transform_2, window_bounds = array<i64: 288, 32>}, {pipeline_mode = #tpu.pipeline_mode<synchronous>, transform_indices = @transform_3, window_bounds = array<i64: 32, 32>}, {pipeline_mode = #tpu.pipeline_mode<synchronous>, transform_indices = @transform_4, window_bounds = array<i64: 32, 1>}, {pipeline_mode = #tpu.pipeline_mode<synchronous>, transform_indices = @transform_5, window_bounds = array<i64: 1, 1>}, {transform_indices = @transform_6, window_bounds = array<i64: 512, 32>}, {transform_indices = @transform_7, window_bounds = array<i64: 512, 1>}]} {
    %c0 = arith.constant 0 : index
    %c0_0 = arith.constant 0 : index
    %0 = vector.load %arg1[%c0, %c0_0] : memref<512x288xbf16, #tpu.memory_space<vmem>>, vector<512x288xbf16>
    %c0_1 = arith.constant 0 : index
    %c0_2 = arith.constant 0 : index
    %1 = vector.load %arg3[%c0_1, %c0_2] : memref<288x32xbf16, #tpu.memory_space<vmem>>, vector<288x32xbf16>
    %cst = arith.constant dense<0.000000e+00> : vector<512x32xf32>
    %2 = tpu.matmul %0, %1, %cst {dimension_numbers = #tpu.dot_dimension_numbers<[1], [0], [0], [1], [0, 0, 1, 1], [], []>} : vector<512x288xbf16>, vector<288x32xbf16>, vector<512x32xf32> -> vector<512x32xf32>
    %cst_3 = arith.constant 0.000000e+00 : f32
    %3 = vector.broadcast %cst_3 : f32 to vector<512x32xf32>
    %4 = arith.maximumf %2, %3 : vector<512x32xf32>
    %c0_4 = arith.constant 0 : index
    %c0_5 = arith.constant 0 : index
    %5 = vector.load %arg2[%c0_4, %c0_5] : memref<512x32xbf16, #tpu.memory_space<vmem>>, vector<512x32xbf16>
    %c0_6 = arith.constant 0 : index
    %c0_7 = arith.constant 0 : index
    %6 = vector.load %arg4[%c0_6, %c0_7] : memref<32x32xbf16, #tpu.memory_space<vmem>>, vector<32x32xbf16>
    %cst_8 = arith.constant dense<0.000000e+00> : vector<512x32xf32>
    %7 = tpu.matmul %5, %6, %cst_8 {dimension_numbers = #tpu.dot_dimension_numbers<[1], [0], [0], [1], [0, 0, 1, 1], [], []>} : vector<512x32xbf16>, vector<32x32xbf16>, vector<512x32xf32> -> vector<512x32xf32>
    %8 = arith.addf %4, %7 : vector<512x32xf32>
    %cst_9 = arith.constant 0.000000e+00 : f32
    %9 = vector.broadcast %cst_9 : f32 to vector<512x32xf32>
    %10 = arith.maximumf %8, %9 : vector<512x32xf32>
    %11 = arith.truncf %10 : vector<512x32xf32> to vector<512x32xbf16>
    %c0_10 = arith.constant 0 : index
    %c0_11 = arith.constant 0 : index
    %12 = vector.load %arg7[%c0_10, %c0_11] : memref<512x32xbf16, #tpu.memory_space<vmem>>, vector<512x32xbf16>
    tpu.vector_store %arg7[%c0_10, %c0_11], %11 {strides = array<i32>} : memref<512x32xbf16, #tpu.memory_space<vmem>>, vector<512x32xbf16>,
    %13 = arith.truncf %10 : vector<512x32xf32> to vector<512x32xbf16>
    %c0_12 = arith.constant 0 : index
    %c0_13 = arith.constant 0 : index
    %14 = vector.load %arg5[%c0_12, %c0_13] : memref<32x1xbf16, #tpu.memory_space<vmem>>, vector<32x1xbf16>
    %cst_14 = arith.constant dense<0.000000e+00> : vector<512x1xf32>
    %15 = tpu.matmul %13, %14, %cst_14 {dimension_numbers = #tpu.dot_dimension_numbers<[1], [0], [0], [1], [0, 0, 1, 1], [], []>} : vector<512x32xbf16>, vector<32x1xbf16>, vector<512x1xf32> -> vector<512x1xf32>
    %c0_15 = arith.constant 0 : index
    %c0_16 = arith.constant 0 : index
    %16 = vector.load %arg6[%c0_15, %c0_16] : memref<1x1xf32, #tpu.memory_space<vmem>>, vector<1x1xf32>
    %17 = vector.broadcast %16 : vector<1x1xf32> to vector<512x1xf32>
    %18 = arith.addf %15, %17 : vector<512x1xf32>
    %c0_17 = arith.constant 0 : index
    %c0_18 = arith.constant 0 : index
    %19 = vector.load %arg8[%c0_17, %c0_18] : memref<512x1xf32, #tpu.memory_space<vmem>>, vector<512x1xf32>
    tpu.vector_store %arg8[%c0_17, %c0_18], %18 {strides = array<i32>} : memref<512x1xf32, #tpu.memory_space<vmem>>, vector<512x1xf32>,
    return
  }
  func.func @transform_0(%arg0: i32) -> (i32, i32) {
    %c0_i32 = arith.constant 0 : i32
    %c0_i32_0 = arith.constant 0 : i32
    return %arg0, %c0_i32 : i32, i32
  }
  func.func @transform_1(%arg0: i32) -> (i32, i32) {
    %c0_i32 = arith.constant 0 : i32
    %c0_i32_0 = arith.constant 0 : i32
    return %arg0, %c0_i32 : i32, i32
  }
  func.func @transform_2(%arg0: i32) -> (i32, i32) {
    %c0_i32 = arith.constant 0 : i32
    %c0_i32_0 = arith.constant 0 : i32
    %c0_i32_1 = arith.constant 0 : i32
    return %c0_i32, %c0_i32_0 : i32, i32
  }
  func.func @transform_3(%arg0: i32) -> (i32, i32) {
    %c0_i32 = arith.constant 0 : i32
    %c0_i32_0 = arith.constant 0 : i32
    %c0_i32_1 = arith.constant 0 : i32
    return %c0_i32, %c0_i32_0 : i32, i32
  }
  func.func @transform_4(%arg0: i32) -> (i32, i32) {
    %c0_i32 = arith.constant 0 : i32
    %c0_i32_0 = arith.constant 0 : i32
    %c0_i32_1 = arith.constant 0 : i32
    return %c0_i32, %c0_i32_0 : i32, i32
  }
  func.func @transform_5(%arg0: i32) -> (i32, i32) {
    %c0_i32 = arith.constant 0 : i32
    %c0_i32_0 = arith.constant 0 : i32
    %c0_i32_1 = arith.constant 0 : i32
    return %c0_i32, %c0_i32_0 : i32, i32
  }
  func.func @transform_6(%arg0: i32) -> (i32, i32) {
    %c0_i32 = arith.constant 0 : i32
    %c0_i32_0 = arith.constant 0 : i32
    return %arg0, %c0_i32 : i32, i32
  }
  func.func @transform_7(%arg0: i32) -> (i32, i32) {
    %c0_i32 = arith.constant 0 : i32
    %c0_i32_0 = arith.constant 0 : i32
    return %arg0, %c0_i32 : i32, i32
  }
}

module attributes {stable_mosaic.version = 11 : i64} {
  func.func @_conv_gemm_kernel(%arg0: i32, %arg1: memref<128x288xbf16, #tpu.memory_space<vmem>>, %arg2: memref<288x32xbf16, #tpu.memory_space<vmem>>, %arg3: memref<1x32xf32, #tpu.memory_space<vmem>>, %arg4: memref<128x32xbf16, #tpu.memory_space<vmem>>) attributes {dimension_semantics = [#tpu.dimension_semantics<parallel>], iteration_bounds = array<i64: 1>, scalar_prefetch = 0 : i64, scratch_operands = 0 : i64, tpu.core_type = #tpu.core_type<tc>, window_params = [{transform_indices = @transform_0, window_bounds = array<i64: 128, 288>}, {pipeline_mode = #tpu.pipeline_mode<synchronous>, transform_indices = @transform_1, window_bounds = array<i64: 288, 32>}, {pipeline_mode = #tpu.pipeline_mode<synchronous>, transform_indices = @transform_2, window_bounds = array<i64: 1, 32>}, {transform_indices = @transform_3, window_bounds = array<i64: 128, 32>}]} {
    %c0 = arith.constant 0 : index
    %c0_0 = arith.constant 0 : index
    %0 = vector.load %arg1[%c0, %c0_0] : memref<128x288xbf16, #tpu.memory_space<vmem>>, vector<128x288xbf16>
    %c0_1 = arith.constant 0 : index
    %c0_2 = arith.constant 0 : index
    %1 = vector.load %arg2[%c0_1, %c0_2] : memref<288x32xbf16, #tpu.memory_space<vmem>>, vector<288x32xbf16>
    %cst = arith.constant dense<0.000000e+00> : vector<128x32xf32>
    %2 = tpu.matmul %0, %1, %cst {dimension_numbers = #tpu.dot_dimension_numbers<[1], [0], [0], [1], [0, 0, 1, 1], [], []>} : vector<128x288xbf16>, vector<288x32xbf16>, vector<128x32xf32> -> vector<128x32xf32>
    %c0_3 = arith.constant 0 : index
    %c0_4 = arith.constant 0 : index
    %3 = vector.load %arg3[%c0_3, %c0_4] : memref<1x32xf32, #tpu.memory_space<vmem>>, vector<1x32xf32>
    %4 = vector.broadcast %3 : vector<1x32xf32> to vector<128x32xf32>
    %5 = arith.addf %2, %4 : vector<128x32xf32>
    %cst_5 = arith.constant 0.000000e+00 : f32
    %6 = vector.broadcast %cst_5 : f32 to vector<128x32xf32>
    %7 = arith.maximumf %5, %6 : vector<128x32xf32>
    %8 = arith.truncf %7 : vector<128x32xf32> to vector<128x32xbf16>
    %c0_6 = arith.constant 0 : index
    %c0_7 = arith.constant 0 : index
    %9 = vector.load %arg4[%c0_6, %c0_7] : memref<128x32xbf16, #tpu.memory_space<vmem>>, vector<128x32xbf16>
    tpu.vector_store %arg4[%c0_6, %c0_7], %8 {strides = array<i32>} : memref<128x32xbf16, #tpu.memory_space<vmem>>, vector<128x32xbf16>,
    return
  }
  func.func @transform_0(%arg0: i32) -> (i32, i32) {
    %c0_i32 = arith.constant 0 : i32
    %c0_i32_0 = arith.constant 0 : i32
    return %arg0, %c0_i32 : i32, i32
  }
  func.func @transform_1(%arg0: i32) -> (i32, i32) {
    %c0_i32 = arith.constant 0 : i32
    %c0_i32_0 = arith.constant 0 : i32
    %c0_i32_1 = arith.constant 0 : i32
    return %c0_i32, %c0_i32_0 : i32, i32
  }
  func.func @transform_2(%arg0: i32) -> (i32, i32) {
    %c0_i32 = arith.constant 0 : i32
    %c0_i32_0 = arith.constant 0 : i32
    %c0_i32_1 = arith.constant 0 : i32
    return %c0_i32, %c0_i32_0 : i32, i32
  }
  func.func @transform_3(%arg0: i32) -> (i32, i32) {
    %c0_i32 = arith.constant 0 : i32
    %c0_i32_0 = arith.constant 0 : i32
    return %arg0, %c0_i32 : i32, i32
  }
}

module attributes {stable_mosaic.version = 11 : i64} {
  func.func @_res_tail_kernel(%arg0: i32, %arg1: memref<128x288xbf16, #tpu.memory_space<vmem>>, %arg2: memref<128x32xbf16, #tpu.memory_space<vmem>>, %arg3: memref<288x32xbf16, #tpu.memory_space<vmem>>, %arg4: memref<32x32xbf16, #tpu.memory_space<vmem>>, %arg5: memref<32x1xbf16, #tpu.memory_space<vmem>>, %arg6: memref<1x1xf32, #tpu.memory_space<vmem>>, %arg7: memref<128x32xbf16, #tpu.memory_space<vmem>>, %arg8: memref<128x1xf32, #tpu.memory_space<vmem>>) attributes {dimension_semantics = [#tpu.dimension_semantics<parallel>], iteration_bounds = array<i64: 1>, scalar_prefetch = 0 : i64, scratch_operands = 0 : i64, tpu.core_type = #tpu.core_type<tc>, window_params = [{transform_indices = @transform_0, window_bounds = array<i64: 128, 288>}, {transform_indices = @transform_1, window_bounds = array<i64: 128, 32>}, {pipeline_mode = #tpu.pipeline_mode<synchronous>, transform_indices = @transform_2, window_bounds = array<i64: 288, 32>}, {pipeline_mode = #tpu.pipeline_mode<synchronous>, transform_indices = @transform_3, window_bounds = array<i64: 32, 32>}, {pipeline_mode = #tpu.pipeline_mode<synchronous>, transform_indices = @transform_4, window_bounds = array<i64: 32, 1>}, {pipeline_mode = #tpu.pipeline_mode<synchronous>, transform_indices = @transform_5, window_bounds = array<i64: 1, 1>}, {transform_indices = @transform_6, window_bounds = array<i64: 128, 32>}, {transform_indices = @transform_7, window_bounds = array<i64: 128, 1>}]} {
    %c0 = arith.constant 0 : index
    %c0_0 = arith.constant 0 : index
    %0 = vector.load %arg1[%c0, %c0_0] : memref<128x288xbf16, #tpu.memory_space<vmem>>, vector<128x288xbf16>
    %c0_1 = arith.constant 0 : index
    %c0_2 = arith.constant 0 : index
    %1 = vector.load %arg3[%c0_1, %c0_2] : memref<288x32xbf16, #tpu.memory_space<vmem>>, vector<288x32xbf16>
    %cst = arith.constant dense<0.000000e+00> : vector<128x32xf32>
    %2 = tpu.matmul %0, %1, %cst {dimension_numbers = #tpu.dot_dimension_numbers<[1], [0], [0], [1], [0, 0, 1, 1], [], []>} : vector<128x288xbf16>, vector<288x32xbf16>, vector<128x32xf32> -> vector<128x32xf32>
    %cst_3 = arith.constant 0.000000e+00 : f32
    %3 = vector.broadcast %cst_3 : f32 to vector<128x32xf32>
    %4 = arith.maximumf %2, %3 : vector<128x32xf32>
    %c0_4 = arith.constant 0 : index
    %c0_5 = arith.constant 0 : index
    %5 = vector.load %arg2[%c0_4, %c0_5] : memref<128x32xbf16, #tpu.memory_space<vmem>>, vector<128x32xbf16>
    %c0_6 = arith.constant 0 : index
    %c0_7 = arith.constant 0 : index
    %6 = vector.load %arg4[%c0_6, %c0_7] : memref<32x32xbf16, #tpu.memory_space<vmem>>, vector<32x32xbf16>
    %cst_8 = arith.constant dense<0.000000e+00> : vector<128x32xf32>
    %7 = tpu.matmul %5, %6, %cst_8 {dimension_numbers = #tpu.dot_dimension_numbers<[1], [0], [0], [1], [0, 0, 1, 1], [], []>} : vector<128x32xbf16>, vector<32x32xbf16>, vector<128x32xf32> -> vector<128x32xf32>
    %8 = arith.addf %4, %7 : vector<128x32xf32>
    %cst_9 = arith.constant 0.000000e+00 : f32
    %9 = vector.broadcast %cst_9 : f32 to vector<128x32xf32>
    %10 = arith.maximumf %8, %9 : vector<128x32xf32>
    %11 = arith.truncf %10 : vector<128x32xf32> to vector<128x32xbf16>
    %c0_10 = arith.constant 0 : index
    %c0_11 = arith.constant 0 : index
    %12 = vector.load %arg7[%c0_10, %c0_11] : memref<128x32xbf16, #tpu.memory_space<vmem>>, vector<128x32xbf16>
    tpu.vector_store %arg7[%c0_10, %c0_11], %11 {strides = array<i32>} : memref<128x32xbf16, #tpu.memory_space<vmem>>, vector<128x32xbf16>,
    %13 = arith.truncf %10 : vector<128x32xf32> to vector<128x32xbf16>
    %c0_12 = arith.constant 0 : index
    %c0_13 = arith.constant 0 : index
    %14 = vector.load %arg5[%c0_12, %c0_13] : memref<32x1xbf16, #tpu.memory_space<vmem>>, vector<32x1xbf16>
    %cst_14 = arith.constant dense<0.000000e+00> : vector<128x1xf32>
    %15 = tpu.matmul %13, %14, %cst_14 {dimension_numbers = #tpu.dot_dimension_numbers<[1], [0], [0], [1], [0, 0, 1, 1], [], []>} : vector<128x32xbf16>, vector<32x1xbf16>, vector<128x1xf32> -> vector<128x1xf32>
    %c0_15 = arith.constant 0 : index
    %c0_16 = arith.constant 0 : index
    %16 = vector.load %arg6[%c0_15, %c0_16] : memref<1x1xf32, #tpu.memory_space<vmem>>, vector<1x1xf32>
    %17 = vector.broadcast %16 : vector<1x1xf32> to vector<128x1xf32>
    %18 = arith.addf %15, %17 : vector<128x1xf32>
    %c0_17 = arith.constant 0 : index
    %c0_18 = arith.constant 0 : index
    %19 = vector.load %arg8[%c0_17, %c0_18] : memref<128x1xf32, #tpu.memory_space<vmem>>, vector<128x1xf32>
    tpu.vector_store %arg8[%c0_17, %c0_18], %18 {strides = array<i32>} : memref<128x1xf32, #tpu.memory_space<vmem>>, vector<128x1xf32>,
    return
  }
  func.func @transform_0(%arg0: i32) -> (i32, i32) {
    %c0_i32 = arith.constant 0 : i32
    %c0_i32_0 = arith.constant 0 : i32
    return %arg0, %c0_i32 : i32, i32
  }
  func.func @transform_1(%arg0: i32) -> (i32, i32) {
    %c0_i32 = arith.constant 0 : i32
    %c0_i32_0 = arith.constant 0 : i32
    return %arg0, %c0_i32 : i32, i32
  }
  func.func @transform_2(%arg0: i32) -> (i32, i32) {
    %c0_i32 = arith.constant 0 : i32
    %c0_i32_0 = arith.constant 0 : i32
    %c0_i32_1 = arith.constant 0 : i32
    return %c0_i32, %c0_i32_0 : i32, i32
  }
  func.func @transform_3(%arg0: i32) -> (i32, i32) {
    %c0_i32 = arith.constant 0 : i32
    %c0_i32_0 = arith.constant 0 : i32
    %c0_i32_1 = arith.constant 0 : i32
    return %c0_i32, %c0_i32_0 : i32, i32
  }
  func.func @transform_4(%arg0: i32) -> (i32, i32) {
    %c0_i32 = arith.constant 0 : i32
    %c0_i32_0 = arith.constant 0 : i32
    %c0_i32_1 = arith.constant 0 : i32
    return %c0_i32, %c0_i32_0 : i32, i32
  }
  func.func @transform_5(%arg0: i32) -> (i32, i32) {
    %c0_i32 = arith.constant 0 : i32
    %c0_i32_0 = arith.constant 0 : i32
    %c0_i32_1 = arith.constant 0 : i32
    return %c0_i32, %c0_i32_0 : i32, i32
  }
  func.func @transform_6(%arg0: i32) -> (i32, i32) {
    %c0_i32 = arith.constant 0 : i32
    %c0_i32_0 = arith.constant 0 : i32
    return %arg0, %c0_i32 : i32, i32
  }
  func.func @transform_7(%arg0: i32) -> (i32, i32) {
    %c0_i32 = arith.constant 0 : i32
    %c0_i32_0 = arith.constant 0 : i32
    return %arg0, %c0_i32 : i32, i32
  }
}

module attributes {stable_mosaic.version = 11 : i64} {
  func.func @_conv_gemm_kernel(%arg0: i32, %arg1: memref<32x288xbf16, #tpu.memory_space<vmem>>, %arg2: memref<288x32xbf16, #tpu.memory_space<vmem>>, %arg3: memref<1x32xf32, #tpu.memory_space<vmem>>, %arg4: memref<32x32xbf16, #tpu.memory_space<vmem>>) attributes {dimension_semantics = [#tpu.dimension_semantics<parallel>], iteration_bounds = array<i64: 1>, scalar_prefetch = 0 : i64, scratch_operands = 0 : i64, tpu.core_type = #tpu.core_type<tc>, window_params = [{transform_indices = @transform_0, window_bounds = array<i64: 32, 288>}, {pipeline_mode = #tpu.pipeline_mode<synchronous>, transform_indices = @transform_1, window_bounds = array<i64: 288, 32>}, {pipeline_mode = #tpu.pipeline_mode<synchronous>, transform_indices = @transform_2, window_bounds = array<i64: 1, 32>}, {transform_indices = @transform_3, window_bounds = array<i64: 32, 32>}]} {
    %c0 = arith.constant 0 : index
    %c0_0 = arith.constant 0 : index
    %0 = vector.load %arg1[%c0, %c0_0] : memref<32x288xbf16, #tpu.memory_space<vmem>>, vector<32x288xbf16>
    %c0_1 = arith.constant 0 : index
    %c0_2 = arith.constant 0 : index
    %1 = vector.load %arg2[%c0_1, %c0_2] : memref<288x32xbf16, #tpu.memory_space<vmem>>, vector<288x32xbf16>
    %cst = arith.constant dense<0.000000e+00> : vector<32x32xf32>
    %2 = tpu.matmul %0, %1, %cst {dimension_numbers = #tpu.dot_dimension_numbers<[1], [0], [0], [1], [0, 0, 1, 1], [], []>} : vector<32x288xbf16>, vector<288x32xbf16>, vector<32x32xf32> -> vector<32x32xf32>
    %c0_3 = arith.constant 0 : index
    %c0_4 = arith.constant 0 : index
    %3 = vector.load %arg3[%c0_3, %c0_4] : memref<1x32xf32, #tpu.memory_space<vmem>>, vector<1x32xf32>
    %4 = vector.broadcast %3 : vector<1x32xf32> to vector<32x32xf32>
    %5 = arith.addf %2, %4 : vector<32x32xf32>
    %cst_5 = arith.constant 0.000000e+00 : f32
    %6 = vector.broadcast %cst_5 : f32 to vector<32x32xf32>
    %7 = arith.maximumf %5, %6 : vector<32x32xf32>
    %8 = arith.truncf %7 : vector<32x32xf32> to vector<32x32xbf16>
    %c0_6 = arith.constant 0 : index
    %c0_7 = arith.constant 0 : index
    %9 = vector.load %arg4[%c0_6, %c0_7] : memref<32x32xbf16, #tpu.memory_space<vmem>>, vector<32x32xbf16>
    tpu.vector_store %arg4[%c0_6, %c0_7], %8 {strides = array<i32>} : memref<32x32xbf16, #tpu.memory_space<vmem>>, vector<32x32xbf16>,
    return
  }
  func.func @transform_0(%arg0: i32) -> (i32, i32) {
    %c0_i32 = arith.constant 0 : i32
    %c0_i32_0 = arith.constant 0 : i32
    return %arg0, %c0_i32 : i32, i32
  }
  func.func @transform_1(%arg0: i32) -> (i32, i32) {
    %c0_i32 = arith.constant 0 : i32
    %c0_i32_0 = arith.constant 0 : i32
    %c0_i32_1 = arith.constant 0 : i32
    return %c0_i32, %c0_i32_0 : i32, i32
  }
  func.func @transform_2(%arg0: i32) -> (i32, i32) {
    %c0_i32 = arith.constant 0 : i32
    %c0_i32_0 = arith.constant 0 : i32
    %c0_i32_1 = arith.constant 0 : i32
    return %c0_i32, %c0_i32_0 : i32, i32
  }
  func.func @transform_3(%arg0: i32) -> (i32, i32) {
    %c0_i32 = arith.constant 0 : i32
    %c0_i32_0 = arith.constant 0 : i32
    return %arg0, %c0_i32 : i32, i32
  }
}

module attributes {stable_mosaic.version = 11 : i64} {
  func.func @_res_tail_kernel(%arg0: i32, %arg1: memref<32x288xbf16, #tpu.memory_space<vmem>>, %arg2: memref<32x32xbf16, #tpu.memory_space<vmem>>, %arg3: memref<288x32xbf16, #tpu.memory_space<vmem>>, %arg4: memref<32x32xbf16, #tpu.memory_space<vmem>>, %arg5: memref<32x1xbf16, #tpu.memory_space<vmem>>, %arg6: memref<1x1xf32, #tpu.memory_space<vmem>>, %arg7: memref<32x32xbf16, #tpu.memory_space<vmem>>, %arg8: memref<32x1xf32, #tpu.memory_space<vmem>>) attributes {dimension_semantics = [#tpu.dimension_semantics<parallel>], iteration_bounds = array<i64: 1>, scalar_prefetch = 0 : i64, scratch_operands = 0 : i64, tpu.core_type = #tpu.core_type<tc>, window_params = [{transform_indices = @transform_0, window_bounds = array<i64: 32, 288>}, {transform_indices = @transform_1, window_bounds = array<i64: 32, 32>}, {pipeline_mode = #tpu.pipeline_mode<synchronous>, transform_indices = @transform_2, window_bounds = array<i64: 288, 32>}, {pipeline_mode = #tpu.pipeline_mode<synchronous>, transform_indices = @transform_3, window_bounds = array<i64: 32, 32>}, {pipeline_mode = #tpu.pipeline_mode<synchronous>, transform_indices = @transform_4, window_bounds = array<i64: 32, 1>}, {pipeline_mode = #tpu.pipeline_mode<synchronous>, transform_indices = @transform_5, window_bounds = array<i64: 1, 1>}, {transform_indices = @transform_6, window_bounds = array<i64: 32, 32>}, {transform_indices = @transform_7, window_bounds = array<i64: 32, 1>}]} {
    %c0 = arith.constant 0 : index
    %c0_0 = arith.constant 0 : index
    %0 = vector.load %arg1[%c0, %c0_0] : memref<32x288xbf16, #tpu.memory_space<vmem>>, vector<32x288xbf16>
    %c0_1 = arith.constant 0 : index
    %c0_2 = arith.constant 0 : index
    %1 = vector.load %arg3[%c0_1, %c0_2] : memref<288x32xbf16, #tpu.memory_space<vmem>>, vector<288x32xbf16>
    %cst = arith.constant dense<0.000000e+00> : vector<32x32xf32>
    %2 = tpu.matmul %0, %1, %cst {dimension_numbers = #tpu.dot_dimension_numbers<[1], [0], [0], [1], [0, 0, 1, 1], [], []>} : vector<32x288xbf16>, vector<288x32xbf16>, vector<32x32xf32> -> vector<32x32xf32>
    %cst_3 = arith.constant 0.000000e+00 : f32
    %3 = vector.broadcast %cst_3 : f32 to vector<32x32xf32>
    %4 = arith.maximumf %2, %3 : vector<32x32xf32>
    %c0_4 = arith.constant 0 : index
    %c0_5 = arith.constant 0 : index
    %5 = vector.load %arg2[%c0_4, %c0_5] : memref<32x32xbf16, #tpu.memory_space<vmem>>, vector<32x32xbf16>
    %c0_6 = arith.constant 0 : index
    %c0_7 = arith.constant 0 : index
    %6 = vector.load %arg4[%c0_6, %c0_7] : memref<32x32xbf16, #tpu.memory_space<vmem>>, vector<32x32xbf16>
    %cst_8 = arith.constant dense<0.000000e+00> : vector<32x32xf32>
    %7 = tpu.matmul %5, %6, %cst_8 {dimension_numbers = #tpu.dot_dimension_numbers<[1], [0], [0], [1], [0, 0, 1, 1], [], []>} : vector<32x32xbf16>, vector<32x32xbf16>, vector<32x32xf32> -> vector<32x32xf32>
    %8 = arith.addf %4, %7 : vector<32x32xf32>
    %cst_9 = arith.constant 0.000000e+00 : f32
    %9 = vector.broadcast %cst_9 : f32 to vector<32x32xf32>
    %10 = arith.maximumf %8, %9 : vector<32x32xf32>
    %11 = arith.truncf %10 : vector<32x32xf32> to vector<32x32xbf16>
    %c0_10 = arith.constant 0 : index
    %c0_11 = arith.constant 0 : index
    %12 = vector.load %arg7[%c0_10, %c0_11] : memref<32x32xbf16, #tpu.memory_space<vmem>>, vector<32x32xbf16>
    tpu.vector_store %arg7[%c0_10, %c0_11], %11 {strides = array<i32>} : memref<32x32xbf16, #tpu.memory_space<vmem>>, vector<32x32xbf16>,
    %13 = arith.truncf %10 : vector<32x32xf32> to vector<32x32xbf16>
    %c0_12 = arith.constant 0 : index
    %c0_13 = arith.constant 0 : index
    %14 = vector.load %arg5[%c0_12, %c0_13] : memref<32x1xbf16, #tpu.memory_space<vmem>>, vector<32x1xbf16>
    %cst_14 = arith.constant dense<0.000000e+00> : vector<32x1xf32>
    %15 = tpu.matmul %13, %14, %cst_14 {dimension_numbers = #tpu.dot_dimension_numbers<[1], [0], [0], [1], [0, 0, 1, 1], [], []>} : vector<32x32xbf16>, vector<32x1xbf16>, vector<32x1xf32> -> vector<32x1xf32>
    %c0_15 = arith.constant 0 : index
    %c0_16 = arith.constant 0 : index
    %16 = vector.load %arg6[%c0_15, %c0_16] : memref<1x1xf32, #tpu.memory_space<vmem>>, vector<1x1xf32>
    %17 = vector.broadcast %16 : vector<1x1xf32> to vector<32x1xf32>
    %18 = arith.addf %15, %17 : vector<32x1xf32>
    %c0_17 = arith.constant 0 : index
    %c0_18 = arith.constant 0 : index
    %19 = vector.load %arg8[%c0_17, %c0_18] : memref<32x1xf32, #tpu.memory_space<vmem>>, vector<32x1xf32>
    tpu.vector_store %arg8[%c0_17, %c0_18], %18 {strides = array<i32>} : memref<32x1xf32, #tpu.memory_space<vmem>>, vector<32x1xf32>,
    return
  }
  func.func @transform_0(%arg0: i32) -> (i32, i32) {
    %c0_i32 = arith.constant 0 : i32
    %c0_i32_0 = arith.constant 0 : i32
    return %arg0, %c0_i32 : i32, i32
  }
  func.func @transform_1(%arg0: i32) -> (i32, i32) {
    %c0_i32 = arith.constant 0 : i32
    %c0_i32_0 = arith.constant 0 : i32
    return %arg0, %c0_i32 : i32, i32
  }
  func.func @transform_2(%arg0: i32) -> (i32, i32) {
    %c0_i32 = arith.constant 0 : i32
    %c0_i32_0 = arith.constant 0 : i32
    %c0_i32_1 = arith.constant 0 : i32
    return %c0_i32, %c0_i32_0 : i32, i32
  }
  func.func @transform_3(%arg0: i32) -> (i32, i32) {
    %c0_i32 = arith.constant 0 : i32
    %c0_i32_0 = arith.constant 0 : i32
    %c0_i32_1 = arith.constant 0 : i32
    return %c0_i32, %c0_i32_0 : i32, i32
  }
  func.func @transform_4(%arg0: i32) -> (i32, i32) {
    %c0_i32 = arith.constant 0 : i32
    %c0_i32_0 = arith.constant 0 : i32
    %c0_i32_1 = arith.constant 0 : i32
    return %c0_i32, %c0_i32_0 : i32, i32
  }
  func.func @transform_5(%arg0: i32) -> (i32, i32) {
    %c0_i32 = arith.constant 0 : i32
    %c0_i32_0 = arith.constant 0 : i32
    %c0_i32_1 = arith.constant 0 : i32
    return %c0_i32, %c0_i32_0 : i32, i32
  }
  func.func @transform_6(%arg0: i32) -> (i32, i32) {
    %c0_i32 = arith.constant 0 : i32
    %c0_i32_0 = arith.constant 0 : i32
    return %arg0, %c0_i32 : i32, i32
  }
  func.func @transform_7(%arg0: i32) -> (i32, i32) {
    %c0_i32 = arith.constant 0 : i32
    %c0_i32_0 = arith.constant 0 : i32
    return %arg0, %c0_i32 : i32, i32
  }
}

module attributes {stable_mosaic.version = 11 : i64} {
  func.func @_conv_gemm_kernel(%arg0: i32, %arg1: memref<8x288xbf16, #tpu.memory_space<vmem>>, %arg2: memref<288x32xbf16, #tpu.memory_space<vmem>>, %arg3: memref<1x32xf32, #tpu.memory_space<vmem>>, %arg4: memref<8x32xbf16, #tpu.memory_space<vmem>>) attributes {dimension_semantics = [#tpu.dimension_semantics<parallel>], iteration_bounds = array<i64: 1>, scalar_prefetch = 0 : i64, scratch_operands = 0 : i64, tpu.core_type = #tpu.core_type<tc>, window_params = [{transform_indices = @transform_0, window_bounds = array<i64: 8, 288>}, {pipeline_mode = #tpu.pipeline_mode<synchronous>, transform_indices = @transform_1, window_bounds = array<i64: 288, 32>}, {pipeline_mode = #tpu.pipeline_mode<synchronous>, transform_indices = @transform_2, window_bounds = array<i64: 1, 32>}, {transform_indices = @transform_3, window_bounds = array<i64: 8, 32>}]} {
    %c0 = arith.constant 0 : index
    %c0_0 = arith.constant 0 : index
    %0 = vector.load %arg1[%c0, %c0_0] : memref<8x288xbf16, #tpu.memory_space<vmem>>, vector<8x288xbf16>
    %c0_1 = arith.constant 0 : index
    %c0_2 = arith.constant 0 : index
    %1 = vector.load %arg2[%c0_1, %c0_2] : memref<288x32xbf16, #tpu.memory_space<vmem>>, vector<288x32xbf16>
    %cst = arith.constant dense<0.000000e+00> : vector<8x32xf32>
    %2 = tpu.matmul %0, %1, %cst {dimension_numbers = #tpu.dot_dimension_numbers<[1], [0], [0], [1], [0, 0, 1, 1], [], []>} : vector<8x288xbf16>, vector<288x32xbf16>, vector<8x32xf32> -> vector<8x32xf32>
    %c0_3 = arith.constant 0 : index
    %c0_4 = arith.constant 0 : index
    %3 = vector.load %arg3[%c0_3, %c0_4] : memref<1x32xf32, #tpu.memory_space<vmem>>, vector<1x32xf32>
    %4 = vector.broadcast %3 : vector<1x32xf32> to vector<8x32xf32>
    %5 = arith.addf %2, %4 : vector<8x32xf32>
    %cst_5 = arith.constant 0.000000e+00 : f32
    %6 = vector.broadcast %cst_5 : f32 to vector<8x32xf32>
    %7 = arith.maximumf %5, %6 : vector<8x32xf32>
    %8 = arith.truncf %7 : vector<8x32xf32> to vector<8x32xbf16>
    %c0_6 = arith.constant 0 : index
    %c0_7 = arith.constant 0 : index
    %9 = vector.load %arg4[%c0_6, %c0_7] : memref<8x32xbf16, #tpu.memory_space<vmem>>, vector<8x32xbf16>
    tpu.vector_store %arg4[%c0_6, %c0_7], %8 {strides = array<i32>} : memref<8x32xbf16, #tpu.memory_space<vmem>>, vector<8x32xbf16>,
    return
  }
  func.func @transform_0(%arg0: i32) -> (i32, i32) {
    %c0_i32 = arith.constant 0 : i32
    %c0_i32_0 = arith.constant 0 : i32
    return %arg0, %c0_i32 : i32, i32
  }
  func.func @transform_1(%arg0: i32) -> (i32, i32) {
    %c0_i32 = arith.constant 0 : i32
    %c0_i32_0 = arith.constant 0 : i32
    %c0_i32_1 = arith.constant 0 : i32
    return %c0_i32, %c0_i32_0 : i32, i32
  }
  func.func @transform_2(%arg0: i32) -> (i32, i32) {
    %c0_i32 = arith.constant 0 : i32
    %c0_i32_0 = arith.constant 0 : i32
    %c0_i32_1 = arith.constant 0 : i32
    return %c0_i32, %c0_i32_0 : i32, i32
  }
  func.func @transform_3(%arg0: i32) -> (i32, i32) {
    %c0_i32 = arith.constant 0 : i32
    %c0_i32_0 = arith.constant 0 : i32
    return %arg0, %c0_i32 : i32, i32
  }
}

module attributes {stable_mosaic.version = 11 : i64} {
  func.func @_res_tail_kernel(%arg0: i32, %arg1: memref<8x288xbf16, #tpu.memory_space<vmem>>, %arg2: memref<8x32xbf16, #tpu.memory_space<vmem>>, %arg3: memref<288x32xbf16, #tpu.memory_space<vmem>>, %arg4: memref<32x32xbf16, #tpu.memory_space<vmem>>, %arg5: memref<32x1xbf16, #tpu.memory_space<vmem>>, %arg6: memref<1x1xf32, #tpu.memory_space<vmem>>, %arg7: memref<8x32xbf16, #tpu.memory_space<vmem>>, %arg8: memref<8x1xf32, #tpu.memory_space<vmem>>) attributes {dimension_semantics = [#tpu.dimension_semantics<parallel>], iteration_bounds = array<i64: 1>, scalar_prefetch = 0 : i64, scratch_operands = 0 : i64, tpu.core_type = #tpu.core_type<tc>, window_params = [{transform_indices = @transform_0, window_bounds = array<i64: 8, 288>}, {transform_indices = @transform_1, window_bounds = array<i64: 8, 32>}, {pipeline_mode = #tpu.pipeline_mode<synchronous>, transform_indices = @transform_2, window_bounds = array<i64: 288, 32>}, {pipeline_mode = #tpu.pipeline_mode<synchronous>, transform_indices = @transform_3, window_bounds = array<i64: 32, 32>}, {pipeline_mode = #tpu.pipeline_mode<synchronous>, transform_indices = @transform_4, window_bounds = array<i64: 32, 1>}, {pipeline_mode = #tpu.pipeline_mode<synchronous>, transform_indices = @transform_5, window_bounds = array<i64: 1, 1>}, {transform_indices = @transform_6, window_bounds = array<i64: 8, 32>}, {transform_indices = @transform_7, window_bounds = array<i64: 8, 1>}]} {
    %c0 = arith.constant 0 : index
    %c0_0 = arith.constant 0 : index
    %0 = vector.load %arg1[%c0, %c0_0] : memref<8x288xbf16, #tpu.memory_space<vmem>>, vector<8x288xbf16>
    %c0_1 = arith.constant 0 : index
    %c0_2 = arith.constant 0 : index
    %1 = vector.load %arg3[%c0_1, %c0_2] : memref<288x32xbf16, #tpu.memory_space<vmem>>, vector<288x32xbf16>
    %cst = arith.constant dense<0.000000e+00> : vector<8x32xf32>
    %2 = tpu.matmul %0, %1, %cst {dimension_numbers = #tpu.dot_dimension_numbers<[1], [0], [0], [1], [0, 0, 1, 1], [], []>} : vector<8x288xbf16>, vector<288x32xbf16>, vector<8x32xf32> -> vector<8x32xf32>
    %cst_3 = arith.constant 0.000000e+00 : f32
    %3 = vector.broadcast %cst_3 : f32 to vector<8x32xf32>
    %4 = arith.maximumf %2, %3 : vector<8x32xf32>
    %c0_4 = arith.constant 0 : index
    %c0_5 = arith.constant 0 : index
    %5 = vector.load %arg2[%c0_4, %c0_5] : memref<8x32xbf16, #tpu.memory_space<vmem>>, vector<8x32xbf16>
    %c0_6 = arith.constant 0 : index
    %c0_7 = arith.constant 0 : index
    %6 = vector.load %arg4[%c0_6, %c0_7] : memref<32x32xbf16, #tpu.memory_space<vmem>>, vector<32x32xbf16>
    %cst_8 = arith.constant dense<0.000000e+00> : vector<8x32xf32>
    %7 = tpu.matmul %5, %6, %cst_8 {dimension_numbers = #tpu.dot_dimension_numbers<[1], [0], [0], [1], [0, 0, 1, 1], [], []>} : vector<8x32xbf16>, vector<32x32xbf16>, vector<8x32xf32> -> vector<8x32xf32>
    %8 = arith.addf %4, %7 : vector<8x32xf32>
    %cst_9 = arith.constant 0.000000e+00 : f32
    %9 = vector.broadcast %cst_9 : f32 to vector<8x32xf32>
    %10 = arith.maximumf %8, %9 : vector<8x32xf32>
    %11 = arith.truncf %10 : vector<8x32xf32> to vector<8x32xbf16>
    %c0_10 = arith.constant 0 : index
    %c0_11 = arith.constant 0 : index
    %12 = vector.load %arg7[%c0_10, %c0_11] : memref<8x32xbf16, #tpu.memory_space<vmem>>, vector<8x32xbf16>
    tpu.vector_store %arg7[%c0_10, %c0_11], %11 {strides = array<i32>} : memref<8x32xbf16, #tpu.memory_space<vmem>>, vector<8x32xbf16>,
    %13 = arith.truncf %10 : vector<8x32xf32> to vector<8x32xbf16>
    %c0_12 = arith.constant 0 : index
    %c0_13 = arith.constant 0 : index
    %14 = vector.load %arg5[%c0_12, %c0_13] : memref<32x1xbf16, #tpu.memory_space<vmem>>, vector<32x1xbf16>
    %cst_14 = arith.constant dense<0.000000e+00> : vector<8x1xf32>
    %15 = tpu.matmul %13, %14, %cst_14 {dimension_numbers = #tpu.dot_dimension_numbers<[1], [0], [0], [1], [0, 0, 1, 1], [], []>} : vector<8x32xbf16>, vector<32x1xbf16>, vector<8x1xf32> -> vector<8x1xf32>
    %c0_15 = arith.constant 0 : index
    %c0_16 = arith.constant 0 : index
    %16 = vector.load %arg6[%c0_15, %c0_16] : memref<1x1xf32, #tpu.memory_space<vmem>>, vector<1x1xf32>
    %17 = vector.broadcast %16 : vector<1x1xf32> to vector<8x1xf32>
    %18 = arith.addf %15, %17 : vector<8x1xf32>
    %c0_17 = arith.constant 0 : index
    %c0_18 = arith.constant 0 : index
    %19 = vector.load %arg8[%c0_17, %c0_18] : memref<8x1xf32, #tpu.memory_space<vmem>>, vector<8x1xf32>
    tpu.vector_store %arg8[%c0_17, %c0_18], %18 {strides = array<i32>} : memref<8x1xf32, #tpu.memory_space<vmem>>, vector<8x1xf32>,
    return
  }
  func.func @transform_0(%arg0: i32) -> (i32, i32) {
    %c0_i32 = arith.constant 0 : i32
    %c0_i32_0 = arith.constant 0 : i32
    return %arg0, %c0_i32 : i32, i32
  }
  func.func @transform_1(%arg0: i32) -> (i32, i32) {
    %c0_i32 = arith.constant 0 : i32
    %c0_i32_0 = arith.constant 0 : i32
    return %arg0, %c0_i32 : i32, i32
  }
  func.func @transform_2(%arg0: i32) -> (i32, i32) {
    %c0_i32 = arith.constant 0 : i32
    %c0_i32_0 = arith.constant 0 : i32
    %c0_i32_1 = arith.constant 0 : i32
    return %c0_i32, %c0_i32_0 : i32, i32
  }
  func.func @transform_3(%arg0: i32) -> (i32, i32) {
    %c0_i32 = arith.constant 0 : i32
    %c0_i32_0 = arith.constant 0 : i32
    %c0_i32_1 = arith.constant 0 : i32
    return %c0_i32, %c0_i32_0 : i32, i32
  }
  func.func @transform_4(%arg0: i32) -> (i32, i32) {
    %c0_i32 = arith.constant 0 : i32
    %c0_i32_0 = arith.constant 0 : i32
    %c0_i32_1 = arith.constant 0 : i32
    return %c0_i32, %c0_i32_0 : i32, i32
  }
  func.func @transform_5(%arg0: i32) -> (i32, i32) {
    %c0_i32 = arith.constant 0 : i32
    %c0_i32_0 = arith.constant 0 : i32
    %c0_i32_1 = arith.constant 0 : i32
    return %c0_i32, %c0_i32_0 : i32, i32
  }
  func.func @transform_6(%arg0: i32) -> (i32, i32) {
    %c0_i32 = arith.constant 0 : i32
    %c0_i32_0 = arith.constant 0 : i32
    return %arg0, %c0_i32 : i32, i32
  }
  func.func @transform_7(%arg0: i32) -> (i32, i32) {
    %c0_i32 = arith.constant 0 : i32
    %c0_i32_0 = arith.constant 0 : i32
    return %arg0, %c0_i32 : i32, i32
  }
}

module attributes {stable_mosaic.version = 11 : i64} {
  func.func @_combine_kernel(%arg0: i32, %arg1: memref<4xf32, #tpu.memory_space<smem>>, %arg2: memref<1x16x16xf32, #tpu.memory_space<vmem>>, %arg3: memref<1x8x8xf32, #tpu.memory_space<vmem>>, %arg4: memref<1x4x4xf32, #tpu.memory_space<vmem>>, %arg5: memref<1x2x2xf32, #tpu.memory_space<vmem>>, %arg6: memref<16x8xf32, #tpu.memory_space<vmem>>, %arg7: memref<8x16xf32, #tpu.memory_space<vmem>>, %arg8: memref<16x4xf32, #tpu.memory_space<vmem>>, %arg9: memref<4x16xf32, #tpu.memory_space<vmem>>, %arg10: memref<16x2xf32, #tpu.memory_space<vmem>>, %arg11: memref<2x16xf32, #tpu.memory_space<vmem>>, %arg12: memref<1x16x16xf32, #tpu.memory_space<vmem>>) attributes {dimension_semantics = [#tpu.dimension_semantics<parallel>], iteration_bounds = array<i64: 2>, scalar_prefetch = 0 : i64, scratch_operands = 0 : i64, tpu.core_type = #tpu.core_type<tc>, window_params = [{transform_indices = @transform_0, window_bounds = array<i64: 4>}, {transform_indices = @transform_1, window_bounds = array<i64: 1, 16, 16>}, {transform_indices = @transform_2, window_bounds = array<i64: 1, 8, 8>}, {transform_indices = @transform_3, window_bounds = array<i64: 1, 4, 4>}, {transform_indices = @transform_4, window_bounds = array<i64: 1, 2, 2>}, {pipeline_mode = #tpu.pipeline_mode<synchronous>, transform_indices = @transform_5, window_bounds = array<i64: 16, 8>}, {pipeline_mode = #tpu.pipeline_mode<synchronous>, transform_indices = @transform_6, window_bounds = array<i64: 8, 16>}, {pipeline_mode = #tpu.pipeline_mode<synchronous>, transform_indices = @transform_7, window_bounds = array<i64: 16, 4>}, {pipeline_mode = #tpu.pipeline_mode<synchronous>, transform_indices = @transform_8, window_bounds = array<i64: 4, 16>}, {pipeline_mode = #tpu.pipeline_mode<synchronous>, transform_indices = @transform_9, window_bounds = array<i64: 16, 2>}, {pipeline_mode = #tpu.pipeline_mode<synchronous>, transform_indices = @transform_10, window_bounds = array<i64: 2, 16>}, {transform_indices = @transform_11, window_bounds = array<i64: 1, 16, 16>}]} {
    %c0 = arith.constant 0 : index
    %0 = memref.load %arg1[%c0] : memref<4xf32, #tpu.memory_space<smem>>
    %c0_0 = arith.constant 0 : index
    %c0_1 = arith.constant 0 : index
    %c0_2 = arith.constant 0 : index
    %1 = vector.load %arg2[%c0_0, %c0_1, %c0_2] : memref<1x16x16xf32, #tpu.memory_space<vmem>>, vector<1x16x16xf32>
    %2 = vector.shape_cast %1 : vector<1x16x16xf32> to vector<16x16xf32>
    %3 = vector.broadcast %0 : f32 to vector<16x16xf32>
    %4 = arith.mulf %3, %2 : vector<16x16xf32>
    %c1 = arith.constant 1 : index
    %5 = memref.load %arg1[%c1] : memref<4xf32, #tpu.memory_space<smem>>
    %c0_3 = arith.constant 0 : index
    %c0_4 = arith.constant 0 : index
    %c0_5 = arith.constant 0 : index
    %6 = vector.load %arg3[%c0_3, %c0_4, %c0_5] : memref<1x8x8xf32, #tpu.memory_space<vmem>>, vector<1x8x8xf32>
    %7 = vector.shape_cast %6 : vector<1x8x8xf32> to vector<8x8xf32>
    %c0_6 = arith.constant 0 : index
    %c0_7 = arith.constant 0 : index
    %8 = vector.load %arg7[%c0_6, %c0_7] : memref<8x16xf32, #tpu.memory_space<vmem>>, vector<8x16xf32>
    %cst = arith.constant dense<0.000000e+00> : vector<8x16xf32>
    %9 = tpu.matmul %7, %8, %cst {dimension_numbers = #tpu.dot_dimension_numbers<[1], [0], [0], [1], [0, 0, 1, 1], [], []>} : vector<8x8xf32>, vector<8x16xf32>, vector<8x16xf32> -> vector<8x16xf32>
    %c0_8 = arith.constant 0 : index
    %c0_9 = arith.constant 0 : index
    %10 = vector.load %arg6[%c0_8, %c0_9] : memref<16x8xf32, #tpu.memory_space<vmem>>, vector<16x8xf32>
    %cst_10 = arith.constant dense<0.000000e+00> : vector<16x16xf32>
    %11 = tpu.matmul %10, %9, %cst_10 {dimension_numbers = #tpu.dot_dimension_numbers<[1], [0], [0], [1], [0, 0, 1, 1], [], []>} : vector<16x8xf32>, vector<8x16xf32>, vector<16x16xf32> -> vector<16x16xf32>
    %12 = vector.broadcast %5 : f32 to vector<16x16xf32>
    %13 = arith.mulf %12, %11 : vector<16x16xf32>
    %14 = arith.addf %4, %13 : vector<16x16xf32>
    %c2 = arith.constant 2 : index
    %15 = memref.load %arg1[%c2] : memref<4xf32, #tpu.memory_space<smem>>
    %c0_11 = arith.constant 0 : index
    %c0_12 = arith.constant 0 : index
    %c0_13 = arith.constant 0 : index
    %16 = vector.load %arg4[%c0_11, %c0_12, %c0_13] : memref<1x4x4xf32, #tpu.memory_space<vmem>>, vector<1x4x4xf32>
    %17 = vector.shape_cast %16 : vector<1x4x4xf32> to vector<4x4xf32>
    %c0_14 = arith.constant 0 : index
    %c0_15 = arith.constant 0 : index
    %18 = vector.load %arg9[%c0_14, %c0_15] : memref<4x16xf32, #tpu.memory_space<vmem>>, vector<4x16xf32>
    %cst_16 = arith.constant dense<0.000000e+00> : vector<4x16xf32>
    %19 = tpu.matmul %17, %18, %cst_16 {dimension_numbers = #tpu.dot_dimension_numbers<[1], [0], [0], [1], [0, 0, 1, 1], [], []>} : vector<4x4xf32>, vector<4x16xf32>, vector<4x16xf32> -> vector<4x16xf32>
    %c0_17 = arith.constant 0 : index
    %c0_18 = arith.constant 0 : index
    %20 = vector.load %arg8[%c0_17, %c0_18] : memref<16x4xf32, #tpu.memory_space<vmem>>, vector<16x4xf32>
    %cst_19 = arith.constant dense<0.000000e+00> : vector<16x16xf32>
    %21 = tpu.matmul %20, %19, %cst_19 {dimension_numbers = #tpu.dot_dimension_numbers<[1], [0], [0], [1], [0, 0, 1, 1], [], []>} : vector<16x4xf32>, vector<4x16xf32>, vector<16x16xf32> -> vector<16x16xf32>
    %22 = vector.broadcast %15 : f32 to vector<16x16xf32>
    %23 = arith.mulf %22, %21 : vector<16x16xf32>
    %24 = arith.addf %14, %23 : vector<16x16xf32>
    %c3 = arith.constant 3 : index
    %25 = memref.load %arg1[%c3] : memref<4xf32, #tpu.memory_space<smem>>
    %c0_20 = arith.constant 0 : index
    %c0_21 = arith.constant 0 : index
    %c0_22 = arith.constant 0 : index
    %26 = vector.load %arg5[%c0_20, %c0_21, %c0_22] : memref<1x2x2xf32, #tpu.memory_space<vmem>>, vector<1x2x2xf32>
    %27 = vector.shape_cast %26 : vector<1x2x2xf32> to vector<2x2xf32>
    %c0_23 = arith.constant 0 : index
    %c0_24 = arith.constant 0 : index
    %28 = vector.load %arg11[%c0_23, %c0_24] : memref<2x16xf32, #tpu.memory_space<vmem>>, vector<2x16xf32>
    %cst_25 = arith.constant dense<0.000000e+00> : vector<2x16xf32>
    %29 = tpu.matmul %27, %28, %cst_25 {dimension_numbers = #tpu.dot_dimension_numbers<[1], [0], [0], [1], [0, 0, 1, 1], [], []>} : vector<2x2xf32>, vector<2x16xf32>, vector<2x16xf32> -> vector<2x16xf32>
    %c0_26 = arith.constant 0 : index
    %c0_27 = arith.constant 0 : index
    %30 = vector.load %arg10[%c0_26, %c0_27] : memref<16x2xf32, #tpu.memory_space<vmem>>, vector<16x2xf32>
    %cst_28 = arith.constant dense<0.000000e+00> : vector<16x16xf32>
    %31 = tpu.matmul %30, %29, %cst_28 {dimension_numbers = #tpu.dot_dimension_numbers<[1], [0], [0], [1], [0, 0, 1, 1], [], []>} : vector<16x2xf32>, vector<2x16xf32>, vector<16x16xf32> -> vector<16x16xf32>
    %32 = vector.broadcast %25 : f32 to vector<16x16xf32>
    %33 = arith.mulf %32, %31 : vector<16x16xf32>
    %34 = arith.addf %24, %33 : vector<16x16xf32>
    %cst_29 = arith.constant 5.000000e-01 : f32
    %35 = vector.broadcast %cst_29 : f32 to vector<16x16xf32>
    %36 = arith.mulf %35, %34 : vector<16x16xf32>
    %37 = math.tanh %36 : vector<16x16xf32>
    %cst_30 = arith.constant 1.000000e+00 : f32
    %38 = vector.broadcast %cst_30 : f32 to vector<16x16xf32>
    %39 = arith.addf %37, %38 : vector<16x16xf32>
    %cst_31 = arith.constant 5.000000e-01 : f32
    %40 = vector.broadcast %cst_31 : f32 to vector<16x16xf32>
    %41 = arith.mulf %40, %39 : vector<16x16xf32>
    %c0_32 = arith.constant 0 : index
    %c0_33 = arith.constant 0 : index
    %c0_34 = arith.constant 0 : index
    %42 = vector.load %arg12[%c0_32, %c0_33, %c0_34] : memref<1x16x16xf32, #tpu.memory_space<vmem>>, vector<1x16x16xf32>
    %43 = vector.shape_cast %42 : vector<1x16x16xf32> to vector<16x16xf32>
    %44 = vector.shape_cast %41 : vector<16x16xf32> to vector<1x16x16xf32>
    tpu.vector_store %arg12[%c0_32, %c0_33, %c0_34], %44 {strides = array<i32>} : memref<1x16x16xf32, #tpu.memory_space<vmem>>, vector<1x16x16xf32>,
    return
  }
  func.func @transform_0(%arg0: i32) -> i32 {
    %c0_i32 = arith.constant 0 : i32
    %c0_i32_0 = arith.constant 0 : i32
    return %c0_i32 : i32
  }
  func.func @transform_1(%arg0: i32) -> (i32, i32, i32) {
    %c0_i32 = arith.constant 0 : i32
    %c0_i32_0 = arith.constant 0 : i32
    %c0_i32_1 = arith.constant 0 : i32
    return %arg0, %c0_i32, %c0_i32_0 : i32, i32, i32
  }
  func.func @transform_2(%arg0: i32) -> (i32, i32, i32) {
    %c0_i32 = arith.constant 0 : i32
    %c0_i32_0 = arith.constant 0 : i32
    %c0_i32_1 = arith.constant 0 : i32
    return %arg0, %c0_i32, %c0_i32_0 : i32, i32, i32
  }
  func.func @transform_3(%arg0: i32) -> (i32, i32, i32) {
    %c0_i32 = arith.constant 0 : i32
    %c0_i32_0 = arith.constant 0 : i32
    %c0_i32_1 = arith.constant 0 : i32
    return %arg0, %c0_i32, %c0_i32_0 : i32, i32, i32
  }
  func.func @transform_4(%arg0: i32) -> (i32, i32, i32) {
    %c0_i32 = arith.constant 0 : i32
    %c0_i32_0 = arith.constant 0 : i32
    %c0_i32_1 = arith.constant 0 : i32
    return %arg0, %c0_i32, %c0_i32_0 : i32, i32, i32
  }
  func.func @transform_5(%arg0: i32) -> (i32, i32) {
    %c0_i32 = arith.constant 0 : i32
    %c0_i32_0 = arith.constant 0 : i32
    %c0_i32_1 = arith.constant 0 : i32
    return %c0_i32, %c0_i32_0 : i32, i32
  }
  func.func @transform_6(%arg0: i32) -> (i32, i32) {
    %c0_i32 = arith.constant 0 : i32
    %c0_i32_0 = arith.constant 0 : i32
    %c0_i32_1 = arith.constant 0 : i32
    return %c0_i32, %c0_i32_0 : i32, i32
  }
  func.func @transform_7(%arg0: i32) -> (i32, i32) {
    %c0_i32 = arith.constant 0 : i32
    %c0_i32_0 = arith.constant 0 : i32
    %c0_i32_1 = arith.constant 0 : i32
    return %c0_i32, %c0_i32_0 : i32, i32
  }
  func.func @transform_8(%arg0: i32) -> (i32, i32) {
    %c0_i32 = arith.constant 0 : i32
    %c0_i32_0 = arith.constant 0 : i32
    %c0_i32_1 = arith.constant 0 : i32
    return %c0_i32, %c0_i32_0 : i32, i32
  }
  func.func @transform_9(%arg0: i32) -> (i32, i32) {
    %c0_i32 = arith.constant 0 : i32
    %c0_i32_0 = arith.constant 0 : i32
    %c0_i32_1 = arith.constant 0 : i32
    return %c0_i32, %c0_i32_0 : i32, i32
  }
  func.func @transform_10(%arg0: i32) -> (i32, i32) {
    %c0_i32 = arith.constant 0 : i32
    %c0_i32_0 = arith.constant 0 : i32
    %c0_i32_1 = arith.constant 0 : i32
    return %c0_i32, %c0_i32_0 : i32, i32
  }
  func.func @transform_11(%arg0: i32) -> (i32, i32, i32) {
    %c0_i32 = arith.constant 0 : i32
    %c0_i32_0 = arith.constant 0 : i32
    %c0_i32_1 = arith.constant 0 : i32
    return %arg0, %c0_i32, %c0_i32_0 : i32, i32, i32
  }
}

</mosaic_0001>

<bundles_post_ra>
// kernel: deep_supervision_forward.10
= control target key start
LH: loop header
LB: loop body
LE: loop exit
PB: predicated region body
PF: predicated region fallthrough
CT: control target
= control target key end

     0   :  { %vm358_vm0 = vcmask 1044480   ;;  %vm359_vm1 = vcmask 1045504   ;;  %v1315_v1 = vmov 65535   ;;  %vm261_vm2 = vcmask 220160   ;;  %s1795_s1 = inlined_call_operand.vmem [shape: bf16[27,32], index: 1, kind: input, shape index: {}]   ;;  %s1796_s0 = inlined_call_operand.vmem [shape: bf16[512,27], index: 0, kind: input, shape index: {}]   ;;  %s1797_s2 = inlined_call_operand.vmem [shape: f32[1,32], index: 2, kind: input, shape index: {}]   ;;  %s1798_s3 = inlined_call_operand.vmem [shape: bf16[512,32], index: 3, kind: output, shape index: {}]  }
   0x1   :  { %v1281_v0 = vld [vmem:[%s1795_s1 + $0x8] sm:$0x3f]   ;;  %v360_v2 = vsel %vm358_vm0, 4294967295, %v1315_v1  ;;  %v1283_v4 = vld [vmem:[%s1796_s0] sm:$0xff]   ;;  %v1287_v10 = vld [vmem:[%s1796_s0 + $0x10] sm:$0xff]   ;;  %vm910_vm3 = vcmask 257024  }
   0x2   :  { %v361_v3 = vsel %vm359_vm1, %v360_v2, 0  ;;  %v1282_v6 = vld [vmem:[%s1795_s1] sm:$0xff]   ;;  %1212 = vmatprep.mubr.msk.bf16.mxu0 %vm261_vm2, %v1283_v4  ;;  %v1285_v8 = vld [vmem:[%s1796_s0 + $0x8] sm:$0xff]   ;;  %v1288_v11 = vld [vmem:[%s1796_s0 + $0x90] sm:$0xff]  }
   0x3   :  { %v363_v5 = vand.u32 %v1281_v0, %v361_v3  ;;  %v1284_v7 = vld [vmem:[%s1796_s0 + $0x80] sm:$0xff]   ;;  %v1286_v9 = vld [vmem:[%s1796_s0 + $0x88] sm:$0xff]   ;;  %v1289_v12 = vld [vmem:[%s1796_s0 + $0x18] sm:$0xff]  }
   0x4   :  { %1244 = vmatprep.mubr.msk.bf16.mxu1 %vm261_vm2, %v1284_v7  ;;  %v1290_v13 = vld [vmem:[%s1796_s0 + $0x98] sm:$0xff]   ;;  %v1291_v14 = vld [vmem:[%s1796_s0 + $0x20] sm:$0xff]   ;;  %v1293_v16 = vld [vmem:[%s1796_s0 + $0x28] sm:$0xff]  }
   0x5   :  { %1208 = vmatprep.subr.bf16.mxu0 %v363_v5  ;;  %1276 = vmatprep.subr.bf16.mxu1 %v363_v5  ;;  %v1292_v15 = vld [vmem:[%s1796_s0 + $0xa0] sm:$0xff]   ;;  %v1294_v17 = vld [vmem:[%s1796_s0 + $0xa8] sm:$0xff]   ;;  %v1295_v18 = vld [vmem:[%s1796_s0 + $0x30] sm:$0xff]  }
   0x6   :  { %1209 = vmatpush3.bf16.msra.mxu0 %v363_v5  ;;  %1278 = vmatpush3.bf16.msra.mxu1 %v363_v5  ;;  %v1296_v19 = vld [vmem:[%s1796_s0 + $0xb0] sm:$0xff]   ;;  %v1297_v20 = vld [vmem:[%s1796_s0 + $0x38] sm:$0xff]   ;;  %v1299_v22 = vld [vmem:[%s1796_s0 + $0x40] sm:$0xff]  }
   0x7   :  { %1210 = vmatprep.subr.bf16.mxu0 %v1282_v6  ;;  %1277 = vmatprep.subr.bf16.mxu1 %v1282_v6  ;;  %v1298_v21 = vld [vmem:[%s1796_s0 + $0xb8] sm:$0xff]   ;;  %v1300_v23 = vld [vmem:[%s1796_s0 + $0xc0] sm:$0xff]   ;;  %v1301_v24 = vld [vmem:[%s1796_s0 + $0x48] sm:$0xff]  }
   0x8   :  { %v1302_v25 = vld [vmem:[%s1796_s0 + $0xc8] sm:$0xff]   ;;  %v1303_v26 = vld [vmem:[%s1796_s0 + $0x50] sm:$0xff]   ;;  %v1305_v28 = vld [vmem:[%s1796_s0 + $0x58] sm:$0xff]  }
   0x9   :  { %v1304_v27 = vld [vmem:[%s1796_s0 + $0xd0] sm:$0xff]   ;;  %v1306_v29 = vld [vmem:[%s1796_s0 + $0xd8] sm:$0xff]   ;;  %v1307_v30 = vld [vmem:[%s1796_s0 + $0x60] sm:$0xff]  }
   0xa   :  { %1211 = vmatpush3.bf16.msra.mxu0 %v1282_v6  ;;  %1279 = vmatpush3.bf16.msra.mxu1 %v1282_v6  ;;  %v1308_v31 = vld [vmem:[%s1796_s0 + $0xe0] sm:$0xff]   ;;  %v1309_v32 = vld [vmem:[%s1796_s0 + $0x68] sm:$0xff]   ;;  %v1311_v34 = vld [vmem:[%s1796_s0 + $0x70] sm:$0xff]  }
   0xb   :  { %v1310_v33 = vld [vmem:[%s1796_s0 + $0xe8] sm:$0xff]   ;;  %v1312_v35 = vld [vmem:[%s1796_s0 + $0xf0] sm:$0xff]   ;;  %v1313_v36 = vld [vmem:[%s1796_s0 + $0x78] sm:$0xff]  }
   0xc   :  { %v1314_v37 = vld [vmem:[%s1796_s0 + $0xf8] sm:$0xff]   ;;  %v1473_v38 = vld [vmem:[%s1797_s2] ss:$0 sm:$0xff] }
   0xd   :  { %1213 = vmatmul.mubr.msk.bf16.vlgmr.msra.gmra.mxu0 %vm261_vm2, %v1285_v8  ;;  %1245 = vmatmul.mubr.msk.bf16.vlgmr.msra.gmra.mxu1 %vm261_vm2, %v1286_v9 }
   0xe   :  { %1216 = vmatprep.mubr.msk.bf16.mxu0 %vm261_vm2, %v1287_v10  ;;  %1248 = vmatprep.mubr.msk.bf16.mxu1 %vm261_vm2, %v1288_v11 }
  0x15   :  { %1217 = vmatmul.mubr.msk.bf16.gmra.mxu0 %vm261_vm2, %v1289_v12  ;;  %1249 = vmatmul.mubr.msk.bf16.gmra.mxu1 %vm261_vm2, %v1290_v13 }
  0x16   :  { %1220 = vmatprep.mubr.msk.bf16.mxu0 %vm261_vm2, %v1291_v14  ;;  %1252 = vmatprep.mubr.msk.bf16.mxu1 %vm261_vm2, %v1292_v15 }
  0x1d   :  { %1221 = vmatmul.mubr.msk.bf16.gmra.mxu0 %vm261_vm2, %v1293_v16  ;;  %1253 = vmatmul.mubr.msk.bf16.gmra.mxu1 %vm261_vm2, %v1294_v17 }
  0x1e   :  { %1224 = vmatprep.mubr.msk.bf16.mxu0 %vm261_vm2, %v1295_v18  ;;  %1256 = vmatprep.mubr.msk.bf16.mxu1 %vm261_vm2, %v1296_v19 }
  0x25   :  { %1225 = vmatmul.mubr.msk.bf16.gmra.mxu0 %vm261_vm2, %v1297_v20  ;;  %1257 = vmatmul.mubr.msk.bf16.gmra.mxu1 %vm261_vm2, %v1298_v21 }
  0x26   :  { %1228 = vmatprep.mubr.msk.bf16.mxu0 %vm261_vm2, %v1299_v22  ;;  %1260 = vmatprep.mubr.msk.bf16.mxu1 %vm261_vm2, %v1300_v23 }
  0x2d   :  { %1229 = vmatmul.mubr.msk.bf16.gmra.mxu0 %vm261_vm2, %v1301_v24  ;;  %1261 = vmatmul.mubr.msk.bf16.gmra.mxu1 %vm261_vm2, %v1302_v25 }
  0x2e   :  { %1232 = vmatprep.mubr.msk.bf16.mxu0 %vm261_vm2, %v1303_v26  ;;  %1264 = vmatprep.mubr.msk.bf16.mxu1 %vm261_vm2, %v1304_v27 }
  0x35   :  { %1233 = vmatmul.mubr.msk.bf16.gmra.mxu0 %vm261_vm2, %v1305_v28  ;;  %1265 = vmatmul.mubr.msk.bf16.gmra.mxu1 %vm261_vm2, %v1306_v29 }
  0x36   :  { %1236 = vmatprep.mubr.msk.bf16.mxu0 %vm261_vm2, %v1307_v30  ;;  %1268 = vmatprep.mubr.msk.bf16.mxu1 %vm261_vm2, %v1308_v31 }
  0x3d   :  { %1237 = vmatmul.mubr.msk.bf16.gmra.mxu0 %vm261_vm2, %v1309_v32  ;;  %1269 = vmatmul.mubr.msk.bf16.gmra.mxu1 %vm261_vm2, %v1310_v33 }
  0x3e   :  { %1240 = vmatprep.mubr.msk.bf16.mxu0 %vm261_vm2, %v1311_v34  ;;  %1272 = vmatprep.mubr.msk.bf16.mxu1 %vm261_vm2, %v1312_v35 }
  0x45   :  { %1241 = vmatmul.mubr.msk.bf16.gmra.mxu0 %vm261_vm2, %v1313_v36  ;;  %1273 = vmatmul.mubr.msk.bf16.gmra.mxu1 %vm261_vm2, %v1314_v37 }
  0xcd   :  { %v1214_v39 = vpop.f32.mrf.mxu0  ;;  %v1246_v40 = vpop.f32.mrf.mxu1 }
  0xce   :  { %v408_v41 = vadd.f32 %v1214_v39, %v1473_v38  ;;  %v536_v42 = vadd.f32 %v1246_v40, %v1473_v38 }
  0xcf   :  { %v399_v43 = vpop.f32.mrf.mxu0  ;;  %v527_v44 = vpop.f32.mrf.mxu1 }
  0xd0   :  { %v1112_v45 = vpack.c.bf16 %v408_v41, %v408_v41  ;;  %v1144_v46 = vpack.c.bf16 %v536_v42, %v536_v42  ;;  %v400_v47 = vadd.f32 %v1473_v38, %v399_v43  ;;  %v528_v48 = vadd.f32 %v1473_v38, %v527_v44 }
  0xd1   :  { %v1215_v49 = vpop.f32.mrf.mxu0  ;;  %v1247_v50 = vpop.f32.mrf.mxu1 }
  0xd2   :  { %913 = vst.msk [vmem:[%s1798_s3 + $0x8] sm:$0xf] %vm910_vm3, %v1112_v45  ;;  %945 = vst.msk [vmem:[%s1798_s3 + $0x88] sm:$0xf] %vm910_vm3, %v1144_v46  ;;  %v1110_v51 = vpack.c.bf16 %v400_v47, %v400_v47  ;;  %v1142_v52 = vpack.c.bf16 %v528_v48, %v528_v48  ;;  %v411_v53 = vadd.f32 %v1215_v49, %v1473_v38 }
  0xd3   :  { %v539_v54 = vadd.f32 %v1247_v50, %v1473_v38  ;;  %v402_v55 = vpop.f32.mrf.mxu0  ;;  %v530_v56 = vpop.f32.mrf.mxu1 }
  0xd4   :  { %911 = vst.msk [vmem:[%s1798_s3] sm:$0xf] %vm910_vm3, %v1110_v51  ;;  %943 = vst.msk [vmem:[%s1798_s3 + $0x80] sm:$0xf] %vm910_vm3, %v1142_v52  ;;  %v1113_v57 = vpack.c.bf16 %v411_v53, %v411_v53  ;;  %v403_v59 = vadd.f32 %v1473_v38, %v402_v55  ;;  %v531_v60 = vadd.f32 %v1473_v38, %v530_v56 }
  0xd5   :  { %v1145_v58 = vpack.c.bf16 %v539_v54, %v539_v54  ;;  %v1218_v61 = vpop.f32.mrf.mxu0  ;;  %v1250_v62 = vpop.f32.mrf.mxu1 }
  0xd6   :  { %914 = vst.msk [vmem:[%s1798_s3 + $0xc] sm:$0xf] %vm910_vm3, %v1113_v57  ;;  %v1111_v63 = vpack.c.bf16 %v403_v59, %v403_v59  ;;  %v1143_v0 = vpack.c.bf16 %v531_v60, %v531_v60  ;;  %v424_v1 = vadd.f32 %v1218_v61, %v1473_v38  ;;  %v552_v2 = vadd.f32 %v1250_v62, %v1473_v38 }
  0xd7   :  { %946 = vst.msk [vmem:[%s1798_s3 + $0x8c] sm:$0xf] %vm910_vm3, %v1145_v58  ;;  %v415_v3 = vpop.f32.mrf.mxu0  ;;  %v543_v4 = vpop.f32.mrf.mxu1 }
  0xd8   :  { %912 = vst.msk [vmem:[%s1798_s3 + $0x4] sm:$0xf] %vm910_vm3, %v1111_v63  ;;  %944 = vst.msk [vmem:[%s1798_s3 + $0x84] sm:$0xf] %vm910_vm3, %v1143_v0  ;;  %v1116_v5 = vpack.c.bf16 %v424_v1, %v424_v1  ;;  %v1148_v6 = vpack.c.bf16 %v552_v2, %v552_v2  ;;  %v416_v7 = vadd.f32 %v1473_v38, %v415_v3 }
  0xd9   :  { %v544_v8 = vadd.f32 %v1473_v38, %v543_v4  ;;  %v1219_v9 = vpop.f32.mrf.mxu0  ;;  %v1251_v10 = vpop.f32.mrf.mxu1 }
  0xda   :  { %917 = vst.msk [vmem:[%s1798_s3 + $0x18] sm:$0xf] %vm910_vm3, %v1116_v5  ;;  %949 = vst.msk [vmem:[%s1798_s3 + $0x98] sm:$0xf] %vm910_vm3, %v1148_v6  ;;  %v1114_v11 = vpack.c.bf16 %v416_v7, %v416_v7  ;;  %v427_v13 = vadd.f32 %v1219_v9, %v1473_v38  ;;  %v555_v14 = vadd.f32 %v1251_v10, %v1473_v38 }
  0xdb   :  { %v1146_v12 = vpack.c.bf16 %v544_v8, %v544_v8  ;;  %v418_v15 = vpop.f32.mrf.mxu0  ;;  %v546_v16 = vpop.f32.mrf.mxu1 }
  0xdc   :  { %915 = vst.msk [vmem:[%s1798_s3 + $0x10] sm:$0xf] %vm910_vm3, %v1114_v11  ;;  %v1117_v17 = vpack.c.bf16 %v427_v13, %v427_v13  ;;  %v1149_v18 = vpack.c.bf16 %v555_v14, %v555_v14  ;;  %v419_v19 = vadd.f32 %v1473_v38, %v418_v15  ;;  %v547_v20 = vadd.f32 %v1473_v38, %v546_v16 }
  0xdd   :  { %947 = vst.msk [vmem:[%s1798_s3 + $0x90] sm:$0xf] %vm910_vm3, %v1146_v12  ;;  %v1222_v21 = vpop.f32.mrf.mxu0  ;;  %v1254_v22 = vpop.f32.mrf.mxu1 }
  0xde   :  { %918 = vst.msk [vmem:[%s1798_s3 + $0x1c] sm:$0xf] %vm910_vm3, %v1117_v17  ;;  %950 = vst.msk [vmem:[%s1798_s3 + $0x9c] sm:$0xf] %vm910_vm3, %v1149_v18  ;;  %v1115_v23 = vpack.c.bf16 %v419_v19, %v419_v19  ;;  %v1147_v24 = vpack.c.bf16 %v547_v20, %v547_v20  ;;  %v440_v25 = vadd.f32 %v1222_v21, %v1473_v38 }
  0xdf   :  { %v568_v26 = vadd.f32 %v1254_v22, %v1473_v38  ;;  %v431_v27 = vpop.f32.mrf.mxu0  ;;  %v559_v28 = vpop.f32.mrf.mxu1 }
  0xe0   :  { %916 = vst.msk [vmem:[%s1798_s3 + $0x14] sm:$0xf] %vm910_vm3, %v1115_v23  ;;  %948 = vst.msk [vmem:[%s1798_s3 + $0x94] sm:$0xf] %vm910_vm3, %v1147_v24  ;;  %v1120_v29 = vpack.c.bf16 %v440_v25, %v440_v25  ;;  %v432_v31 = vadd.f32 %v1473_v38, %v431_v27  ;;  %v560_v32 = vadd.f32 %v1473_v38, %v559_v28 }
  0xe1   :  { %v1152_v30 = vpack.c.bf16 %v568_v26, %v568_v26  ;;  %v1223_v33 = vpop.f32.mrf.mxu0  ;;  %v1255_v34 = vpop.f32.mrf.mxu1 }
  0xe2   :  { %921 = vst.msk [vmem:[%s1798_s3 + $0x28] sm:$0xf] %vm910_vm3, %v1120_v29  ;;  %v1118_v35 = vpack.c.bf16 %v432_v31, %v432_v31  ;;  %v1150_v36 = vpack.c.bf16 %v560_v32, %v560_v32  ;;  %v443_v37 = vadd.f32 %v1223_v33, %v1473_v38  ;;  %v571_v39 = vadd.f32 %v1255_v34, %v1473_v38 }
  0xe3   :  { %953 = vst.msk [vmem:[%s1798_s3 + $0xa8] sm:$0xf] %vm910_vm3, %v1152_v30  ;;  %v434_v40 = vpop.f32.mrf.mxu0  ;;  %v562_v41 = vpop.f32.mrf.mxu1 }
  0xe4   :  { %919 = vst.msk [vmem:[%s1798_s3 + $0x20] sm:$0xf] %vm910_vm3, %v1118_v35  ;;  %951 = vst.msk [vmem:[%s1798_s3 + $0xa0] sm:$0xf] %vm910_vm3, %v1150_v36  ;;  %v1121_v42 = vpack.c.bf16 %v443_v37, %v443_v37  ;;  %v1153_v43 = vpack.c.bf16 %v571_v39, %v571_v39  ;;  %v435_v44 = vadd.f32 %v1473_v38, %v434_v40 }
  0xe5   :  { %v563_v45 = vadd.f32 %v1473_v38, %v562_v41  ;;  %v1226_v46 = vpop.f32.mrf.mxu0  ;;  %v1258_v47 = vpop.f32.mrf.mxu1 }
  0xe6   :  { %922 = vst.msk [vmem:[%s1798_s3 + $0x2c] sm:$0xf] %vm910_vm3, %v1121_v42  ;;  %954 = vst.msk [vmem:[%s1798_s3 + $0xac] sm:$0xf] %vm910_vm3, %v1153_v43  ;;  %v1119_v48 = vpack.c.bf16 %v435_v44, %v435_v44  ;;  %v456_v50 = vadd.f32 %v1226_v46, %v1473_v38  ;;  %v584_v51 = vadd.f32 %v1258_v47, %v1473_v38 }
  0xe7   :  { %v1151_v49 = vpack.c.bf16 %v563_v45, %v563_v45  ;;  %v447_v52 = vpop.f32.mrf.mxu0  ;;  %v575_v53 = vpop.f32.mrf.mxu1 }
  0xe8   :  { %920 = vst.msk [vmem:[%s1798_s3 + $0x24] sm:$0xf] %vm910_vm3, %v1119_v48  ;;  %v1124_v54 = vpack.c.bf16 %v456_v50, %v456_v50  ;;  %v1156_v55 = vpack.c.bf16 %v584_v51, %v584_v51  ;;  %v448_v56 = vadd.f32 %v1473_v38, %v447_v52  ;;  %v576_v57 = vadd.f32 %v1473_v38, %v575_v53 }
  0xe9   :  { %952 = vst.msk [vmem:[%s1798_s3 + $0xa4] sm:$0xf] %vm910_vm3, %v1151_v49  ;;  %v1227_v58 = vpop.f32.mrf.mxu0  ;;  %v1259_v59 = vpop.f32.mrf.mxu1 }
  0xea   :  { %925 = vst.msk [vmem:[%s1798_s3 + $0x38] sm:$0xf] %vm910_vm3, %v1124_v54  ;;  %957 = vst.msk [vmem:[%s1798_s3 + $0xb8] sm:$0xf] %vm910_vm3, %v1156_v55  ;;  %v1122_v60 = vpack.c.bf16 %v448_v56, %v448_v56  ;;  %v1154_v61 = vpack.c.bf16 %v576_v57, %v576_v57  ;;  %v459_v62 = vadd.f32 %v1227_v58, %v1473_v38 }
  0xeb   :  { %v587_v63 = vadd.f32 %v1259_v59, %v1473_v38  ;;  %v450_v0 = vpop.f32.mrf.mxu0  ;;  %v578_v1 = vpop.f32.mrf.mxu1 }
  0xec   :  { %923 = vst.msk [vmem:[%s1798_s3 + $0x30] sm:$0xf] %vm910_vm3, %v1122_v60  ;;  %955 = vst.msk [vmem:[%s1798_s3 + $0xb0] sm:$0xf] %vm910_vm3, %v1154_v61  ;;  %v1125_v2 = vpack.c.bf16 %v459_v62, %v459_v62  ;;  %v451_v4 = vadd.f32 %v1473_v38, %v450_v0  ;;  %v579_v5 = vadd.f32 %v1473_v38, %v578_v1 }
  0xed   :  { %v1157_v3 = vpack.c.bf16 %v587_v63, %v587_v63  ;;  %v1230_v6 = vpop.f32.mrf.mxu0  ;;  %v1262_v7 = vpop.f32.mrf.mxu1 }
  0xee   :  { %926 = vst.msk [vmem:[%s1798_s3 + $0x3c] sm:$0xf] %vm910_vm3, %v1125_v2  ;;  %v1123_v8 = vpack.c.bf16 %v451_v4, %v451_v4  ;;  %v1155_v9 = vpack.c.bf16 %v579_v5, %v579_v5  ;;  %v472_v10 = vadd.f32 %v1230_v6, %v1473_v38  ;;  %v600_v11 = vadd.f32 %v1262_v7, %v1473_v38 }
  0xef   :  { %958 = vst.msk [vmem:[%s1798_s3 + $0xbc] sm:$0xf] %vm910_vm3, %v1157_v3  ;;  %v463_v12 = vpop.f32.mrf.mxu0  ;;  %v591_v13 = vpop.f32.mrf.mxu1 }
  0xf0   :  { %924 = vst.msk [vmem:[%s1798_s3 + $0x34] sm:$0xf] %vm910_vm3, %v1123_v8  ;;  %956 = vst.msk [vmem:[%s1798_s3 + $0xb4] sm:$0xf] %vm910_vm3, %v1155_v9  ;;  %v1128_v14 = vpack.c.bf16 %v472_v10, %v472_v10  ;;  %v1160_v15 = vpack.c.bf16 %v600_v11, %v600_v11  ;;  %v464_v16 = vadd.f32 %v1473_v38, %v463_v12 }
  0xf1   :  { %v592_v17 = vadd.f32 %v1473_v38, %v591_v13  ;;  %v1231_v18 = vpop.f32.mrf.mxu0  ;;  %v1263_v19 = vpop.f32.mrf.mxu1 }
  0xf2   :  { %929 = vst.msk [vmem:[%s1798_s3 + $0x48] sm:$0xf] %vm910_vm3, %v1128_v14  ;;  %961 = vst.msk [vmem:[%s1798_s3 + $0xc8] sm:$0xf] %vm910_vm3, %v1160_v15  ;;  %v1126_v20 = vpack.c.bf16 %v464_v16, %v464_v16  ;;  %v475_v22 = vadd.f32 %v1231_v18, %v1473_v38  ;;  %v603_v23 = vadd.f32 %v1263_v19, %v1473_v38 }
  0xf3   :  { %v1158_v21 = vpack.c.bf16 %v592_v17, %v592_v17  ;;  %v466_v24 = vpop.f32.mrf.mxu0  ;;  %v594_v25 = vpop.f32.mrf.mxu1 }
  0xf4   :  { %927 = vst.msk [vmem:[%s1798_s3 + $0x40] sm:$0xf] %vm910_vm3, %v1126_v20  ;;  %v1129_v26 = vpack.c.bf16 %v475_v22, %v475_v22  ;;  %v1161_v27 = vpack.c.bf16 %v603_v23, %v603_v23  ;;  %v467_v28 = vadd.f32 %v1473_v38, %v466_v24  ;;  %v595_v29 = vadd.f32 %v1473_v38, %v594_v25 }
  0xf5   :  { %959 = vst.msk [vmem:[%s1798_s3 + $0xc0] sm:$0xf] %vm910_vm3, %v1158_v21  ;;  %v1234_v30 = vpop.f32.mrf.mxu0  ;;  %v1266_v31 = vpop.f32.mrf.mxu1 }
  0xf6   :  { %930 = vst.msk [vmem:[%s1798_s3 + $0x4c] sm:$0xf] %vm910_vm3, %v1129_v26  ;;  %962 = vst.msk [vmem:[%s1798_s3 + $0xcc] sm:$0xf] %vm910_vm3, %v1161_v27  ;;  %v1127_v32 = vpack.c.bf16 %v467_v28, %v467_v28  ;;  %v1159_v33 = vpack.c.bf16 %v595_v29, %v595_v29  ;;  %v488_v34 = vadd.f32 %v1234_v30, %v1473_v38 }
  0xf7   :  { %v616_v35 = vadd.f32 %v1266_v31, %v1473_v38  ;;  %v479_v36 = vpop.f32.mrf.mxu0  ;;  %v607_v37 = vpop.f32.mrf.mxu1 }
  0xf8   :  { %928 = vst.msk [vmem:[%s1798_s3 + $0x44] sm:$0xf] %vm910_vm3, %v1127_v32  ;;  %960 = vst.msk [vmem:[%s1798_s3 + $0xc4] sm:$0xf] %vm910_vm3, %v1159_v33  ;;  %v1132_v39 = vpack.c.bf16 %v488_v34, %v488_v34  ;;  %v480_v41 = vadd.f32 %v1473_v38, %v479_v36  ;;  %v608_v42 = vadd.f32 %v1473_v38, %v607_v37 }
  0xf9   :  { %v1164_v40 = vpack.c.bf16 %v616_v35, %v616_v35  ;;  %v1235_v43 = vpop.f32.mrf.mxu0  ;;  %v1267_v44 = vpop.f32.mrf.mxu1 }
  0xfa   :  { %933 = vst.msk [vmem:[%s1798_s3 + $0x58] sm:$0xf] %vm910_vm3, %v1132_v39  ;;  %v1130_v45 = vpack.c.bf16 %v480_v41, %v480_v41  ;;  %v1162_v46 = vpack.c.bf16 %v608_v42, %v608_v42  ;;  %v491_v47 = vadd.f32 %v1235_v43, %v1473_v38  ;;  %v619_v48 = vadd.f32 %v1267_v44, %v1473_v38 }
  0xfb   :  { %965 = vst.msk [vmem:[%s1798_s3 + $0xd8] sm:$0xf] %vm910_vm3, %v1164_v40  ;;  %v482_v49 = vpop.f32.mrf.mxu0  ;;  %v610_v50 = vpop.f32.mrf.mxu1 }
  0xfc   :  { %931 = vst.msk [vmem:[%s1798_s3 + $0x50] sm:$0xf] %vm910_vm3, %v1130_v45  ;;  %963 = vst.msk [vmem:[%s1798_s3 + $0xd0] sm:$0xf] %vm910_vm3, %v1162_v46  ;;  %v1133_v51 = vpack.c.bf16 %v491_v47, %v491_v47  ;;  %v1165_v52 = vpack.c.bf16 %v619_v48, %v619_v48  ;;  %v483_v53 = vadd.f32 %v1473_v38, %v482_v49 }
  0xfd   :  { %v611_v54 = vadd.f32 %v1473_v38, %v610_v50  ;;  %v1238_v55 = vpop.f32.mrf.mxu0  ;;  %v1270_v56 = vpop.f32.mrf.mxu1 }
  0xfe   :  { %934 = vst.msk [vmem:[%s1798_s3 + $0x5c] sm:$0xf] %vm910_vm3, %v1133_v51  ;;  %966 = vst.msk [vmem:[%s1798_s3 + $0xdc] sm:$0xf] %vm910_vm3, %v1165_v52  ;;  %v1131_v57 = vpack.c.bf16 %v483_v53, %v483_v53  ;;  %v504_v59 = vadd.f32 %v1238_v55, %v1473_v38  ;;  %v632_v60 = vadd.f32 %v1270_v56, %v1473_v38 }
  0xff   :  { %v1163_v58 = vpack.c.bf16 %v611_v54, %v611_v54  ;;  %v495_v61 = vpop.f32.mrf.mxu0  ;;  %v623_v62 = vpop.f32.mrf.mxu1 }
 0x100   :  { %932 = vst.msk [vmem:[%s1798_s3 + $0x54] sm:$0xf] %vm910_vm3, %v1131_v57  ;;  %v1136_v63 = vpack.c.bf16 %v504_v59, %v504_v59  ;;  %v1168_v0 = vpack.c.bf16 %v632_v60, %v632_v60  ;;  %v496_v1 = vadd.f32 %v1473_v38, %v495_v61  ;;  %v624_v2 = vadd.f32 %v1473_v38, %v623_v62 }
 0x101   :  { %964 = vst.msk [vmem:[%s1798_s3 + $0xd4] sm:$0xf] %vm910_vm3, %v1163_v58  ;;  %v1239_v3 = vpop.f32.mrf.mxu0  ;;  %v1271_v4 = vpop.f32.mrf.mxu1 }
 0x102   :  { %937 = vst.msk [vmem:[%s1798_s3 + $0x68] sm:$0xf] %vm910_vm3, %v1136_v63  ;;  %969 = vst.msk [vmem:[%s1798_s3 + $0xe8] sm:$0xf] %vm910_vm3, %v1168_v0  ;;  %v1134_v5 = vpack.c.bf16 %v496_v1, %v496_v1  ;;  %v1166_v6 = vpack.c.bf16 %v624_v2, %v624_v2  ;;  %v507_v7 = vadd.f32 %v1239_v3, %v1473_v38 }
 0x103   :  { %v635_v8 = vadd.f32 %v1271_v4, %v1473_v38  ;;  %v498_v9 = vpop.f32.mrf.mxu0  ;;  %v626_v10 = vpop.f32.mrf.mxu1 }
 0x104   :  { %935 = vst.msk [vmem:[%s1798_s3 + $0x60] sm:$0xf] %vm910_vm3, %v1134_v5  ;;  %967 = vst.msk [vmem:[%s1798_s3 + $0xe0] sm:$0xf] %vm910_vm3, %v1166_v6  ;;  %v1137_v11 = vpack.c.bf16 %v507_v7, %v507_v7  ;;  %v499_v13 = vadd.f32 %v1473_v38, %v498_v9  ;;  %v627_v14 = vadd.f32 %v1473_v38, %v626_v10 }
 0x105   :  { %v1169_v12 = vpack.c.bf16 %v635_v8, %v635_v8  ;;  %v1242_v15 = vpop.f32.mrf.mxu0  ;;  %v1274_v16 = vpop.f32.mrf.mxu1 }
 0x106   :  { %938 = vst.msk [vmem:[%s1798_s3 + $0x6c] sm:$0xf] %vm910_vm3, %v1137_v11  ;;  %v1135_v17 = vpack.c.bf16 %v499_v13, %v499_v13  ;;  %v1167_v18 = vpack.c.bf16 %v627_v14, %v627_v14  ;;  %v520_v19 = vadd.f32 %v1242_v15, %v1473_v38  ;;  %v648_v20 = vadd.f32 %v1274_v16, %v1473_v38 }
 0x107   :  { %970 = vst.msk [vmem:[%s1798_s3 + $0xec] sm:$0xf] %vm910_vm3, %v1169_v12  ;;  %v511_v21 = vpop.f32.mrf.mxu0  ;;  %v639_v22 = vpop.f32.mrf.mxu1 }
 0x108   :  { %936 = vst.msk [vmem:[%s1798_s3 + $0x64] sm:$0xf] %vm910_vm3, %v1135_v17  ;;  %968 = vst.msk [vmem:[%s1798_s3 + $0xe4] sm:$0xf] %vm910_vm3, %v1167_v18  ;;  %v1140_v23 = vpack.c.bf16 %v520_v19, %v520_v19  ;;  %v1172_v24 = vpack.c.bf16 %v648_v20, %v648_v20  ;;  %v512_v25 = vadd.f32 %v1473_v38, %v511_v21 }
 0x109   :  { %v640_v26 = vadd.f32 %v1473_v38, %v639_v22  ;;  %v1243_v27 = vpop.f32.mrf.mxu0  ;;  %v1275_v28 = vpop.f32.mrf.mxu1 }
 0x10a   :  { %941 = vst.msk [vmem:[%s1798_s3 + $0x78] sm:$0xf] %vm910_vm3, %v1140_v23  ;;  %973 = vst.msk [vmem:[%s1798_s3 + $0xf8] sm:$0xf] %vm910_vm3, %v1172_v24  ;;  %v1138_v29 = vpack.c.bf16 %v512_v25, %v512_v25  ;;  %v523_v31 = vadd.f32 %v1243_v27, %v1473_v38  ;;  %v651_v32 = vadd.f32 %v1275_v28, %v1473_v38 }
 0x10b   :  { %v1170_v30 = vpack.c.bf16 %v640_v26, %v640_v26  ;;  %v514_v33 = vpop.f32.mrf.mxu0  ;;  %v642_v34 = vpop.f32.mrf.mxu1 }
 0x10c   :  { %939 = vst.msk [vmem:[%s1798_s3 + $0x70] sm:$0xf] %vm910_vm3, %v1138_v29  ;;  %v1141_v35 = vpack.c.bf16 %v523_v31, %v523_v31  ;;  %v1173_v36 = vpack.c.bf16 %v651_v32, %v651_v32  ;;  %v515_v37 = vadd.f32 %v1473_v38, %v514_v33  ;;  %v643_v39 = vadd.f32 %v1473_v38, %v642_v34 }
 0x10d   :  { %971 = vst.msk [vmem:[%s1798_s3 + $0xf0] sm:$0xf] %vm910_vm3, %v1170_v30 }
 0x10e   :  { %942 = vst.msk [vmem:[%s1798_s3 + $0x7c] sm:$0xf] %vm910_vm3, %v1141_v35  ;;  %974 = vst.msk [vmem:[%s1798_s3 + $0xfc] sm:$0xf] %vm910_vm3, %v1173_v36  ;;  %v1139_v40 = vpack.c.bf16 %v515_v37, %v515_v37  ;;  %v1171_v41 = vpack.c.bf16 %v643_v39, %v643_v39 }
 0x110   :  { %940 = vst.msk [vmem:[%s1798_s3 + $0x74] sm:$0xf] %vm910_vm3, %v1139_v40  ;;  %972 = vst.msk [vmem:[%s1798_s3 + $0xf4] sm:$0xf] %vm910_vm3, %v1171_v41 }

// kernel: deep_supervision_forward.11
= control target key start
LH: loop header
LB: loop body
LE: loop exit
PB: predicated region body
PF: predicated region fallthrough
CT: control target
= control target key end

     0   :  { %v2394_v0 = vmov 0   ;;  %vm774_vm0 = vcmask 261120   ;;  %vm1769_vm1 = vcmask 257024   ;;  %s3269_s1 = inlined_call_operand.vmem [shape: bf16[288,32], index: 1, kind: input, shape index: {}]   ;;  %s3270_s0 = inlined_call_operand.vmem [shape: bf16[512,288], index: 0, kind: input, shape index: {}]   ;;  %s3271_s2 = inlined_call_operand.vmem [shape: f32[1,32], index: 2, kind: input, shape index: {}]   ;;  %s3272_s3 = inlined_call_operand.vmem [shape: bf16[512,32], index: 3, kind: output, shape index: {}]  }
   0x1   :  { %871 = vmatprep.subr.bf16.mxu0 %v2394_v0  ;;  %2215 = vmatprep.subr.bf16.mxu1 %v2394_v0  ;;  %v2248_v1 = vld [vmem:[%s3269_s1 + $0x38] sm:$0xff]   ;;  %v2249_v2 = vld [vmem:[%s3269_s1 + $0x30] sm:$0xff]   ;;  %v2250_v3 = vld [vmem:[%s3269_s1 + $0x28] sm:$0xff]  }
   0x2   :  { %872 = vmatpush1.bf16.msra.mxu0 %v2248_v1  ;;  %2231 = vmatpush1.bf16.msra.mxu1 %v2248_v1  ;;  %v2251_v4 = vld [vmem:[%s3269_s1 + $0x20] sm:$0xff]   ;;  %v2252_v5 = vld [vmem:[%s3269_s1 + $0x18] sm:$0xff]   ;;  %v2253_v7 = vld [vmem:[%s3269_s1 + $0x10] sm:$0xff]  }
   0x3   :  { %873 = vmatprep.subr.bf16.mxu0 %v2394_v0  ;;  %2216 = vmatprep.subr.bf16.mxu1 %v2394_v0  ;;  %v2266_v6 = vld [vmem:[%s3270_s0 + $0x4] ss:$12 sps:$4 sm:$0xff]   ;;  %v2254_v9 = vld [vmem:[%s3269_s1 + $0x8] sm:$0xff]   ;;  %v2256_v11 = vld [vmem:[%s3269_s1 + $0x78] sm:$0xff]  }
   0x4   :  { %v2269_v8 = vld [vmem:[%s3270_s0 + $0x244] ss:$12 sps:$4 sm:$0xff]   ;;  %903 = vmatprep.mubr.bf16.mxu0 %v2266_v6  ;;  %v2258_v13 = vld [vmem:[%s3269_s1 + $0x68] sm:$0xff]   ;;  %v2260_v15 = vld [vmem:[%s3269_s1 + $0x58] sm:$0xff]  }
   0x5   :  { %1095 = vmatprep.mubr.bf16.mxu1 %v2269_v8  ;;  %v2255_v10 = vld [vmem:[%s3269_s1] sm:$0xff]   ;;  %v2257_v12 = vld [vmem:[%s3269_s1 + $0x70] sm:$0xff]   ;;  %v2262_v17 = vld [vmem:[%s3269_s1 + $0x48] sm:$0xff]  }
   0x6   :  { %874 = vmatpush1.bf16.msra.mxu0 %v2249_v2  ;;  %2232 = vmatpush1.bf16.msra.mxu1 %v2249_v2  ;;  %v2259_v14 = vld [vmem:[%s3269_s1 + $0x60] sm:$0xff]   ;;  %v2261_v16 = vld [vmem:[%s3269_s1 + $0x50] sm:$0xff]   ;;  %v2270_v19 = vld [vmem:[%s3269_s1 + $0x88] sm:$0xff]  }
   0x7   :  { %875 = vmatprep.subr.bf16.mxu0 %v2394_v0  ;;  %2217 = vmatprep.subr.bf16.mxu1 %v2394_v0  ;;  %v2263_v18 = vld [vmem:[%s3269_s1 + $0x40] sm:$0xff]   ;;  %v2271_v22 = vld [vmem:[%s3270_s0 + $0x1c] ss:$12 sps:$4 sm:$0xff]   ;;  %v2283_v31 = vld [vmem:[%s3270_s0 + $0x4c] ss:$12 sps:$4 sm:$0xff]  }
   0x8   :  { %v2264_v20 = vld [vmem:[%s3270_s0] ss:$12 sps:$4 sm:$0xff]   ;;  %v2273_v23 = vld [vmem:[%s3270_s0 + $0x25c] ss:$12 sps:$4 sm:$0xff]   ;;  %v2275_v25 = vld [vmem:[%s3270_s0 + $0x18] ss:$12 sps:$4 sm:$0xff]  }
   0x9   :  { %v2267_v21 = vld [vmem:[%s3270_s0 + $0x240] ss:$12 sps:$4 sm:$0xff]   ;;  %v2276_v26 = vld [vmem:[%s3270_s0 + $0x258] ss:$12 sps:$4 sm:$0xff]   ;;  %v2281_v29 = vld [vmem:[%s3270_s0 + $0x30] ss:$12 sps:$4 sm:$0xff]  }
   0xa   :  { %876 = vmatpush1.bf16.msra.mxu0 %v2250_v3  ;;  %2233 = vmatpush1.bf16.msra.mxu1 %v2250_v3  ;;  %v2295_v24 = vld [vmem:[%s3269_s1 + $0x80] sm:$0xff]   ;;  %v2282_v30 = vld [vmem:[%s3270_s0 + $0x270] ss:$12 sps:$4 sm:$0xff]   ;;  %v2285_v32 = vld [vmem:[%s3270_s0 + $0x28c] ss:$12 sps:$4 sm:$0xff]  }
   0xb   :  { %877 = vmatprep.subr.bf16.mxu0 %v2394_v0  ;;  %2218 = vmatprep.subr.bf16.mxu1 %v2394_v0  ;;  %v2277_v27 = vld [vmem:[%s3270_s0 + $0x34] ss:$12 sps:$4 sm:$0xff]   ;;  %v2289_v35 = vld [vmem:[%s3270_s0 + $0x64] ss:$12 sps:$4 sm:$0xff]   ;;  %v2296_v39 = vld [vmem:[%s3270_s0 + $0x7c] ss:$12 sps:$4 sm:$0xff]  }
   0xc   :  { %v2279_v28 = vld [vmem:[%s3270_s0 + $0x274] ss:$12 sps:$4 sm:$0xff]   ;;  %v2291_v36 = vld [vmem:[%s3270_s0 + $0x2a4] ss:$12 sps:$4 sm:$0xff]   ;;  %v2298_v40 = vld [vmem:[%s3270_s0 + $0x2bc] ss:$12 sps:$4 sm:$0xff]  }
   0xd   :  { %v2287_v33 = vld [vmem:[%s3270_s0 + $0x48] ss:$12 sps:$4 sm:$0xff]   ;;  %v2293_v37 = vld [vmem:[%s3270_s0 + $0x60] ss:$12 sps:$4 sm:$0xff]   ;;  %v2300_v41 = vld [vmem:[%s3270_s0 + $0x78] ss:$12 sps:$4 sm:$0xff]  }
   0xe   :  { %878 = vmatpush1.bf16.msra.mxu0 %v2251_v4  ;;  %2234 = vmatpush1.bf16.msra.mxu1 %v2251_v4  ;;  %v2288_v34 = vld [vmem:[%s3270_s0 + $0x288] ss:$12 sps:$4 sm:$0xff]   ;;  %v2294_v38 = vld [vmem:[%s3270_s0 + $0x2a0] ss:$12 sps:$4 sm:$0xff]   ;;  %v2301_v42 = vld [vmem:[%s3270_s0 + $0x2b8] ss:$12 sps:$4 sm:$0xff]  }
   0xf   :  { %879 = vmatprep.subr.bf16.mxu0 %v2394_v0  ;;  %2219 = vmatprep.subr.bf16.mxu1 %v2394_v0  ;;  %v2302_v43 = vld [vmem:[%s3270_s0 + $0x94] ss:$12 sps:$4 sm:$0xff]   ;;  %v2306_v45 = vld [vmem:[%s3270_s0 + $0x90] ss:$12 sps:$4 sm:$0xff]   ;;  %v2308_v47 = vld [vmem:[%s3270_s0 + $0xac] ss:$12 sps:$4 sm:$0xff]  }
  0x10   :  { %v2304_v44 = vld [vmem:[%s3270_s0 + $0x2d4] ss:$12 sps:$4 sm:$0xff]   ;;  %v2307_v46 = vld [vmem:[%s3270_s0 + $0x2d0] ss:$12 sps:$4 sm:$0xff]   ;;  %v2310_v48 = vld [vmem:[%s3270_s0 + $0x2ec] ss:$12 sps:$4 sm:$0xff]  }
  0x11   :  { %v2312_v49 = vld [vmem:[%s3270_s0 + $0xa8] ss:$12 sps:$4 sm:$0xff]   ;;  %v2314_v51 = vld [vmem:[%s3270_s0 + $0xc4] ss:$12 sps:$4 sm:$0xff]   ;;  %v2317_v53 = vld [vmem:[%s3270_s0 + $0xc0] ss:$12 sps:$4 sm:$0xff]  }
  0x12   :  { %880 = vmatpush1.bf16.msra.mxu0 %v2252_v5  ;;  %2235 = vmatpush1.bf16.msra.mxu1 %v2252_v5  ;;  %v2313_v50 = vld [vmem:[%s3270_s0 + $0x2e8] ss:$12 sps:$4 sm:$0xff]   ;;  %v2318_v54 = vld [vmem:[%s3270_s0 + $0x20] ss:$12 sps:$4 sm:$0xff]   ;;  %v2321_v56 = vld [vmem:[%s3270_s0 + $0x38] ss:$12 sps:$4 sm:$0xff]  }
  0x13   :  { %881 = vmatprep.subr.bf16.mxu0 %v2394_v0  ;;  %2220 = vmatprep.subr.bf16.mxu1 %v2394_v0  ;;  %v2316_v52 = vld [vmem:[%s3270_s0 + $0x8] ss:$12 sps:$4 sm:$0xff]   ;;  %v2322_v57 = vld [vmem:[%s3270_s0 + $0xd8] ss:$12 sps:$4 sm:$0xff]   ;;  %v2323_v58 = vld [vmem:[%s3270_s0 + $0x50] ss:$12 sps:$4 sm:$0xff]  }
  0x14   :  { %v2319_v55 = vld [vmem:[%s3270_s0 + $0xdc] ss:$12 sps:$4 sm:$0xff]   ;;  %v2324_v59 = vld [vmem:[%s3270_s0 + $0xf4] ss:$12 sps:$4 sm:$0xff]   ;;  %v2329_v63 = vld [vmem:[%s3270_s0 + $0x10c] ss:$12 sps:$4 sm:$0xff]  }
  0x15   :  { %v2326_v60 = vld [vmem:[%s3270_s0 + $0x68] ss:$12 sps:$4 sm:$0xff]   ;;  %v2327_v61 = vld [vmem:[%s3270_s0 + $0xf0] ss:$12 sps:$4 sm:$0xff]   ;;  %v2328_v62 = vld [vmem:[%s3270_s0 + $0x80] ss:$12 sps:$4 sm:$0xff]  }
  0x16   :  { %882 = vmatpush1.bf16.msra.mxu0 %v2253_v7  ;;  %2236 = vmatpush1.bf16.msra.mxu1 %v2253_v7  ;;  %v2332_v1 = vld [vmem:[%s3270_s0 + $0x108] ss:$12 sps:$4 sm:$0xff]   ;;  %v2333_v2 = vld [vmem:[%s3270_s0 + $0xb0] ss:$12 sps:$4 sm:$0xff]   ;;  %v2337_v5 = vld [vmem:[%s3270_s0 + $0x120] ss:$12 sps:$4 sm:$0xff]  }
  0x17   :  { %883 = vmatprep.subr.bf16.mxu0 %v2394_v0  ;;  %2221 = vmatprep.subr.bf16.mxu1 %v2394_v0  ;;  %v2334_v3 = vld [vmem:[%s3270_s0 + $0x124] ss:$12 sps:$4 sm:$0xff]   ;;  %v2336_v4 = vld [vmem:[%s3270_s0 + $0xc8] ss:$12 sps:$4 sm:$0xff]   ;;  %v2338_v6 = vld [vmem:[%s3270_s0 + $0xe0] ss:$12 sps:$4 sm:$0xff]  }
  0x18   :  { %v2339_v7 = vld [vmem:[%s3270_s0 + $0x13c] ss:$12 sps:$4 sm:$0xff]   ;;  %v2341_v8 = vld [vmem:[%s3270_s0 + $0xf8] ss:$12 sps:$4 sm:$0xff]  }
  0x1a   :  { %884 = vmatpush1.bf16.msra.mxu0 %v2254_v9  ;;  %2237 = vmatpush1.bf16.msra.mxu1 %v2254_v9  ;;  %v2342_v9 = vld [vmem:[%s3270_s0 + $0x138] ss:$12 sps:$4 sm:$0xff]  }
  0x1b   :  { %885 = vmatprep.subr.bf16.mxu0 %v2394_v0  ;;  %2222 = vmatprep.subr.bf16.mxu1 %v2394_v0 }
  0x1e   :  { %886 = vmatpush1.bf16.msra.mxu0 %v2255_v10  ;;  %2238 = vmatpush1.bf16.msra.mxu1 %v2255_v10  ;;  %v2343_v10 = vld [vmem:[%s3270_s0 + $0x110] ss:$12 sps:$4 sm:$0xff]  }
  0x1f   :  { %887 = vmatprep.subr.bf16.mxu0 %v2394_v0  ;;  %2223 = vmatprep.subr.bf16.mxu1 %v2394_v0 }
  0x22   :  { %888 = vmatpush2.bf16.msra.mxu0 %v2256_v11  ;;  %2239 = vmatpush2.bf16.msra.mxu1 %v2256_v11  ;;  %v2344_v11 = vld [vmem:[%s3270_s0 + $0x154] ss:$12 sps:$4 sm:$0xff]  }
  0x23   :  { %889 = vmatprep.subr.bf16.mxu0 %v2394_v0  ;;  %2224 = vmatprep.subr.bf16.mxu1 %v2394_v0 }
  0x26   :  { %890 = vmatpush2.bf16.msra.mxu0 %v2257_v12  ;;  %2240 = vmatpush2.bf16.msra.mxu1 %v2257_v12  ;;  %v2346_v12 = vld [vmem:[%s3270_s0 + $0x128] ss:$12 sps:$4 sm:$0xff]  }
  0x27   :  { %891 = vmatprep.subr.bf16.mxu0 %v2394_v0  ;;  %2225 = vmatprep.subr.bf16.mxu1 %v2394_v0 }
  0x2a   :  { %892 = vmatpush2.bf16.msra.mxu0 %v2258_v13  ;;  %2241 = vmatpush2.bf16.msra.mxu1 %v2258_v13  ;;  %v2347_v13 = vld [vmem:[%s3270_s0 + $0x150] ss:$12 sps:$4 sm:$0xff]  }
  0x2b   :  { %893 = vmatprep.subr.bf16.mxu0 %v2394_v0  ;;  %2226 = vmatprep.subr.bf16.mxu1 %v2394_v0 }
  0x2e   :  { %894 = vmatpush2.bf16.msra.mxu0 %v2259_v14  ;;  %2242 = vmatpush2.bf16.msra.mxu1 %v2259_v14  ;;  %v2348_v14 = vld [vmem:[%s3270_s0 + $0x140] ss:$12 sps:$4 sm:$0xff]  }
  0x2f   :  { %895 = vmatprep.subr.bf16.mxu0 %v2394_v0  ;;  %2227 = vmatprep.subr.bf16.mxu1 %v2394_v0 }
  0x32   :  { %896 = vmatpush2.bf16.msra.mxu0 %v2260_v15  ;;  %2243 = vmatpush2.bf16.msra.mxu1 %v2260_v15  ;;  %v2349_v15 = vld [vmem:[%s3270_s0 + $0x16c] ss:$12 sps:$4 sm:$0xff]  }
  0x33   :  { %897 = vmatprep.subr.bf16.mxu0 %v2394_v0  ;;  %2228 = vmatprep.subr.bf16.mxu1 %v2394_v0 }
  0x36   :  { %898 = vmatpush2.bf16.msra.mxu0 %v2261_v16  ;;  %2244 = vmatpush2.bf16.msra.mxu1 %v2261_v16  ;;  %v2351_v16 = vld [vmem:[%s3270_s0 + $0x158] ss:$12 sps:$4 sm:$0xff]  }
  0x37   :  { %899 = vmatprep.subr.bf16.mxu0 %v2394_v0  ;;  %2229 = vmatprep.subr.bf16.mxu1 %v2394_v0 }
  0x3a   :  { %900 = vmatpush2.bf16.msra.mxu0 %v2262_v17  ;;  %2245 = vmatpush2.bf16.msra.mxu1 %v2262_v17  ;;  %v2352_v17 = vld [vmem:[%s3270_s0 + $0x168] ss:$12 sps:$4 sm:$0xff]  }
  0x3b   :  { %901 = vmatprep.subr.bf16.mxu0 %v2394_v0  ;;  %2230 = vmatprep.subr.bf16.mxu1 %v2394_v0  ;;  %v2331_v0 = vld [vmem:[%s3270_s0 + $0x98] ss:$12 sps:$4 sm:$0xff]  }
  0x3e   :  { %902 = vmatpush2.bf16.msra.mxu0 %v2263_v18  ;;  %2246 = vmatpush2.bf16.msra.mxu1 %v2263_v18  ;;  %v2353_v18 = vld [vmem:[%s3270_s0 + $0x170] ss:$12 sps:$4 sm:$0xff]  }
  0x3f   :  { %2147 = vmatprep.subr.bf16.mxu1 %v2270_v19 }
  0x41   :  { %904 = vmatmul.mubr.bf16.vlgmr.msra.gmra.mxu0 %v2264_v20  ;;  %1096 = vmatmul.mubr.bf16.vlgmr.msra.gmra.mxu1 %v2267_v21  ;;  %v2356_v20 = vld [vmem:[%s3270_s0 + $0x188] ss:$12 sps:$4 sm:$0xff]   ;;  %v2357_v21 = vld [vmem:[%s3270_s0 + $0x180] ss:$12 sps:$4 sm:$0xff]  }
  0x42   :  { %2148 = vmatpush3.bf16.msra.mxu1 %v2270_v19  ;;  %911 = vmatprep.mubr.bf16.mxu0 %v2271_v22  ;;  %v2354_v19 = vld [vmem:[%s3270_s0 + $0x184] ss:$12 sps:$4 sm:$0xff]   ;;  %v2358_v22 = vld [vmem:[%s3270_s0 + $0x1a0] ss:$12 sps:$4 sm:$0xff]  }
  0x43   :  { %1103 = vmatprep.mubr.bf16.mxu1 %v2273_v23  ;;  %2149 = vmatprep.subr.bf16.mxu1 %v2295_v24  ;;  %v2359_v23 = vld [vmem:[%s3270_s0 + $0x19c] ss:$12 sps:$4 sm:$0xff]  }
  0x46   :  { %2150 = vmatpush3.bf16.msra.mxu1 %v2295_v24  ;;  %v2361_v24 = vld [vmem:[%s3270_s0 + $0x1b8] ss:$12 sps:$4 sm:$0xff]  }
  0x49   :  { %912 = vmatmul.mubr.bf16.gmra.mxu0 %v2275_v25  ;;  %1104 = vmatmul.mubr.bf16.gmra.mxu1 %v2276_v26  ;;  %v2362_v25 = vld [vmem:[%s3270_s0 + $0x198] ss:$12 sps:$4 sm:$0xff]   ;;  %v2363_v26 = vld [vmem:[%s3270_s0 + $0x1d0] ss:$12 sps:$4 sm:$0xff]  }
  0x4a   :  { %919 = vmatprep.mubr.bf16.mxu0 %v2277_v27  ;;  %1111 = vmatprep.mubr.bf16.mxu1 %v2279_v28  ;;  %v2364_v27 = vld [vmem:[%s3270_s0 + $0x1b4] ss:$12 sps:$4 sm:$0xff]  }
  0x4b   :  { %v2366_v28 = vld [vmem:[%s3270_s0 + $0x1e8] ss:$12 sps:$4 sm:$0xff]  }
  0x51   :  { %920 = vmatmul.mubr.bf16.gmra.mxu0 %v2281_v29  ;;  %1112 = vmatmul.mubr.bf16.gmra.mxu1 %v2282_v30  ;;  %v2367_v29 = vld [vmem:[%s3270_s0 + $0x1b0] ss:$12 sps:$4 sm:$0xff]   ;;  %v2368_v30 = vld [vmem:[%s3270_s0 + $0x200] ss:$12 sps:$4 sm:$0xff]  }
  0x52   :  { %927 = vmatprep.mubr.bf16.mxu0 %v2283_v31  ;;  %1119 = vmatprep.mubr.bf16.mxu1 %v2285_v32  ;;  %v2369_v31 = vld [vmem:[%s3270_s0 + $0x1cc] ss:$12 sps:$4 sm:$0xff]  }
  0x53   :  { %v2371_v32 = vld [vmem:[%s3270_s0 + $0x218] ss:$12 sps:$4 sm:$0xff]  }
  0x59   :  { %928 = vmatmul.mubr.bf16.gmra.mxu0 %v2287_v33  ;;  %1120 = vmatmul.mubr.bf16.gmra.mxu1 %v2288_v34  ;;  %v2372_v33 = vld [vmem:[%s3270_s0 + $0x1c8] ss:$12 sps:$4 sm:$0xff]   ;;  %v2373_v34 = vld [vmem:[%s3270_s0 + $0x230] ss:$12 sps:$4 sm:$0xff]  }
  0x5a   :  { %935 = vmatprep.mubr.bf16.mxu0 %v2289_v35  ;;  %1127 = vmatprep.mubr.bf16.mxu1 %v2291_v36  ;;  %v2374_v35 = vld [vmem:[%s3270_s0 + $0x1e4] ss:$12 sps:$4 sm:$0xff]   ;;  %v2376_v36 = vld [vmem:[%s3270_s0 + $0x248] ss:$12 sps:$4 sm:$0xff]  }
  0x61   :  { %936 = vmatmul.mubr.bf16.gmra.mxu0 %v2293_v37  ;;  %1128 = vmatmul.mubr.bf16.gmra.mxu1 %v2294_v38  ;;  %v2377_v37 = vld [vmem:[%s3270_s0 + $0x1e0] ss:$12 sps:$4 sm:$0xff]  }
  0x62   :  { %943 = vmatprep.mubr.bf16.mxu0 %v2296_v39  ;;  %1135 = vmatprep.mubr.bf16.mxu1 %v2298_v40  ;;  %v2378_v38 = vld [vmem:[%s3270_s0 + $0x260] ss:$12 sps:$4 sm:$0xff]   ;;  %v2379_v39 = vld [vmem:[%s3270_s0 + $0x1fc] ss:$12 sps:$4 sm:$0xff]   ;;  %v2381_v40 = vld [vmem:[%s3270_s0 + $0x278] ss:$12 sps:$4 sm:$0xff]  }
  0x69   :  { %944 = vmatmul.mubr.bf16.gmra.mxu0 %v2300_v41  ;;  %1136 = vmatmul.mubr.bf16.gmra.mxu1 %v2301_v42  ;;  %v2382_v41 = vld [vmem:[%s3270_s0 + $0x1f8] ss:$12 sps:$4 sm:$0xff]   ;;  %v2383_v42 = vld [vmem:[%s3270_s0 + $0x290] ss:$12 sps:$4 sm:$0xff]  }
  0x6a   :  { %951 = vmatprep.mubr.bf16.mxu0 %v2302_v43  ;;  %1143 = vmatprep.mubr.bf16.mxu1 %v2304_v44  ;;  %v2384_v43 = vld [vmem:[%s3270_s0 + $0x214] ss:$12 sps:$4 sm:$0xff]  }
  0x6b   :  { %v2386_v44 = vld [vmem:[%s3270_s0 + $0x2a8] ss:$12 sps:$4 sm:$0xff]  }
  0x71   :  { %952 = vmatmul.mubr.bf16.gmra.mxu0 %v2306_v45  ;;  %1144 = vmatmul.mubr.bf16.gmra.mxu1 %v2307_v46  ;;  %v2387_v45 = vld [vmem:[%s3270_s0 + $0x210] ss:$12 sps:$4 sm:$0xff]   ;;  %v2388_v46 = vld [vmem:[%s3270_s0 + $0x2c0] ss:$12 sps:$4 sm:$0xff]  }
  0x72   :  { %959 = vmatprep.mubr.bf16.mxu0 %v2308_v47  ;;  %1151 = vmatprep.mubr.bf16.mxu1 %v2310_v48  ;;  %v2389_v47 = vld [vmem:[%s3270_s0 + $0x22c] ss:$12 sps:$4 sm:$0xff]  }
  0x73   :  { %v2391_v48 = vld [vmem:[%s3270_s0 + $0x2d8] ss:$12 sps:$4 sm:$0xff]  }
  0x79   :  { %960 = vmatmul.mubr.bf16.gmra.mxu0 %v2312_v49  ;;  %1152 = vmatmul.mubr.bf16.gmra.mxu1 %v2313_v50  ;;  %v2392_v49 = vld [vmem:[%s3270_s0 + $0x228] ss:$12 sps:$4 sm:$0xff]   ;;  %v2393_v50 = vld [vmem:[%s3270_s0 + $0x2f0] ss:$12 sps:$4 sm:$0xff]  }
  0x7a   :  { %967 = vmatprep.mubr.bf16.mxu0 %v2314_v51  ;;  %2151 = vmatprep.mubr.msk.bf16.mxu1 %vm774_vm0, %v2316_v52 }
  0x81   :  { %968 = vmatmul.mubr.bf16.gmra.mxu0 %v2317_v53  ;;  %2152 = vmatmul.mubr.msk.bf16.vlgmr.msra.gmra.mxu1 %vm774_vm0, %v2318_v54 }
  0x82   :  { %975 = vmatprep.mubr.bf16.mxu0 %v2319_v55  ;;  %2155 = vmatprep.mubr.msk.bf16.mxu1 %vm774_vm0, %v2321_v56 }
  0x89   :  { %976 = vmatmul.mubr.bf16.gmra.mxu0 %v2322_v57  ;;  %2156 = vmatmul.mubr.msk.bf16.gmra.mxu1 %vm774_vm0, %v2323_v58 }
  0x8a   :  { %983 = vmatprep.mubr.bf16.mxu0 %v2324_v59  ;;  %2159 = vmatprep.mubr.msk.bf16.mxu1 %vm774_vm0, %v2326_v60 }
  0x91   :  { %984 = vmatmul.mubr.bf16.gmra.mxu0 %v2327_v61  ;;  %2160 = vmatmul.mubr.msk.bf16.gmra.mxu1 %vm774_vm0, %v2328_v62 }
  0x92   :  { %991 = vmatprep.mubr.bf16.mxu0 %v2329_v63  ;;  %2163 = vmatprep.mubr.msk.bf16.mxu1 %vm774_vm0, %v2331_v0 }
  0x99   :  { %992 = vmatmul.mubr.bf16.gmra.mxu0 %v2332_v1  ;;  %2164 = vmatmul.mubr.msk.bf16.gmra.mxu1 %vm774_vm0, %v2333_v2 }
  0x9a   :  { %999 = vmatprep.mubr.bf16.mxu0 %v2334_v3  ;;  %2167 = vmatprep.mubr.msk.bf16.mxu1 %vm774_vm0, %v2336_v4 }
  0xa1   :  { %1000 = vmatmul.mubr.bf16.gmra.mxu0 %v2337_v5  ;;  %2168 = vmatmul.mubr.msk.bf16.gmra.mxu1 %vm774_vm0, %v2338_v6 }
  0xa2   :  { %1007 = vmatprep.mubr.bf16.mxu0 %v2339_v7  ;;  %2171 = vmatprep.mubr.msk.bf16.mxu1 %vm774_vm0, %v2341_v8 }
  0xa9   :  { %1008 = vmatmul.mubr.bf16.gmra.mxu0 %v2342_v9  ;;  %2172 = vmatmul.mubr.msk.bf16.gmra.mxu1 %vm774_vm0, %v2343_v10 }
  0xaa   :  { %1015 = vmatprep.mubr.bf16.mxu0 %v2344_v11  ;;  %2175 = vmatprep.mubr.msk.bf16.mxu1 %vm774_vm0, %v2346_v12 }
  0xb1   :  { %1016 = vmatmul.mubr.bf16.gmra.mxu0 %v2347_v13  ;;  %2176 = vmatmul.mubr.msk.bf16.gmra.mxu1 %vm774_vm0, %v2348_v14 }
  0xb2   :  { %1023 = vmatprep.mubr.bf16.mxu0 %v2349_v15  ;;  %2179 = vmatprep.mubr.msk.bf16.mxu1 %vm774_vm0, %v2351_v16 }
  0xb9   :  { %1024 = vmatmul.mubr.bf16.gmra.mxu0 %v2352_v17  ;;  %2180 = vmatmul.mubr.msk.bf16.gmra.mxu1 %vm774_vm0, %v2353_v18 }
  0xba   :  { %1031 = vmatprep.mubr.bf16.mxu0 %v2354_v19  ;;  %2183 = vmatprep.mubr.msk.bf16.mxu1 %vm774_vm0, %v2356_v20 }
  0xc1   :  { %1032 = vmatmul.mubr.bf16.gmra.mxu0 %v2357_v21  ;;  %2184 = vmatmul.mubr.msk.bf16.gmra.mxu1 %vm774_vm0, %v2358_v22 }
  0xc2   :  { %1039 = vmatprep.mubr.bf16.mxu0 %v2359_v23  ;;  %2187 = vmatprep.mubr.msk.bf16.mxu1 %vm774_vm0, %v2361_v24 }
  0xc9   :  { %1040 = vmatmul.mubr.bf16.gmra.mxu0 %v2362_v25  ;;  %2188 = vmatmul.mubr.msk.bf16.gmra.mxu1 %vm774_vm0, %v2363_v26 }
  0xca   :  { %1047 = vmatprep.mubr.bf16.mxu0 %v2364_v27  ;;  %2191 = vmatprep.mubr.msk.bf16.mxu1 %vm774_vm0, %v2366_v28 }
  0xd1   :  { %1048 = vmatmul.mubr.bf16.gmra.mxu0 %v2367_v29  ;;  %2192 = vmatmul.mubr.msk.bf16.gmra.mxu1 %vm774_vm0, %v2368_v30 }
  0xd2   :  { %1055 = vmatprep.mubr.bf16.mxu0 %v2369_v31  ;;  %2195 = vmatprep.mubr.msk.bf16.mxu1 %vm774_vm0, %v2371_v32 }
  0xd9   :  { %1056 = vmatmul.mubr.bf16.gmra.mxu0 %v2372_v33  ;;  %2196 = vmatmul.mubr.msk.bf16.gmra.mxu1 %vm774_vm0, %v2373_v34 }
  0xda   :  { %1063 = vmatprep.mubr.bf16.mxu0 %v2374_v35  ;;  %2199 = vmatprep.mubr.msk.bf16.mxu1 %vm774_vm0, %v2376_v36 }
  0xe1   :  { %1064 = vmatmul.mubr.bf16.gmra.mxu0 %v2377_v37  ;;  %2200 = vmatmul.mubr.msk.bf16.gmra.mxu1 %vm774_vm0, %v2378_v38 }
  0xe2   :  { %1071 = vmatprep.mubr.bf16.mxu0 %v2379_v39  ;;  %2203 = vmatprep.mubr.msk.bf16.mxu1 %vm774_vm0, %v2381_v40 }
  0xe9   :  { %1072 = vmatmul.mubr.bf16.gmra.mxu0 %v2382_v41  ;;  %2204 = vmatmul.mubr.msk.bf16.gmra.mxu1 %vm774_vm0, %v2383_v42 }
  0xea   :  { %1079 = vmatprep.mubr.bf16.mxu0 %v2384_v43  ;;  %2207 = vmatprep.mubr.msk.bf16.mxu1 %vm774_vm0, %v2386_v44 }
  0xf1   :  { %1080 = vmatmul.mubr.bf16.gmra.mxu0 %v2387_v45  ;;  %2208 = vmatmul.mubr.msk.bf16.gmra.mxu1 %vm774_vm0, %v2388_v46 }
  0xf2   :  { %1087 = vmatprep.mubr.bf16.mxu0 %v2389_v47  ;;  %2211 = vmatprep.mubr.msk.bf16.mxu1 %vm774_vm0, %v2391_v48 }
  0xf9   :  { %1088 = vmatmul.mubr.bf16.gmra.mxu0 %v2392_v49  ;;  %2212 = vmatmul.mubr.msk.bf16.gmra.mxu1 %vm774_vm0, %v2393_v50  ;;  %v2882_v49 = vld [vmem:[%s3271_s2] ss:$0 sm:$0xff] }
 0x101   :  { %v2821_v51 = vpop.f32.mrf.mxu0  ;;  %v2823_v52 = vpop.f32.mrf.mxu1 }
 0x103   :  { %v907_v53 = vpop.f32.mrf.mxu0  ;;  %v1099_v54 = vpop.f32.mrf.mxu1 }
 0x105   :  { %v2825_v55 = vpop.f32.mrf.mxu0  ;;  %v2827_v56 = vpop.f32.mrf.mxu1 }
 0x107   :  { %v910_v57 = vpop.f32.mrf.mxu0  ;;  %v1102_v58 = vpop.f32.mrf.mxu1 }
 0x109   :  { %v913_v59 = vpop.f32.mrf.mxu0  ;;  %v2829_v60 = vpop.f32.mrf.mxu1 }
 0x10a   :  { %v914_v54 = vadd.f32 %v2882_v49, %v913_v59  ;;  %v909_v59 = vadd.f32 %v2882_v49, %v2825_v55 }
 0x10b   :  { %v915_v61 = vpop.f32.mrf.mxu0  ;;  %v1107_v62 = vpop.f32.mrf.mxu1 }
 0x10c   :  { %v906_v61 = vadd.f32 %v2882_v49, %v2821_v51 }
 0x10d   :  { %v916_v63 = vpop.f32.mrf.mxu0  ;;  %v2831_v0 = vpop.f32.mrf.mxu1 }
 0x10f   :  { %v918_v1 = vpop.f32.mrf.mxu0  ;;  %v1110_v2 = vpop.f32.mrf.mxu1 }
 0x111   :  { %v2833_v3 = vpop.f32.mrf.mxu0  ;;  %v2835_v4 = vpop.f32.mrf.mxu1 }
 0x112   :  { %v922_v55 = vadd.f32 %v2882_v49, %v2833_v3 }
 0x113   :  { %v923_v5 = vpop.f32.mrf.mxu0  ;;  %v1115_v6 = vpop.f32.mrf.mxu1 }
 0x114   :  { %v917_v5 = vadd.f32 %v2882_v49, %v916_v63 }
 0x115   :  { %v2837_v7 = vpop.f32.mrf.mxu0  ;;  %v2839_v8 = vpop.f32.mrf.mxu1 }
 0x117   :  { %v926_v9 = vpop.f32.mrf.mxu0  ;;  %v1118_v10 = vpop.f32.mrf.mxu1 }
 0x119   :  { %v929_v11 = vpop.f32.mrf.mxu0  ;;  %v2841_v12 = vpop.f32.mrf.mxu1 }
 0x11a   :  { %v930_v51 = vadd.f32 %v2882_v49, %v929_v11 }
 0x11b   :  { %v931_v13 = vpop.f32.mrf.mxu0  ;;  %v1123_v14 = vpop.f32.mrf.mxu1 }
 0x11d   :  { %v2843_v15 = vpop.f32.mrf.mxu0  ;;  %v2845_v16 = vpop.f32.mrf.mxu1 }
 0x11f   :  { %v934_v17 = vpop.f32.mrf.mxu0  ;;  %v1126_v18 = vpop.f32.mrf.mxu1 }
 0x121   :  { %v2847_v19 = vpop.f32.mrf.mxu0  ;;  %v2849_v20 = vpop.f32.mrf.mxu1 }
 0x123   :  { %v939_v21 = vpop.f32.mrf.mxu0  ;;  %v1131_v22 = vpop.f32.mrf.mxu1 }
 0x125   :  { %v2851_v23 = vpop.f32.mrf.mxu0  ;;  %v2853_v24 = vpop.f32.mrf.mxu1 }
 0x127   :  { %v942_v25 = vpop.f32.mrf.mxu0  ;;  %v1134_v26 = vpop.f32.mrf.mxu1 }
 0x129   :  { %v2855_v27 = vpop.f32.mrf.mxu0  ;;  %v2857_v28 = vpop.f32.mrf.mxu1 }
 0x12b   :  { %v947_v29 = vpop.f32.mrf.mxu0  ;;  %v1139_v30 = vpop.f32.mrf.mxu1 }
 0x12d   :  { %v2859_v31 = vpop.f32.mrf.mxu0  ;;  %v2861_v32 = vpop.f32.mrf.mxu1 }
 0x12f   :  { %v950_v33 = vpop.f32.mrf.mxu0  ;;  %v1142_v34 = vpop.f32.mrf.mxu1 }
 0x131   :  { %v2863_v35 = vpop.f32.mrf.mxu0  ;;  %v2865_v36 = vpop.f32.mrf.mxu1 }
 0x133   :  { %v955_v37 = vpop.f32.mrf.mxu0  ;;  %v1147_v38 = vpop.f32.mrf.mxu1 }
 0x135   :  { %v2867_v39 = vpop.f32.mrf.mxu0  ;;  %v2869_v40 = vpop.f32.mrf.mxu1 }
 0x137   :  { %v958_v41 = vpop.f32.mrf.mxu0  ;;  %v1150_v42 = vpop.f32.mrf.mxu1 }
 0x138   :  { %v933_v41 = vadd.f32 %v2882_v49, %v2843_v15 }
 0x139   :  { %v2871_v43 = vpop.f32.mrf.mxu0  ;;  %v2873_v44 = vpop.f32.mrf.mxu1 }
 0x13b   :  { %v963_v45 = vpop.f32.mrf.mxu0  ;;  %v1155_v46 = vpop.f32.mrf.mxu1 }
 0x13d   :  { %v2875_v47 = vpop.f32.mrf.mxu0  ;;  %v2877_v48 = vpop.f32.mrf.mxu1 }
 0x13f   :  { %v966_v50 = vpop.f32.mrf.mxu0  ;;  %v1158_v53 = vpop.f32.mrf.mxu1 }
 0x140   :  { %v925_v53 = vadd.f32 %v2882_v49, %v2837_v7 }
 0x141   :  { %v2885_v57 = vpop.f32.mrf.mxu0  ;;  %v2153_v58 = vpop.f32.mrf.mxu1 }
 0x142   :  { %v1203_v62 = vadd.f32 %v2153_v58, %v914_v54 }
 0x143   :  { %v971_v1 = vpop.f32.mrf.mxu0  ;;  %v1194_v2 = vpop.f32.mrf.mxu1 }
 0x144   :  { %v1451_v6 = vmax.f32 %v1203_v62, 0.0  ;;  %v1195_v9 = vadd.f32 %v1194_v2, %v906_v61  ;;  %v946_v1 = vadd.f32 %v2882_v49, %v2855_v27 }
 0x145   :  { %v2890_v10 = vpop.f32.mrf.mxu0  ;;  %v2154_v13 = vpop.f32.mrf.mxu1 }
 0x146   :  { %v2051_v14 = vpack.c.bf16 %v1451_v6, %v1451_v6  ;;  %v1449_v17 = vmax.f32 %v1195_v9, 0.0  ;;  %v1206_v18 = vadd.f32 %v2154_v13, %v917_v5  ;;  %v938_v13 = vadd.f32 %v2882_v49, %v2847_v19 }
 0x147   :  { %v974_v21 = vpop.f32.mrf.mxu0  ;;  %v1197_v22 = vpop.f32.mrf.mxu1 }
 0x148   :  { %1772 = vst.msk [vmem:[%s3272_s3 + $0x8] sm:$0xf] %vm1769_vm1, %v2051_v14  ;;  %v2049_v63 = vpack.c.bf16 %v1449_v17, %v1449_v17  ;;  %v1452_v25 = vmax.f32 %v1206_v18, 0.0  ;;  %v1198_v26 = vadd.f32 %v1197_v22, %v909_v59  ;;  %v949_v21 = vadd.f32 %v2882_v49, %v2859_v31 }
 0x149   :  { %v2899_v29 = vpop.f32.mrf.mxu0  ;;  %v2157_v30 = vpop.f32.mrf.mxu1 }
 0x14a   :  { %1770 = vst.msk [vmem:[%s3272_s3] sm:$0xf] %vm1769_vm1, %v2049_v63  ;;  %v2052_v11 = vpack.c.bf16 %v1452_v25, %v1452_v25  ;;  %v1450_v33 = vmax.f32 %v1198_v26, 0.0  ;;  %v1219_v34 = vadd.f32 %v2157_v30, %v930_v51  ;;  %v941_v26 = vadd.f32 %v2882_v49, %v2851_v23 }
 0x14b   :  { %v979_v37 = vpop.f32.mrf.mxu0  ;;  %v1210_v38 = vpop.f32.mrf.mxu1 }
 0x14c   :  { %1773 = vst.msk [vmem:[%s3272_s3 + $0xc] sm:$0xf] %vm1769_vm1, %v2052_v11  ;;  %v2050_v42 = vpack.c.bf16 %v1450_v33, %v1450_v33  ;;  %v1455_v3 = vmax.f32 %v1219_v34, 0.0  ;;  %v1211_v45 = vadd.f32 %v1210_v38, %v922_v55  ;;  %v962_v34 = vadd.f32 %v2882_v49, %v2871_v43 }
 0x14d   :  { %v2913_v46 = vpop.f32.mrf.mxu0  ;;  %v2158_v50 = vpop.f32.mrf.mxu1 }
 0x14e   :  { %1771 = vst.msk [vmem:[%s3272_s3 + $0x4] sm:$0xf] %vm1769_vm1, %v2050_v42  ;;  %v2055_v15 = vpack.c.bf16 %v1455_v3, %v1455_v3  ;;  %v1453_v54 = vmax.f32 %v1211_v45, 0.0  ;;  %v1222_v58 = vadd.f32 %v2158_v50, %v933_v41  ;;  %v954_v3 = vadd.f32 %v2882_v49, %v2863_v35 }
 0x14f   :  { %v982_v61 = vpop.f32.mrf.mxu0  ;;  %v1213_v62 = vpop.f32.mrf.mxu1 }
 0x150   :  { %1776 = vst.msk [vmem:[%s3272_s3 + $0x18] sm:$0xf] %vm1769_vm1, %v2055_v15  ;;  %v2053_v2 = vpack.c.bf16 %v1453_v54, %v1453_v54  ;;  %v1456_v7 = vmax.f32 %v1222_v58, 0.0  ;;  %v1214_v5 = vadd.f32 %v1213_v62, %v925_v53  ;;  %v965_v54 = vadd.f32 %v2882_v49, %v2875_v47 }
 0x151   :  { %v2927_v6 = vpop.f32.mrf.mxu0  ;;  %v2161_v9 = vpop.f32.mrf.mxu1 }
 0x152   :  { %1774 = vst.msk [vmem:[%s3272_s3 + $0x10] sm:$0xf] %vm1769_vm1, %v2053_v2  ;;  %v2056_v27 = vpack.c.bf16 %v1456_v7, %v1456_v7  ;;  %v1454_v59 = vmax.f32 %v1214_v5, 0.0  ;;  %v1235_v14 = vadd.f32 %v2161_v9, %v946_v1  ;;  %v957_v2 = vadd.f32 %v2882_v49, %v2867_v39 }
 0x153   :  { %v987_v17 = vpop.f32.mrf.mxu0  ;;  %v1226_v18 = vpop.f32.mrf.mxu1 }
 0x154   :  { %1777 = vst.msk [vmem:[%s3272_s3 + $0x1c] sm:$0xf] %vm1769_vm1, %v2056_v27  ;;  %v2054_v22 = vpack.c.bf16 %v1454_v59, %v1454_v59  ;;  %v1459_v19 = vmax.f32 %v1235_v14, 0.0  ;;  %v1227_v51 = vadd.f32 %v1226_v18, %v938_v13  ;;  %v978_v27 = vadd.f32 %v2882_v49, %v2899_v29 }
 0x155   :  { %v2941_v63 = vpop.f32.mrf.mxu0  ;;  %v2162_v25 = vpop.f32.mrf.mxu1 }
 0x156   :  { %1775 = vst.msk [vmem:[%s3272_s3 + $0x14] sm:$0xf] %vm1769_vm1, %v2054_v22  ;;  %v2059_v31 = vpack.c.bf16 %v1459_v19, %v1459_v19  ;;  %v1457_v30 = vmax.f32 %v1227_v51, 0.0  ;;  %v1238_v55 = vadd.f32 %v2162_v25, %v949_v21  ;;  %v970_v21 = vadd.f32 %v2882_v49, %v2885_v57 }
 0x157   :  { %v990_v11 = vpop.f32.mrf.mxu0  ;;  %v1229_v33 = vpop.f32.mrf.mxu1 }
 0x158   :  { %1780 = vst.msk [vmem:[%s3272_s3 + $0x28] sm:$0xf] %vm1769_vm1, %v2059_v31  ;;  %v2057_v37 = vpack.c.bf16 %v1457_v30, %v1457_v30  ;;  %v1460_v23 = vmax.f32 %v1238_v55, 0.0  ;;  %v1230_v38 = vadd.f32 %v1229_v33, %v941_v26  ;;  %v981_v26 = vadd.f32 %v2882_v49, %v2913_v46 }
 0x159   :  { %v993_v41 = vpop.f32.mrf.mxu0  ;;  %v2165_v42 = vpop.f32.mrf.mxu1  ;;  %v973_v33 = vadd.f32 %v2882_v49, %v2890_v10 }
 0x15a   :  { %1778 = vst.msk [vmem:[%s3272_s3 + $0x20] sm:$0xf] %vm1769_vm1, %v2057_v37  ;;  %v2060_v45 = vpack.c.bf16 %v1460_v23, %v1460_v23  ;;  %v1458_v43 = vmax.f32 %v1230_v38, 0.0  ;;  %v1251_v50 = vadd.f32 %v2165_v42, %v962_v34  ;;  %v994_v42 = vadd.f32 %v2882_v49, %v993_v41 }
 0x15b   :  { %v995_v53 = vpop.f32.mrf.mxu0  ;;  %v1242_v15 = vpop.f32.mrf.mxu1 }
 0x15c   :  { %1781 = vst.msk [vmem:[%s3272_s3 + $0x2c] sm:$0xf] %vm1769_vm1, %v2060_v45  ;;  %v2058_v58 = vpack.c.bf16 %v1458_v43, %v1458_v43  ;;  %v1463_v35 = vmax.f32 %v1251_v50, 0.0  ;;  %v1243_v61 = vadd.f32 %v1242_v15, %v954_v3  ;;  %v986_v53 = vadd.f32 %v2882_v49, %v2927_v6 }
 0x15d   :  { %v996_v62 = vpop.f32.mrf.mxu0  ;;  %v2166_v1 = vpop.f32.mrf.mxu1 }
 0x15e   :  { %1779 = vst.msk [vmem:[%s3272_s3 + $0x24] sm:$0xf] %vm1769_vm1, %v2058_v58  ;;  %v2063_v7 = vpack.c.bf16 %v1463_v35, %v1463_v35  ;;  %v1461_v47 = vmax.f32 %v1243_v61, 0.0  ;;  %v1254_v5 = vadd.f32 %v2166_v1, %v965_v54  ;;  %v997_v61 = vadd.f32 %v2882_v49, %v996_v62 }
 0x15f   :  { %v998_v9 = vpop.f32.mrf.mxu0  ;;  %v1245_v13 = vpop.f32.mrf.mxu1 }
 0x160   :  { %1784 = vst.msk [vmem:[%s3272_s3 + $0x38] sm:$0xf] %vm1769_vm1, %v2063_v7  ;;  %v2061_v59 = vpack.c.bf16 %v1461_v47, %v1461_v47  ;;  %v1464_v39 = vmax.f32 %v1254_v5, 0.0  ;;  %v1246_v14 = vadd.f32 %v1245_v13, %v957_v2  ;;  %v989_v5 = vadd.f32 %v2882_v49, %v2941_v63 }
 0x161   :  { %v1001_v17 = vpop.f32.mrf.mxu0  ;;  %v2169_v18 = vpop.f32.mrf.mxu1 }
 0x162   :  { %1782 = vst.msk [vmem:[%s3272_s3 + $0x30] sm:$0xf] %vm1769_vm1, %v2061_v59  ;;  %v2064_v22 = vpack.c.bf16 %v1464_v39, %v1464_v39  ;;  %v1462_v29 = vmax.f32 %v1246_v14, 0.0  ;;  %v1267_v19 = vadd.f32 %v2169_v18, %v978_v27 }
 0x163   :  { %v1003_v51 = vpop.f32.mrf.mxu0  ;;  %v1258_v25 = vpop.f32.mrf.mxu1 }
 0x164   :  { %1785 = vst.msk [vmem:[%s3272_s3 + $0x3c] sm:$0xf] %vm1769_vm1, %v2064_v22  ;;  %v2062_v31 = vpack.c.bf16 %v1462_v29, %v1462_v29  ;;  %v1467_v57 = vmax.f32 %v1267_v19, 0.0  ;;  %v1259_v30 = vadd.f32 %v1258_v25, %v970_v21  ;;  %v1002_v29 = vadd.f32 %v2882_v49, %v1001_v17 }
 0x165   :  { %v1004_v55 = vpop.f32.mrf.mxu0  ;;  %v2170_v11 = vpop.f32.mrf.mxu1 }
 0x166   :  { %1783 = vst.msk [vmem:[%s3272_s3 + $0x34] sm:$0xf] %vm1769_vm1, %v2062_v31  ;;  %v2067_v34 = vpack.c.bf16 %v1467_v57, %v1467_v57  ;;  %v1465_v46 = vmax.f32 %v1259_v30, 0.0  ;;  %v1270_v37 = vadd.f32 %v2170_v11, %v981_v26 }
 0x167   :  { %v1006_v23 = vpop.f32.mrf.mxu0  ;;  %v1261_v38 = vpop.f32.mrf.mxu1 }
 0x168   :  { %1788 = vst.msk [vmem:[%s3272_s3 + $0x48] sm:$0xf] %vm1769_vm1, %v2067_v34  ;;  %v2065_v3 = vpack.c.bf16 %v1465_v46, %v1465_v46  ;;  %v1468_v45 = vmax.f32 %v1270_v37, 0.0  ;;  %v1262_v10 = vadd.f32 %v1261_v38, %v973_v33  ;;  %v1005_v46 = vadd.f32 %v2882_v49, %v1004_v55 }
 0x169   :  { %v1009_v43 = vpop.f32.mrf.mxu0  ;;  %v2173_v50 = vpop.f32.mrf.mxu1 }
 0x16a   :  { %1786 = vst.msk [vmem:[%s3272_s3 + $0x40] sm:$0xf] %vm1769_vm1, %v2065_v3  ;;  %v2068_v15 = vpack.c.bf16 %v1468_v45, %v1468_v45  ;;  %v1466_v41 = vmax.f32 %v1262_v10, 0.0  ;;  %v1283_v54 = vadd.f32 %v2173_v50, %v994_v42  ;;  %v1010_v39 = vadd.f32 %v2882_v49, %v1009_v43 }
 0x16b   :  { %v1011_v58 = vpop.f32.mrf.mxu0  ;;  %v1274_v35 = vpop.f32.mrf.mxu1 }
 0x16c   :  { %1789 = vst.msk [vmem:[%s3272_s3 + $0x4c] sm:$0xf] %vm1769_vm1, %v2068_v15  ;;  %v2066_v1 = vpack.c.bf16 %v1466_v41, %v1466_v41  ;;  %v1471_v2 = vmax.f32 %v1283_v54, 0.0  ;;  %v1275_v6 = vadd.f32 %v1274_v35, %v986_v53 }
 0x16d   :  { %v1012_v7 = vpop.f32.mrf.mxu0  ;;  %v2174_v47 = vpop.f32.mrf.mxu1 }
 0x16e   :  { %1787 = vst.msk [vmem:[%s3272_s3 + $0x44] sm:$0xf] %vm1769_vm1, %v2066_v1  ;;  %v2071_v9 = vpack.c.bf16 %v1471_v2, %v1471_v2  ;;  %v1469_v62 = vmax.f32 %v1275_v6, 0.0  ;;  %v1286_v13 = vadd.f32 %v2174_v47, %v997_v61  ;;  %v1013_v57 = vadd.f32 %v2882_v49, %v1012_v7 }
 0x16f   :  { %v1014_v27 = vpop.f32.mrf.mxu0  ;;  %v1277_v59 = vpop.f32.mrf.mxu1 }
 0x170   :  { %1792 = vst.msk [vmem:[%s3272_s3 + $0x58] sm:$0xf] %vm1769_vm1, %v2071_v9  ;;  %v2069_v14 = vpack.c.bf16 %v1469_v62, %v1469_v62  ;;  %v1472_v18 = vmax.f32 %v1286_v13, 0.0  ;;  %v1278_v63 = vadd.f32 %v1277_v59, %v989_v5 }
 0x171   :  { %v1017_v21 = vpop.f32.mrf.mxu0  ;;  %v2177_v22 = vpop.f32.mrf.mxu1 }
 0x172   :  { %1790 = vst.msk [vmem:[%s3272_s3 + $0x50] sm:$0xf] %vm1769_vm1, %v2069_v14  ;;  %v2072_v19 = vpack.c.bf16 %v1472_v18, %v1472_v18  ;;  %v1470_v51 = vmax.f32 %v1278_v63, 0.0  ;;  %v1299_v25 = vadd.f32 %v2177_v22, %v1010_v39  ;;  %v1018_v53 = vadd.f32 %v2882_v49, %v1017_v21 }
 0x173   :  { %v1019_v26 = vpop.f32.mrf.mxu0  ;;  %v1290_v31 = vpop.f32.mrf.mxu1 }
 0x174   :  { %1793 = vst.msk [vmem:[%s3272_s3 + $0x5c] sm:$0xf] %vm1769_vm1, %v2072_v19  ;;  %v2070_v30 = vpack.c.bf16 %v1470_v51, %v1470_v51  ;;  %v1475_v11 = vmax.f32 %v1299_v25, 0.0  ;;  %v1291_v17 = vadd.f32 %v1290_v31, %v1002_v29 }
 0x175   :  { %v1020_v33 = vpop.f32.mrf.mxu0  ;;  %v2178_v34 = vpop.f32.mrf.mxu1 }
 0x176   :  { %1791 = vst.msk [vmem:[%s3272_s3 + $0x54] sm:$0xf] %vm1769_vm1, %v2070_v30  ;;  %v2075_v37 = vpack.c.bf16 %v1475_v11, %v1475_v11  ;;  %v1473_v23 = vmax.f32 %v1291_v17, 0.0  ;;  %v1302_v38 = vadd.f32 %v2178_v34, %v1013_v57  ;;  %v1021_v47 = vadd.f32 %v2882_v49, %v1020_v33 }
 0x177   :  { %v1022_v42 = vpop.f32.mrf.mxu0  ;;  %v1293_v3 = vpop.f32.mrf.mxu1 }
 0x178   :  { %1796 = vst.msk [vmem:[%s3272_s3 + $0x68] sm:$0xf] %vm1769_vm1, %v2075_v37  ;;  %v2073_v45 = vpack.c.bf16 %v1473_v23, %v1473_v23  ;;  %v1476_v10 = vmax.f32 %v1302_v38, 0.0  ;;  %v1294_v43 = vadd.f32 %v1293_v3, %v1005_v46 }
 0x179   :  { %v1025_v50 = vpop.f32.mrf.mxu0  ;;  %v2181_v55 = vpop.f32.mrf.mxu1 }
 0x17a   :  { %1794 = vst.msk [vmem:[%s3272_s3 + $0x60] sm:$0xf] %vm1769_vm1, %v2073_v45  ;;  %v2076_v15 = vpack.c.bf16 %v1476_v10, %v1476_v10  ;;  %v1474_v41 = vmax.f32 %v1294_v43, 0.0  ;;  %v1026_v54 = vadd.f32 %v2882_v49, %v1025_v50 }
 0x17b   :  { %v1027_v58 = vpop.f32.mrf.mxu0  ;;  %v1306_v35 = vpop.f32.mrf.mxu1 }
 0x17c   :  { %1797 = vst.msk [vmem:[%s3272_s3 + $0x6c] sm:$0xf] %vm1769_vm1, %v2076_v15  ;;  %v2074_v61 = vpack.c.bf16 %v1474_v41, %v1474_v41  ;;  %v1315_v1 = vadd.f32 %v2181_v55, %v1026_v54  ;;  %v1307_v2 = vadd.f32 %v1306_v35, %v1018_v53 }
 0x17d   :  { %v1028_v6 = vpop.f32.mrf.mxu0  ;;  %v2182_v7 = vpop.f32.mrf.mxu1 }
 0x17e   :  { %1795 = vst.msk [vmem:[%s3272_s3 + $0x64] sm:$0xf] %vm1769_vm1, %v2074_v61  ;;  %v1479_v5 = vmax.f32 %v1315_v1, 0.0  ;;  %v1477_v9 = vmax.f32 %v1307_v2, 0.0  ;;  %v1029_v62 = vadd.f32 %v2882_v49, %v1028_v6 }
 0x17f   :  { %v1030_v13 = vpop.f32.mrf.mxu0  ;;  %v1309_v27 = vpop.f32.mrf.mxu1 }
 0x180   :  { %v2079_v59 = vpack.c.bf16 %v1479_v5, %v1479_v5  ;;  %v2077_v39 = vpack.c.bf16 %v1477_v9, %v1477_v9  ;;  %v1318_v14 = vadd.f32 %v2182_v7, %v1029_v62  ;;  %v1310_v18 = vadd.f32 %v1309_v27, %v1021_v47 }
 0x181   :  { %v1033_v63 = vpop.f32.mrf.mxu0  ;;  %v2185_v21 = vpop.f32.mrf.mxu1 }
 0x182   :  { %1800 = vst.msk [vmem:[%s3272_s3 + $0x78] sm:$0xf] %vm1769_vm1, %v2079_v59  ;;  %1798 = vst.msk [vmem:[%s3272_s3 + $0x70] sm:$0xf] %vm1769_vm1, %v2077_v39  ;;  %v1480_v22 = vmax.f32 %v1318_v14, 0.0  ;;  %v1478_v29 = vmax.f32 %v1310_v18, 0.0  ;;  %v1034_v19 = vadd.f32 %v2882_v49, %v1033_v63 }
 0x183   :  { %v1035_v51 = vpop.f32.mrf.mxu0  ;;  %v1322_v25 = vpop.f32.mrf.mxu1 }
 0x184   :  { %v2080_v26 = vpack.c.bf16 %v1480_v22, %v1480_v22  ;;  %v2078_v31 = vpack.c.bf16 %v1478_v29, %v1478_v29  ;;  %v1323_v57 = vadd.f32 %v1322_v25, %v1034_v19 }
 0x185   :  { %v1036_v30 = vpop.f32.mrf.mxu0  ;;  %v2186_v11 = vpop.f32.mrf.mxu1 }
 0x186   :  { %1801 = vst.msk [vmem:[%s3272_s3 + $0x7c] sm:$0xf] %vm1769_vm1, %v2080_v26  ;;  %1799 = vst.msk [vmem:[%s3272_s3 + $0x74] sm:$0xf] %vm1769_vm1, %v2078_v31  ;;  %v1481_v17 = vmax.f32 %v1323_v57, 0.0  ;;  %v1037_v33 = vadd.f32 %v2882_v49, %v1036_v30 }
 0x187   :  { %v1038_v34 = vpop.f32.mrf.mxu0  ;;  %v1325_v46 = vpop.f32.mrf.mxu1 }
 0x188   :  { %v2081_v37 = vpack.c.bf16 %v1481_v17, %v1481_v17  ;;  %v1326_v23 = vadd.f32 %v1325_v46, %v1037_v33 }
 0x189   :  { %v1041_v38 = vpop.f32.mrf.mxu0  ;;  %v2189_v42 = vpop.f32.mrf.mxu1 }
 0x18a   :  { %1802 = vst.msk [vmem:[%s3272_s3 + $0x80] sm:$0xf] %vm1769_vm1, %v2081_v37  ;;  %v1482_v3 = vmax.f32 %v1326_v23, 0.0  ;;  %v1042_v45 = vadd.f32 %v2882_v49, %v1041_v38  ;;  %v1106_v23 = vadd.f32 %v2882_v49, %v2829_v60 }
 0x18b   :  { %v1043_v10 = vpop.f32.mrf.mxu0  ;;  %v1338_v43 = vpop.f32.mrf.mxu1 }
 0x18c   :  { %v2082_v50 = vpack.c.bf16 %v1482_v3, %v1482_v3  ;;  %v1331_v55 = vadd.f32 %v2185_v21, %v1042_v45  ;;  %v1098_v10 = vadd.f32 %v2882_v49, %v2823_v52  ;;  %v1109_v52 = vadd.f32 %v2882_v49, %v2831_v0 }
 0x18d   :  { %v1044_v53 = vpop.f32.mrf.mxu0  ;;  %v2190_v15 = vpop.f32.mrf.mxu1 }
 0x18e   :  { %1803 = vst.msk [vmem:[%s3272_s3 + $0x84] sm:$0xf] %vm1769_vm1, %v2082_v50  ;;  %v1483_v41 = vmax.f32 %v1331_v55, 0.0  ;;  %v1045_v54 = vadd.f32 %v2882_v49, %v1044_v53 }
 0x18f   :  { %v1046_v58 = vpop.f32.mrf.mxu0  ;;  %v1341_v35 = vpop.f32.mrf.mxu1 }
 0x190   :  { %v2083_v61 = vpack.c.bf16 %v1483_v41, %v1483_v41  ;;  %v1334_v1 = vadd.f32 %v2186_v11, %v1045_v54 }
 0x191   :  { %v1049_v2 = vpop.f32.mrf.mxu0  ;;  %v3087_v6 = vpop.f32.mrf.mxu1 }
 0x192   :  { %1804 = vst.msk [vmem:[%s3272_s3 + $0x88] sm:$0xf] %vm1769_vm1, %v2083_v61  ;;  %v1484_v7 = vmax.f32 %v1334_v1, 0.0  ;;  %v1050_v47 = vadd.f32 %v2882_v49, %v1049_v2 }
 0x193   :  { %v1051_v5 = vpop.f32.mrf.mxu0  ;;  %v1354_v9 = vpop.f32.mrf.mxu1 }
 0x194   :  { %v2084_v62 = vpack.c.bf16 %v1484_v7, %v1484_v7  ;;  %v1339_v13 = vadd.f32 %v1338_v43, %v1050_v47 }
 0x195   :  { %v1052_v27 = vpop.f32.mrf.mxu0  ;;  %v3094_v59 = vpop.f32.mrf.mxu1 }
 0x196   :  { %1805 = vst.msk [vmem:[%s3272_s3 + $0x8c] sm:$0xf] %vm1769_vm1, %v2084_v62  ;;  %v1485_v39 = vmax.f32 %v1339_v13, 0.0  ;;  %v1053_v14 = vadd.f32 %v2882_v49, %v1052_v27 }
 0x197   :  { %v1054_v18 = vpop.f32.mrf.mxu0  ;;  %v1357_v63 = vpop.f32.mrf.mxu1 }
 0x198   :  { %v2085_v21 = vpack.c.bf16 %v1485_v39, %v1485_v39  ;;  %v1342_v22 = vadd.f32 %v1341_v35, %v1053_v14  ;;  %v1101_v35 = vadd.f32 %v2882_v49, %v2827_v56 }
 0x199   :  { %v1057_v29 = vpop.f32.mrf.mxu0  ;;  %v3101_v19 = vpop.f32.mrf.mxu1 }
 0x19a   :  { %1806 = vst.msk [vmem:[%s3272_s3 + $0x90] sm:$0xf] %vm1769_vm1, %v2085_v21  ;;  %v1486_v51 = vmax.f32 %v1342_v22, 0.0  ;;  %v1058_v25 = vadd.f32 %v2882_v49, %v1057_v29 }
 0x19b   :  { %v1059_v26 = vpop.f32.mrf.mxu0  ;;  %v3108_v31 = vpop.f32.mrf.mxu1 }
 0x19c   :  { %v2086_v57 = vpack.c.bf16 %v1486_v51, %v1486_v51  ;;  %v1347_v30 = vadd.f32 %v2189_v42, %v1058_v25  ;;  %v1125_v26 = vadd.f32 %v2882_v49, %v2845_v16 }
 0x19d   :  { %v1060_v11 = vpop.f32.mrf.mxu0  ;;  %v3110_v17 = vpop.f32.mrf.mxu1 }
 0x19e   :  { %1807 = vst.msk [vmem:[%s3272_s3 + $0x94] sm:$0xf] %vm1769_vm1, %v2086_v57  ;;  %v1487_v33 = vmax.f32 %v1347_v30, 0.0  ;;  %v1061_v34 = vadd.f32 %v2882_v49, %v1060_v11 }
 0x19f   :  { %v1062_v46 = vpop.f32.mrf.mxu0  ;;  %v3117_v37 = vpop.f32.mrf.mxu1 }
 0x1a0   :  { %v2087_v38 = vpack.c.bf16 %v1487_v33, %v1487_v33  ;;  %v1350_v3 = vadd.f32 %v2190_v15, %v1061_v34 }
 0x1a1   :  { %v1065_v42 = vpop.f32.mrf.mxu0  ;;  %v2201_v45 = vpop.f32.mrf.mxu1 }
 0x1a2   :  { %1808 = vst.msk [vmem:[%s3272_s3 + $0x98] sm:$0xf] %vm1769_vm1, %v2087_v38  ;;  %v1488_v43 = vmax.f32 %v1350_v3, 0.0  ;;  %v1066_v50 = vadd.f32 %v2882_v49, %v1065_v42  ;;  %v1395_v55 = vadd.f32 %v2201_v45, %v1106_v23  ;;  %v1117_v38 = vadd.f32 %v2882_v49, %v2839_v8 }
 0x1a3   :  { %v1067_v53 = vpop.f32.mrf.mxu0  ;;  %v1386_v41 = vpop.f32.mrf.mxu1 }
 0x1a4   :  { %v2088_v54 = vpack.c.bf16 %v1488_v43, %v1488_v43  ;;  %v1355_v60 = vadd.f32 %v1354_v9, %v1066_v50  ;;  %v1499_v58 = vmax.f32 %v1395_v55, 0.0  ;;  %v1387_v15 = vadd.f32 %v1386_v41, %v1098_v10 }
 0x1a5   :  { %v1068_v61 = vpop.f32.mrf.mxu0  ;;  %v2202_v1 = vpop.f32.mrf.mxu1  ;;  %v1122_v9 = vadd.f32 %v2882_v49, %v2841_v12 }
 0x1a6   :  { %1809 = vst.msk [vmem:[%s3272_s3 + $0x9c] sm:$0xf] %vm1769_vm1, %v2088_v54  ;;  %v1489_v2 = vmax.f32 %v1355_v60, 0.0  ;;  %v2099_v7 = vpack.c.bf16 %v1499_v58, %v1499_v58  ;;  %v1497_v47 = vmax.f32 %v1387_v15, 0.0  ;;  %v1069_v5 = vadd.f32 %v2882_v49, %v1068_v61 }
 0x1a7   :  { %v1398_v62 = vadd.f32 %v2202_v1, %v1109_v52  ;;  %v1070_v56 = vpop.f32.mrf.mxu0  ;;  %v1389_v13 = vpop.f32.mrf.mxu1  ;;  %v1130_v60 = vadd.f32 %v2882_v49, %v2849_v20  ;;  %v1138_v58 = vadd.f32 %v2882_v49, %v2857_v28 }
 0x1a8   :  { %v2089_v27 = vpack.c.bf16 %v1489_v2, %v1489_v2  ;;  %1820 = vst.msk [vmem:[%s3272_s3 + $0xc8] sm:$0xf] %vm1769_vm1, %v2099_v7  ;;  %v2097_v0 = vpack.c.bf16 %v1497_v47, %v1497_v47  ;;  %v1358_v39 = vadd.f32 %v1357_v63, %v1069_v5  ;;  %v1390_v14 = vadd.f32 %v1389_v13, %v1101_v35 }
 0x1a9   :  { %v1500_v18 = vmax.f32 %v1398_v62, 0.0  ;;  %v1073_v21 = vpop.f32.mrf.mxu0  ;;  %v2205_v22 = vpop.f32.mrf.mxu1  ;;  %v1114_v63 = vadd.f32 %v2882_v49, %v2835_v4  ;;  %v1141_v7 = vadd.f32 %v2882_v49, %v2861_v32 }
 0x1aa   :  { %1810 = vst.msk [vmem:[%s3272_s3 + $0xa0] sm:$0xf] %vm1769_vm1, %v2089_v27  ;;  %1818 = vst.msk [vmem:[%s3272_s3 + $0xc0] sm:$0xf] %vm1769_vm1, %v2097_v0  ;;  %v1490_v12 = vmax.f32 %v1358_v39, 0.0  ;;  %v1498_v29 = vmax.f32 %v1390_v14, 0.0  ;;  %v1074_v51 = vadd.f32 %v2882_v49, %v1073_v21  ;;  %v1411_v25 = vadd.f32 %v2205_v22, %v1122_v9 }
 0x1ab   :  { %v2100_v57 = vpack.c.bf16 %v1500_v18, %v1500_v18  ;;  %v1075_v30 = vpop.f32.mrf.mxu0  ;;  %v1402_v11 = vpop.f32.mrf.mxu1  ;;  %v1154_v21 = vadd.f32 %v2882_v49, %v2873_v44 }
 0x1ac   :  { %v2090_v33 = vpack.c.bf16 %v1490_v12, %v1490_v12  ;;  %v2098_v34 = vpack.c.bf16 %v1498_v29, %v1498_v29  ;;  %v1363_v46 = vadd.f32 %v3087_v6, %v1074_v51  ;;  %v1503_v23 = vmax.f32 %v1411_v25, 0.0 }
 0x1ad   :  { %1821 = vst.msk [vmem:[%s3272_s3 + $0xcc] sm:$0xf] %vm1769_vm1, %v2100_v57  ;;  %v1403_v4 = vadd.f32 %v1402_v11, %v1114_v63  ;;  %v1076_v3 = vpop.f32.mrf.mxu0  ;;  %v2206_v42 = vpop.f32.mrf.mxu1  ;;  %v1146_v57 = vadd.f32 %v2882_v49, %v2865_v36 }
 0x1ae   :  { %1811 = vst.msk [vmem:[%s3272_s3 + $0xa4] sm:$0xf] %vm1769_vm1, %v2090_v33  ;;  %1819 = vst.msk [vmem:[%s3272_s3 + $0xc4] sm:$0xf] %vm1769_vm1, %v2098_v34  ;;  %v1491_v16 = vmax.f32 %v1363_v46, 0.0  ;;  %v2103_v8 = vpack.c.bf16 %v1503_v23, %v1503_v23  ;;  %v1077_v6 = vadd.f32 %v2882_v49, %v1076_v3  ;;  %v1414_v45 = vadd.f32 %v2206_v42, %v1125_v26 }
 0x1af   :  { %v1501_v10 = vmax.f32 %v1403_v4, 0.0  ;;  %v1078_v43 = vpop.f32.mrf.mxu0  ;;  %v1405_v50 = vpop.f32.mrf.mxu1 }
 0x1b0   :  { %v2091_v55 = vpack.c.bf16 %v1491_v16, %v1491_v16  ;;  %1824 = vst.msk [vmem:[%s3272_s3 + $0xd8] sm:$0xf] %vm1769_vm1, %v2103_v8  ;;  %v1366_v53 = vadd.f32 %v3094_v59, %v1077_v6  ;;  %v1504_v41 = vmax.f32 %v1414_v45, 0.0  ;;  %v1406_v54 = vadd.f32 %v1405_v50, %v1117_v38 }
 0x1b1   :  { %v2101_v15 = vpack.c.bf16 %v1501_v10, %v1501_v10  ;;  %v1081_v35 = vpop.f32.mrf.mxu0  ;;  %v2209_v52 = vpop.f32.mrf.mxu1  ;;  %v1149_v16 = vadd.f32 %v2882_v49, %v2869_v40  ;;  %v1157_v8 = vadd.f32 %v2882_v49, %v2877_v48 }
 0x1b2   :  { %1812 = vst.msk [vmem:[%s3272_s3 + $0xa8] sm:$0xf] %vm1769_vm1, %v2091_v55  ;;  %v1492_v61 = vmax.f32 %v1366_v53, 0.0  ;;  %v2104_v1 = vpack.c.bf16 %v1504_v41, %v1504_v41  ;;  %v1502_v2 = vmax.f32 %v1406_v54, 0.0  ;;  %v1082_v59 = vadd.f32 %v2882_v49, %v1081_v35 }
 0x1b3   :  { %1822 = vst.msk [vmem:[%s3272_s3 + $0xd0] sm:$0xf] %vm1769_vm1, %v2101_v15  ;;  %v1427_v20 = vadd.f32 %v2209_v52, %v1138_v58  ;;  %v1083_v28 = vpop.f32.mrf.mxu0  ;;  %v1418_v47 = vpop.f32.mrf.mxu1 }
 0x1b4   :  { %v2092_v5 = vpack.c.bf16 %v1492_v61, %v1492_v61  ;;  %1825 = vst.msk [vmem:[%s3272_s3 + $0xdc] sm:$0xf] %vm1769_vm1, %v2104_v1  ;;  %v2102_v9 = vpack.c.bf16 %v1502_v2, %v1502_v2  ;;  %v1371_v62 = vadd.f32 %v3108_v31, %v1082_v59  ;;  %v1419_v56 = vadd.f32 %v1418_v47, %v1130_v60 }
 0x1b5   :  { %v1507_v13 = vmax.f32 %v1427_v20, 0.0  ;;  %v1084_v32 = vpop.f32.mrf.mxu0  ;;  %v2210_v27 = vpop.f32.mrf.mxu1  ;;  %v1133_v31 = vadd.f32 %v2882_v49, %v2853_v24 }
 0x1b6   :  { %1813 = vst.msk [vmem:[%s3272_s3 + $0xac] sm:$0xf] %vm1769_vm1, %v2092_v5  ;;  %1823 = vst.msk [vmem:[%s3272_s3 + $0xd4] sm:$0xf] %vm1769_vm1, %v2102_v9  ;;  %v1493_v0 = vmax.f32 %v1371_v62, 0.0  ;;  %v1505_v39 = vmax.f32 %v1419_v56, 0.0  ;;  %v1085_v14 = vadd.f32 %v2882_v49, %v1084_v32  ;;  %v1430_v18 = vadd.f32 %v2210_v27, %v1141_v7 }
 0x1b7   :  { %v2107_v22 = vpack.c.bf16 %v1507_v13, %v1507_v13  ;;  %v1086_v12 = vpop.f32.mrf.mxu0  ;;  %v1421_v29 = vpop.f32.mrf.mxu1 }
 0x1b8   :  { %v2093_v51 = vpack.c.bf16 %v1493_v0, %v1493_v0  ;;  %v2105_v25 = vpack.c.bf16 %v1505_v39, %v1505_v39  ;;  %v1374_v63 = vadd.f32 %v3117_v37, %v1085_v14  ;;  %v1508_v26 = vmax.f32 %v1430_v18, 0.0 }
 0x1b9   :  { %1828 = vst.msk [vmem:[%s3272_s3 + $0xe8] sm:$0xf] %vm1769_vm1, %v2107_v22  ;;  %v1422_v24 = vadd.f32 %v1421_v29, %v1133_v31  ;;  %v1089_v30 = vpop.f32.mrf.mxu0  ;;  %v2213_v11 = vpop.f32.mrf.mxu1 }
 0x1ba   :  { %1814 = vst.msk [vmem:[%s3272_s3 + $0xb0] sm:$0xf] %vm1769_vm1, %v2093_v51  ;;  %1826 = vst.msk [vmem:[%s3272_s3 + $0xe0] sm:$0xf] %vm1769_vm1, %v2105_v25  ;;  %v1494_v44 = vmax.f32 %v1374_v63, 0.0  ;;  %v2108_v36 = vpack.c.bf16 %v1508_v26, %v1508_v26  ;;  %v1090_v37 = vadd.f32 %v2882_v49, %v1089_v30  ;;  %v1443_v33 = vadd.f32 %v2213_v11, %v1154_v21 }
 0x1bb   :  { %v1506_v34 = vmax.f32 %v1422_v24, 0.0  ;;  %v1091_v46 = vpop.f32.mrf.mxu0  ;;  %v1434_v23 = vpop.f32.mrf.mxu1 }
 0x1bc   :  { %v2094_v38 = vpack.c.bf16 %v1494_v44, %v1494_v44  ;;  %1829 = vst.msk [vmem:[%s3272_s3 + $0xec] sm:$0xf] %vm1769_vm1, %v2108_v36  ;;  %v1379_v4 = vadd.f32 %v3101_v19, %v1090_v37  ;;  %v1511_v3 = vmax.f32 %v1443_v33, 0.0  ;;  %v1435_v42 = vadd.f32 %v1434_v23, %v1146_v57 }
 0x1bd   :  { %v2106_v6 = vpack.c.bf16 %v1506_v34, %v1506_v34  ;;  %v1092_v45 = vpop.f32.mrf.mxu0  ;;  %v2214_v10 = vpop.f32.mrf.mxu1 }
 0x1be   :  { %1815 = vst.msk [vmem:[%s3272_s3 + $0xb4] sm:$0xf] %vm1769_vm1, %v2094_v38  ;;  %v1495_v43 = vmax.f32 %v1379_v4, 0.0  ;;  %v2111_v50 = vpack.c.bf16 %v1511_v3, %v1511_v3  ;;  %v1509_v55 = vmax.f32 %v1435_v42, 0.0  ;;  %v1093_v19 = vadd.f32 %v2882_v49, %v1092_v45 }
 0x1bf   :  { %1827 = vst.msk [vmem:[%s3272_s3 + $0xe4] sm:$0xf] %vm1769_vm1, %v2106_v6  ;;  %v1446_v40 = vadd.f32 %v2214_v10, %v1157_v8  ;;  %v1094_v48 = vpop.f32.mrf.mxu0  ;;  %v1437_v53 = vpop.f32.mrf.mxu1 }
 0x1c0   :  { %v2095_v41 = vpack.c.bf16 %v1495_v43, %v1495_v43  ;;  %1832 = vst.msk [vmem:[%s3272_s3 + $0xf8] sm:$0xf] %vm1769_vm1, %v2111_v50  ;;  %v2109_v54 = vpack.c.bf16 %v1509_v55, %v1509_v55  ;;  %v1382_v60 = vadd.f32 %v3110_v17, %v1093_v19  ;;  %v1438_v58 = vadd.f32 %v1437_v53, %v1149_v16 }
 0x1c1   :  { %v1512_v15 = vmax.f32 %v1446_v40, 0.0 }
 0x1c2   :  { %1816 = vst.msk [vmem:[%s3272_s3 + $0xb8] sm:$0xf] %vm1769_vm1, %v2095_v41  ;;  %1830 = vst.msk [vmem:[%s3272_s3 + $0xf0] sm:$0xf] %vm1769_vm1, %v2109_v54  ;;  %v1496_v49 = vmax.f32 %v1382_v60, 0.0  ;;  %v1510_v35 = vmax.f32 %v1438_v58, 0.0 }
 0x1c3   :  { %v2112_v52 = vpack.c.bf16 %v1512_v15, %v1512_v15 }
 0x1c4   :  { %v2096_v61 = vpack.c.bf16 %v1496_v49, %v1496_v49  ;;  %v2110_v1 = vpack.c.bf16 %v1510_v35, %v1510_v35 }
 0x1c5   :  { %1833 = vst.msk [vmem:[%s3272_s3 + $0xfc] sm:$0xf] %vm1769_vm1, %v2112_v52 }
 0x1c6   :  { %1817 = vst.msk [vmem:[%s3272_s3 + $0xbc] sm:$0xf] %vm1769_vm1, %v2096_v61  ;;  %1831 = vst.msk [vmem:[%s3272_s3 + $0xf4] sm:$0xf] %vm1769_vm1, %v2110_v1 }

// kernel: deep_supervision_forward.13
= control target key start
LH: loop header
LB: loop body
LE: loop exit
PB: predicated region body
PF: predicated region fallthrough
CT: control target
= control target key end

     0   :  { %vm318_vm0 = vcmask 261120   ;;  %vm617_vm1 = vcmask 257024   ;;  %s1144_s1 = inlined_call_operand.vmem [shape: bf16[288,32], index: 1, kind: input, shape index: {}]   ;;  %s1145_s0 = inlined_call_operand.vmem [shape: bf16[128,288], index: 0, kind: input, shape index: {}]   ;;  %s1146_s2 = inlined_call_operand.vmem [shape: f32[1,32], index: 2, kind: input, shape index: {}]   ;;  %s1147_s3 = inlined_call_operand.vmem [shape: bf16[128,32], index: 3, kind: output, shape index: {}]  }
   0x1   :  { %v831_v0 = vld [vmem:[%s1144_s1 + $0x78] sm:$0xff]   ;;  %v833_v2 = vld [vmem:[%s1144_s1 + $0x70] sm:$0xff]   ;;  %v835_v4 = vld [vmem:[%s1144_s1 + $0x68] sm:$0xff]  }
   0x2   :  { %v832_v1 = vld [vmem:[%s1144_s1 + $0x38] sm:$0xff]   ;;  %721 = vmatprep.subr.bf16.mxu0 %v831_v0  ;;  %815 = vmatprep.subr.bf16.mxu1 %v831_v0  ;;  %v834_v3 = vld [vmem:[%s1144_s1 + $0x30] sm:$0xff]   ;;  %v836_v5 = vld [vmem:[%s1144_s1 + $0x28] sm:$0xff]  }
   0x3   :  { %722 = vmatpush3.bf16.msra.mxu0 %v832_v1  ;;  %823 = vmatpush3.bf16.msra.mxu1 %v832_v1  ;;  %v837_v6 = vld [vmem:[%s1144_s1 + $0x60] sm:$0xff]   ;;  %v839_v8 = vld [vmem:[%s1144_s1 + $0x58] sm:$0xff]   ;;  %v841_v10 = vld [vmem:[%s1144_s1 + $0x50] sm:$0xff]  }
   0x4   :  { %723 = vmatprep.subr.bf16.mxu0 %v833_v2  ;;  %816 = vmatprep.subr.bf16.mxu1 %v833_v2  ;;  %v838_v7 = vld [vmem:[%s1144_s1 + $0x20] sm:$0xff]   ;;  %v840_v9 = vld [vmem:[%s1144_s1 + $0x18] sm:$0xff]   ;;  %v842_v13 = vld [vmem:[%s1144_s1 + $0x10] sm:$0xff]  }
   0x5   :  { %v849_v11 = vld [vmem:[%s1145_s0 + $0x4] ss:$12 sps:$4 sm:$0xff]   ;;  %v852_v12 = vld [vmem:[%s1145_s0 + $0x94] ss:$12 sps:$4 sm:$0xff]   ;;  %v843_v14 = vld [vmem:[%s1144_s1 + $0x48] sm:$0xff]  }
   0x6   :  { %375 = vmatprep.mubr.bf16.mxu0 %v849_v11  ;;  %423 = vmatprep.mubr.bf16.mxu1 %v852_v12  ;;  %v844_v15 = vld [vmem:[%s1144_s1 + $0x8] sm:$0xff]   ;;  %v845_v16 = vld [vmem:[%s1144_s1 + $0x40] sm:$0xff]   ;;  %v850_v20 = vld [vmem:[%s1145_s0 + $0x90] ss:$12 sps:$4 sm:$0xff]  }
   0x7   :  { %724 = vmatpush3.bf16.msra.mxu0 %v834_v3  ;;  %824 = vmatpush3.bf16.msra.mxu1 %v834_v3  ;;  %v846_v17 = vld [vmem:[%s1144_s1] sm:$0xff]   ;;  %v853_v19 = vld [vmem:[%s1144_s1 + $0x88] sm:$0xff]   ;;  %v864_v28 = vld [vmem:[%s1145_s0 + $0x30] ss:$12 sps:$4 sm:$0xff]  }
   0x8   :  { %725 = vmatprep.subr.bf16.mxu0 %v835_v4  ;;  %817 = vmatprep.subr.bf16.mxu1 %v835_v4  ;;  %v847_v18 = vld [vmem:[%s1145_s0] ss:$12 sps:$4 sm:$0xff]   ;;  %v854_v21 = vld [vmem:[%s1145_s0 + $0x1c] ss:$12 sps:$4 sm:$0xff]   ;;  %v858_v24 = vld [vmem:[%s1145_s0 + $0x18] ss:$12 sps:$4 sm:$0xff]  }
   0x9   :  { %v856_v22 = vld [vmem:[%s1145_s0 + $0xac] ss:$12 sps:$4 sm:$0xff]   ;;  %v860_v23 = vld [vmem:[%s1144_s1 + $0x80] sm:$0xff]   ;;  %v859_v25 = vld [vmem:[%s1145_s0 + $0xa8] ss:$12 sps:$4 sm:$0xff]  }
   0xa   :  { %v861_v26 = vld [vmem:[%s1145_s0 + $0x34] ss:$12 sps:$4 sm:$0xff]   ;;  %v866_v30 = vld [vmem:[%s1145_s0 + $0x4c] ss:$12 sps:$4 sm:$0xff]   ;;  %v870_v33 = vld [vmem:[%s1145_s0 + $0x50] ss:$12 sps:$4 sm:$0xff]  }
   0xb   :  { %726 = vmatpush3.bf16.msra.mxu0 %v836_v5  ;;  %825 = vmatpush3.bf16.msra.mxu1 %v836_v5  ;;  %v863_v27 = vld [vmem:[%s1145_s0 + $0x8] ss:$12 sps:$4 sm:$0xff]   ;;  %v865_v29 = vld [vmem:[%s1145_s0 + $0x20] ss:$12 sps:$4 sm:$0xff]   ;;  %v868_v31 = vld [vmem:[%s1145_s0 + $0x38] ss:$12 sps:$4 sm:$0xff]  }
   0xc   :  { %727 = vmatprep.subr.bf16.mxu0 %v837_v6  ;;  %818 = vmatprep.subr.bf16.mxu1 %v837_v6  ;;  %v869_v32 = vld [vmem:[%s1145_s0 + $0x48] ss:$12 sps:$4 sm:$0xff]   ;;  %v871_v34 = vld [vmem:[%s1145_s0 + $0x64] ss:$12 sps:$4 sm:$0xff]   ;;  %v874_v36 = vld [vmem:[%s1145_s0 + $0x60] ss:$12 sps:$4 sm:$0xff]  }
   0xd   :  { %v873_v35 = vld [vmem:[%s1145_s0 + $0x68] ss:$12 sps:$4 sm:$0xff]   ;;  %v875_v37 = vld [vmem:[%s1145_s0 + $0x80] ss:$12 sps:$4 sm:$0xff]   ;;  %v878_v39 = vld [vmem:[%s1145_s0 + $0x98] ss:$12 sps:$4 sm:$0xff]  }
   0xe   :  { %v876_v38 = vld [vmem:[%s1145_s0 + $0x7c] ss:$12 sps:$4 sm:$0xff]   ;;  %v879_v40 = vld [vmem:[%s1145_s0 + $0x78] ss:$12 sps:$4 sm:$0xff]   ;;  %v1054_v60 = vld [vmem:[%s1146_s2] ss:$0 sm:$0xff] }
   0xf   :  { %728 = vmatpush3.bf16.msra.mxu0 %v838_v7  ;;  %826 = vmatpush3.bf16.msra.mxu1 %v838_v7  ;;  %v880_v41 = vld [vmem:[%s1145_s0 + $0xb0] ss:$12 sps:$4 sm:$0xff]  }
  0x10   :  { %729 = vmatprep.subr.bf16.mxu0 %v839_v8  ;;  %819 = vmatprep.subr.bf16.mxu1 %v839_v8 }
  0x13   :  { %730 = vmatpush3.bf16.msra.mxu0 %v840_v9  ;;  %827 = vmatpush3.bf16.msra.mxu1 %v840_v9 }
  0x14   :  { %731 = vmatprep.subr.bf16.mxu0 %v841_v10  ;;  %820 = vmatprep.subr.bf16.mxu1 %v841_v10 }
  0x17   :  { %732 = vmatpush3.bf16.msra.mxu0 %v842_v13  ;;  %828 = vmatpush3.bf16.msra.mxu1 %v842_v13 }
  0x18   :  { %733 = vmatprep.subr.bf16.mxu0 %v843_v14  ;;  %821 = vmatprep.subr.bf16.mxu1 %v843_v14 }
  0x1b   :  { %734 = vmatpush3.bf16.msra.mxu0 %v844_v15  ;;  %829 = vmatpush3.bf16.msra.mxu1 %v844_v15 }
  0x1c   :  { %735 = vmatprep.subr.bf16.mxu0 %v845_v16  ;;  %822 = vmatprep.subr.bf16.mxu1 %v845_v16 }
  0x1f   :  { %736 = vmatpush3.bf16.msra.mxu0 %v846_v17  ;;  %830 = vmatpush3.bf16.msra.mxu1 %v846_v17 }
  0x20   :  { %795 = vmatprep.subr.bf16.mxu1 %v853_v19 }
  0x22   :  { %376 = vmatmul.mubr.bf16.vlgmr.msra.gmra.mxu0 %v847_v18  ;;  %424 = vmatmul.mubr.bf16.vlgmr.msra.gmra.mxu1 %v850_v20 }
  0x23   :  { %796 = vmatpush3.bf16.msra.mxu1 %v853_v19  ;;  %383 = vmatprep.mubr.bf16.mxu0 %v854_v21 }
  0x24   :  { %431 = vmatprep.mubr.bf16.mxu1 %v856_v22  ;;  %797 = vmatprep.subr.bf16.mxu1 %v860_v23 }
  0x27   :  { %798 = vmatpush3.bf16.msra.mxu1 %v860_v23 }
  0x2a   :  { %384 = vmatmul.mubr.bf16.gmra.mxu0 %v858_v24  ;;  %432 = vmatmul.mubr.bf16.gmra.mxu1 %v859_v25 }
  0x2b   :  { %391 = vmatprep.mubr.bf16.mxu0 %v861_v26  ;;  %799 = vmatprep.mubr.msk.bf16.mxu1 %vm318_vm0, %v863_v27 }
  0x32   :  { %392 = vmatmul.mubr.bf16.gmra.mxu0 %v864_v28  ;;  %800 = vmatmul.mubr.msk.bf16.vlgmr.msra.gmra.mxu1 %vm318_vm0, %v865_v29 }
  0x33   :  { %399 = vmatprep.mubr.bf16.mxu0 %v866_v30  ;;  %803 = vmatprep.mubr.msk.bf16.mxu1 %vm318_vm0, %v868_v31 }
  0x3a   :  { %400 = vmatmul.mubr.bf16.gmra.mxu0 %v869_v32  ;;  %804 = vmatmul.mubr.msk.bf16.gmra.mxu1 %vm318_vm0, %v870_v33 }
  0x3b   :  { %407 = vmatprep.mubr.bf16.mxu0 %v871_v34  ;;  %807 = vmatprep.mubr.msk.bf16.mxu1 %vm318_vm0, %v873_v35 }
  0x42   :  { %408 = vmatmul.mubr.bf16.gmra.mxu0 %v874_v36  ;;  %808 = vmatmul.mubr.msk.bf16.gmra.mxu1 %vm318_vm0, %v875_v37 }
  0x43   :  { %415 = vmatprep.mubr.bf16.mxu0 %v876_v38  ;;  %811 = vmatprep.mubr.msk.bf16.mxu1 %vm318_vm0, %v878_v39 }
  0x4a   :  { %416 = vmatmul.mubr.bf16.gmra.mxu0 %v879_v40  ;;  %812 = vmatmul.mubr.msk.bf16.gmra.mxu1 %vm318_vm0, %v880_v41 }
  0xe2   :  { %v737_v42 = vpop.f32.mrf.mxu0  ;;  %v1035_v43 = vpop.f32.mrf.mxu1 }
  0xe4   :  { %v738_v44 = vpop.f32.mrf.mxu0  ;;  %v1037_v45 = vpop.f32.mrf.mxu1 }
  0xe5   :  { %v739_v57 = vadd.f32 %v738_v44, %v737_v42 }
  0xe6   :  { %v740_v46 = vpop.f32.mrf.mxu0  ;;  %v1039_v47 = vpop.f32.mrf.mxu1 }
  0xe7   :  { %v378_v3 = vadd.f32 %v739_v57, %v1054_v60 }
  0xe8   :  { %v741_v48 = vpop.f32.mrf.mxu0  ;;  %v1041_v49 = vpop.f32.mrf.mxu1 }
  0xe9   :  { %v742_v63 = vadd.f32 %v741_v48, %v740_v46 }
  0xea   :  { %v743_v50 = vpop.f32.mrf.mxu0  ;;  %v1043_v51 = vpop.f32.mrf.mxu1 }
  0xeb   :  { %v381_v11 = vadd.f32 %v742_v63, %v1054_v60 }
  0xec   :  { %v744_v52 = vpop.f32.mrf.mxu0  ;;  %v1045_v53 = vpop.f32.mrf.mxu1 }
  0xed   :  { %v745_v54 = vadd.f32 %v744_v52, %v743_v50 }
  0xee   :  { %v746_v55 = vpop.f32.mrf.mxu0  ;;  %v1047_v56 = vpop.f32.mrf.mxu1 }
  0xef   :  { %v386_v62 = vadd.f32 %v745_v54, %v1054_v60  ;;  %v781_v54 = vadd.f32 %v1045_v53, %v1043_v51  ;;  %v775_v53 = vadd.f32 %v1037_v45, %v1035_v43 }
  0xf0   :  { %v747_v58 = vpop.f32.mrf.mxu0  ;;  %v1049_v59 = vpop.f32.mrf.mxu1 }
  0xf1   :  { %v748_v61 = vadd.f32 %v747_v58, %v746_v55 }
  0xf2   :  { %v749_v0 = vpop.f32.mrf.mxu0  ;;  %v801_v1 = vpop.f32.mrf.mxu1 }
  0xf3   :  { %v483_v2 = vadd.f32 %v801_v1, %v386_v62  ;;  %v389_v8 = vadd.f32 %v748_v61, %v1054_v60 }
  0xf4   :  { %v750_v4 = vpop.f32.mrf.mxu0  ;;  %v474_v5 = vpop.f32.mrf.mxu1 }
  0xf5   :  { %v539_v6 = vmax.f32 %v483_v2, 0.0  ;;  %v475_v7 = vadd.f32 %v474_v5, %v378_v3  ;;  %v751_v13 = vadd.f32 %v750_v4, %v749_v0  ;;  %v784_v3 = vadd.f32 %v1049_v59, %v1047_v56 }
  0xf6   :  { %v752_v9 = vpop.f32.mrf.mxu0  ;;  %v802_v10 = vpop.f32.mrf.mxu1  ;;  %v778_v56 = vadd.f32 %v1041_v49, %v1039_v47 }
  0xf7   :  { %v707_v12 = vpack.c.bf16 %v539_v6, %v539_v6  ;;  %v537_v14 = vmax.f32 %v475_v7, 0.0  ;;  %v486_v15 = vadd.f32 %v802_v10, %v389_v8  ;;  %v394_v26 = vadd.f32 %v751_v13, %v1054_v60 }
  0xf8   :  { %v753_v16 = vpop.f32.mrf.mxu0  ;;  %v477_v17 = vpop.f32.mrf.mxu1  ;;  %v426_v13 = vadd.f32 %v775_v53, %v1054_v60 }
  0xf9   :  { %620 = vst.msk [vmem:[%s1147_s3 + $0x8] sm:$0xf] %vm617_vm1, %v707_v12  ;;  %v705_v18 = vpack.c.bf16 %v537_v14, %v537_v14  ;;  %v540_v19 = vmax.f32 %v486_v15, 0.0  ;;  %v478_v20 = vadd.f32 %v477_v17, %v381_v11  ;;  %v754_v24 = vadd.f32 %v753_v16, %v752_v9 }
  0xfa   :  { %v755_v21 = vpop.f32.mrf.mxu0  ;;  %v805_v22 = vpop.f32.mrf.mxu1  ;;  %v434_v9 = vadd.f32 %v781_v54, %v1054_v60  ;;  %v437_v15 = vadd.f32 %v784_v3, %v1054_v60 }
  0xfb   :  { %618 = vst.msk [vmem:[%s1147_s3] sm:$0xf] %vm617_vm1, %v705_v18  ;;  %v708_v23 = vpack.c.bf16 %v540_v19, %v540_v19  ;;  %v538_v25 = vmax.f32 %v478_v20, 0.0  ;;  %v397_v36 = vadd.f32 %v754_v24, %v1054_v60 }
  0xfc   :  { %v756_v27 = vpop.f32.mrf.mxu0  ;;  %v490_v28 = vpop.f32.mrf.mxu1 }
  0xfd   :  { %621 = vst.msk [vmem:[%s1147_s3 + $0xc] sm:$0xf] %vm617_vm1, %v708_v23  ;;  %v706_v29 = vpack.c.bf16 %v538_v25, %v538_v25  ;;  %v757_v30 = vadd.f32 %v756_v27, %v755_v21  ;;  %v491_v31 = vadd.f32 %v490_v28, %v394_v26  ;;  %v429_v27 = vadd.f32 %v778_v56, %v1054_v60 }
  0xfe   :  { %v758_v32 = vpop.f32.mrf.mxu0  ;;  %v806_v33 = vpop.f32.mrf.mxu1 }
  0xff   :  { %619 = vst.msk [vmem:[%s1147_s3 + $0x4] sm:$0xf] %vm617_vm1, %v706_v29  ;;  %v402_v34 = vadd.f32 %v757_v30, %v1054_v60  ;;  %v541_v35 = vmax.f32 %v491_v31, 0.0 }
 0x100   :  { %v759_v37 = vpop.f32.mrf.mxu0  ;;  %v493_v38 = vpop.f32.mrf.mxu1 }
 0x101   :  { %v499_v39 = vadd.f32 %v805_v22, %v402_v34  ;;  %v709_v40 = vpack.c.bf16 %v541_v35, %v541_v35  ;;  %v760_v41 = vadd.f32 %v759_v37, %v758_v32  ;;  %v494_v42 = vadd.f32 %v493_v38, %v397_v36 }
 0x102   :  { %v761_v44 = vpop.f32.mrf.mxu0  ;;  %v809_v46 = vpop.f32.mrf.mxu1 }
 0x103   :  { %v543_v48 = vmax.f32 %v499_v39, 0.0  ;;  %622 = vst.msk [vmem:[%s1147_s3 + $0x10] sm:$0xf] %vm617_vm1, %v709_v40  ;;  %v405_v50 = vadd.f32 %v760_v41, %v1054_v60  ;;  %v542_v52 = vmax.f32 %v494_v42, 0.0 }
 0x104   :  { %v762_v55 = vpop.f32.mrf.mxu0  ;;  %v506_v57 = vpop.f32.mrf.mxu1 }
 0x105   :  { %v711_v58 = vpack.c.bf16 %v543_v48, %v543_v48  ;;  %v502_v61 = vadd.f32 %v806_v33, %v405_v50  ;;  %v710_v62 = vpack.c.bf16 %v542_v52, %v542_v52  ;;  %v763_v63 = vadd.f32 %v762_v55, %v761_v44 }
 0x106   :  { %v764_v0 = vpop.f32.mrf.mxu0  ;;  %v810_v1 = vpop.f32.mrf.mxu1 }
 0x107   :  { %624 = vst.msk [vmem:[%s1147_s3 + $0x18] sm:$0xf] %vm617_vm1, %v711_v58  ;;  %v544_v2 = vmax.f32 %v502_v61, 0.0  ;;  %623 = vst.msk [vmem:[%s1147_s3 + $0x14] sm:$0xf] %vm617_vm1, %v710_v62  ;;  %v410_v51 = vadd.f32 %v763_v63, %v1054_v60 }
 0x108   :  { %v765_v4 = vpop.f32.mrf.mxu0  ;;  %v509_v5 = vpop.f32.mrf.mxu1 }
 0x109   :  { %v712_v6 = vpack.c.bf16 %v544_v2, %v544_v2  ;;  %v507_v7 = vadd.f32 %v506_v57, %v410_v51  ;;  %v766_v8 = vadd.f32 %v765_v4, %v764_v0 }
 0x10a   :  { %v767_v10 = vpop.f32.mrf.mxu0  ;;  %v813_v11 = vpop.f32.mrf.mxu1 }
 0x10b   :  { %625 = vst.msk [vmem:[%s1147_s3 + $0x1c] sm:$0xf] %vm617_vm1, %v712_v6  ;;  %v545_v12 = vmax.f32 %v507_v7, 0.0  ;;  %v413_v43 = vadd.f32 %v766_v8, %v1054_v60  ;;  %v531_v45 = vadd.f32 %v813_v11, %v434_v9 }
 0x10c   :  { %v768_v59 = vpop.f32.mrf.mxu0  ;;  %v522_v14 = vpop.f32.mrf.mxu1 }
 0x10d   :  { %v713_v16 = vpack.c.bf16 %v545_v12, %v545_v12  ;;  %v510_v17 = vadd.f32 %v509_v5, %v413_v43  ;;  %v551_v18 = vmax.f32 %v531_v45, 0.0  ;;  %v769_v19 = vadd.f32 %v768_v59, %v767_v10 }
 0x10e   :  { %v523_v20 = vadd.f32 %v522_v14, %v426_v13  ;;  %v770_v21 = vpop.f32.mrf.mxu0  ;;  %v814_v22 = vpop.f32.mrf.mxu1 }
 0x10f   :  { %626 = vst.msk [vmem:[%s1147_s3 + $0x20] sm:$0xf] %vm617_vm1, %v713_v16  ;;  %v546_v23 = vmax.f32 %v510_v17, 0.0  ;;  %v719_v47 = vpack.c.bf16 %v551_v18, %v551_v18  ;;  %v418_v49 = vadd.f32 %v769_v19, %v1054_v60  ;;  %v534_v24 = vadd.f32 %v814_v22, %v437_v15 }
 0x110   :  { %v549_v25 = vmax.f32 %v523_v20, 0.0  ;;  %v771_v26 = vpop.f32.mrf.mxu0  ;;  %v525_v28 = vpop.f32.mrf.mxu1 }
 0x111   :  { %v714_v29 = vpack.c.bf16 %v546_v23, %v546_v23  ;;  %632 = vst.msk [vmem:[%s1147_s3 + $0x38] sm:$0xf] %vm617_vm1, %v719_v47  ;;  %v515_v30 = vadd.f32 %v809_v46, %v418_v49  ;;  %v552_v31 = vmax.f32 %v534_v24, 0.0  ;;  %v772_v32 = vadd.f32 %v771_v26, %v770_v21 }
 0x112   :  { %v717_v33 = vpack.c.bf16 %v549_v25, %v549_v25  ;;  %v526_v34 = vadd.f32 %v525_v28, %v429_v27 }
 0x113   :  { %627 = vst.msk [vmem:[%s1147_s3 + $0x24] sm:$0xf] %vm617_vm1, %v714_v29  ;;  %v547_v35 = vmax.f32 %v515_v30, 0.0  ;;  %v720_v36 = vpack.c.bf16 %v552_v31, %v552_v31  ;;  %v421_v37 = vadd.f32 %v772_v32, %v1054_v60 }
 0x114   :  { %630 = vst.msk [vmem:[%s1147_s3 + $0x30] sm:$0xf] %vm617_vm1, %v717_v33  ;;  %v550_v38 = vmax.f32 %v526_v34, 0.0 }
 0x115   :  { %v715_v39 = vpack.c.bf16 %v547_v35, %v547_v35  ;;  %633 = vst.msk [vmem:[%s1147_s3 + $0x3c] sm:$0xf] %vm617_vm1, %v720_v36  ;;  %v518_v40 = vadd.f32 %v810_v1, %v421_v37 }
 0x116   :  { %v718_v41 = vpack.c.bf16 %v550_v38, %v550_v38 }
 0x117   :  { %628 = vst.msk [vmem:[%s1147_s3 + $0x28] sm:$0xf] %vm617_vm1, %v715_v39  ;;  %v548_v60 = vmax.f32 %v518_v40, 0.0 }
 0x118   :  { %631 = vst.msk [vmem:[%s1147_s3 + $0x34] sm:$0xf] %vm617_vm1, %v718_v41 }
 0x119   :  { %v716_v42 = vpack.c.bf16 %v548_v60, %v548_v60 }
 0x11b   :  { %629 = vst.msk [vmem:[%s1147_s3 + $0x2c] sm:$0xf] %vm617_vm1, %v716_v42 }

// kernel: deep_supervision_forward.15
= control target key start
LH: loop header
LB: loop body
LE: loop exit
PB: predicated region body
PF: predicated region fallthrough
CT: control target
= control target key end

     0   :  { %vm204_vm0 = vcmask 261120   ;;  %vm329_vm1 = vcmask 257024   ;;  %s550_s1 = inlined_call_operand.vmem [shape: bf16[288,32], index: 1, kind: input, shape index: {}]   ;;  %s551_s0 = inlined_call_operand.vmem [shape: bf16[32,288], index: 0, kind: input, shape index: {}]   ;;  %s552_s2 = inlined_call_operand.vmem [shape: f32[1,32], index: 2, kind: input, shape index: {}]   ;;  %s553_s3 = inlined_call_operand.vmem [shape: bf16[32,32], index: 3, kind: output, shape index: {}]  }
   0x1   :  { %v413_v0 = vld [vmem:[%s550_s1 + $0x78] sm:$0xff]   ;;  %v415_v2 = vld [vmem:[%s550_s1 + $0x70] sm:$0xff]   ;;  %v417_v4 = vld [vmem:[%s550_s1 + $0x68] sm:$0xff]  }
   0x2   :  { %v414_v1 = vld [vmem:[%s550_s1 + $0x38] sm:$0xff]   ;;  %373 = vmatprep.subr.bf16.mxu0 %v413_v0  ;;  %v416_v3 = vld [vmem:[%s550_s1 + $0x30] sm:$0xff]   ;;  %v418_v5 = vld [vmem:[%s550_s1 + $0x28] sm:$0xff]  }
   0x3   :  { %374 = vmatpush3.bf16.msra.mxu0 %v414_v1  ;;  %v419_v6 = vld [vmem:[%s550_s1 + $0x60] sm:$0xff]   ;;  %v421_v8 = vld [vmem:[%s550_s1 + $0x58] sm:$0xff]   ;;  %v428_v10 = vld [vmem:[%s550_s1 + $0x88] sm:$0xff]  }
   0x4   :  { %375 = vmatprep.subr.bf16.mxu0 %v415_v2  ;;  %v420_v7 = vld [vmem:[%s550_s1 + $0x20] sm:$0xff]   ;;  %v422_v9 = vld [vmem:[%s550_s1 + $0x18] sm:$0xff]   ;;  %v423_v11 = vld [vmem:[%s550_s1 + $0x50] sm:$0xff]   ;;  %405 = vmatprep.subr.bf16.mxu1 %v428_v10 }
   0x5   :  { %v424_v12 = vld [vmem:[%s550_s1 + $0x10] sm:$0xff]   ;;  %v425_v13 = vld [vmem:[%s550_s1 + $0x48] sm:$0xff]   ;;  %406 = vmatpush3.bf16.msra.mxu1 %v428_v10  ;;  %v433_v15 = vld [vmem:[%s550_s1 + $0x80] sm:$0xff]  }
   0x6   :  { %v432_v14 = vld [vmem:[%s551_s0 + $0x4] ss:$12 sps:$4 sm:$0xff]   ;;  %v434_v16 = vld [vmem:[%s551_s0 + $0x8] ss:$12 sps:$4 sm:$0xff]   ;;  %407 = vmatprep.subr.bf16.mxu1 %v433_v15  ;;  %v435_v17 = vld [vmem:[%s551_s0 + $0x20] ss:$12 sps:$4 sm:$0xff]  }
   0x7   :  { %376 = vmatpush3.bf16.msra.mxu0 %v416_v3  ;;  %243 = vmatprep.mubr.bf16.mxu0 %v432_v14  ;;  %v426_v18 = vld [vmem:[%s550_s1 + $0x8] sm:$0xff]   ;;  %v427_v19 = vld [vmem:[%s550_s1 + $0x40] sm:$0xff]  }
   0x8   :  { %377 = vmatprep.subr.bf16.mxu0 %v417_v4  ;;  %409 = vmatprep.mubr.msk.bf16.mxu1 %vm204_vm0, %v434_v16  ;;  %v429_v20 = vld [vmem:[%s550_s1] sm:$0xff]   ;;  %v436_v22 = vld [vmem:[%s551_s0 + $0x1c] ss:$12 sps:$4 sm:$0xff]  }
   0x9   :  { %408 = vmatpush3.bf16.msra.mxu1 %v433_v15  ;;  %v430_v21 = vld [vmem:[%s551_s0] ss:$12 sps:$4 sm:$0xff]   ;;  %v438_v23 = vld [vmem:[%s551_s0 + $0x18] ss:$12 sps:$4 sm:$0xff]  }
   0xa   :  { %v338_v28 = vld [vmem:[%s552_s2] ss:$0 sm:$0xff] }
   0xb   :  { %378 = vmatpush3.bf16.msra.mxu0 %v418_v5 }
   0xc   :  { %379 = vmatprep.subr.bf16.mxu0 %v419_v6  ;;  %410 = vmatmul.mubr.msk.bf16.vlgmr.msra.gmra.mxu1 %vm204_vm0, %v435_v17 }
   0xf   :  { %380 = vmatpush3.bf16.msra.mxu0 %v420_v7 }
  0x10   :  { %381 = vmatprep.subr.bf16.mxu0 %v421_v8 }
  0x13   :  { %382 = vmatpush3.bf16.msra.mxu0 %v422_v9 }
  0x14   :  { %383 = vmatprep.subr.bf16.mxu0 %v423_v11 }
  0x17   :  { %384 = vmatpush3.bf16.msra.mxu0 %v424_v12 }
  0x18   :  { %385 = vmatprep.subr.bf16.mxu0 %v425_v13 }
  0x1b   :  { %386 = vmatpush3.bf16.msra.mxu0 %v426_v18 }
  0x1c   :  { %387 = vmatprep.subr.bf16.mxu0 %v427_v19 }
  0x1f   :  { %388 = vmatpush3.bf16.msra.mxu0 %v429_v20 }
  0x22   :  { %244 = vmatmul.mubr.bf16.vlgmr.msra.gmra.mxu0 %v430_v21 }
  0x23   :  { %251 = vmatprep.mubr.bf16.mxu0 %v436_v22 }
  0x2a   :  { %252 = vmatmul.mubr.bf16.gmra.mxu0 %v438_v23 }
  0xcc   :  { %v411_v24 = vpop.f32.mrf.mxu1 }
  0xce   :  { %v294_v26 = vpop.f32.mrf.mxu1 }
  0xd0   :  { %v412_v31 = vpop.f32.mrf.mxu1 }
  0xd2   :  { %v297_v37 = vpop.f32.mrf.mxu1 }
  0xe2   :  { %v389_v25 = vpop.f32.mrf.mxu0 }
  0xe4   :  { %v390_v27 = vpop.f32.mrf.mxu0 }
  0xe5   :  { %v391_v29 = vadd.f32 %v390_v27, %v389_v25 }
  0xe6   :  { %v392_v30 = vpop.f32.mrf.mxu0 }
  0xe7   :  { %v246_v32 = vadd.f32 %v391_v29, %v338_v28 }
  0xe8   :  { %v393_v33 = vpop.f32.mrf.mxu0 }
  0xe9   :  { %v394_v34 = vadd.f32 %v393_v33, %v392_v30  ;;  %v295_v35 = vadd.f32 %v294_v26, %v246_v32 }
  0xea   :  { %v395_v36 = vpop.f32.mrf.mxu0 }
  0xeb   :  { %v309_v38 = vmax.f32 %v295_v35, 0.0  ;;  %v249_v39 = vadd.f32 %v394_v34, %v338_v28 }
  0xec   :  { %v396_v40 = vpop.f32.mrf.mxu0 }
  0xed   :  { %v369_v41 = vpack.c.bf16 %v309_v38, %v309_v38  ;;  %v397_v42 = vadd.f32 %v396_v40, %v395_v36  ;;  %v298_v43 = vadd.f32 %v297_v37, %v249_v39 }
  0xee   :  { %v398_v44 = vpop.f32.mrf.mxu0 }
  0xef   :  { %330 = vst.msk [vmem:[%s553_s3] sm:$0xf] %vm329_vm1, %v369_v41  ;;  %v254_v45 = vadd.f32 %v397_v42, %v338_v28  ;;  %v310_v46 = vmax.f32 %v298_v43, 0.0 }
  0xf0   :  { %v399_v47 = vpop.f32.mrf.mxu0 }
  0xf1   :  { %v303_v48 = vadd.f32 %v411_v24, %v254_v45  ;;  %v370_v49 = vpack.c.bf16 %v310_v46, %v310_v46  ;;  %v400_v50 = vadd.f32 %v399_v47, %v398_v44 }
  0xf3   :  { %v311_v51 = vmax.f32 %v303_v48, 0.0  ;;  %331 = vst.msk [vmem:[%s553_s3 + $0x4] sm:$0xf] %vm329_vm1, %v370_v49  ;;  %v257_v52 = vadd.f32 %v400_v50, %v338_v28 }
  0xf5   :  { %v371_v53 = vpack.c.bf16 %v311_v51, %v311_v51  ;;  %v306_v54 = vadd.f32 %v412_v31, %v257_v52 }
  0xf7   :  { %332 = vst.msk [vmem:[%s553_s3 + $0x8] sm:$0xf] %vm329_vm1, %v371_v53  ;;  %v312_v55 = vmax.f32 %v306_v54, 0.0 }
  0xf9   :  { %v372_v56 = vpack.c.bf16 %v312_v55, %v312_v55 }
  0xfb   :  { %333 = vst.msk [vmem:[%s553_s3 + $0xc] sm:$0xf] %vm329_vm1, %v372_v56 }

// kernel: deep_supervision_forward.14
= control target key start
LH: loop header
LB: loop body
LE: loop exit
PB: predicated region body
PF: predicated region fallthrough
CT: control target
= control target key end

     0   :  { %vm324_vm0 = vcmask 261120   ;;  %vm848_vm1 = vcmask 257024   ;;  %vm1009_vm2 = vcmask 7168   ;;  %s1751_s2 = inlined_call_operand.vmem [shape: bf16[288,32], index: 2, kind: input, shape index: {}]   ;;  %s1752_s0 = inlined_call_operand.vmem [shape: bf16[128,288], index: 0, kind: input, shape index: {}]   ;;  %s1753_s3 = inlined_call_operand.vmem [shape: bf16[32,32], index: 3, kind: input, shape index: {}]   ;;  %s1754_s1 = inlined_call_operand.vmem [shape: bf16[128,32], index: 1, kind: input, shape index: {}]   ;;  %s1755_s4 = inlined_call_operand.vmem [shape: bf16[32,1], index: 4, kind: input, shape index: {}]   ;;  %s1756_s5 = inlined_call_operand.<no memory space> [shape: f32[1,1], index: 5, kind: input, shape index: {}]   ;;  %s1757_s6 = inlined_call_operand.vmem [shape: bf16[128,32], index: 6, kind: output, shape index: {0}]   ;;  %s1758_s7 = inlined_call_operand.vmem [shape: f32[128,1], index: 7, kind: output, shape index: {1}]  }
   0x1   :  { %v1299_v0 = vld [vmem:[%s1751_s2 + $0x78] sm:$0xff]   ;;  %v1300_v1 = vld [vmem:[%s1751_s2 + $0x88] sm:$0xff]   ;;  %v1302_v3 = vld [vmem:[%s1751_s2 + $0x70] sm:$0xff]   ;;  %v13_v54 = vstv %s1756_s5 }
   0x2   :  { %1145 = vmatprep.subr.bf16.mxu0 %v1299_v0  ;;  %v1301_v2 = vld [vmem:[%s1751_s2 + $0x38] sm:$0xff]   ;;  %1239 = vmatprep.subr.bf16.mxu1 %v1300_v1  ;;  %v1303_v4 = vld [vmem:[%s1751_s2 + $0x80] sm:$0xff]   ;;  %v1304_v5 = vld [vmem:[%s1751_s2 + $0x30] sm:$0xff]   ;;  %14 = vst [vmem:[#allocation2] sm:$0x1] %v13_v54 }
   0x3   :  { %1146 = vmatpush3.bf16.msra.mxu0 %v1301_v2  ;;  %1240 = vmatpush3.bf16.msra.mxu1 %v1300_v1  ;;  %v1305_v6 = vld [vmem:[%s1752_s0 + $0x8] ss:$12 sps:$4 sm:$0xff]   ;;  %v1307_v8 = vld [vmem:[%s1752_s0 + $0x20] ss:$12 sps:$4 sm:$0xff]   ;;  %v1311_v12 = vld [vmem:[%s1752_s0 + $0x38] ss:$12 sps:$4 sm:$0xff]  }
   0x4   :  { %1147 = vmatprep.subr.bf16.mxu0 %v1302_v3  ;;  %1241 = vmatprep.subr.bf16.mxu1 %v1303_v4  ;;  %v1306_v7 = vld [vmem:[%s1751_s2 + $0x68] sm:$0xff]   ;;  %v1309_v10 = vld [vmem:[%s1751_s2 + $0x60] sm:$0xff]   ;;  %v1312_v13 = vld [vmem:[%s1751_s2 + $0x58] sm:$0xff]  }
   0x5   :  { %1243 = vmatprep.mubr.msk.bf16.mxu1 %vm324_vm0, %v1305_v6  ;;  %v1308_v9 = vld [vmem:[%s1751_s2 + $0x28] sm:$0xff]   ;;  %v1310_v11 = vld [vmem:[%s1751_s2 + $0x20] sm:$0xff]   ;;  %v1313_v14 = vld [vmem:[%s1752_s0 + $0x50] ss:$12 sps:$4 sm:$0xff]  }
   0x6   :  { %v1314_v15 = vld [vmem:[%s1751_s2 + $0x18] sm:$0xff]   ;;  %v1315_v16 = vld [vmem:[%s1751_s2 + $0x50] sm:$0xff]   ;;  %v1318_v19 = vld [vmem:[%s1751_s2 + $0x48] sm:$0xff]  }
   0x7   :  { %1148 = vmatpush3.bf16.msra.mxu0 %v1304_v5  ;;  %1242 = vmatpush3.bf16.msra.mxu1 %v1303_v4  ;;  %v1317_v17 = vld [vmem:[%s1752_s0 + $0x68] ss:$12 sps:$4 sm:$0xff]   ;;  %v1319_v20 = vld [vmem:[%s1752_s0 + $0x80] ss:$12 sps:$4 sm:$0xff]   ;;  %v1325_v23 = vld [vmem:[%s1752_s0 + $0x4] ss:$12 sps:$4 sm:$0xff]  }
   0x8   :  { %1149 = vmatprep.subr.bf16.mxu0 %v1306_v7  ;;  %v1316_v18 = vld [vmem:[%s1751_s2 + $0x10] sm:$0xff]   ;;  %v1320_v21 = vld [vmem:[%s1751_s2 + $0x8] sm:$0xff]   ;;  %v1321_v22 = vld [vmem:[%s1751_s2 + $0x40] sm:$0xff]   ;;  %381 = vmatprep.mubr.bf16.mxu0 %v1325_v23 }
   0x9   :  { %v1326_v24 = vld [vmem:[%s1752_s0 + $0x98] ss:$12 sps:$4 sm:$0xff]   ;;  %v1328_v26 = vld [vmem:[%s1753_s3 + $0x8] sm:$0xff]   ;;  %v1327_v29 = vld [vmem:[%s1752_s0 + $0xb0] ss:$12 sps:$4 sm:$0xff]  }
   0xa   :  { %1244 = vmatmul.mubr.msk.bf16.vlgmr.msra.gmra.mxu1 %vm324_vm0, %v1307_v8  ;;  %v1322_v25 = vld [vmem:[%s1751_s2] sm:$0xff]   ;;  %1259 = vmatprep.subr.bf16.mxu1 %v1328_v26  ;;  %v1330_v30 = vld [vmem:[%s1752_s0 + $0x1c] ss:$12 sps:$4 sm:$0xff]   ;;  %v1338_v35 = vld [vmem:[%s1754_s1 + $0x10] sm:$0xff]  }
   0xb   :  { %1150 = vmatpush3.bf16.msra.mxu0 %v1308_v9  ;;  %1247 = vmatprep.mubr.msk.bf16.mxu1 %vm324_vm0, %v1311_v12  ;;  %v1329_v27 = vld [vmem:[%s1753_s3] sm:$0xff]   ;;  %v1334_v33 = vld [vmem:[%s1754_s1 + $0x8] sm:$0xff]   ;;  %v1337_v36 = vld [vmem:[%s1752_s0 + $0x30] ss:$12 sps:$4 sm:$0xff]  }
   0xc   :  { %1151 = vmatprep.subr.bf16.mxu0 %v1309_v10  ;;  %v1323_v28 = vld [vmem:[%s1752_s0] ss:$12 sps:$4 sm:$0xff]   ;;  %1260 = vmatpush3.bf16.msra.mxu1 %v1328_v26  ;;  %v1333_v32 = vld [vmem:[%s1752_s0 + $0x18] ss:$12 sps:$4 sm:$0xff]   ;;  %v1342_v40 = vld [vmem:[%s1752_s0 + $0x48] ss:$12 sps:$4 sm:$0xff]  }
   0xd   :  { %1261 = vmatprep.subr.bf16.mxu1 %v1329_v27  ;;  %v1332_v31 = vld [vmem:[%s1754_s1] sm:$0xff]   ;;  %v1339_v37 = vld [vmem:[%s1754_s1 + $0x18] sm:$0xff]   ;;  %v1347_v41 = vld [vmem:[%s1754_s1 + $0x28] sm:$0xff]  }
   0xe   :  { %v1335_v34 = vld [vmem:[%s1752_s0 + $0x34] ss:$12 sps:$4 sm:$0xff]   ;;  %v1340_v38 = vld [vmem:[%s1752_s0 + $0x4c] ss:$12 sps:$4 sm:$0xff]   ;;  %v1343_v42 = vld [vmem:[%s1752_s0 + $0x64] ss:$12 sps:$4 sm:$0xff]  }
   0xf   :  { %1152 = vmatpush3.bf16.msra.mxu0 %v1310_v11  ;;  %v1346_v39 = vld [vmem:[%s1754_s1 + $0x20] sm:$0xff]   ;;  %v1354_v43 = vld [vmem:[%s1754_s1 + $0x30] sm:$0xff]   ;;  %v1355_v45 = vld [vmem:[%s1754_s1 + $0x38] sm:$0xff]  }
  0x10   :  { %1153 = vmatprep.subr.bf16.mxu0 %v1312_v13  ;;  %1262 = vmatpush3.bf16.msra.mxu1 %v1329_v27  ;;  %v1345_v44 = vld [vmem:[%s1752_s0 + $0x60] ss:$12 sps:$4 sm:$0xff]   ;;  %v1348_v46 = vld [vmem:[%s1752_s0 + $0x7c] ss:$12 sps:$4 sm:$0xff]   ;;  %v1350_v47 = vld [vmem:[%s1752_s0 + $0x78] ss:$12 sps:$4 sm:$0xff]  }
  0x11   :  { %v1351_v48 = vld [vmem:[%s1752_s0 + $0x94] ss:$12 sps:$4 sm:$0xff]   ;;  %v1353_v49 = vld [vmem:[%s1752_s0 + $0x90] ss:$12 sps:$4 sm:$0xff]   ;;  %v1356_v50 = vld [vmem:[%s1752_s0 + $0xac] ss:$12 sps:$4 sm:$0xff]  }
  0x12   :  { %1248 = vmatmul.mubr.msk.bf16.gmra.mxu1 %vm324_vm0, %v1313_v14  ;;  %v1358_v51 = vld [vmem:[%s1752_s0 + $0xa8] ss:$12 sps:$4 sm:$0xff]   ;;  %v1360_v53 = vld [vmem:[%s1755_s4] sm:$0xff]  }
  0x13   :  { %1154 = vmatpush3.bf16.msra.mxu0 %v1314_v15  ;;  %1251 = vmatprep.mubr.msk.bf16.mxu1 %vm324_vm0, %v1317_v17  ;;  %v1359_v52 = vld [vmem:[%s1755_s4 + $0x8] sm:$0xff]  }
  0x14   :  { %1155 = vmatprep.subr.bf16.mxu0 %v1315_v16  ;;  %1279 = vmatprep.subr.bf16.mxu1 %v1359_v52 }
  0x17   :  { %1156 = vmatpush3.bf16.msra.mxu0 %v1316_v18 }
  0x18   :  { %1157 = vmatprep.subr.bf16.mxu0 %v1318_v19 }
  0x1a   :  { %1252 = vmatmul.mubr.msk.bf16.gmra.mxu1 %vm324_vm0, %v1319_v20 }
  0x1b   :  { %1158 = vmatpush3.bf16.msra.mxu0 %v1320_v21  ;;  %1255 = vmatprep.mubr.msk.bf16.mxu1 %vm324_vm0, %v1326_v24 }
  0x1c   :  { %1159 = vmatprep.subr.bf16.mxu0 %v1321_v22 }
  0x1f   :  { %1160 = vmatpush3.bf16.msra.mxu0 %v1322_v25 }
  0x22   :  { %382 = vmatmul.mubr.bf16.vlgmr.msra.gmra.mxu0 %v1323_v28  ;;  %1256 = vmatmul.mubr.msk.bf16.gmra.mxu1 %vm324_vm0, %v1327_v29 }
  0x23   :  { %389 = vmatprep.mubr.bf16.mxu0 %v1330_v30  ;;  %1263 = vmatprep.mubr.msk.bf16.mxu1 %vm324_vm0, %v1332_v31 }
  0x2a   :  { %390 = vmatmul.mubr.bf16.gmra.mxu0 %v1333_v32  ;;  %1264 = vmatmul.mubr.msk.bf16.vlgmr.msra.gmra.mxu1 %vm324_vm0, %v1334_v33 }
  0x2b   :  { %397 = vmatprep.mubr.bf16.mxu0 %v1335_v34  ;;  %1267 = vmatprep.mubr.msk.bf16.mxu1 %vm324_vm0, %v1338_v35 }
  0x2c   :  { %1280 = vmatpush3.bf16.msra.mxu1 %v1359_v52 }
  0x2d   :  { %1281 = vmatprep.subr.bf16.mxu1 %v1360_v53 }
  0x30   :  { %1282 = vmatpush3.bf16.msra.mxu1 %v1360_v53 }
  0x32   :  { %398 = vmatmul.mubr.bf16.gmra.mxu0 %v1337_v36  ;;  %1268 = vmatmul.mubr.msk.bf16.gmra.mxu1 %vm324_vm0, %v1339_v37 }
  0x33   :  { %405 = vmatprep.mubr.bf16.mxu0 %v1340_v38  ;;  %1271 = vmatprep.mubr.msk.bf16.mxu1 %vm324_vm0, %v1346_v39 }
  0x3a   :  { %406 = vmatmul.mubr.bf16.gmra.mxu0 %v1342_v40  ;;  %1272 = vmatmul.mubr.msk.bf16.gmra.mxu1 %vm324_vm0, %v1347_v41 }
  0x3b   :  { %413 = vmatprep.mubr.bf16.mxu0 %v1343_v42  ;;  %1275 = vmatprep.mubr.msk.bf16.mxu1 %vm324_vm0, %v1354_v43 }
  0x42   :  { %414 = vmatmul.mubr.bf16.gmra.mxu0 %v1345_v44  ;;  %1276 = vmatmul.mubr.msk.bf16.gmra.mxu1 %vm324_vm0, %v1355_v45 }
  0x43   :  { %421 = vmatprep.mubr.bf16.mxu0 %v1348_v46 }
  0x4a   :  { %422 = vmatmul.mubr.bf16.gmra.mxu0 %v1350_v47 }
  0x4b   :  { %429 = vmatprep.mubr.bf16.mxu0 %v1351_v48 }
  0x52   :  { %430 = vmatmul.mubr.bf16.gmra.mxu0 %v1353_v49 }
  0x53   :  { %437 = vmatprep.mubr.bf16.mxu0 %v1356_v50 }
  0x5a   :  { %438 = vmatmul.mubr.bf16.gmra.mxu0 %v1358_v51 }
  0xca   :  { %v1245_v55 = vpop.f32.mrf.mxu1 }
  0xcc   :  { %v480_v56 = vpop.f32.mrf.mxu1 }
  0xce   :  { %v1246_v57 = vpop.f32.mrf.mxu1 }
  0xd0   :  { %v483_v58 = vpop.f32.mrf.mxu1 }
  0xd2   :  { %v1582_v59 = vpop.f32.mrf.mxu1 }
  0xd4   :  { %v496_v60 = vpop.f32.mrf.mxu1 }
  0xd6   :  { %v1584_v61 = vpop.f32.mrf.mxu1 }
  0xd8   :  { %v1586_v62 = vpop.f32.mrf.mxu1 }
  0xda   :  { %v1588_v63 = vpop.f32.mrf.mxu1 }
  0xdc   :  { %v1590_v0 = vpop.f32.mrf.mxu1 }
  0xde   :  { %v1592_v1 = vpop.f32.mrf.mxu1 }
  0xe0   :  { %v1594_v2 = vpop.f32.mrf.mxu1 }
  0xe2   :  { %v1161_v3 = vpop.f32.mrf.mxu0  ;;  %v1596_v4 = vpop.f32.mrf.mxu1 }
  0xe4   :  { %v1162_v5 = vpop.f32.mrf.mxu0  ;;  %v1598_v6 = vpop.f32.mrf.mxu1 }
  0xe5   :  { %v1163_v7 = vadd.f32 %v1162_v5, %v1161_v3 }
  0xe6   :  { %v1164_v8 = vpop.f32.mrf.mxu0  ;;  %v1600_v9 = vpop.f32.mrf.mxu1 }
  0xe7   :  { %v481_v10 = vadd.f32 %v1163_v7, %v480_v56 }
  0xe8   :  { %v1165_v11 = vpop.f32.mrf.mxu0  ;;  %v1602_v12 = vpop.f32.mrf.mxu1 }
  0xe9   :  { %v1166_v13 = vadd.f32 %v1165_v11, %v1164_v8  ;;  %v543_v17 = vmax.f32 %v481_v10, 0.0 }
  0xea   :  { %v1167_v14 = vpop.f32.mrf.mxu0  ;;  %v1265_v15 = vpop.f32.mrf.mxu1 }
  0xeb   :  { %v484_v16 = vadd.f32 %v1166_v13, %v483_v58 }
  0xec   :  { %v1168_v18 = vpop.f32.mrf.mxu0  ;;  %v689_v19 = vpop.f32.mrf.mxu1 }
  0xed   :  { %v1169_v20 = vadd.f32 %v1168_v18, %v1167_v14  ;;  %v752_v21 = vadd.f32 %v689_v19, %v543_v17  ;;  %v544_v26 = vmax.f32 %v484_v16, 0.0 }
  0xee   :  { %v1170_v22 = vpop.f32.mrf.mxu0  ;;  %v1266_v23 = vpop.f32.mrf.mxu1 }
  0xef   :  { %v489_v24 = vadd.f32 %v1245_v55, %v1169_v20  ;;  %v768_v25 = vmax.f32 %v752_v21, 0.0 }
  0xf0   :  { %v1171_v27 = vpop.f32.mrf.mxu0  ;;  %v692_v28 = vpop.f32.mrf.mxu1 }
  0xf1   :  { %v545_v29 = vmax.f32 %v489_v24, 0.0  ;;  %v1129_v30 = vpack.c.bf16 %v768_v25, %v768_v25  ;;  %v1172_v31 = vadd.f32 %v1171_v27, %v1170_v22  ;;  %v753_v32 = vadd.f32 %v692_v28, %v544_v26 }
  0xf2   :  { %v1173_v33 = vpop.f32.mrf.mxu0  ;;  %v1269_v34 = vpop.f32.mrf.mxu1 }
  0xf3   :  { %v754_v35 = vadd.f32 %v1265_v15, %v545_v29  ;;  %849 = vst.msk [vmem:[%s1757_s6] sm:$0xf] %vm848_vm1, %v1129_v30  ;;  %v492_v36 = vadd.f32 %v1246_v57, %v1172_v31  ;;  %v769_v37 = vmax.f32 %v753_v32, 0.0 }
  0xf4   :  { %v1174_v38 = vpop.f32.mrf.mxu0  ;;  %v705_v39 = vpop.f32.mrf.mxu1 }
  0xf5   :  { %v770_v40 = vmax.f32 %v754_v35, 0.0  ;;  %v546_v41 = vmax.f32 %v492_v36, 0.0  ;;  %v784_v42 = vpack.c.bf16 %v769_v37, %v768_v25  ;;  %v1130_v43 = vpack.c.bf16 %v769_v37, %v769_v37 }
  0xf6   :  { %v1175_v44 = vadd.f32 %v1174_v38, %v1173_v33  ;;  %v1176_v45 = vpop.f32.mrf.mxu0  ;;  %v1270_v50 = vpop.f32.mrf.mxu1 }
  0xf7   :  { %v1131_v46 = vpack.c.bf16 %v770_v40, %v770_v40  ;;  %v755_v47 = vadd.f32 %v1266_v23, %v546_v41  ;;  %850 = vst.msk [vmem:[%s1757_s6 + $0x4] sm:$0xf] %vm848_vm1, %v1130_v43  ;;  %1283 = vmatprep.mubr.msk.bf16.mxu1 %vm324_vm0, %v784_v42 }
  0xf8   :  { %v497_v48 = vadd.f32 %v1175_v44, %v496_v60  ;;  %v1177_v49 = vpop.f32.mrf.mxu0  ;;  %v708_v5 = vpop.f32.mrf.mxu1 }
  0xf9   :  { %851 = vst.msk [vmem:[%s1757_s6 + $0x8] sm:$0xf] %vm848_vm1, %v1131_v46  ;;  %v771_v51 = vmax.f32 %v755_v47, 0.0  ;;  %v1178_v52 = vadd.f32 %v1177_v49, %v1176_v45 }
  0xfa   :  { %v1179_v53 = vpop.f32.mrf.mxu0  ;;  %v547_v54 = vmax.f32 %v497_v48, 0.0 }
  0xfb   :  { %v785_v55 = vpack.c.bf16 %v771_v51, %v770_v40  ;;  %v1132_v56 = vpack.c.bf16 %v771_v51, %v771_v51  ;;  %v500_v57 = vadd.f32 %v1178_v52, %v1586_v62  ;;  %v1273_v62 = vpop.f32.mrf.mxu1 }
  0xfc   :  { %v756_v58 = vadd.f32 %v705_v39, %v547_v54  ;;  %v1180_v3 = vpop.f32.mrf.mxu0 }
  0xfd   :  { %852 = vst.msk [vmem:[%s1757_s6 + $0xc] sm:$0xf] %vm848_vm1, %v1132_v56  ;;  %v1181_v60 = vadd.f32 %v1180_v3, %v1179_v53  ;;  %1284 = vmatmul.mubr.msk.bf16.vlgmr.msra.gmra.mxu1 %vm324_vm0, %v785_v55  ;;  %v548_v7 = vmax.f32 %v500_v57, 0.0 }
  0xfe   :  { %v772_v8 = vmax.f32 %v756_v58, 0.0  ;;  %v1182_v10 = vpop.f32.mrf.mxu0 }
  0xff   :  { %v505_v11 = vadd.f32 %v1582_v59, %v1181_v60  ;;  %v757_v13 = vadd.f32 %v708_v5, %v548_v7  ;;  %v721_v59 = vpop.f32.mrf.mxu1 }
 0x100   :  { %v1133_v14 = vpack.c.bf16 %v772_v8, %v772_v8  ;;  %v1183_v15 = vpop.f32.mrf.mxu0 }
 0x101   :  { %v549_v16 = vmax.f32 %v505_v11, 0.0  ;;  %v773_v17 = vmax.f32 %v757_v13, 0.0  ;;  %v1184_v18 = vadd.f32 %v1183_v15, %v1182_v10  ;;  %v1274_v33 = vpop.f32.mrf.mxu1 }
 0x102   :  { %853 = vst.msk [vmem:[%s1757_s6 + $0x10] sm:$0xf] %vm848_vm1, %v1133_v14  ;;  %v1185_v19 = vpop.f32.mrf.mxu0 }
 0x103   :  { %v758_v20 = vadd.f32 %v1269_v34, %v549_v16  ;;  %v786_v21 = vpack.c.bf16 %v773_v17, %v772_v8  ;;  %v1134_v22 = vpack.c.bf16 %v773_v17, %v773_v17  ;;  %v508_v23 = vadd.f32 %v1584_v61, %v1184_v18  ;;  %v724_v42 = vpop.f32.mrf.mxu1 }
 0x104   :  { %v1186_v24 = vpop.f32.mrf.mxu0 }
 0x105   :  { %v774_v25 = vmax.f32 %v758_v20, 0.0  ;;  %854 = vst.msk [vmem:[%s1757_s6 + $0x14] sm:$0xf] %vm848_vm1, %v1134_v22  ;;  %v550_v26 = vmax.f32 %v508_v23, 0.0  ;;  %v1187_v27 = vadd.f32 %v1186_v24, %v1185_v19  ;;  %1287 = vmatprep.mubr.msk.bf16.mxu1 %vm324_vm0, %v786_v21  ;;  %v1277_v49 = vpop.f32.mrf.mxu1 }
 0x106   :  { %v1188_v28 = vpop.f32.mrf.mxu0 }
 0x107   :  { %v1135_v29 = vpack.c.bf16 %v774_v25, %v774_v25  ;;  %v759_v30 = vadd.f32 %v1270_v50, %v550_v26  ;;  %v513_v31 = vadd.f32 %v1187_v27, %v1590_v0  ;;  %v737_v3 = vpop.f32.mrf.mxu1 }
 0x108   :  { %v1189_v32 = vpop.f32.mrf.mxu0 }
 0x109   :  { %855 = vst.msk [vmem:[%s1757_s6 + $0x18] sm:$0xf] %vm848_vm1, %v1135_v29  ;;  %v775_v61 = vmax.f32 %v759_v30, 0.0  ;;  %v1190_v34 = vadd.f32 %v1189_v32, %v1188_v28  ;;  %v551_v35 = vmax.f32 %v513_v31, 0.0  ;;  %v1278_v14 = vpop.f32.mrf.mxu1 }
 0x10a   :  { %v1191_v36 = vpop.f32.mrf.mxu0 }
 0x10b   :  { %v1136_v37 = vpack.c.bf16 %v775_v61, %v775_v61  ;;  %v516_v38 = vadd.f32 %v1190_v34, %v1594_v2  ;;  %v760_v39 = vadd.f32 %v721_v59, %v551_v35  ;;  %v787_v40 = vpack.c.bf16 %v775_v61, %v774_v25  ;;  %v740_v22 = vpop.f32.mrf.mxu1 }
 0x10c   :  { %v1192_v41 = vpop.f32.mrf.mxu0 }
 0x10d   :  { %856 = vst.msk [vmem:[%s1757_s6 + $0x1c] sm:$0xf] %vm848_vm1, %v1136_v37  ;;  %v776_v0 = vmax.f32 %v760_v39, 0.0  ;;  %v1193_v43 = vadd.f32 %v1192_v41, %v1191_v36  ;;  %1288 = vmatmul.mubr.msk.bf16.gmra.mxu1 %vm324_vm0, %v787_v40  ;;  %v552_v44 = vmax.f32 %v516_v38, 0.0 }
 0x10e   :  { %v1194_v45 = vpop.f32.mrf.mxu0 }
 0x10f   :  { %v1137_v46 = vpack.c.bf16 %v776_v0, %v776_v0  ;;  %v521_v47 = vadd.f32 %v1588_v63, %v1193_v43  ;;  %v761_v48 = vadd.f32 %v724_v42, %v552_v44 }
 0x110   :  { %v1195_v2 = vpop.f32.mrf.mxu0 }
 0x111   :  { %857 = vst.msk [vmem:[%s1757_s6 + $0x20] sm:$0xf] %vm848_vm1, %v1137_v46  ;;  %v553_v50 = vmax.f32 %v521_v47, 0.0  ;;  %v777_v51 = vmax.f32 %v761_v48, 0.0  ;;  %v1196_v52 = vadd.f32 %v1195_v2, %v1194_v45 }
 0x112   :  { %v1197_v53 = vpop.f32.mrf.mxu0 }
 0x113   :  { %v762_v54 = vadd.f32 %v1273_v62, %v553_v50  ;;  %v788_v55 = vpack.c.bf16 %v777_v51, %v776_v0  ;;  %v1138_v56 = vpack.c.bf16 %v777_v51, %v777_v51  ;;  %v524_v57 = vadd.f32 %v1592_v1, %v1196_v52 }
 0x114   :  { %v1198_v58 = vpop.f32.mrf.mxu0 }
 0x115   :  { %v778_v63 = vmax.f32 %v762_v54, 0.0  ;;  %858 = vst.msk [vmem:[%s1757_s6 + $0x24] sm:$0xf] %vm848_vm1, %v1138_v56  ;;  %v554_v5 = vmax.f32 %v524_v57, 0.0  ;;  %v1199_v60 = vadd.f32 %v1198_v58, %v1197_v53  ;;  %1291 = vmatprep.mubr.msk.bf16.mxu1 %vm324_vm0, %v788_v55 }
 0x116   :  { %v1200_v7 = vpop.f32.mrf.mxu0 }
 0x117   :  { %v1139_v8 = vpack.c.bf16 %v778_v63, %v778_v63  ;;  %v763_v10 = vadd.f32 %v1274_v33, %v554_v5  ;;  %v529_v11 = vadd.f32 %v1199_v60, %v1598_v6 }
 0x118   :  { %v1201_v13 = vpop.f32.mrf.mxu0 }
 0x119   :  { %859 = vst.msk [vmem:[%s1757_s6 + $0x28] sm:$0xf] %vm848_vm1, %v1139_v8  ;;  %v779_v1 = vmax.f32 %v763_v10, 0.0  ;;  %v1202_v15 = vadd.f32 %v1201_v13, %v1200_v7  ;;  %v555_v62 = vmax.f32 %v529_v11, 0.0 }
 0x11a   :  { %v1203_v16 = vpop.f32.mrf.mxu0 }
 0x11b   :  { %v1140_v17 = vpack.c.bf16 %v779_v1, %v779_v1  ;;  %v532_v18 = vadd.f32 %v1202_v15, %v1602_v12  ;;  %v764_v19 = vadd.f32 %v737_v3, %v555_v62  ;;  %v789_v20 = vpack.c.bf16 %v779_v1, %v778_v63 }
 0x11c   :  { %v1204_v21 = vpop.f32.mrf.mxu0 }
 0x11d   :  { %860 = vst.msk [vmem:[%s1757_s6 + $0x2c] sm:$0xf] %vm848_vm1, %v1140_v17  ;;  %v780_v6 = vmax.f32 %v764_v19, 0.0  ;;  %v1205_v23 = vadd.f32 %v1204_v21, %v1203_v16  ;;  %1292 = vmatmul.mubr.msk.bf16.gmra.mxu1 %vm324_vm0, %v789_v20  ;;  %v556_v24 = vmax.f32 %v532_v18, 0.0 }
 0x11e   :  { %v1206_v59 = vpop.f32.mrf.mxu0 }
 0x11f   :  { %v1141_v25 = vpack.c.bf16 %v780_v6, %v780_v6  ;;  %v537_v26 = vadd.f32 %v1596_v4, %v1205_v23  ;;  %v765_v27 = vadd.f32 %v740_v22, %v556_v24 }
 0x120   :  { %v1207_v12 = vpop.f32.mrf.mxu0 }
 0x121   :  { %861 = vst.msk [vmem:[%s1757_s6 + $0x30] sm:$0xf] %vm848_vm1, %v1141_v25  ;;  %v557_v28 = vmax.f32 %v537_v26, 0.0  ;;  %v781_v29 = vmax.f32 %v765_v27, 0.0  ;;  %v1208_v30 = vadd.f32 %v1207_v12, %v1206_v59 }
 0x123   :  { %v766_v31 = vadd.f32 %v1277_v49, %v557_v28  ;;  %v790_v32 = vpack.c.bf16 %v781_v29, %v780_v6  ;;  %v1142_v33 = vpack.c.bf16 %v781_v29, %v781_v29  ;;  %v540_v61 = vadd.f32 %v1600_v9, %v1208_v30  ;;  %v1118_v9 = vld [vmem:[#allocation2] ss:$0 sm:$0xff] }
 0x125   :  { %v782_v34 = vmax.f32 %v766_v31, 0.0  ;;  %862 = vst.msk [vmem:[%s1757_s6 + $0x34] sm:$0xf] %vm848_vm1, %v1142_v33  ;;  %v558_v4 = vmax.f32 %v540_v61, 0.0  ;;  %1295 = vmatprep.mubr.msk.bf16.mxu1 %vm324_vm0, %v790_v32 }
 0x127   :  { %v1143_v35 = vpack.c.bf16 %v782_v34, %v782_v34  ;;  %v767_v36 = vadd.f32 %v1278_v14, %v558_v4 }
 0x129   :  { %863 = vst.msk [vmem:[%s1757_s6 + $0x38] sm:$0xf] %vm848_vm1, %v1143_v35  ;;  %v783_v37 = vmax.f32 %v767_v36, 0.0 }
 0x12b   :  { %v1144_v38 = vpack.c.bf16 %v783_v37, %v783_v37  ;;  %v791_v39 = vpack.c.bf16 %v783_v37, %v782_v34 }
 0x12d   :  { %864 = vst.msk [vmem:[%s1757_s6 + $0x3c] sm:$0xf] %vm848_vm1, %v1144_v38  ;;  %1296 = vmatmul.mubr.msk.bf16.gmra.mxu1 %vm324_vm0, %v791_v39 }
 0x1bd   :  { %v1285_v40 = vpop.f32.mrf.mxu1 }
 0x1be   :  { %v955_v41 = vadd.f32 %v1285_v40, %v1118_v9 }
 0x1bf   :  { %v946_v42 = vpop.f32.mrf.mxu1 }
 0x1c0   :  { %1012 = vst.msk [vmem:[%s1758_s7 + $0x10] sm:$0xff] %vm1009_vm2, %v955_v41  ;;  %v947_v0 = vadd.f32 %v1118_v9, %v946_v42 }
 0x1c1   :  { %v1286_v43 = vpop.f32.mrf.mxu1 }
 0x1c2   :  { %1010 = vst.msk [vmem:[%s1758_s7] sm:$0xff] %vm1009_vm2, %v947_v0  ;;  %v958_v44 = vadd.f32 %v1286_v43, %v1118_v9 }
 0x1c3   :  { %v949_v45 = vpop.f32.mrf.mxu1 }
 0x1c4   :  { %1013 = vst.msk [vmem:[%s1758_s7 + $0x18] sm:$0xff] %vm1009_vm2, %v958_v44  ;;  %v950_v46 = vadd.f32 %v1118_v9, %v949_v45 }
 0x1c6   :  { %1011 = vst.msk [vmem:[%s1758_s7 + $0x8] sm:$0xff] %vm1009_vm2, %v950_v46 }
 0x1cd   :  { %v1289_v47 = vpop.f32.mrf.mxu1 }
 0x1ce   :  { %v971_v48 = vadd.f32 %v1289_v47, %v1118_v9 }
 0x1cf   :  { %v962_v2 = vpop.f32.mrf.mxu1 }
 0x1d0   :  { %1016 = vst.msk [vmem:[%s1758_s7 + $0x30] sm:$0xff] %vm1009_vm2, %v971_v48  ;;  %v963_v49 = vadd.f32 %v1118_v9, %v962_v2 }
 0x1d1   :  { %v1290_v50 = vpop.f32.mrf.mxu1 }
 0x1d2   :  { %1014 = vst.msk [vmem:[%s1758_s7 + $0x20] sm:$0xff] %vm1009_vm2, %v963_v49  ;;  %v974_v51 = vadd.f32 %v1290_v50, %v1118_v9 }
 0x1d3   :  { %v965_v52 = vpop.f32.mrf.mxu1 }
 0x1d4   :  { %1017 = vst.msk [vmem:[%s1758_s7 + $0x38] sm:$0xff] %vm1009_vm2, %v974_v51  ;;  %v966_v53 = vadd.f32 %v1118_v9, %v965_v52 }
 0x1d6   :  { %1015 = vst.msk [vmem:[%s1758_s7 + $0x28] sm:$0xff] %vm1009_vm2, %v966_v53 }
 0x1dd   :  { %v1293_v54 = vpop.f32.mrf.mxu1 }
 0x1de   :  { %v987_v55 = vadd.f32 %v1293_v54, %v1118_v9 }
 0x1df   :  { %v978_v56 = vpop.f32.mrf.mxu1 }
 0x1e0   :  { %1020 = vst.msk [vmem:[%s1758_s7 + $0x50] sm:$0xff] %vm1009_vm2, %v987_v55  ;;  %v979_v57 = vadd.f32 %v1118_v9, %v978_v56 }
 0x1e1   :  { %v1294_v58 = vpop.f32.mrf.mxu1 }
 0x1e2   :  { %1018 = vst.msk [vmem:[%s1758_s7 + $0x40] sm:$0xff] %vm1009_vm2, %v979_v57  ;;  %v990_v3 = vadd.f32 %v1294_v58, %v1118_v9 }
 0x1e3   :  { %v981_v63 = vpop.f32.mrf.mxu1 }
 0x1e4   :  { %1021 = vst.msk [vmem:[%s1758_s7 + $0x58] sm:$0xff] %vm1009_vm2, %v990_v3  ;;  %v982_v5 = vadd.f32 %v1118_v9, %v981_v63 }
 0x1e6   :  { %1019 = vst.msk [vmem:[%s1758_s7 + $0x48] sm:$0xff] %vm1009_vm2, %v982_v5 }
 0x1ed   :  { %v1297_v60 = vpop.f32.mrf.mxu1 }
 0x1ee   :  { %v1003_v7 = vadd.f32 %v1297_v60, %v1118_v9 }
 0x1ef   :  { %v994_v8 = vpop.f32.mrf.mxu1 }
 0x1f0   :  { %1024 = vst.msk [vmem:[%s1758_s7 + $0x70] sm:$0xff] %vm1009_vm2, %v1003_v7  ;;  %v995_v10 = vadd.f32 %v1118_v9, %v994_v8 }
 0x1f1   :  { %v1298_v11 = vpop.f32.mrf.mxu1 }
 0x1f2   :  { %1022 = vst.msk [vmem:[%s1758_s7 + $0x60] sm:$0xff] %vm1009_vm2, %v995_v10  ;;  %v1006_v13 = vadd.f32 %v1298_v11, %v1118_v9 }
 0x1f3   :  { %v997_v14 = vpop.f32.mrf.mxu1 }
 0x1f4   :  { %1025 = vst.msk [vmem:[%s1758_s7 + $0x78] sm:$0xff] %vm1009_vm2, %v1006_v13  ;;  %v998_v1 = vadd.f32 %v1118_v9, %v997_v14 }
 0x1f6   :  { %1023 = vst.msk [vmem:[%s1758_s7 + $0x68] sm:$0xff] %vm1009_vm2, %v998_v1 }

// kernel: deep_supervision_forward.12
= control target key start
LH: loop header
LB: loop body
LE: loop exit
PB: predicated region body
PF: predicated region fallthrough
CT: control target
= control target key end

     0   :  { %v3942_v0 = vmov 0   ;;  %vm780_vm0 = vcmask 261120   ;;  %vm2528_vm1 = vcmask 257024   ;;  %vm3001_vm2 = vcmask 7168   ;;  %s5690_s2 = inlined_call_operand.vmem [shape: bf16[288,32], index: 2, kind: input, shape index: {}]   ;;  %s5691_s0 = inlined_call_operand.vmem [shape: bf16[512,288], index: 0, kind: input, shape index: {}]   ;;  %s5692_s3 = inlined_call_operand.vmem [shape: bf16[32,32], index: 3, kind: input, shape index: {}]   ;;  %s5693_s1 = inlined_call_operand.vmem [shape: bf16[512,32], index: 1, kind: input, shape index: {}]   ;;  %s5694_s4 = inlined_call_operand.vmem [shape: bf16[32,1], index: 4, kind: input, shape index: {}]   ;;  %s5695_s6 = inlined_call_operand.vmem [shape: bf16[512,32], index: 6, kind: output, shape index: {0}]   ;;  %s5696_s5 = inlined_call_operand.<no memory space> [shape: f32[1,1], index: 5, kind: input, shape index: {}]   ;;  %s5697_s7 = inlined_call_operand.vmem [shape: f32[512,1], index: 7, kind: output, shape index: {1}]  }
   0x1   :  { %877 = vmatprep.subr.bf16.mxu0 %v3942_v0  ;;  %v3760_v1 = vld [vmem:[%s5690_s2 + $0x38] sm:$0xff]   ;;  %v3990_v2 = vld [vmem:[%s5690_s2 + $0x88] sm:$0xff]   ;;  %v3762_v3 = vld [vmem:[%s5690_s2 + $0x30] sm:$0xff]  }
   0x2   :  { %878 = vmatpush1.bf16.msra.mxu0 %v3760_v1  ;;  %3755 = vmatprep.subr.bf16.mxu1 %v3990_v2  ;;  %v4000_v4 = vld [vmem:[%s5690_s2 + $0x80] sm:$0xff]   ;;  %v3764_v5 = vld [vmem:[%s5691_s0 + $0xc8] ss:$12 sps:$4 sm:$0xff]   ;;  %v3769_v10 = vld [vmem:[%s5690_s2 + $0x18] sm:$0xff]  }
   0x3   :  { %879 = vmatprep.subr.bf16.mxu0 %v3942_v0  ;;  %3757 = vmatpush3.bf16.msra.mxu1 %v3990_v2  ;;  %v3765_v6 = vld [vmem:[%s5690_s2 + $0x28] sm:$0xff]   ;;  %v3768_v8 = vld [vmem:[%s5691_s0 + $0xf8] ss:$12 sps:$4 sm:$0xff]   ;;  %v3770_v11 = vld [vmem:[%s5691_s0 + $0x110] ss:$12 sps:$4 sm:$0xff]  }
   0x4   :  { %3756 = vmatprep.subr.bf16.mxu1 %v4000_v4  ;;  %3571 = vmatprep.mubr.msk.bf16.mxu1 %vm780_vm0, %v3764_v5  ;;  %v3766_v7 = vld [vmem:[%s5691_s0 + $0xe0] ss:$12 sps:$4 sm:$0xff]   ;;  %v3772_v12 = vld [vmem:[%s5691_s0 + $0x128] ss:$12 sps:$4 sm:$0xff]   ;;  %v3776_v16 = vld [vmem:[%s5691_s0 + $0x158] ss:$12 sps:$4 sm:$0xff]  }
   0x5   :  { %v3767_v9 = vld [vmem:[%s5690_s2 + $0x20] sm:$0xff]   ;;  %v3771_v13 = vld [vmem:[%s5690_s2 + $0x10] sm:$0xff]   ;;  %v3773_v14 = vld [vmem:[%s5690_s2 + $0x8] sm:$0xff]  }
   0x6   :  { %880 = vmatpush1.bf16.msra.mxu0 %v3762_v3  ;;  %v3774_v15 = vld [vmem:[%s5691_s0 + $0x140] ss:$12 sps:$4 sm:$0xff]   ;;  %v3777_v18 = vld [vmem:[%s5690_s2 + $0x78] sm:$0xff]   ;;  %v3780_v20 = vld [vmem:[%s5691_s0 + $0x188] ss:$12 sps:$4 sm:$0xff]  }
   0x7   :  { %881 = vmatprep.subr.bf16.mxu0 %v3942_v0  ;;  %3758 = vmatpush3.bf16.msra.mxu1 %v4000_v4  ;;  %v3775_v17 = vld [vmem:[%s5690_s2] sm:$0xff]   ;;  %v3778_v19 = vld [vmem:[%s5691_s0 + $0x170] ss:$12 sps:$4 sm:$0xff]   ;;  %v3781_v23 = vld [vmem:[%s5690_s2 + $0x68] sm:$0xff]  }
   0x8   :  { %v3794_v21 = vld [vmem:[%s5691_s0 + $0x4] ss:$12 sps:$4 sm:$0xff]   ;;  %v3782_v24 = vld [vmem:[%s5691_s0 + $0x1a0] ss:$12 sps:$4 sm:$0xff]   ;;  %v3785_v27 = vld [vmem:[%s5690_s2 + $0x58] sm:$0xff]  }
   0x9   :  { %v3779_v22 = vld [vmem:[%s5690_s2 + $0x70] sm:$0xff]   ;;  %909 = vmatprep.mubr.bf16.mxu0 %v3794_v21  ;;  %v3784_v25 = vld [vmem:[%s5691_s0 + $0x1b8] ss:$12 sps:$4 sm:$0xff]   ;;  %v3817_v31 = vld [vmem:[%s5692_s3 + $0x8] sm:$0xff]  }
   0xa   :  { %882 = vmatpush1.bf16.msra.mxu0 %v3765_v6  ;;  %3572 = vmatmul.mubr.msk.bf16.vlgmr.msra.gmra.mxu1 %vm780_vm0, %v3766_v7  ;;  %v3783_v26 = vld [vmem:[%s5690_s2 + $0x60] sm:$0xff]   ;;  %v3786_v28 = vld [vmem:[%s5691_s0 + $0x1d0] ss:$12 sps:$4 sm:$0xff]   ;;  %v3788_v30 = vld [vmem:[%s5691_s0 + $0x1e8] ss:$12 sps:$4 sm:$0xff]  }
   0xb   :  { %883 = vmatprep.subr.bf16.mxu0 %v3942_v0  ;;  %3575 = vmatprep.mubr.msk.bf16.mxu1 %vm780_vm0, %v3768_v8  ;;  %v3787_v29 = vld [vmem:[%s5690_s2 + $0x50] sm:$0xff]   ;;  %v3818_v32 = vld [vmem:[%s5692_s3] sm:$0xff]   ;;  %v3789_v33 = vld [vmem:[%s5690_s2 + $0x48] sm:$0xff]  }
   0xc   :  { %3619 = vmatprep.subr.bf16.mxu1 %v3817_v31  ;;  %v3790_v34 = vld [vmem:[%s5691_s0 + $0x200] ss:$12 sps:$4 sm:$0xff]   ;;  %v3795_v35 = vld [vmem:[%s5691_s0 + $0x218] ss:$12 sps:$4 sm:$0xff]   ;;  %v3797_v38 = vld [vmem:[%s5691_s0 + $0x1c] ss:$12 sps:$4 sm:$0xff]  }
   0xd   :  { %3620 = vmatpush3.bf16.msra.mxu1 %v3817_v31  ;;  %v3791_v36 = vld [vmem:[%s5690_s2 + $0x40] sm:$0xff]   ;;  %v3796_v39 = vld [vmem:[%s5691_s0 + $0x230] ss:$12 sps:$4 sm:$0xff]   ;;  %v3800_v40 = vld [vmem:[%s5691_s0 + $0x248] ss:$12 sps:$4 sm:$0xff]  }
   0xe   :  { %884 = vmatpush1.bf16.msra.mxu0 %v3767_v9  ;;  %3621 = vmatprep.subr.bf16.mxu1 %v3818_v32  ;;  %v3792_v37 = vld [vmem:[%s5691_s0] ss:$12 sps:$4 sm:$0xff]   ;;  %v3799_v41 = vld [vmem:[%s5691_s0 + $0x18] ss:$12 sps:$4 sm:$0xff]   ;;  %v3804_v45 = vld [vmem:[%s5691_s0 + $0x30] ss:$12 sps:$4 sm:$0xff]  }
   0xf   :  { %885 = vmatprep.subr.bf16.mxu0 %v3942_v0  ;;  %v3802_v42 = vld [vmem:[%s5691_s0 + $0x34] ss:$12 sps:$4 sm:$0xff]   ;;  %v3805_v44 = vld [vmem:[%s5691_s0 + $0x278] ss:$12 sps:$4 sm:$0xff]   ;;  %v3806_v47 = vld [vmem:[%s5691_s0 + $0x290] ss:$12 sps:$4 sm:$0xff]  }
  0x10   :  { %v3801_v43 = vld [vmem:[%s5691_s0 + $0x260] ss:$12 sps:$4 sm:$0xff]   ;;  %v3810_v48 = vld [vmem:[%s5691_s0 + $0x2a8] ss:$12 sps:$4 sm:$0xff]   ;;  %v3812_v50 = vld [vmem:[%s5691_s0 + $0x64] ss:$12 sps:$4 sm:$0xff]  }
  0x11   :  { %3622 = vmatpush3.bf16.msra.mxu1 %v3818_v32  ;;  %v3807_v46 = vld [vmem:[%s5691_s0 + $0x4c] ss:$12 sps:$4 sm:$0xff]   ;;  %v3809_v49 = vld [vmem:[%s5691_s0 + $0x48] ss:$12 sps:$4 sm:$0xff]   ;;  %v3816_v55 = vld [vmem:[%s5691_s0 + $0x2f0] ss:$12 sps:$4 sm:$0xff]  }
  0x12   :  { %886 = vmatpush1.bf16.msra.mxu0 %v3769_v10  ;;  %3576 = vmatmul.mubr.msk.bf16.gmra.mxu1 %vm780_vm0, %v3770_v11  ;;  %v3811_v51 = vld [vmem:[%s5691_s0 + $0x2c0] ss:$12 sps:$4 sm:$0xff]   ;;  %v3815_v52 = vld [vmem:[%s5691_s0 + $0x2d8] ss:$12 sps:$4 sm:$0xff]   ;;  %v3819_v54 = vld [vmem:[%s5691_s0 + $0x7c] ss:$12 sps:$4 sm:$0xff]  }
  0x13   :  { %887 = vmatprep.subr.bf16.mxu0 %v3942_v0  ;;  %3579 = vmatprep.mubr.msk.bf16.mxu1 %vm780_vm0, %v3772_v12  ;;  %v3814_v53 = vld [vmem:[%s5691_s0 + $0x60] ss:$12 sps:$4 sm:$0xff]   ;;  %v3821_v57 = vld [vmem:[%s5691_s0 + $0x78] ss:$12 sps:$4 sm:$0xff]   ;;  %v3827_v60 = vld [vmem:[%s5693_s1 + $0x10] sm:$0xff]  }
  0x14   :  { %v3822_v56 = vld [vmem:[%s5693_s1] sm:$0xff]   ;;  %v3823_v59 = vld [vmem:[%s5693_s1 + $0x8] sm:$0xff]   ;;  %v3826_v61 = vld [vmem:[%s5691_s0 + $0x90] ss:$12 sps:$4 sm:$0xff]  }
  0x15   :  { %v3824_v58 = vld [vmem:[%s5691_s0 + $0x94] ss:$12 sps:$4 sm:$0xff]   ;;  %v3829_v62 = vld [vmem:[%s5691_s0 + $0xac] ss:$12 sps:$4 sm:$0xff]   ;;  %v3839_v6 = vld [vmem:[%s5691_s0 + $0xdc] ss:$12 sps:$4 sm:$0xff]  }
  0x16   :  { %888 = vmatpush1.bf16.msra.mxu0 %v3771_v13  ;;  %v3828_v63 = vld [vmem:[%s5693_s1 + $0x18] sm:$0xff]   ;;  %v3831_v1 = vld [vmem:[%s5691_s0 + $0xa8] ss:$12 sps:$4 sm:$0xff]   ;;  %v3836_v5 = vld [vmem:[%s5691_s0 + $0xc0] ss:$12 sps:$4 sm:$0xff]  }
  0x17   :  { %889 = vmatprep.subr.bf16.mxu0 %v3942_v0  ;;  %v3833_v3 = vld [vmem:[%s5693_s1 + $0x28] sm:$0xff]   ;;  %v3838_v7 = vld [vmem:[%s5693_s1 + $0x38] sm:$0xff]   ;;  %v3842_v8 = vld [vmem:[%s5693_s1 + $0x40] sm:$0xff]  }
  0x18   :  { %v3841_v9 = vld [vmem:[%s5691_s0 + $0xd8] ss:$12 sps:$4 sm:$0xff]   ;;  %v3844_v10 = vld [vmem:[%s5691_s0 + $0xf4] ss:$12 sps:$4 sm:$0xff]   ;;  %v3843_v11 = vld [vmem:[%s5693_s1 + $0x48] sm:$0xff]  }
  0x19   :  { %v3847_v12 = vld [vmem:[%s5693_s1 + $0x50] sm:$0xff]   ;;  %v3854_v21 = vld [vmem:[%s5691_s0 + $0x120] ss:$12 sps:$4 sm:$0xff]   ;;  %v3880_v31 = vld [vmem:[%s5693_s1 + $0x98] sm:$0xff]  }
  0x1a   :  { %890 = vmatpush1.bf16.msra.mxu0 %v3773_v14  ;;  %3580 = vmatmul.mubr.msk.bf16.gmra.mxu1 %vm780_vm0, %v3774_v15  ;;  %v3846_v13 = vld [vmem:[%s5691_s0 + $0xf0] ss:$12 sps:$4 sm:$0xff]   ;;  %v3849_v14 = vld [vmem:[%s5691_s0 + $0x10c] ss:$12 sps:$4 sm:$0xff]   ;;  %v3887_v32 = vld [vmem:[%s5693_s1 + $0xa0] sm:$0xff]  }
  0x1b   :  { %891 = vmatprep.subr.bf16.mxu0 %v3942_v0  ;;  %3583 = vmatprep.mubr.msk.bf16.mxu1 %vm780_vm0, %v3776_v16  ;;  %v3848_v15 = vld [vmem:[%s5693_s1 + $0x58] sm:$0xff]   ;;  %v3855_v16 = vld [vmem:[%s5693_s1 + $0x60] sm:$0xff]  }
  0x1e   :  { %892 = vmatpush1.bf16.msra.mxu0 %v3775_v17  ;;  %v3851_v17 = vld [vmem:[%s5691_s0 + $0x108] ss:$12 sps:$4 sm:$0xff]  }
  0x1f   :  { %893 = vmatprep.subr.bf16.mxu0 %v3942_v0 }
  0x22   :  { %894 = vmatpush2.bf16.msra.mxu0 %v3777_v18  ;;  %3584 = vmatmul.mubr.msk.bf16.gmra.mxu1 %vm780_vm0, %v3778_v19  ;;  %v3852_v18 = vld [vmem:[%s5691_s0 + $0x124] ss:$12 sps:$4 sm:$0xff]   ;;  %v3856_v19 = vld [vmem:[%s5693_s1 + $0x68] sm:$0xff]  }
  0x23   :  { %895 = vmatprep.subr.bf16.mxu0 %v3942_v0  ;;  %3587 = vmatprep.mubr.msk.bf16.mxu1 %vm780_vm0, %v3780_v20  ;;  %v3863_v20 = vld [vmem:[%s5693_s1 + $0x70] sm:$0xff]  }
  0x26   :  { %896 = vmatpush2.bf16.msra.mxu0 %v3779_v22  ;;  %v3857_v22 = vld [vmem:[%s5691_s0 + $0x13c] ss:$12 sps:$4 sm:$0xff]  }
  0x27   :  { %897 = vmatprep.subr.bf16.mxu0 %v3942_v0 }
  0x2a   :  { %898 = vmatpush2.bf16.msra.mxu0 %v3781_v23  ;;  %3588 = vmatmul.mubr.msk.bf16.gmra.mxu1 %vm780_vm0, %v3782_v24  ;;  %v3864_v23 = vld [vmem:[%s5693_s1 + $0x78] sm:$0xff]   ;;  %v3871_v24 = vld [vmem:[%s5693_s1 + $0x80] sm:$0xff]  }
  0x2b   :  { %899 = vmatprep.subr.bf16.mxu0 %v3942_v0  ;;  %3591 = vmatprep.mubr.msk.bf16.mxu1 %vm780_vm0, %v3784_v25  ;;  %v3859_v25 = vld [vmem:[%s5691_s0 + $0x138] ss:$12 sps:$4 sm:$0xff]  }
  0x2e   :  { %900 = vmatpush2.bf16.msra.mxu0 %v3783_v26  ;;  %v3860_v26 = vld [vmem:[%s5691_s0 + $0x154] ss:$12 sps:$4 sm:$0xff]  }
  0x2f   :  { %901 = vmatprep.subr.bf16.mxu0 %v3942_v0 }
  0x32   :  { %902 = vmatpush2.bf16.msra.mxu0 %v3785_v27  ;;  %3592 = vmatmul.mubr.msk.bf16.gmra.mxu1 %vm780_vm0, %v3786_v28  ;;  %v3872_v27 = vld [vmem:[%s5693_s1 + $0x88] sm:$0xff]   ;;  %v3879_v28 = vld [vmem:[%s5693_s1 + $0x90] sm:$0xff]  }
  0x33   :  { %903 = vmatprep.subr.bf16.mxu0 %v3942_v0  ;;  %3595 = vmatprep.mubr.msk.bf16.mxu1 %vm780_vm0, %v3788_v30  ;;  %v3865_v30 = vld [vmem:[%s5691_s0 + $0x16c] ss:$12 sps:$4 sm:$0xff]  }
  0x36   :  { %904 = vmatpush2.bf16.msra.mxu0 %v3787_v29  ;;  %v3862_v29 = vld [vmem:[%s5691_s0 + $0x150] ss:$12 sps:$4 sm:$0xff]  }
  0x37   :  { %905 = vmatprep.subr.bf16.mxu0 %v3942_v0 }
  0x3a   :  { %906 = vmatpush2.bf16.msra.mxu0 %v3789_v33  ;;  %3596 = vmatmul.mubr.msk.bf16.gmra.mxu1 %vm780_vm0, %v3790_v34  ;;  %v3867_v33 = vld [vmem:[%s5691_s0 + $0x168] ss:$12 sps:$4 sm:$0xff]   ;;  %v3868_v34 = vld [vmem:[%s5691_s0 + $0x184] ss:$12 sps:$4 sm:$0xff]  }
  0x3b   :  { %907 = vmatprep.subr.bf16.mxu0 %v3942_v0  ;;  %3599 = vmatprep.mubr.msk.bf16.mxu1 %vm780_vm0, %v3795_v35  ;;  %v3832_v0 = vld [vmem:[%s5693_s1 + $0x20] sm:$0xff]   ;;  %v3888_v35 = vld [vmem:[%s5693_s1 + $0xa8] sm:$0xff]  }
  0x3e   :  { %908 = vmatpush2.bf16.msra.mxu0 %v3791_v36  ;;  %v3895_v36 = vld [vmem:[%s5693_s1 + $0xb0] sm:$0xff]  }
  0x3f   :  { %3551 = vmatprep.subr.bf16.mxu0 %v3990_v2 }
  0x41   :  { %910 = vmatmul.mubr.bf16.vlgmr.msra.gmra.mxu0 %v3792_v37  ;;  %v3870_v37 = vld [vmem:[%s5691_s0 + $0x180] ss:$12 sps:$4 sm:$0xff]  }
  0x42   :  { %3552 = vmatpush3.bf16.msra.mxu0 %v3990_v2  ;;  %917 = vmatprep.mubr.bf16.mxu0 %v3797_v38  ;;  %v3834_v2 = vld [vmem:[%s5691_s0 + $0xc4] ss:$12 sps:$4 sm:$0xff]   ;;  %v3873_v38 = vld [vmem:[%s5691_s0 + $0x19c] ss:$12 sps:$4 sm:$0xff]  }
  0x43   :  { %3600 = vmatmul.mubr.msk.bf16.gmra.mxu1 %vm780_vm0, %v3796_v39  ;;  %3553 = vmatprep.subr.bf16.mxu0 %v4000_v4  ;;  %v3896_v39 = vld [vmem:[%s5693_s1 + $0xb8] sm:$0xff]  }
  0x44   :  { %3603 = vmatprep.mubr.msk.bf16.mxu1 %vm780_vm0, %v3800_v40  ;;  %v3903_v40 = vld [vmem:[%s5693_s1 + $0xc0] sm:$0xff]  }
  0x46   :  { %3554 = vmatpush3.bf16.msra.mxu0 %v4000_v4  ;;  %v3837_v4 = vld [vmem:[%s5693_s1 + $0x30] sm:$0xff]  }
  0x49   :  { %918 = vmatmul.mubr.bf16.gmra.mxu0 %v3799_v41  ;;  %v3875_v41 = vld [vmem:[%s5691_s0 + $0x198] ss:$12 sps:$4 sm:$0xff]  }
  0x4a   :  { %925 = vmatprep.mubr.bf16.mxu0 %v3802_v42  ;;  %v3876_v42 = vld [vmem:[%s5691_s0 + $0x1b4] ss:$12 sps:$4 sm:$0xff]  }
  0x4b   :  { %3604 = vmatmul.mubr.msk.bf16.gmra.mxu1 %vm780_vm0, %v3801_v43  ;;  %v3904_v43 = vld [vmem:[%s5693_s1 + $0xc8] sm:$0xff]  }
  0x4c   :  { %3607 = vmatprep.mubr.msk.bf16.mxu1 %vm780_vm0, %v3805_v44  ;;  %v3911_v44 = vld [vmem:[%s5693_s1 + $0xd0] sm:$0xff]  }
  0x51   :  { %926 = vmatmul.mubr.bf16.gmra.mxu0 %v3804_v45 }
  0x52   :  { %933 = vmatprep.mubr.bf16.mxu0 %v3807_v46 }
  0x53   :  { %3608 = vmatmul.mubr.msk.bf16.gmra.mxu1 %vm780_vm0, %v3806_v47  ;;  %v3878_v47 = vld [vmem:[%s5691_s0 + $0x1b0] ss:$12 sps:$4 sm:$0xff]  }
  0x54   :  { %3611 = vmatprep.mubr.msk.bf16.mxu1 %vm780_vm0, %v3810_v48  ;;  %v3881_v48 = vld [vmem:[%s5691_s0 + $0x1cc] ss:$12 sps:$4 sm:$0xff]  }
  0x59   :  { %934 = vmatmul.mubr.bf16.gmra.mxu0 %v3809_v49 }
  0x5a   :  { %941 = vmatprep.mubr.bf16.mxu0 %v3812_v50  ;;  %v3912_v50 = vld [vmem:[%s5693_s1 + $0xd8] sm:$0xff]  }
  0x5b   :  { %3612 = vmatmul.mubr.msk.bf16.gmra.mxu1 %vm780_vm0, %v3811_v51  ;;  %v3919_v51 = vld [vmem:[%s5693_s1 + $0xe0] sm:$0xff]  }
  0x5c   :  { %3615 = vmatprep.mubr.msk.bf16.mxu1 %vm780_vm0, %v3815_v52 }
  0x61   :  { %942 = vmatmul.mubr.bf16.gmra.mxu0 %v3814_v53 }
  0x62   :  { %949 = vmatprep.mubr.bf16.mxu0 %v3819_v54 }
  0x63   :  { %3616 = vmatmul.mubr.msk.bf16.gmra.mxu1 %vm780_vm0, %v3816_v55  ;;  %v3883_v55 = vld [vmem:[%s5691_s0 + $0x1c8] ss:$12 sps:$4 sm:$0xff]  }
  0x64   :  { %3623 = vmatprep.mubr.msk.bf16.mxu1 %vm780_vm0, %v3822_v56  ;;  %v3884_v56 = vld [vmem:[%s5691_s0 + $0x1e4] ss:$12 sps:$4 sm:$0xff]  }
  0x69   :  { %950 = vmatmul.mubr.bf16.gmra.mxu0 %v3821_v57 }
  0x6a   :  { %957 = vmatprep.mubr.bf16.mxu0 %v3824_v58  ;;  %v3920_v58 = vld [vmem:[%s5693_s1 + $0xe8] sm:$0xff]  }
  0x6b   :  { %3624 = vmatmul.mubr.msk.bf16.vlgmr.msra.gmra.mxu1 %vm780_vm0, %v3823_v59  ;;  %v3927_v59 = vld [vmem:[%s5693_s1 + $0xf0] sm:$0xff]  }
  0x6c   :  { %3627 = vmatprep.mubr.msk.bf16.mxu1 %vm780_vm0, %v3827_v60 }
  0x71   :  { %958 = vmatmul.mubr.bf16.gmra.mxu0 %v3826_v61 }
  0x72   :  { %965 = vmatprep.mubr.bf16.mxu0 %v3829_v62 }
  0x73   :  { %3628 = vmatmul.mubr.msk.bf16.gmra.mxu1 %vm780_vm0, %v3828_v63  ;;  %v3886_v63 = vld [vmem:[%s5691_s0 + $0x1e0] ss:$12 sps:$4 sm:$0xff]  }
  0x74   :  { %3631 = vmatprep.mubr.msk.bf16.mxu1 %vm780_vm0, %v3832_v0  ;;  %v3889_v0 = vld [vmem:[%s5691_s0 + $0x1fc] ss:$12 sps:$4 sm:$0xff]  }
  0x79   :  { %966 = vmatmul.mubr.bf16.gmra.mxu0 %v3831_v1 }
  0x7a   :  { %973 = vmatprep.mubr.bf16.mxu0 %v3834_v2  ;;  %v3928_v2 = vld [vmem:[%s5693_s1 + $0xf8] sm:$0xff]  }
  0x7b   :  { %3632 = vmatmul.mubr.msk.bf16.gmra.mxu1 %vm780_vm0, %v3833_v3 }
  0x7c   :  { %3635 = vmatprep.mubr.msk.bf16.mxu1 %vm780_vm0, %v3837_v4 }
  0x81   :  { %974 = vmatmul.mubr.bf16.gmra.mxu0 %v3836_v5 }
  0x82   :  { %981 = vmatprep.mubr.bf16.mxu0 %v3839_v6  ;;  %v3891_v6 = vld [vmem:[%s5691_s0 + $0x1f8] ss:$12 sps:$4 sm:$0xff]  }
  0x83   :  { %3636 = vmatmul.mubr.msk.bf16.gmra.mxu1 %vm780_vm0, %v3838_v7  ;;  %v3892_v7 = vld [vmem:[%s5691_s0 + $0x214] ss:$12 sps:$4 sm:$0xff]  }
  0x84   :  { %3639 = vmatprep.mubr.msk.bf16.mxu1 %vm780_vm0, %v3842_v8 }
  0x89   :  { %982 = vmatmul.mubr.bf16.gmra.mxu0 %v3841_v9 }
  0x8a   :  { %989 = vmatprep.mubr.bf16.mxu0 %v3844_v10 }
  0x8b   :  { %3640 = vmatmul.mubr.msk.bf16.gmra.mxu1 %vm780_vm0, %v3843_v11 }
  0x8c   :  { %3643 = vmatprep.mubr.msk.bf16.mxu1 %vm780_vm0, %v3847_v12  ;;  %v3894_v12 = vld [vmem:[%s5691_s0 + $0x210] ss:$12 sps:$4 sm:$0xff]  }
  0x91   :  { %990 = vmatmul.mubr.bf16.gmra.mxu0 %v3846_v13  ;;  %v3897_v13 = vld [vmem:[%s5691_s0 + $0x22c] ss:$12 sps:$4 sm:$0xff]  }
  0x92   :  { %997 = vmatprep.mubr.bf16.mxu0 %v3849_v14 }
  0x93   :  { %3644 = vmatmul.mubr.msk.bf16.gmra.mxu1 %vm780_vm0, %v3848_v15 }
  0x94   :  { %3647 = vmatprep.mubr.msk.bf16.mxu1 %vm780_vm0, %v3855_v16 }
  0x99   :  { %998 = vmatmul.mubr.bf16.gmra.mxu0 %v3851_v17 }
  0x9a   :  { %1005 = vmatprep.mubr.bf16.mxu0 %v3852_v18  ;;  %v3899_v18 = vld [vmem:[%s5691_s0 + $0x228] ss:$12 sps:$4 sm:$0xff]  }
  0x9b   :  { %3648 = vmatmul.mubr.msk.bf16.gmra.mxu1 %vm780_vm0, %v3856_v19  ;;  %v3900_v19 = vld [vmem:[%s5691_s0 + $0x244] ss:$12 sps:$4 sm:$0xff]  }
  0x9c   :  { %3651 = vmatprep.mubr.msk.bf16.mxu1 %vm780_vm0, %v3863_v20 }
  0xa1   :  { %1006 = vmatmul.mubr.bf16.gmra.mxu0 %v3854_v21 }
  0xa2   :  { %1013 = vmatprep.mubr.bf16.mxu0 %v3857_v22 }
  0xa3   :  { %3652 = vmatmul.mubr.msk.bf16.gmra.mxu1 %vm780_vm0, %v3864_v23 }
  0xa4   :  { %3655 = vmatprep.mubr.msk.bf16.mxu1 %vm780_vm0, %v3871_v24  ;;  %v3902_v24 = vld [vmem:[%s5691_s0 + $0x240] ss:$12 sps:$4 sm:$0xff]  }
  0xa9   :  { %1014 = vmatmul.mubr.bf16.gmra.mxu0 %v3859_v25  ;;  %v3905_v25 = vld [vmem:[%s5691_s0 + $0x25c] ss:$12 sps:$4 sm:$0xff]  }
  0xaa   :  { %1021 = vmatprep.mubr.bf16.mxu0 %v3860_v26 }
  0xab   :  { %3656 = vmatmul.mubr.msk.bf16.gmra.mxu1 %vm780_vm0, %v3872_v27 }
  0xac   :  { %3659 = vmatprep.mubr.msk.bf16.mxu1 %vm780_vm0, %v3879_v28 }
  0xb1   :  { %1022 = vmatmul.mubr.bf16.gmra.mxu0 %v3862_v29 }
  0xb2   :  { %1029 = vmatprep.mubr.bf16.mxu0 %v3865_v30 }
  0xb3   :  { %3660 = vmatmul.mubr.msk.bf16.gmra.mxu1 %vm780_vm0, %v3880_v31 }
  0xb4   :  { %3663 = vmatprep.mubr.msk.bf16.mxu1 %vm780_vm0, %v3887_v32 }
  0xb9   :  { %1030 = vmatmul.mubr.bf16.gmra.mxu0 %v3867_v33  ;;  %v3907_v33 = vld [vmem:[%s5691_s0 + $0x258] ss:$12 sps:$4 sm:$0xff]  }
  0xba   :  { %1037 = vmatprep.mubr.bf16.mxu0 %v3868_v34  ;;  %v3908_v34 = vld [vmem:[%s5691_s0 + $0x274] ss:$12 sps:$4 sm:$0xff]  }
  0xbb   :  { %3664 = vmatmul.mubr.msk.bf16.gmra.mxu1 %vm780_vm0, %v3888_v35 }
  0xbc   :  { %3667 = vmatprep.mubr.msk.bf16.mxu1 %vm780_vm0, %v3895_v36 }
  0xc1   :  { %1038 = vmatmul.mubr.bf16.gmra.mxu0 %v3870_v37 }
  0xc2   :  { %1045 = vmatprep.mubr.bf16.mxu0 %v3873_v38 }
  0xc3   :  { %3668 = vmatmul.mubr.msk.bf16.gmra.mxu1 %vm780_vm0, %v3896_v39 }
  0xc4   :  { %3671 = vmatprep.mubr.msk.bf16.mxu1 %vm780_vm0, %v3903_v40 }
  0xc9   :  { %1046 = vmatmul.mubr.bf16.gmra.mxu0 %v3875_v41 }
  0xca   :  { %1053 = vmatprep.mubr.bf16.mxu0 %v3876_v42  ;;  %v4384_v45 = vpop.f32.mrf.mxu1 }
  0xcb   :  { %3672 = vmatmul.mubr.msk.bf16.gmra.mxu1 %vm780_vm0, %v3904_v43  ;;  %v3910_v43 = vld [vmem:[%s5691_s0 + $0x270] ss:$12 sps:$4 sm:$0xff]  }
  0xcc   :  { %3675 = vmatprep.mubr.msk.bf16.mxu1 %vm780_vm0, %v3911_v44  ;;  %v4388_v46 = vpop.f32.mrf.mxu1  ;;  %v3913_v44 = vld [vmem:[%s5691_s0 + $0x28c] ss:$12 sps:$4 sm:$0xff]  }
  0xce   :  { %v4396_v49 = vpop.f32.mrf.mxu1 }
  0xd0   :  { %v4404_v52 = vpop.f32.mrf.mxu1 }
  0xd1   :  { %1054 = vmatmul.mubr.bf16.gmra.mxu0 %v3878_v47 }
  0xd2   :  { %1061 = vmatprep.mubr.bf16.mxu0 %v3881_v48  ;;  %v4406_v53 = vpop.f32.mrf.mxu1 }
  0xd3   :  { %3676 = vmatmul.mubr.msk.bf16.gmra.mxu1 %vm780_vm0, %v3912_v50 }
  0xd4   :  { %3679 = vmatprep.mubr.msk.bf16.mxu1 %vm780_vm0, %v3919_v51  ;;  %v4410_v54 = vpop.f32.mrf.mxu1 }
  0xd6   :  { %v4418_v57 = vpop.f32.mrf.mxu1 }
  0xd8   :  { %v4426_v60 = vpop.f32.mrf.mxu1 }
  0xd9   :  { %1062 = vmatmul.mubr.bf16.gmra.mxu0 %v3883_v55 }
  0xda   :  { %1069 = vmatprep.mubr.bf16.mxu0 %v3884_v56  ;;  %v4428_v61 = vpop.f32.mrf.mxu1 }
  0xdb   :  { %3680 = vmatmul.mubr.msk.bf16.gmra.mxu1 %vm780_vm0, %v3920_v58 }
  0xdc   :  { %3683 = vmatprep.mubr.msk.bf16.mxu1 %vm780_vm0, %v3927_v59  ;;  %v4432_v62 = vpop.f32.mrf.mxu1 }
  0xde   :  { %v4440_v1 = vpop.f32.mrf.mxu1 }
  0xe0   :  { %v4445_v3 = vpop.f32.mrf.mxu1 }
  0xe1   :  { %1070 = vmatmul.mubr.bf16.gmra.mxu0 %v3886_v63  ;;  %v3915_v63 = vld [vmem:[%s5691_s0 + $0x288] ss:$12 sps:$4 sm:$0xff]  }
  0xe2   :  { %1077 = vmatprep.mubr.bf16.mxu0 %v3889_v0  ;;  %v4447_v4 = vpop.f32.mrf.mxu1  ;;  %v3918_v0 = vld [vmem:[%s5691_s0 + $0x2a4] ss:$12 sps:$4 sm:$0xff]  }
  0xe3   :  { %3684 = vmatmul.mubr.msk.bf16.gmra.mxu1 %vm780_vm0, %v3928_v2 }
  0xe4   :  { %v4450_v5 = vpop.f32.mrf.mxu1 }
  0xe6   :  { %v4458_v8 = vpop.f32.mrf.mxu1 }
  0xe8   :  { %v4460_v9 = vpop.f32.mrf.mxu1 }
  0xe9   :  { %1078 = vmatmul.mubr.bf16.gmra.mxu0 %v3891_v6 }
  0xea   :  { %1085 = vmatprep.mubr.bf16.mxu0 %v3892_v7  ;;  %v4462_v10 = vpop.f32.mrf.mxu1 }
  0xec   :  { %v4464_v11 = vpop.f32.mrf.mxu1 }
  0xee   :  { %v4472_v14 = vpop.f32.mrf.mxu1 }
  0xf0   :  { %v4474_v15 = vpop.f32.mrf.mxu1 }
  0xf1   :  { %1086 = vmatmul.mubr.bf16.gmra.mxu0 %v3894_v12 }
  0xf2   :  { %1093 = vmatprep.mubr.bf16.mxu0 %v3897_v13  ;;  %v4476_v16 = vpop.f32.mrf.mxu1  ;;  %v3940_v13 = vld [vmem:[%s5694_s4 + $0x8] sm:$0xff]  }
  0xf3   :  { %3687 = vmatprep.subr.bf16.mxu1 %v3940_v13 }
  0xf4   :  { %v4478_v17 = vpop.f32.mrf.mxu1  ;;  %3688 = vmatpush3.bf16.msra.mxu1 %v3940_v13 }
  0xf6   :  { %v4486_v20 = vpop.f32.mrf.mxu1 }
  0xf8   :  { %v4488_v21 = vpop.f32.mrf.mxu1 }
  0xf9   :  { %1094 = vmatmul.mubr.bf16.gmra.mxu0 %v3899_v18 }
  0xfa   :  { %1101 = vmatprep.mubr.bf16.mxu0 %v3900_v19  ;;  %v4490_v22 = vpop.f32.mrf.mxu1 }
  0xfc   :  { %v4492_v23 = vpop.f32.mrf.mxu1 }
  0xfe   :  { %v4500_v26 = vpop.f32.mrf.mxu1 }
 0x100   :  { %v4502_v27 = vpop.f32.mrf.mxu1 }
 0x101   :  { %v4504_v28 = vpop.f32.mrf.mxu0  ;;  %1102 = vmatmul.mubr.bf16.gmra.mxu0 %v3902_v24 }
 0x102   :  { %5706 = vst [vmem:[#allocation3_spill] sm:$0xff] %v4504_v28  ;;  %1109 = vmatprep.mubr.bf16.mxu0 %v3905_v25 }
 0x103   :  { %v4506_v29 = vpop.f32.mrf.mxu1  ;;  %v913_v30 = vpop.f32.mrf.mxu0 }
 0x104   :  { %v3916_v30 = vld [vmem:[%s5691_s0 + $0x2a0] ss:$12 sps:$4 sm:$0xff]  }
 0x105   :  { %v4508_v31 = vpop.f32.mrf.mxu1  ;;  %v4510_v32 = vpop.f32.mrf.mxu0 }
 0x106   :  { %5707 = vst [vmem:[#allocation4_spill] sm:$0xff] %v4510_v32  ;;  %v3929_v32 = vld [vmem:[%s5691_s0 + $0x2e8] ss:$12 sps:$4 sm:$0xff]  }
 0x107   :  { %v4518_v35 = vpop.f32.mrf.mxu1  ;;  %v916_v36 = vpop.f32.mrf.mxu0 }
 0x109   :  { %v4520_v37 = vpop.f32.mrf.mxu1  ;;  %v4522_v38 = vpop.f32.mrf.mxu0  ;;  %1110 = vmatmul.mubr.bf16.gmra.mxu0 %v3907_v33  ;;  %v3923_v33 = vld [vmem:[%s5691_s0 + $0x2bc] ss:$12 sps:$4 sm:$0xff]  }
 0x10a   :  { %5708 = vst [vmem:[#allocation5_spill] sm:$0xff] %v4522_v38  ;;  %1117 = vmatprep.mubr.bf16.mxu0 %v3908_v34 }
 0x10b   :  { %v4524_v39 = vpop.f32.mrf.mxu1  ;;  %v921_v40 = vpop.f32.mrf.mxu0 }
 0x10d   :  { %v4526_v41 = vpop.f32.mrf.mxu1  ;;  %v4528_v42 = vpop.f32.mrf.mxu0 }
 0x10e   :  { %5709 = vst [vmem:[#allocation6_spill] sm:$0xff] %v4528_v42 }
 0x10f   :  { %v4536_v47 = vpop.f32.mrf.mxu1  ;;  %v924_v48 = vpop.f32.mrf.mxu0 }
 0x111   :  { %v4538_v50 = vpop.f32.mrf.mxu1  ;;  %v4540_v51 = vpop.f32.mrf.mxu0  ;;  %1118 = vmatmul.mubr.bf16.gmra.mxu0 %v3910_v43 }
 0x112   :  { %5710 = vst [vmem:[#allocation7_spill] sm:$0xff] %v4540_v51  ;;  %1125 = vmatprep.mubr.bf16.mxu0 %v3913_v44 }
 0x113   :  { %v4542_v55 = vpop.f32.mrf.mxu1  ;;  %v929_v56 = vpop.f32.mrf.mxu0 }
 0x115   :  { %v4544_v58 = vpop.f32.mrf.mxu1  ;;  %v4546_v59 = vpop.f32.mrf.mxu0 }
 0x116   :  { %5711 = vst [vmem:[#allocation8_spill] sm:$0xff] %v4546_v59  ;;  %v3924_v59 = vld [vmem:[%s5691_s0 + $0x2d0] ss:$12 sps:$4 sm:$0xff]  }
 0x117   :  { %v4554_v2 = vpop.f32.mrf.mxu1  ;;  %v932_v6 = vpop.f32.mrf.mxu0 }
 0x118   :  { %v3926_v6 = vld [vmem:[%s5691_s0 + $0x2d4] ss:$12 sps:$4 sm:$0xff]  }
 0x119   :  { %v4556_v7 = vpop.f32.mrf.mxu1  ;;  %v4558_v12 = vpop.f32.mrf.mxu0  ;;  %1126 = vmatmul.mubr.bf16.gmra.mxu0 %v3915_v63 }
 0x11a   :  { %5712 = vst [vmem:[#allocation9_spill] sm:$0xff] %v4558_v12  ;;  %1133 = vmatprep.mubr.bf16.mxu0 %v3918_v0  ;;  %v3921_v0 = vld [vmem:[%s5691_s0 + $0x2b8] ss:$12 sps:$4 sm:$0xff]  }
 0x11b   :  { %v4563_v18 = vpop.f32.mrf.mxu1  ;;  %v937_v19 = vpop.f32.mrf.mxu0 }
 0x11d   :  { %v4565_v24 = vpop.f32.mrf.mxu1  ;;  %v4567_v25 = vpop.f32.mrf.mxu0 }
 0x11e   :  { %5713 = vst [vmem:[#allocation10_spill] sm:$0xff] %v4567_v25 }
 0x11f   :  { %v4575_v34 = vpop.f32.mrf.mxu1  ;;  %v940_v36 = vpop.f32.mrf.mxu0 }
 0x121   :  { %v4577_v40 = vpop.f32.mrf.mxu1  ;;  %v4579_v43 = vpop.f32.mrf.mxu0  ;;  %1134 = vmatmul.mubr.bf16.gmra.mxu0 %v3916_v30 }
 0x122   :  { %5714 = vst [vmem:[#allocation11_spill] sm:$0xff] %v4579_v43  ;;  %1141 = vmatprep.mubr.bf16.mxu0 %v3923_v33 }
 0x123   :  { %v4581_v44 = vpop.f32.mrf.mxu1  ;;  %v945_v48 = vpop.f32.mrf.mxu0 }
 0x125   :  { %v4583_v56 = vpop.f32.mrf.mxu1  ;;  %v4585_v63 = vpop.f32.mrf.mxu0 }
 0x126   :  { %5715 = vst [vmem:[#allocation12_spill] sm:$0xff] %v4585_v63 }
 0x127   :  { %v4593_v13 = vpop.f32.mrf.mxu1  ;;  %v948_v19 = vpop.f32.mrf.mxu0 }
 0x128   :  { %v3931_v19 = vld [vmem:[%s5691_s0 + $0x2ec] ss:$12 sps:$4 sm:$0xff]  }
 0x129   :  { %v4595_v30 = vpop.f32.mrf.mxu1  ;;  %v4597_v33 = vpop.f32.mrf.mxu0  ;;  %1142 = vmatmul.mubr.bf16.gmra.mxu0 %v3921_v0 }
 0x12a   :  { %5716 = vst [vmem:[#allocation13_spill] sm:$0xff] %v4597_v33  ;;  %1149 = vmatprep.mubr.bf16.mxu0 %v3926_v6 }
 0x12b   :  { %v4599_v36 = vpop.f32.mrf.mxu1  ;;  %v953_v48 = vpop.f32.mrf.mxu0 }
 0x12c   :  { %5717 = vst [vmem:[#allocation14_spill] sm:$0xff] %v4599_v36 }
 0x12d   :  { %v4601_v63 = vpop.f32.mrf.mxu1  ;;  %v4603_v43 = vpop.f32.mrf.mxu0 }
 0x12e   :  { %5718 = vst [vmem:[#allocation15_spill] sm:$0xff] %v4601_v63  ;;  %5719 = vst [vmem:[#allocation16_spill] sm:$0xff] %v4603_v43 }
 0x12f   :  { %v4611_v25 = vpop.f32.mrf.mxu1  ;;  %v956_v33 = vpop.f32.mrf.mxu0 }
 0x130   :  { %5720 = vst [vmem:[#allocation17_spill] sm:$0xff] %v4611_v25  ;;  %v3932_v33 = vld [vmem:[%s5691_s0 + $0x8] ss:$12 sps:$4 sm:$0xff]   ;;  %v3933_v25 = vld [vmem:[%s5691_s0 + $0x20] ss:$12 sps:$4 sm:$0xff]  }
 0x131   :  { %v4613_v0 = vpop.f32.mrf.mxu1  ;;  %v4615_v6 = vpop.f32.mrf.mxu0  ;;  %1150 = vmatmul.mubr.bf16.gmra.mxu0 %v3924_v59 }
 0x132   :  { %5721 = vst [vmem:[#allocation18_spill] sm:$0xff] %v4613_v0  ;;  %5722 = vst [vmem:[#allocation19_spill] sm:$0xff] %v4615_v6  ;;  %1157 = vmatprep.mubr.bf16.mxu0 %v3931_v19 }
 0x133   :  { %v4617_v48 = vpop.f32.mrf.mxu1  ;;  %v961_v43 = vpop.f32.mrf.mxu0 }
 0x134   :  { %5723 = vst [vmem:[#allocation20_spill] sm:$0xff] %v4617_v48 }
 0x135   :  { %v4619_v51 = vpop.f32.mrf.mxu1  ;;  %v4621_v12 = vpop.f32.mrf.mxu0 }
 0x136   :  { %5724 = vst [vmem:[#allocation21_spill] sm:$0xff] %v4619_v51  ;;  %5725 = vst [vmem:[#allocation22_spill] sm:$0xff] %v4621_v12 }
 0x137   :  { %v4629_v0 = vpop.f32.mrf.mxu1  ;;  %v964_v6 = vpop.f32.mrf.mxu0 }
 0x138   :  { %5726 = vst [vmem:[#allocation23_spill] sm:$0xff] %v4629_v0  ;;  %v3934_v6 = vld [vmem:[%s5691_s0 + $0x38] ss:$12 sps:$4 sm:$0xff]   ;;  %v3935_v0 = vld [vmem:[%s5691_s0 + $0x50] ss:$12 sps:$4 sm:$0xff]  }
 0x139   :  { %v4631_v59 = vpop.f32.mrf.mxu1  ;;  %v4633_v19 = vpop.f32.mrf.mxu0  ;;  %1158 = vmatmul.mubr.bf16.gmra.mxu0 %v3929_v32 }
 0x13a   :  { %5727 = vst [vmem:[#allocation24_spill] sm:$0xff] %v4631_v59  ;;  %5728 = vst [vmem:[#allocation25_spill] sm:$0xff] %v4633_v19  ;;  %3555 = vmatprep.mubr.msk.bf16.mxu0 %vm780_vm0, %v3932_v33 }
 0x13b   :  { %v4636_v43 = vpop.f32.mrf.mxu1  ;;  %v969_v12 = vpop.f32.mrf.mxu0 }
 0x13c   :  { %5729 = vst [vmem:[#allocation26_spill] sm:$0xff] %v4636_v43 }
 0x13d   :  { %v4638_v51 = vpop.f32.mrf.mxu1  ;;  %v4640_v48 = vpop.f32.mrf.mxu0 }
 0x13e   :  { %5730 = vst [vmem:[#allocation27_spill] sm:$0xff] %v4638_v51  ;;  %5731 = vst [vmem:[#allocation28_spill] sm:$0xff] %v4640_v48 }
 0x13f   :  { %v4648_v59 = vpop.f32.mrf.mxu1  ;;  %v972_v32 = vpop.f32.mrf.mxu0 }
 0x140   :  { %5732 = vst [vmem:[#allocation29_spill] sm:$0xff] %v4648_v59  ;;  %v3936_v32 = vld [vmem:[%s5691_s0 + $0x68] ss:$12 sps:$4 sm:$0xff]  }
 0x141   :  { %v4650_v19 = vpop.f32.mrf.mxu1  ;;  %v975_v33 = vpop.f32.mrf.mxu0  ;;  %3556 = vmatmul.mubr.msk.bf16.vlgmr.msra.gmra.mxu0 %vm780_vm0, %v3933_v25 }
 0x142   :  { %5733 = vst [vmem:[#allocation30_spill] sm:$0xff] %v4650_v19  ;;  %3559 = vmatprep.mubr.msk.bf16.mxu0 %vm780_vm0, %v3934_v6  ;;  %v1265_v25 = vadd.f32 %v4388_v46, %v975_v33  ;;  %v3937_v46 = vld [vmem:[%s5691_s0 + $0x80] ss:$12 sps:$4 sm:$0xff]  }
 0x143   :  { %v4654_v12 = vpop.f32.mrf.mxu1  ;;  %v977_v48 = vpop.f32.mrf.mxu0 }
 0x144   :  { %5734 = vst [vmem:[#allocation31_spill] sm:$0xff] %v4654_v12  ;;  %v1471_v42 = vmax.f32 %v1265_v25, 0.0 }
 0x145   :  { %v4656_v51 = vpop.f32.mrf.mxu1  ;;  %v978_v43 = vpop.f32.mrf.mxu0 }
 0x146   :  { %5735 = vst [vmem:[#allocation32_spill] sm:$0xff] %v4656_v51  ;;  %v1268_v36 = vadd.f32 %v4404_v52, %v978_v43 }
 0x147   :  { %v4664_v19 = vpop.f32.mrf.mxu1  ;;  %v980_v59 = vpop.f32.mrf.mxu0 }
 0x148   :  { %5736 = vst [vmem:[#allocation33_spill] sm:$0xff] %v4664_v19 }
 0x149   :  { %v4667_v6 = vpop.f32.mrf.mxu1  ;;  %v983_v12 = vpop.f32.mrf.mxu0  ;;  %3560 = vmatmul.mubr.msk.bf16.gmra.mxu0 %vm780_vm0, %v3935_v0 }
 0x14a   :  { %5737 = vst [vmem:[#allocation34_spill] sm:$0xff] %v4667_v6  ;;  %v1273_v48 = vadd.f32 %v4384_v45, %v983_v12  ;;  %3563 = vmatprep.mubr.msk.bf16.mxu0 %vm780_vm0, %v3936_v32  ;;  %v3938_v45 = vld [vmem:[%s5691_s0 + $0x98] ss:$12 sps:$4 sm:$0xff]   ;;  %v1472_v32 = vmax.f32 %v1268_v36, 0.0 }
 0x14b   :  { %v3641_v51 = vpop.f32.mrf.mxu1  ;;  %v985_v63 = vpop.f32.mrf.mxu0 }
 0x14c   :  { %v1473_v28 = vmax.f32 %v1273_v48, 0.0 }
 0x14d   :  { %v1953_v38 = vpop.f32.mrf.mxu1  ;;  %v986_v19 = vpop.f32.mrf.mxu0 }
 0x14e   :  { %v2162_v59 = vadd.f32 %v3641_v51, %v1473_v28  ;;  %v2160_v33 = vadd.f32 %v1953_v38, %v1471_v42  ;;  %v1276_v0 = vadd.f32 %v4396_v49, %v986_v19 }
 0x14f   :  { %v3642_v12 = vpop.f32.mrf.mxu1  ;;  %v988_v63 = vpop.f32.mrf.mxu0 }
 0x150   :  { %v4680_v25 = vmax.f32 %v2162_v59, 0.0  ;;  %v4682_v52 = vmax.f32 %v2160_v33, 0.0  ;;  %v1474_v43 = vmax.f32 %v1276_v0, 0.0 }
 0x151   :  { %v1956_v48 = vpop.f32.mrf.mxu1  ;;  %v991_v6 = vpop.f32.mrf.mxu0  ;;  %3564 = vmatmul.mubr.msk.bf16.gmra.mxu0 %vm780_vm0, %v3937_v46 }
 0x152   :  { %v3403_v49 = vpack.c.bf16 %v4680_v25, %v4680_v25  ;;  %v3401_v28 = vpack.c.bf16 %v4682_v52, %v4682_v52  ;;  %v2163_v38 = vadd.f32 %v3642_v12, %v1474_v43  ;;  %v2161_v42 = vadd.f32 %v1956_v48, %v1472_v32  ;;  %3567 = vmatprep.mubr.msk.bf16.mxu0 %vm780_vm0, %v3938_v45 }
 0x153   :  { %v1281_v51 = vadd.f32 %v4410_v54, %v991_v6  ;;  %v993_v36 = vpop.f32.mrf.mxu0  ;;  %v3645_v19 = vpop.f32.mrf.mxu1  ;;  %v3939_v54 = vld [vmem:[%s5691_s0 + $0xb0] ss:$12 sps:$4 sm:$0xff]  }
 0x154   :  { %2547 = vst.msk [vmem:[%s5695_s6 + $0x48] sm:$0xf] %vm2528_vm1, %v3403_v49  ;;  %2545 = vst.msk [vmem:[%s5695_s6 + $0x40] sm:$0xf] %vm2528_vm1, %v3401_v28  ;;  %v4699_v46 = vmax.f32 %v2163_v38, 0.0  ;;  %v4701_v59 = vmax.f32 %v2161_v42, 0.0 }
 0x155   :  { %v1475_v33 = vmax.f32 %v1281_v51, 0.0  ;;  %v994_v0 = vpop.f32.mrf.mxu0  ;;  %v1969_v45 = vpop.f32.mrf.mxu1  ;;  %v3941_v38 = vld [vmem:[%s5694_s4] sm:$0xff]  }
 0x156   :  { %v3404_v12 = vpack.c.bf16 %v4699_v46, %v4699_v46  ;;  %v3402_v32 = vpack.c.bf16 %v4701_v59, %v4701_v59  ;;  %v1284_v43 = vadd.f32 %v4426_v60, %v994_v0  ;;  %3689 = vmatprep.subr.bf16.mxu1 %v3941_v38 }
 0x157   :  { %v2164_v48 = vadd.f32 %v1969_v45, %v1475_v33  ;;  %v996_v49 = vpop.f32.mrf.mxu0  ;;  %v3646_v28 = vpop.f32.mrf.mxu1  ;;  %3690 = vmatpush3.bf16.msra.mxu1 %v3941_v38 }
 0x158   :  { %2548 = vst.msk [vmem:[%s5695_s6 + $0x4c] sm:$0xf] %vm2528_vm1, %v3404_v12  ;;  %2546 = vst.msk [vmem:[%s5695_s6 + $0x44] sm:$0xf] %vm2528_vm1, %v3402_v32  ;;  %v1476_v42 = vmax.f32 %v1284_v43, 0.0 }
 0x159   :  { %v4726_v51 = vmax.f32 %v2164_v48, 0.0  ;;  %v999_v60 = vpop.f32.mrf.mxu0  ;;  %3568 = vmatmul.mubr.msk.bf16.gmra.mxu0 %vm780_vm0, %v3939_v54  ;;  %v1972_v36 = vpop.f32.mrf.mxu1 }
 0x15a   :  { %v1289_v33 = vadd.f32 %v4406_v53, %v999_v60  ;;  %v2165_v45 = vadd.f32 %v1972_v36, %v1476_v42 }
 0x15b   :  { %v3405_v0 = vpack.c.bf16 %v4726_v51, %v4726_v51  ;;  %v1001_v12 = vpop.f32.mrf.mxu0  ;;  %v3649_v32 = vpop.f32.mrf.mxu1 }
 0x15c   :  { %v1477_v49 = vmax.f32 %v1289_v33, 0.0  ;;  %v4736_v43 = vmax.f32 %v2165_v45, 0.0 }
 0x15d   :  { %2549 = vst.msk [vmem:[%s5695_s6 + $0x50] sm:$0xf] %vm2528_vm1, %v3405_v0  ;;  %v1002_v54 = vpop.f32.mrf.mxu0  ;;  %v1985_v38 = vpop.f32.mrf.mxu1 }
 0x15e   :  { %v2166_v48 = vadd.f32 %v3645_v19, %v1477_v49  ;;  %v1292_v53 = vadd.f32 %v4418_v57, %v1002_v54  ;;  %v3406_v42 = vpack.c.bf16 %v4736_v43, %v4736_v43 }
 0x15f   :  { %v1004_v36 = vpop.f32.mrf.mxu0  ;;  %v3650_v54 = vpop.f32.mrf.mxu1 }
 0x160   :  { %v4743_v33 = vmax.f32 %v2166_v48, 0.0  ;;  %v1478_v12 = vmax.f32 %v1292_v53, 0.0  ;;  %2550 = vst.msk [vmem:[%s5695_s6 + $0x54] sm:$0xf] %vm2528_vm1, %v3406_v42 }
 0x161   :  { %v1007_v0 = vpop.f32.mrf.mxu0 }
 0x162   :  { %v3407_v57 = vpack.c.bf16 %v4743_v33, %v4743_v33  ;;  %v2167_v19 = vadd.f32 %v3646_v28, %v1478_v12  ;;  %v1297_v45 = vadd.f32 %v4432_v62, %v1007_v0  ;;  %v1988_v0 = vpop.f32.mrf.mxu1 }
 0x163   :  { %v1009_v49 = vpop.f32.mrf.mxu0 }
 0x164   :  { %2551 = vst.msk [vmem:[%s5695_s6 + $0x58] sm:$0xf] %vm2528_vm1, %v3407_v57  ;;  %v4756_v48 = vmax.f32 %v2167_v19, 0.0  ;;  %v1479_v53 = vmax.f32 %v1297_v45, 0.0 }
 0x165   :  { %v1010_v36 = vpop.f32.mrf.mxu0 }
 0x166   :  { %v3408_v60 = vpack.c.bf16 %v4756_v48, %v4756_v48  ;;  %v1300_v28 = vadd.f32 %v4445_v3, %v1010_v36  ;;  %v2168_v62 = vadd.f32 %v1985_v38, %v1479_v53  ;;  %v3653_v3 = vpop.f32.mrf.mxu1 }
 0x167   :  { %v1012_v12 = vpop.f32.mrf.mxu0 }
 0x168   :  { %2552 = vst.msk [vmem:[%s5695_s6 + $0x5c] sm:$0xf] %vm2528_vm1, %v3408_v60  ;;  %v1480_v57 = vmax.f32 %v1300_v28, 0.0  ;;  %v4767_v19 = vmax.f32 %v2168_v62, 0.0  ;;  %v2001_v12 = vpop.f32.mrf.mxu1 }
 0x169   :  { %v1015_v45 = vpop.f32.mrf.mxu0 }
 0x16a   :  { %v3409_v49 = vpack.c.bf16 %v4767_v19, %v4767_v19  ;;  %v1305_v42 = vadd.f32 %v4428_v61, %v1015_v45  ;;  %v2169_v6 = vadd.f32 %v1988_v0, %v1480_v57 }
 0x16b   :  { %v1017_v63 = vpop.f32.mrf.mxu0 }
 0x16c   :  { %2553 = vst.msk [vmem:[%s5695_s6 + $0x60] sm:$0xf] %vm2528_vm1, %v3409_v49  ;;  %v1481_v38 = vmax.f32 %v1305_v42, 0.0  ;;  %v4776_v53 = vmax.f32 %v2169_v6, 0.0 }
 0x16d   :  { %v1018_v60 = vpop.f32.mrf.mxu0 }
 0x16e   :  { %v2170_v36 = vadd.f32 %v3649_v32, %v1481_v38  ;;  %v3410_v62 = vpack.c.bf16 %v4776_v53, %v4776_v53  ;;  %v1308_v61 = vadd.f32 %v4440_v1, %v1018_v60  ;;  %v3654_v38 = vpop.f32.mrf.mxu1 }
 0x16f   :  { %v1020_v63 = vpop.f32.mrf.mxu0 }
 0x170   :  { %v4783_v0 = vmax.f32 %v2170_v36, 0.0  ;;  %2554 = vst.msk [vmem:[%s5695_s6 + $0x64] sm:$0xf] %vm2528_vm1, %v3410_v62  ;;  %v1482_v6 = vmax.f32 %v1308_v61, 0.0 }
 0x171   :  { %v1023_v42 = vpop.f32.mrf.mxu0 }
 0x172   :  { %v3411_v32 = vpack.c.bf16 %v4783_v0, %v4783_v0  ;;  %v2171_v57 = vadd.f32 %v3650_v54, %v1482_v6  ;;  %v1313_v45 = vadd.f32 %v4450_v5, %v1023_v42  ;;  %v2004_v6 = vpop.f32.mrf.mxu1 }
 0x173   :  { %v1025_v49 = vpop.f32.mrf.mxu0 }
 0x174   :  { %2555 = vst.msk [vmem:[%s5695_s6 + $0x68] sm:$0xf] %vm2528_vm1, %v3411_v32  ;;  %v4796_v1 = vmax.f32 %v2171_v57, 0.0  ;;  %v1483_v60 = vmax.f32 %v1313_v45, 0.0 }
 0x175   :  { %v1026_v36 = vpop.f32.mrf.mxu0 }
 0x176   :  { %v3412_v61 = vpack.c.bf16 %v4796_v1, %v4796_v1  ;;  %v1316_v54 = vadd.f32 %v4460_v9, %v1026_v36  ;;  %v2172_v5 = vadd.f32 %v2001_v12, %v1483_v60  ;;  %v3657_v9 = vpop.f32.mrf.mxu1 }
 0x177   :  { %v1028_v63 = vpop.f32.mrf.mxu0 }
 0x178   :  { %2556 = vst.msk [vmem:[%s5695_s6 + $0x6c] sm:$0xf] %vm2528_vm1, %v3412_v61  ;;  %v1484_v42 = vmax.f32 %v1316_v54, 0.0  ;;  %v4807_v32 = vmax.f32 %v2172_v5, 0.0  ;;  %v2017_v63 = vpop.f32.mrf.mxu1 }
 0x179   :  { %v1031_v57 = vpop.f32.mrf.mxu0 }
 0x17a   :  { %v3413_v45 = vpack.c.bf16 %v4807_v32, %v4807_v32  ;;  %v1321_v49 = vadd.f32 %v4447_v4, %v1031_v57  ;;  %v2173_v62 = vadd.f32 %v2004_v6, %v1484_v42 }
 0x17b   :  { %v1033_v28 = vpop.f32.mrf.mxu0 }
 0x17c   :  { %2557 = vst.msk [vmem:[%s5695_s6 + $0x70] sm:$0xf] %vm2528_vm1, %v3413_v45  ;;  %v1485_v12 = vmax.f32 %v1321_v49, 0.0  ;;  %v4816_v60 = vmax.f32 %v2173_v62, 0.0 }
 0x17d   :  { %v1034_v36 = vpop.f32.mrf.mxu0 }
 0x17e   :  { %v2174_v61 = vadd.f32 %v3653_v3, %v1485_v12  ;;  %v3414_v5 = vpack.c.bf16 %v4816_v60, %v4816_v60  ;;  %v1324_v4 = vadd.f32 %v4458_v8, %v1034_v36  ;;  %v3658_v12 = vpop.f32.mrf.mxu1 }
 0x17f   :  { %v1036_v28 = vpop.f32.mrf.mxu0 }
 0x180   :  { %v4823_v6 = vmax.f32 %v2174_v61, 0.0  ;;  %2558 = vst.msk [vmem:[%s5695_s6 + $0x74] sm:$0xf] %vm2528_vm1, %v3414_v5  ;;  %v1486_v62 = vmax.f32 %v1324_v4, 0.0 }
 0x181   :  { %v1039_v42 = vpop.f32.mrf.mxu0 }
 0x182   :  { %v3415_v3 = vpack.c.bf16 %v4823_v6, %v4823_v6  ;;  %v2175_v57 = vadd.f32 %v3654_v38, %v1486_v62  ;;  %v1329_v45 = vadd.f32 %v4464_v11, %v1039_v42  ;;  %v2020_v62 = vpop.f32.mrf.mxu1 }
 0x183   :  { %v1041_v49 = vpop.f32.mrf.mxu0 }
 0x184   :  { %2559 = vst.msk [vmem:[%s5695_s6 + $0x78] sm:$0xf] %vm2528_vm1, %v3415_v3  ;;  %v4836_v8 = vmax.f32 %v2175_v57, 0.0  ;;  %v1487_v36 = vmax.f32 %v1329_v45, 0.0 }
 0x185   :  { %v1042_v61 = vpop.f32.mrf.mxu0 }
 0x186   :  { %v3416_v4 = vpack.c.bf16 %v4836_v8, %v4836_v8  ;;  %v1332_v38 = vadd.f32 %v4474_v15, %v1042_v61  ;;  %v2176_v11 = vadd.f32 %v2017_v63, %v1487_v36  ;;  %v3661_v15 = vpop.f32.mrf.mxu1 }
 0x187   :  { %v1044_v28 = vpop.f32.mrf.mxu0 }
 0x188   :  { %2560 = vst.msk [vmem:[%s5695_s6 + $0x7c] sm:$0xf] %vm2528_vm1, %v3416_v4  ;;  %v1488_v42 = vmax.f32 %v1332_v38, 0.0  ;;  %v4847_v3 = vmax.f32 %v2176_v11, 0.0  ;;  %v2033_v28 = vpop.f32.mrf.mxu1 }
 0x189   :  { %v1047_v57 = vpop.f32.mrf.mxu0 }
 0x18a   :  { %v3417_v45 = vpack.c.bf16 %v4847_v3, %v4847_v3  ;;  %v1337_v49 = vadd.f32 %v4462_v10, %v1047_v57  ;;  %v2177_v5 = vadd.f32 %v2020_v62, %v1488_v42 }
 0x18b   :  { %v1049_v54 = vpop.f32.mrf.mxu0 }
 0x18c   :  { %2561 = vst.msk [vmem:[%s5695_s6 + $0x80] sm:$0xf] %vm2528_vm1, %v3417_v45  ;;  %v1489_v63 = vmax.f32 %v1337_v49, 0.0  ;;  %v4856_v36 = vmax.f32 %v2177_v5, 0.0 }
 0x18d   :  { %v1050_v61 = vpop.f32.mrf.mxu0 }
 0x18e   :  { %v2178_v4 = vadd.f32 %v3657_v9, %v1489_v63  ;;  %v3418_v11 = vpack.c.bf16 %v4856_v36, %v4856_v36  ;;  %v1340_v10 = vadd.f32 %v4472_v14, %v1050_v61  ;;  %v3662_v63 = vpop.f32.mrf.mxu1 }
 0x18f   :  { %v1052_v54 = vpop.f32.mrf.mxu0 }
 0x190   :  { %v4863_v62 = vmax.f32 %v2178_v4, 0.0  ;;  %2562 = vst.msk [vmem:[%s5695_s6 + $0x84] sm:$0xf] %vm2528_vm1, %v3418_v11  ;;  %v1490_v5 = vmax.f32 %v1340_v10, 0.0 }
 0x191   :  { %v1055_v42 = vpop.f32.mrf.mxu0 }
 0x192   :  { %v3419_v9 = vpack.c.bf16 %v4863_v62, %v4863_v62  ;;  %v2179_v57 = vadd.f32 %v3658_v12, %v1490_v5  ;;  %v1345_v45 = vadd.f32 %v4478_v17, %v1055_v42  ;;  %v2036_v5 = vpop.f32.mrf.mxu1 }
 0x193   :  { %v1057_v49 = vpop.f32.mrf.mxu0 }
 0x194   :  { %2563 = vst.msk [vmem:[%s5695_s6 + $0x88] sm:$0xf] %vm2528_vm1, %v3419_v9  ;;  %v4876_v14 = vmax.f32 %v2179_v57, 0.0  ;;  %v1491_v61 = vmax.f32 %v1345_v45, 0.0 }
 0x195   :  { %v1058_v4 = vpop.f32.mrf.mxu0 }
 0x196   :  { %v3420_v10 = vpack.c.bf16 %v4876_v14, %v4876_v14  ;;  %v1348_v12 = vadd.f32 %v4488_v21, %v1058_v4  ;;  %v2180_v17 = vadd.f32 %v2033_v28, %v1491_v61  ;;  %v3665_v21 = vpop.f32.mrf.mxu1 }
 0x197   :  { %v1060_v54 = vpop.f32.mrf.mxu0 }
 0x198   :  { %2564 = vst.msk [vmem:[%s5695_s6 + $0x8c] sm:$0xf] %vm2528_vm1, %v3420_v10  ;;  %v1492_v42 = vmax.f32 %v1348_v12, 0.0  ;;  %v4887_v9 = vmax.f32 %v2180_v17, 0.0  ;;  %v2049_v54 = vpop.f32.mrf.mxu1 }
 0x199   :  { %v1063_v57 = vpop.f32.mrf.mxu0 }
 0x19a   :  { %v3421_v45 = vpack.c.bf16 %v4887_v9, %v4887_v9  ;;  %v1353_v49 = vadd.f32 %v4476_v16, %v1063_v57  ;;  %v2181_v11 = vadd.f32 %v2036_v5, %v1492_v42 }
 0x19b   :  { %v1065_v38 = vpop.f32.mrf.mxu0 }
 0x19c   :  { %2565 = vst.msk [vmem:[%s5695_s6 + $0x90] sm:$0xf] %vm2528_vm1, %v3421_v45  ;;  %v1493_v28 = vmax.f32 %v1353_v49, 0.0  ;;  %v4896_v61 = vmax.f32 %v2181_v11, 0.0 }
 0x19d   :  { %v1066_v4 = vpop.f32.mrf.mxu0 }
 0x19e   :  { %v2182_v10 = vadd.f32 %v3661_v15, %v1493_v28  ;;  %v3422_v17 = vpack.c.bf16 %v4896_v61, %v4896_v61  ;;  %v1356_v16 = vadd.f32 %v4486_v20, %v1066_v4  ;;  %v3666_v28 = vpop.f32.mrf.mxu1 }
 0x19f   :  { %v1068_v38 = vpop.f32.mrf.mxu0 }
 0x1a0   :  { %v4903_v5 = vmax.f32 %v2182_v10, 0.0  ;;  %2566 = vst.msk [vmem:[%s5695_s6 + $0x94] sm:$0xf] %vm2528_vm1, %v3422_v17  ;;  %v1494_v11 = vmax.f32 %v1356_v16, 0.0 }
 0x1a1   :  { %v1071_v42 = vpop.f32.mrf.mxu0 }
 0x1a2   :  { %v3423_v15 = vpack.c.bf16 %v4903_v5, %v4903_v5  ;;  %v2183_v57 = vadd.f32 %v3662_v63, %v1494_v11  ;;  %v1361_v45 = vadd.f32 %v4492_v23, %v1071_v42  ;;  %v2052_v11 = vpop.f32.mrf.mxu1 }
 0x1a3   :  { %v1073_v49 = vpop.f32.mrf.mxu0 }
 0x1a4   :  { %2567 = vst.msk [vmem:[%s5695_s6 + $0x98] sm:$0xf] %vm2528_vm1, %v3423_v15  ;;  %v4916_v20 = vmax.f32 %v2183_v57, 0.0  ;;  %v1495_v4 = vmax.f32 %v1361_v45, 0.0 }
 0x1a5   :  { %v1074_v10 = vpop.f32.mrf.mxu0 }
 0x1a6   :  { %v3424_v16 = vpack.c.bf16 %v4916_v20, %v4916_v20  ;;  %v1364_v63 = vadd.f32 %v4502_v27, %v1074_v10  ;;  %v2184_v23 = vadd.f32 %v2049_v54, %v1495_v4  ;;  %v3669_v27 = vpop.f32.mrf.mxu1 }
 0x1a7   :  { %v1076_v38 = vpop.f32.mrf.mxu0 }
 0x1a8   :  { %2568 = vst.msk [vmem:[%s5695_s6 + $0x9c] sm:$0xf] %vm2528_vm1, %v3424_v16  ;;  %v1496_v42 = vmax.f32 %v1364_v63, 0.0  ;;  %v4927_v15 = vmax.f32 %v2184_v23, 0.0  ;;  %v2065_v38 = vpop.f32.mrf.mxu1 }
 0x1a9   :  { %v1079_v57 = vpop.f32.mrf.mxu0 }
 0x1aa   :  { %v3425_v45 = vpack.c.bf16 %v4927_v15, %v4927_v15  ;;  %v1369_v49 = vadd.f32 %v4490_v22, %v1079_v57  ;;  %v2185_v17 = vadd.f32 %v2052_v11, %v1496_v42 }
 0x1ab   :  { %v1081_v12 = vpop.f32.mrf.mxu0 }
 0x1ac   :  { %2569 = vst.msk [vmem:[%s5695_s6 + $0xa0] sm:$0xf] %vm2528_vm1, %v3425_v45  ;;  %v1497_v54 = vmax.f32 %v1369_v49, 0.0  ;;  %v4936_v4 = vmax.f32 %v2185_v17, 0.0 }
 0x1ad   :  { %v1082_v10 = vpop.f32.mrf.mxu0 }
 0x1ae   :  { %v2186_v16 = vadd.f32 %v3665_v21, %v1497_v54  ;;  %v3426_v23 = vpack.c.bf16 %v4936_v4, %v4936_v4  ;;  %v1372_v22 = vadd.f32 %v4500_v26, %v1082_v10  ;;  %v3670_v54 = vpop.f32.mrf.mxu1 }
 0x1af   :  { %v1084_v12 = vpop.f32.mrf.mxu0 }
 0x1b0   :  { %v4943_v11 = vmax.f32 %v2186_v16, 0.0  ;;  %2570 = vst.msk [vmem:[%s5695_s6 + $0xa4] sm:$0xf] %vm2528_vm1, %v3426_v23  ;;  %v1498_v17 = vmax.f32 %v1372_v22, 0.0 }
 0x1b1   :  { %v1087_v42 = vpop.f32.mrf.mxu0 }
 0x1b2   :  { %v3427_v21 = vpack.c.bf16 %v4943_v11, %v4943_v11  ;;  %v2187_v57 = vadd.f32 %v3666_v28, %v1498_v17  ;;  %v1377_v45 = vadd.f32 %v4508_v31, %v1087_v42  ;;  %v2068_v17 = vpop.f32.mrf.mxu1 }
 0x1b3   :  { %v1089_v49 = vpop.f32.mrf.mxu0 }
 0x1b4   :  { %2571 = vst.msk [vmem:[%s5695_s6 + $0xa8] sm:$0xf] %vm2528_vm1, %v3427_v21  ;;  %v4956_v26 = vmax.f32 %v2187_v57, 0.0  ;;  %v1499_v10 = vmax.f32 %v1377_v45, 0.0 }
 0x1b5   :  { %v1090_v16 = vpop.f32.mrf.mxu0 }
 0x1b6   :  { %v3428_v22 = vpack.c.bf16 %v4956_v26, %v4956_v26  ;;  %v1380_v28 = vadd.f32 %v4520_v37, %v1090_v16  ;;  %v2188_v31 = vadd.f32 %v2065_v38, %v1499_v10  ;;  %v3673_v37 = vpop.f32.mrf.mxu1 }
 0x1b7   :  { %v1092_v12 = vpop.f32.mrf.mxu0 }
 0x1b8   :  { %2572 = vst.msk [vmem:[%s5695_s6 + $0xac] sm:$0xf] %vm2528_vm1, %v3428_v22  ;;  %v1500_v42 = vmax.f32 %v1380_v28, 0.0  ;;  %v4967_v21 = vmax.f32 %v2188_v31, 0.0  ;;  %v2081_v12 = vpop.f32.mrf.mxu1 }
 0x1b9   :  { %v1095_v57 = vpop.f32.mrf.mxu0 }
 0x1ba   :  { %v3429_v45 = vpack.c.bf16 %v4967_v21, %v4967_v21  ;;  %v1385_v49 = vadd.f32 %v4506_v29, %v1095_v57  ;;  %v2189_v23 = vadd.f32 %v2068_v17, %v1500_v42 }
 0x1bb   :  { %v1097_v63 = vpop.f32.mrf.mxu0 }
 0x1bc   :  { %2573 = vst.msk [vmem:[%s5695_s6 + $0xb0] sm:$0xf] %vm2528_vm1, %v3429_v45  ;;  %v1501_v38 = vmax.f32 %v1385_v49, 0.0  ;;  %v4976_v10 = vmax.f32 %v2189_v23, 0.0 }
 0x1bd   :  { %v1098_v16 = vpop.f32.mrf.mxu0 }
 0x1be   :  { %v2190_v22 = vadd.f32 %v3669_v27, %v1501_v38  ;;  %v3430_v31 = vpack.c.bf16 %v4976_v10, %v4976_v10  ;;  %v1388_v29 = vadd.f32 %v4518_v35, %v1098_v16  ;;  %v3674_v38 = vpop.f32.mrf.mxu1 }
 0x1bf   :  { %v1100_v63 = vpop.f32.mrf.mxu0 }
 0x1c0   :  { %v4983_v17 = vmax.f32 %v2190_v22, 0.0  ;;  %2574 = vst.msk [vmem:[%s5695_s6 + $0xb4] sm:$0xf] %vm2528_vm1, %v3430_v31  ;;  %v1502_v23 = vmax.f32 %v1388_v29, 0.0 }
 0x1c1   :  { %v1103_v42 = vpop.f32.mrf.mxu0 }
 0x1c2   :  { %v3431_v27 = vpack.c.bf16 %v4983_v17, %v4983_v17  ;;  %v2191_v57 = vadd.f32 %v3670_v54, %v1502_v23  ;;  %v1393_v45 = vadd.f32 %v4526_v41, %v1103_v42  ;;  %v2084_v23 = vpop.f32.mrf.mxu1 }
 0x1c3   :  { %v1105_v49 = vpop.f32.mrf.mxu0 }
 0x1c4   :  { %2575 = vst.msk [vmem:[%s5695_s6 + $0xb8] sm:$0xf] %vm2528_vm1, %v3431_v27  ;;  %v4996_v35 = vmax.f32 %v2191_v57, 0.0  ;;  %v1503_v16 = vmax.f32 %v1393_v45, 0.0 }
 0x1c5   :  { %v1106_v22 = vpop.f32.mrf.mxu0 }
 0x1c6   :  { %v3432_v29 = vpack.c.bf16 %v4996_v35, %v4996_v35  ;;  %v1396_v54 = vadd.f32 %v4538_v50, %v1106_v22  ;;  %v2192_v41 = vadd.f32 %v2081_v12, %v1503_v16  ;;  %v3677_v50 = vpop.f32.mrf.mxu1 }
 0x1c7   :  { %v1108_v63 = vpop.f32.mrf.mxu0 }
 0x1c8   :  { %2576 = vst.msk [vmem:[%s5695_s6 + $0xbc] sm:$0xf] %vm2528_vm1, %v3432_v29  ;;  %v1504_v42 = vmax.f32 %v1396_v54, 0.0  ;;  %v5007_v27 = vmax.f32 %v2192_v41, 0.0  ;;  %v2097_v63 = vpop.f32.mrf.mxu1 }
 0x1c9   :  { %v1111_v57 = vpop.f32.mrf.mxu0 }
 0x1ca   :  { %v3433_v45 = vpack.c.bf16 %v5007_v27, %v5007_v27  ;;  %v1401_v49 = vadd.f32 %v4524_v39, %v1111_v57  ;;  %v2193_v31 = vadd.f32 %v2084_v23, %v1504_v42 }
 0x1cb   :  { %v1113_v28 = vpop.f32.mrf.mxu0 }
 0x1cc   :  { %2577 = vst.msk [vmem:[%s5695_s6 + $0xc0] sm:$0xf] %vm2528_vm1, %v3433_v45  ;;  %v1505_v12 = vmax.f32 %v1401_v49, 0.0  ;;  %v5016_v16 = vmax.f32 %v2193_v31, 0.0 }
 0x1cd   :  { %v1114_v22 = vpop.f32.mrf.mxu0 }
 0x1ce   :  { %v2194_v29 = vadd.f32 %v3673_v37, %v1505_v12  ;;  %v3434_v41 = vpack.c.bf16 %v5016_v16, %v5016_v16  ;;  %v1404_v39 = vadd.f32 %v4536_v47, %v1114_v22  ;;  %v3678_v12 = vpop.f32.mrf.mxu1 }
 0x1cf   :  { %v1116_v28 = vpop.f32.mrf.mxu0 }
 0x1d0   :  { %v5023_v23 = vmax.f32 %v2194_v29, 0.0  ;;  %2578 = vst.msk [vmem:[%s5695_s6 + $0xc4] sm:$0xf] %vm2528_vm1, %v3434_v41  ;;  %v1506_v31 = vmax.f32 %v1404_v39, 0.0 }
 0x1d1   :  { %v1119_v42 = vpop.f32.mrf.mxu0 }
 0x1d2   :  { %v3435_v37 = vpack.c.bf16 %v5023_v23, %v5023_v23  ;;  %v2195_v57 = vadd.f32 %v3674_v38, %v1506_v31  ;;  %v1409_v45 = vadd.f32 %v4544_v58, %v1119_v42  ;;  %v2100_v31 = vpop.f32.mrf.mxu1 }
 0x1d3   :  { %v1121_v49 = vpop.f32.mrf.mxu0 }
 0x1d4   :  { %2579 = vst.msk [vmem:[%s5695_s6 + $0xc8] sm:$0xf] %vm2528_vm1, %v3435_v37  ;;  %v5036_v47 = vmax.f32 %v2195_v57, 0.0  ;;  %v1507_v22 = vmax.f32 %v1409_v45, 0.0 }
 0x1d5   :  { %v1122_v29 = vpop.f32.mrf.mxu0 }
 0x1d6   :  { %v3436_v39 = vpack.c.bf16 %v5036_v47, %v5036_v47  ;;  %v1412_v38 = vadd.f32 %v4556_v7, %v1122_v29  ;;  %v2196_v58 = vadd.f32 %v2097_v63, %v1507_v22  ;;  %v3681_v7 = vpop.f32.mrf.mxu1 }
 0x1d7   :  { %v1124_v28 = vpop.f32.mrf.mxu0 }
 0x1d8   :  { %2580 = vst.msk [vmem:[%s5695_s6 + $0xcc] sm:$0xf] %vm2528_vm1, %v3436_v39  ;;  %v1508_v42 = vmax.f32 %v1412_v38, 0.0  ;;  %v5047_v37 = vmax.f32 %v2196_v58, 0.0  ;;  %v2113_v28 = vpop.f32.mrf.mxu1 }
 0x1d9   :  { %v1127_v57 = vpop.f32.mrf.mxu0 }
 0x1da   :  { %v3437_v45 = vpack.c.bf16 %v5047_v37, %v5047_v37  ;;  %v1417_v49 = vadd.f32 %v4542_v55, %v1127_v57  ;;  %v2197_v41 = vadd.f32 %v2100_v31, %v1508_v42 }
 0x1db   :  { %v1129_v54 = vpop.f32.mrf.mxu0 }
 0x1dc   :  { %2581 = vst.msk [vmem:[%s5695_s6 + $0xd0] sm:$0xf] %vm2528_vm1, %v3437_v45  ;;  %v1509_v63 = vmax.f32 %v1417_v49, 0.0  ;;  %v5056_v22 = vmax.f32 %v2197_v41, 0.0 }
 0x1dd   :  { %v1130_v29 = vpop.f32.mrf.mxu0 }
 0x1de   :  { %v2198_v39 = vadd.f32 %v3677_v50, %v1509_v63  ;;  %v3438_v58 = vpack.c.bf16 %v5056_v22, %v5056_v22  ;;  %v1420_v55 = vadd.f32 %v4554_v2, %v1130_v29  ;;  %v3682_v63 = vpop.f32.mrf.mxu1 }
 0x1df   :  { %v1132_v54 = vpop.f32.mrf.mxu0 }
 0x1e0   :  { %v5063_v31 = vmax.f32 %v2198_v39, 0.0  ;;  %2582 = vst.msk [vmem:[%s5695_s6 + $0xd4] sm:$0xf] %vm2528_vm1, %v3438_v58  ;;  %v1510_v41 = vmax.f32 %v1420_v55, 0.0 }
 0x1e1   :  { %v1135_v42 = vpop.f32.mrf.mxu0 }
 0x1e2   :  { %v3439_v50 = vpack.c.bf16 %v5063_v31, %v5063_v31  ;;  %v2199_v57 = vadd.f32 %v3678_v12, %v1510_v41  ;;  %v1425_v45 = vadd.f32 %v4565_v24, %v1135_v42  ;;  %v2116_v41 = vpop.f32.mrf.mxu1 }
 0x1e3   :  { %v1137_v49 = vpop.f32.mrf.mxu0 }
 0x1e4   :  { %2583 = vst.msk [vmem:[%s5695_s6 + $0xd8] sm:$0xf] %vm2528_vm1, %v3439_v50  ;;  %v5076_v2 = vmax.f32 %v2199_v57, 0.0  ;;  %v1511_v29 = vmax.f32 %v1425_v45, 0.0 }
 0x1e5   :  { %v1138_v39 = vpop.f32.mrf.mxu0 }
 0x1e6   :  { %v3440_v55 = vpack.c.bf16 %v5076_v2, %v5076_v2  ;;  %v1428_v12 = vadd.f32 %v4577_v40, %v1138_v39  ;;  %v2200_v24 = vadd.f32 %v2113_v28, %v1511_v29  ;;  %v3685_v40 = vpop.f32.mrf.mxu1 }
 0x1e7   :  { %v1140_v54 = vpop.f32.mrf.mxu0 }
 0x1e8   :  { %2584 = vst.msk [vmem:[%s5695_s6 + $0xdc] sm:$0xf] %vm2528_vm1, %v3440_v55  ;;  %v1512_v42 = vmax.f32 %v1428_v12, 0.0  ;;  %v5087_v50 = vmax.f32 %v2200_v24, 0.0  ;;  %v2129_v54 = vpop.f32.mrf.mxu1 }
 0x1e9   :  { %v1143_v57 = vpop.f32.mrf.mxu0 }
 0x1ea   :  { %5738 = vst [vmem:[#allocation35_spill] sm:$0xff] %v5087_v50  ;;  %v3441_v45 = vpack.c.bf16 %v5087_v50, %v5087_v50  ;;  %v1433_v49 = vadd.f32 %v4563_v18, %v1143_v57  ;;  %v2201_v58 = vadd.f32 %v2116_v41, %v1512_v42 }
 0x1eb   :  { %v1145_v38 = vpop.f32.mrf.mxu0 }
 0x1ec   :  { %2585 = vst.msk [vmem:[%s5695_s6 + $0xe0] sm:$0xf] %vm2528_vm1, %v3441_v45  ;;  %v1513_v28 = vmax.f32 %v1433_v49, 0.0  ;;  %v5096_v29 = vmax.f32 %v2201_v58, 0.0 }
 0x1ed   :  { %v1146_v39 = vpop.f32.mrf.mxu0 }
 0x1ee   :  { %5739 = vst [vmem:[#allocation36_spill] sm:$0xff] %v5096_v29  ;;  %v2202_v55 = vadd.f32 %v3681_v7, %v1513_v28  ;;  %v3442_v24 = vpack.c.bf16 %v5096_v29, %v5096_v29  ;;  %v1436_v18 = vadd.f32 %v4575_v34, %v1146_v39  ;;  %v3686_v28 = vpop.f32.mrf.mxu1 }
 0x1ef   :  { %v1148_v38 = vpop.f32.mrf.mxu0 }
 0x1f0   :  { %v5103_v41 = vmax.f32 %v2202_v55, 0.0  ;;  %2586 = vst.msk [vmem:[%s5695_s6 + $0xe4] sm:$0xf] %vm2528_vm1, %v3442_v24  ;;  %v1514_v58 = vmax.f32 %v1436_v18, 0.0 }
 0x1f1   :  { %v1151_v42 = vpop.f32.mrf.mxu0 }
 0x1f2   :  { %5740 = vst [vmem:[#allocation37_spill] sm:$0xff] %v5103_v41  ;;  %v3443_v7 = vpack.c.bf16 %v5103_v41, %v5103_v41  ;;  %v2203_v57 = vadd.f32 %v3682_v63, %v1514_v58  ;;  %v1441_v45 = vadd.f32 %v4583_v56, %v1151_v42  ;;  %v2132_v58 = vpop.f32.mrf.mxu1 }
 0x1f3   :  { %v1153_v49 = vpop.f32.mrf.mxu0 }
 0x1f4   :  { %2587 = vst.msk [vmem:[%s5695_s6 + $0xe8] sm:$0xf] %vm2528_vm1, %v3443_v7  ;;  %v5116_v34 = vmax.f32 %v2203_v57, 0.0  ;;  %v1515_v39 = vmax.f32 %v1441_v45, 0.0 }
 0x1f5   :  { %v1154_v55 = vpop.f32.mrf.mxu0 }
 0x1f6   :  { %5741 = vst [vmem:[#allocation38_spill] sm:$0xff] %v5116_v34  ;;  %v3444_v18 = vpack.c.bf16 %v5116_v34, %v5116_v34  ;;  %v1444_v63 = vadd.f32 %v4595_v30, %v1154_v55  ;;  %v2204_v56 = vadd.f32 %v2129_v54, %v1515_v39 }
 0x1f7   :  { %v1156_v38 = vpop.f32.mrf.mxu0 }
 0x1f8   :  { %2588 = vst.msk [vmem:[%s5695_s6 + $0xec] sm:$0xf] %vm2528_vm1, %v3444_v18  ;;  %v1516_v42 = vmax.f32 %v1444_v63, 0.0  ;;  %v5127_v7 = vmax.f32 %v2204_v56, 0.0 }
 0x1f9   :  { %v1159_v57 = vpop.f32.mrf.mxu0 }
 0x1fa   :  { %5742 = vst [vmem:[#allocation39_spill] sm:$0xff] %v5127_v7  ;;  %v3445_v45 = vpack.c.bf16 %v5127_v7, %v5127_v7  ;;  %v1449_v49 = vadd.f32 %v4581_v44, %v1159_v57  ;;  %v2205_v24 = vadd.f32 %v2132_v58, %v1516_v42  ;;  %v5745_v42 = vld [vmem:[#allocation5_spill] sm:$0xff] }
 0x1fb   :  { %v1161_v12 = vpop.f32.mrf.mxu0 }
 0x1fc   :  { %2589 = vst.msk [vmem:[%s5695_s6 + $0xf0] sm:$0xf] %vm2528_vm1, %v3445_v45  ;;  %v1517_v30 = vmax.f32 %v1449_v49, 0.0  ;;  %v5136_v54 = vmax.f32 %v2205_v24, 0.0 }
 0x1fd   :  { %v1162_v39 = vpop.f32.mrf.mxu0 }
 0x1fe   :  { %5743 = vst [vmem:[#allocation40_spill] sm:$0xff] %v5136_v54  ;;  %v2206_v55 = vadd.f32 %v3685_v40, %v1517_v30  ;;  %v3446_v63 = vpack.c.bf16 %v5136_v54, %v5136_v54  ;;  %v1452_v44 = vadd.f32 %v4593_v13, %v1162_v39  ;;  %v5747_v30 = vld [vmem:[#allocation3_spill] sm:$0xff] }
 0x1ff   :  { %v1164_v56 = vpop.f32.mrf.mxu0 }
 0x200   :  { %v5143_v12 = vmax.f32 %v2206_v55, 0.0  ;;  %2590 = vst.msk [vmem:[%s5695_s6 + $0xf4] sm:$0xf] %vm2528_vm1, %v3446_v63  ;;  %v1518_v24 = vmax.f32 %v1452_v44, 0.0  ;;  %v5748_v44 = vld [vmem:[#allocation14_spill] sm:$0xff] }
 0x201   :  { %v3557_v38 = vpop.f32.mrf.mxu0 }
 0x202   :  { %5744 = vst [vmem:[#allocation41_spill] sm:$0xff] %v5143_v12  ;;  %v3447_v40 = vpack.c.bf16 %v5143_v12, %v5143_v12  ;;  %v2207_v58 = vadd.f32 %v3686_v28, %v1518_v24  ;;  %v1209_v57 = vadd.f32 %v3557_v38, %v5745_v42  ;;  %v5749_v38 = vld [vmem:[#allocation6_spill] sm:$0xff] }
 0x203   :  { %v1200_v45 = vpop.f32.mrf.mxu0 }
 0x204   :  { %2591 = vst.msk [vmem:[%s5695_s6 + $0xf8] sm:$0xf] %vm2528_vm1, %v3447_v40  ;;  %v5156_v13 = vmax.f32 %v2207_v58, 0.0  ;;  %v1457_v49 = vmax.f32 %v1209_v57, 0.0  ;;  %v1201_v39 = vadd.f32 %v1200_v45, %v5747_v30  ;;  %v5750_v58 = vld [vmem:[#allocation15_spill] sm:$0xff]  ;;  %v5751_v45 = vld [vmem:[#allocation4_spill] sm:$0xff] }
 0x205   :  { %v3558_v55 = vpop.f32.mrf.mxu0 }
 0x206   :  { %5746 = vst [vmem:[#allocation5_spill] sm:$0xff] %v5156_v13  ;;  %v3448_v28 = vpack.c.bf16 %v5156_v13, %v5156_v13  ;;  %v2146_v56 = vadd.f32 %v5748_v44, %v1457_v49  ;;  %v1455_v24 = vmax.f32 %v1201_v39, 0.0  ;;  %v1212_v42 = vadd.f32 %v3558_v55, %v5749_v38  ;;  %v5752_v49 = vld [vmem:[#allocation9_spill] sm:$0xff] }
 0x207   :  { %v1203_v18 = vpop.f32.mrf.mxu0  ;;  %v5753_v44 = vld [vmem:[#allocation17_spill] sm:$0xff] }
 0x208   :  { %2592 = vst.msk [vmem:[%s5695_s6 + $0xfc] sm:$0xf] %vm2528_vm1, %v3448_v28  ;;  %v2210_v40 = vmax.f32 %v2146_v56, 0.0  ;;  %v2144_v57 = vadd.f32 %v5750_v58, %v1455_v24  ;;  %v1204_v30 = vadd.f32 %v1203_v18, %v5751_v45  ;;  %v1458_v63 = vmax.f32 %v1212_v42, 0.0  ;;  %v5754_v56 = vld [vmem:[#allocation18_spill] sm:$0xff]  ;;  %v5755_v18 = vld [vmem:[#allocation7_spill] sm:$0xff] }
 0x209   :  { %v3561_v12 = vpop.f32.mrf.mxu0 }
 0x20a   :  { %v3387_v7 = vpack.c.bf16 %v2210_v40, %v2210_v40  ;;  %v2208_v13 = vmax.f32 %v2144_v57, 0.0  ;;  %v1456_v54 = vmax.f32 %v1204_v30, 0.0  ;;  %v1225_v39 = vadd.f32 %v3561_v12, %v5752_v49  ;;  %v5756_v57 = vld [vmem:[#allocation20_spill] sm:$0xff]  ;;  %v5757_v49 = vld [vmem:[#allocation10_spill] sm:$0xff] }
 0x20b   :  { %v2147_v55 = vadd.f32 %v5753_v44, %v1458_v63  ;;  %v1216_v38 = vpop.f32.mrf.mxu0  ;;  %v13_v12 = vstv %s5696_s5 }
 0x20c   :  { %2531 = vst.msk [vmem:[%s5695_s6 + $0x8] sm:$0xf] %vm2528_vm1, %v3387_v7  ;;  %v3385_v28 = vpack.c.bf16 %v2208_v13, %v2208_v13  ;;  %v2145_v24 = vadd.f32 %v5754_v56, %v1456_v54  ;;  %v1461_v58 = vmax.f32 %v1225_v39, 0.0  ;;  %v1217_v42 = vadd.f32 %v1216_v38, %v5755_v18  ;;  %14 = vst [vmem:[#allocation2] sm:$0x1] %v13_v12  ;;  %v5758_v18 = vld [vmem:[#allocation21_spill] sm:$0xff] }
 0x20d   :  { %v2211_v45 = vmax.f32 %v2147_v55, 0.0  ;;  %v3562_v41 = vpop.f32.mrf.mxu0  ;;  %v5760_v12 = vld [vmem:[#allocation13_spill] sm:$0xff] }
 0x20e   :  { %2529 = vst.msk [vmem:[%s5695_s6] sm:$0xf] %vm2528_vm1, %v3385_v28  ;;  %v2209_v63 = vmax.f32 %v2145_v24, 0.0  ;;  %v2150_v7 = vadd.f32 %v5756_v57, %v1461_v58  ;;  %v1459_v30 = vmax.f32 %v1217_v42, 0.0  ;;  %v1228_v54 = vadd.f32 %v3562_v41, %v5757_v49  ;;  %v5759_v24 = vld [vmem:[#allocation8_spill] sm:$0xff] }
 0x20f   :  { %v3388_v39 = vpack.c.bf16 %v2211_v45, %v2211_v45  ;;  %v1219_v44 = vpop.f32.mrf.mxu0  ;;  %v2273_v50 = vpack.c.bf16 %v2211_v45, %v2210_v40  ;;  %v5761_v40 = vld [vmem:[#allocation23_spill] sm:$0xff] }
 0x210   :  { %v2272_v55 = vpack.c.bf16 %v2209_v63, %v2208_v13  ;;  %v3386_v38 = vpack.c.bf16 %v2209_v63, %v2209_v63  ;;  %v2214_v56 = vmax.f32 %v2150_v7, 0.0  ;;  %v2148_v34 = vadd.f32 %v5758_v18, %v1459_v30 }
 0x211   :  { %2532 = vst.msk [vmem:[%s5695_s6 + $0xc] sm:$0xf] %vm2528_vm1, %v3388_v39  ;;  %v1462_v28 = vmax.f32 %v1228_v54, 0.0  ;;  %v1220_v58 = vadd.f32 %v1219_v44, %v5759_v24  ;;  %v3565_v42 = vpop.f32.mrf.mxu0  ;;  %v5762_v54 = vld [vmem:[#allocation11_spill] sm:$0xff]  ;;  %v5763_v44 = vld [vmem:[#allocation24_spill] sm:$0xff] }
 0x212   :  { %2530 = vst.msk [vmem:[%s5695_s6 + $0x4] sm:$0xf] %vm2528_vm1, %v3386_v38  ;;  %v3391_v41 = vpack.c.bf16 %v2214_v56, %v2214_v56  ;;  %v2212_v13 = vmax.f32 %v2148_v34, 0.0  ;;  %v1241_v63 = vadd.f32 %v3565_v42, %v5760_v12  ;;  %3691 = vmatprep.mubr.msk.bf16.mxu1 %vm780_vm0, %v2272_v55  ;;  %v5764_v55 = vld [vmem:[#allocation26_spill] sm:$0xff]  ;;  %v5765_v24 = vld [vmem:[#allocation16_spill] sm:$0xff] }
 0x213   :  { %v2151_v45 = vadd.f32 %v5761_v40, %v1462_v28  ;;  %v1460_v57 = vmax.f32 %v1220_v58, 0.0  ;;  %v1232_v7 = vpop.f32.mrf.mxu0  ;;  %3692 = vmatmul.mubr.msk.bf16.vlgmr.msra.gmra.mxu1 %vm780_vm0, %v2273_v50  ;;  %v5766_v40 = vld [vmem:[#allocation27_spill] sm:$0xff] }
 0x214   :  { %2535 = vst.msk [vmem:[%s5695_s6 + $0x18] sm:$0xf] %vm2528_vm1, %v3391_v41  ;;  %v3389_v30 = vpack.c.bf16 %v2212_v13, %v2212_v13  ;;  %v1465_v49 = vmax.f32 %v1241_v63, 0.0  ;;  %v1233_v39 = vadd.f32 %v1232_v7, %v5762_v54  ;;  %v5767_v54 = vld [vmem:[#allocation12_spill] sm:$0xff] }
 0x215   :  { %v2215_v34 = vmax.f32 %v2151_v45, 0.0  ;;  %v2149_v38 = vadd.f32 %v5763_v44, %v1460_v57  ;;  %v3566_v18 = vpop.f32.mrf.mxu0 }
 0x216   :  { %2533 = vst.msk [vmem:[%s5695_s6 + $0x10] sm:$0xf] %vm2528_vm1, %v3389_v30  ;;  %v2154_v50 = vadd.f32 %v5764_v55, %v1465_v49  ;;  %v1463_v28 = vmax.f32 %v1233_v39, 0.0  ;;  %v1244_v58 = vadd.f32 %v3566_v18, %v5765_v24  ;;  %v5768_v24 = vld [vmem:[#allocation29_spill] sm:$0xff] }
 0x217   :  { %v3392_v42 = vpack.c.bf16 %v2215_v34, %v2215_v34  ;;  %v2213_v41 = vmax.f32 %v2149_v38, 0.0  ;;  %v1235_v12 = vpop.f32.mrf.mxu0  ;;  %v2275_v44 = vpack.c.bf16 %v2215_v34, %v2214_v56 }
 0x218   :  { %v2218_v63 = vmax.f32 %v2154_v50, 0.0  ;;  %v2152_v7 = vadd.f32 %v5766_v40, %v1463_v28  ;;  %v1466_v45 = vmax.f32 %v1244_v58, 0.0  ;;  %v1236_v57 = vadd.f32 %v1235_v12, %v5767_v54  ;;  %v5769_v50 = vld [vmem:[#allocation25_spill] sm:$0xff]  ;;  %v5770_v58 = vld [vmem:[#allocation30_spill] sm:$0xff] }
 0x219   :  { %2536 = vst.msk [vmem:[%s5695_s6 + $0x1c] sm:$0xf] %vm2528_vm1, %v3392_v42  ;;  %v2274_v30 = vpack.c.bf16 %v2213_v41, %v2212_v13  ;;  %v3390_v49 = vpack.c.bf16 %v2213_v41, %v2213_v41  ;;  %v3569_v39 = vpop.f32.mrf.mxu0  ;;  %v5771_v41 = vld [vmem:[#allocation19_spill] sm:$0xff] }
 0x21a   :  { %v3395_v55 = vpack.c.bf16 %v2218_v63, %v2218_v63  ;;  %v2216_v18 = vmax.f32 %v2152_v7, 0.0  ;;  %v2155_v38 = vadd.f32 %v5768_v24, %v1466_v45  ;;  %v1464_v29 = vmax.f32 %v1236_v57, 0.0 }
 0x21b   :  { %2534 = vst.msk [vmem:[%s5695_s6 + $0x14] sm:$0xf] %vm2528_vm1, %v3390_v49  ;;  %v1257_v56 = vadd.f32 %v3569_v39, %v5769_v50  ;;  %3695 = vmatprep.mubr.msk.bf16.mxu1 %vm780_vm0, %v2274_v30  ;;  %v1248_v34 = vpop.f32.mrf.mxu0  ;;  %v5772_v30 = vld [vmem:[#allocation31_spill] sm:$0xff]  ;;  %v5773_v39 = vld [vmem:[#allocation28_spill] sm:$0xff] }
 0x21c   :  { %2539 = vst.msk [vmem:[%s5695_s6 + $0x28] sm:$0xf] %vm2528_vm1, %v3395_v55  ;;  %v3393_v13 = vpack.c.bf16 %v2216_v18, %v2216_v18  ;;  %v2219_v28 = vmax.f32 %v2155_v38, 0.0  ;;  %v2153_v42 = vadd.f32 %v5770_v58, %v1464_v29  ;;  %v1249_v12 = vadd.f32 %v1248_v34, %v5771_v41  ;;  %3696 = vmatmul.mubr.msk.bf16.gmra.mxu1 %vm780_vm0, %v2275_v44  ;;  %v5774_v38 = vld [vmem:[#allocation32_spill] sm:$0xff] }
 0x21d   :  { %v1469_v40 = vmax.f32 %v1257_v56, 0.0  ;;  %v3570_v7 = vpop.f32.mrf.mxu0  ;;  %v5775_v56 = vld [vmem:[#allocation22_spill] sm:$0xff] }
 0x21e   :  { %2537 = vst.msk [vmem:[%s5695_s6 + $0x20] sm:$0xf] %vm2528_vm1, %v3393_v13  ;;  %v3396_v45 = vpack.c.bf16 %v2219_v28, %v2219_v28  ;;  %v2217_v54 = vmax.f32 %v2153_v42, 0.0  ;;  %v1467_v57 = vmax.f32 %v1249_v12, 0.0  ;;  %v1260_v55 = vadd.f32 %v3570_v7, %v5773_v39  ;;  %v5776_v7 = vld [vmem:[#allocation33_spill] sm:$0xff] }
 0x21f   :  { %v2158_v49 = vadd.f32 %v5772_v30, %v1469_v40  ;;  %v1251_v24 = vpop.f32.mrf.mxu0  ;;  %v2277_v42 = vpack.c.bf16 %v2219_v28, %v2218_v63 }
 0x220   :  { %2540 = vst.msk [vmem:[%s5695_s6 + $0x2c] sm:$0xf] %vm2528_vm1, %v3396_v45  ;;  %v2276_v29 = vpack.c.bf16 %v2217_v54, %v2216_v18  ;;  %v3394_v44 = vpack.c.bf16 %v2217_v54, %v2217_v54  ;;  %v2156_v50 = vadd.f32 %v5774_v38, %v1467_v57  ;;  %v1252_v34 = vadd.f32 %v1251_v24, %v5775_v56  ;;  %v5777_v54 = vld [vmem:[#allocation34_spill] sm:$0xff] }
 0x221   :  { %v2222_v13 = vmax.f32 %v2158_v49, 0.0  ;;  %v1470_v58 = vmax.f32 %v1260_v55, 0.0  ;;  %v5778_v24 = vpack.c.bf16 %v4701_v59, %v4682_v52  ;;  %v5781_v38 = vpack.c.bf16 %v4756_v48, %v4743_v33 }
 0x222   :  { %2538 = vst.msk [vmem:[%s5695_s6 + $0x24] sm:$0xf] %vm2528_vm1, %v3394_v44  ;;  %v2220_v41 = vmax.f32 %v2156_v50, 0.0  ;;  %v1468_v12 = vmax.f32 %v1252_v34, 0.0  ;;  %3699 = vmatprep.mubr.msk.bf16.mxu1 %vm780_vm0, %v2276_v29  ;;  %v5779_v29 = vpack.c.bf16 %v4699_v46, %v4680_v25  ;;  %v5780_v44 = vpack.c.bf16 %v4736_v43, %v4726_v51 }
 0x223   :  { %v3399_v40 = vpack.c.bf16 %v2222_v13, %v2222_v13  ;;  %v2159_v18 = vadd.f32 %v5776_v7, %v1470_v58  ;;  %v5782_v52 = vpack.c.bf16 %v4776_v53, %v4767_v19  ;;  %v5783_v25 = vpack.c.bf16 %v4796_v1, %v4783_v0 }
 0x224   :  { %v3397_v45 = vpack.c.bf16 %v2220_v41, %v2220_v41  ;;  %v2157_v57 = vadd.f32 %v5777_v54, %v1468_v12  ;;  %3700 = vmatmul.mubr.msk.bf16.gmra.mxu1 %vm780_vm0, %v2277_v42  ;;  %v5784_v46 = vpack.c.bf16 %v4816_v60, %v4807_v32  ;;  %v5785_v59 = vpack.c.bf16 %v4836_v8, %v4823_v6 }
 0x225   :  { %2543 = vst.msk [vmem:[%s5695_s6 + $0x38] sm:$0xf] %vm2528_vm1, %v3399_v40  ;;  %v2223_v63 = vmax.f32 %v2159_v18, 0.0  ;;  %v5786_v51 = vpack.c.bf16 %v4856_v36, %v4847_v3  ;;  %v5787_v43 = vpack.c.bf16 %v4876_v14, %v4863_v62  ;;  %v5788_v33 = vpack.c.bf16 %v4896_v61, %v4887_v9  ;;  %v5798_v3 = vld [vmem:[#allocation36_spill] sm:$0xff]  ;;  %v5799_v36 = vld [vmem:[#allocation35_spill] sm:$0xff]  ;;  %v5801_v14 = vld [vmem:[#allocation38_spill] sm:$0xff] }
 0x226   :  { %2541 = vst.msk [vmem:[%s5695_s6 + $0x30] sm:$0xf] %vm2528_vm1, %v3397_v45  ;;  %v2221_v28 = vmax.f32 %v2157_v57, 0.0  ;;  %v5789_v48 = vpack.c.bf16 %v4916_v20, %v4903_v5  ;;  %v5790_v19 = vpack.c.bf16 %v4936_v4, %v4927_v15  ;;  %v5791_v53 = vpack.c.bf16 %v4956_v26, %v4943_v11  ;;  %v5802_v9 = vld [vmem:[#allocation37_spill] sm:$0xff]  ;;  %v5804_v5 = vld [vmem:[#allocation40_spill] sm:$0xff]  ;;  %v5805_v20 = vld [vmem:[#allocation39_spill] sm:$0xff] }
 0x227   :  { %v3400_v30 = vpack.c.bf16 %v2223_v63, %v2223_v63  ;;  %v2279_v55 = vpack.c.bf16 %v2223_v63, %v2222_v13  ;;  %v5792_v0 = vpack.c.bf16 %v4976_v10, %v4967_v21  ;;  %v5793_v1 = vpack.c.bf16 %v4996_v35, %v4983_v17  ;;  %v5807_v4 = vld [vmem:[#allocation5_spill] sm:$0xff]  ;;  %v5368_v21 = vld [vmem:[#allocation2] ss:$0 sm:$0xff] }
 0x228   :  { %v2278_v49 = vpack.c.bf16 %v2221_v28, %v2220_v41  ;;  %v3398_v39 = vpack.c.bf16 %v2221_v28, %v2221_v28  ;;  %v5794_v32 = vpack.c.bf16 %v5016_v16, %v5007_v27  ;;  %v5795_v60 = vpack.c.bf16 %v5036_v47, %v5023_v23  ;;  %v5808_v11 = vld [vmem:[#allocation41_spill] sm:$0xff] }
 0x229   :  { %2544 = vst.msk [vmem:[%s5695_s6 + $0x3c] sm:$0xf] %vm2528_vm1, %v3400_v30  ;;  %v5796_v6 = vpack.c.bf16 %v5056_v22, %v5047_v37  ;;  %v5797_v8 = vpack.c.bf16 %v5076_v2, %v5063_v31  ;;  %v5800_v62 = vpack.c.bf16 %v5798_v3, %v5799_v36  ;;  %v5803_v61 = vpack.c.bf16 %v5801_v14, %v5802_v9 }
 0x22a   :  { %2542 = vst.msk [vmem:[%s5695_s6 + $0x34] sm:$0xf] %vm2528_vm1, %v3398_v39  ;;  %3703 = vmatprep.mubr.msk.bf16.mxu1 %vm780_vm0, %v2278_v49  ;;  %v5806_v15 = vpack.c.bf16 %v5804_v5, %v5805_v20  ;;  %v5809_v26 = vpack.c.bf16 %v5807_v4, %v5808_v11 }
 0x22c   :  { %3704 = vmatmul.mubr.msk.bf16.gmra.mxu1 %vm780_vm0, %v2279_v55 }
 0x22d   :  { %3707 = vmatprep.mubr.msk.bf16.mxu1 %vm780_vm0, %v5778_v24 }
 0x234   :  { %3708 = vmatmul.mubr.msk.bf16.gmra.mxu1 %vm780_vm0, %v5779_v29 }
 0x235   :  { %3711 = vmatprep.mubr.msk.bf16.mxu1 %vm780_vm0, %v5780_v44 }
 0x23c   :  { %3712 = vmatmul.mubr.msk.bf16.gmra.mxu1 %vm780_vm0, %v5781_v38 }
 0x23d   :  { %3715 = vmatprep.mubr.msk.bf16.mxu1 %vm780_vm0, %v5782_v52 }
 0x244   :  { %3716 = vmatmul.mubr.msk.bf16.gmra.mxu1 %vm780_vm0, %v5783_v25 }
 0x245   :  { %3719 = vmatprep.mubr.msk.bf16.mxu1 %vm780_vm0, %v5784_v46 }
 0x24c   :  { %3720 = vmatmul.mubr.msk.bf16.gmra.mxu1 %vm780_vm0, %v5785_v59 }
 0x24d   :  { %3723 = vmatprep.mubr.msk.bf16.mxu1 %vm780_vm0, %v5786_v51 }
 0x254   :  { %3724 = vmatmul.mubr.msk.bf16.gmra.mxu1 %vm780_vm0, %v5787_v43 }
 0x255   :  { %3727 = vmatprep.mubr.msk.bf16.mxu1 %vm780_vm0, %v5788_v33 }
 0x25c   :  { %3728 = vmatmul.mubr.msk.bf16.gmra.mxu1 %vm780_vm0, %v5789_v48 }
 0x25d   :  { %3731 = vmatprep.mubr.msk.bf16.mxu1 %vm780_vm0, %v5790_v19 }
 0x264   :  { %3732 = vmatmul.mubr.msk.bf16.gmra.mxu1 %vm780_vm0, %v5791_v53 }
 0x265   :  { %3735 = vmatprep.mubr.msk.bf16.mxu1 %vm780_vm0, %v5792_v0 }
 0x26c   :  { %3736 = vmatmul.mubr.msk.bf16.gmra.mxu1 %vm780_vm0, %v5793_v1 }
 0x26d   :  { %3739 = vmatprep.mubr.msk.bf16.mxu1 %vm780_vm0, %v5794_v32 }
 0x274   :  { %3740 = vmatmul.mubr.msk.bf16.gmra.mxu1 %vm780_vm0, %v5795_v60 }
 0x275   :  { %3743 = vmatprep.mubr.msk.bf16.mxu1 %vm780_vm0, %v5796_v6 }
 0x27c   :  { %3744 = vmatmul.mubr.msk.bf16.gmra.mxu1 %vm780_vm0, %v5797_v8 }
 0x27d   :  { %3747 = vmatprep.mubr.msk.bf16.mxu1 %vm780_vm0, %v5800_v62 }
 0x284   :  { %3748 = vmatmul.mubr.msk.bf16.gmra.mxu1 %vm780_vm0, %v5803_v61 }
 0x285   :  { %3751 = vmatprep.mubr.msk.bf16.mxu1 %vm780_vm0, %v5806_v15 }
 0x28c   :  { %3752 = vmatmul.mubr.msk.bf16.gmra.mxu1 %vm780_vm0, %v5809_v26 }
 0x2d3   :  { %v3693_v10 = vpop.f32.mrf.mxu1 }
 0x2d4   :  { %v2755_v17 = vadd.f32 %v3693_v10, %v5368_v21 }
 0x2d5   :  { %v2746_v35 = vpop.f32.mrf.mxu1 }
 0x2d6   :  { %3004 = vst.msk [vmem:[%s5697_s7 + $0x10] sm:$0xff] %vm3001_vm2, %v2755_v17  ;;  %v2747_v27 = vadd.f32 %v5368_v21, %v2746_v35 }
 0x2d7   :  { %v3694_v16 = vpop.f32.mrf.mxu1 }
 0x2d8   :  { %3002 = vst.msk [vmem:[%s5697_s7] sm:$0xff] %vm3001_vm2, %v2747_v27  ;;  %v2758_v23 = vadd.f32 %v3694_v16, %v5368_v21 }
 0x2d9   :  { %v2749_v47 = vpop.f32.mrf.mxu1 }
 0x2da   :  { %3005 = vst.msk [vmem:[%s5697_s7 + $0x18] sm:$0xff] %vm3001_vm2, %v2758_v23  ;;  %v2750_v37 = vadd.f32 %v5368_v21, %v2749_v47 }
 0x2dc   :  { %3003 = vst.msk [vmem:[%s5697_s7 + $0x8] sm:$0xff] %vm3001_vm2, %v2750_v37  ;;  %v3697_v22 = vpop.f32.mrf.mxu1 }
 0x2dd   :  { %v2771_v31 = vadd.f32 %v3697_v22, %v5368_v21 }
 0x2de   :  { %v2762_v2 = vpop.f32.mrf.mxu1 }
 0x2df   :  { %3008 = vst.msk [vmem:[%s5697_s7 + $0x30] sm:$0xff] %vm3001_vm2, %v2771_v31  ;;  %v2763_v50 = vadd.f32 %v5368_v21, %v2762_v2 }
 0x2e0   :  { %v3698_v56 = vpop.f32.mrf.mxu1 }
 0x2e1   :  { %3006 = vst.msk [vmem:[%s5697_s7 + $0x20] sm:$0xff] %vm3001_vm2, %v2763_v50  ;;  %v2774_v34 = vadd.f32 %v3698_v56, %v5368_v21 }
 0x2e2   :  { %v2765_v13 = vpop.f32.mrf.mxu1 }
 0x2e3   :  { %3009 = vst.msk [vmem:[%s5697_s7 + $0x38] sm:$0xff] %vm3001_vm2, %v2774_v34  ;;  %v2766_v58 = vadd.f32 %v5368_v21, %v2765_v13 }
 0x2e4   :  { %v3701_v42 = vpop.f32.mrf.mxu1 }
 0x2e5   :  { %3007 = vst.msk [vmem:[%s5697_s7 + $0x28] sm:$0xff] %vm3001_vm2, %v2766_v58  ;;  %v2787_v41 = vadd.f32 %v3701_v42, %v5368_v21 }
 0x2e6   :  { %v2778_v12 = vpop.f32.mrf.mxu1 }
 0x2e7   :  { %3012 = vst.msk [vmem:[%s5697_s7 + $0x50] sm:$0xff] %vm3001_vm2, %v2787_v41  ;;  %v2779_v40 = vadd.f32 %v5368_v21, %v2778_v12 }
 0x2e8   :  { %v3702_v7 = vpop.f32.mrf.mxu1 }
 0x2e9   :  { %3010 = vst.msk [vmem:[%s5697_s7 + $0x40] sm:$0xff] %vm3001_vm2, %v2779_v40  ;;  %v2790_v18 = vadd.f32 %v3702_v7, %v5368_v21 }
 0x2ea   :  { %v2781_v45 = vpop.f32.mrf.mxu1 }
 0x2eb   :  { %3013 = vst.msk [vmem:[%s5697_s7 + $0x58] sm:$0xff] %vm3001_vm2, %v2790_v18  ;;  %v2782_v54 = vadd.f32 %v5368_v21, %v2781_v45 }
 0x2ec   :  { %v3705_v57 = vpop.f32.mrf.mxu1 }
 0x2ed   :  { %3011 = vst.msk [vmem:[%s5697_s7 + $0x48] sm:$0xff] %vm3001_vm2, %v2782_v54  ;;  %v2803_v63 = vadd.f32 %v3705_v57, %v5368_v21 }
 0x2ee   :  { %v2794_v28 = vpop.f32.mrf.mxu1 }
 0x2ef   :  { %3016 = vst.msk [vmem:[%s5697_s7 + $0x70] sm:$0xff] %vm3001_vm2, %v2803_v63  ;;  %v2795_v30 = vadd.f32 %v5368_v21, %v2794_v28 }
 0x2f0   :  { %v3706_v49 = vpop.f32.mrf.mxu1 }
 0x2f1   :  { %3014 = vst.msk [vmem:[%s5697_s7 + $0x60] sm:$0xff] %vm3001_vm2, %v2795_v30  ;;  %v2806_v39 = vadd.f32 %v3706_v49, %v5368_v21 }
 0x2f2   :  { %v2797_v55 = vpop.f32.mrf.mxu1 }
 0x2f3   :  { %3017 = vst.msk [vmem:[%s5697_s7 + $0x78] sm:$0xff] %vm3001_vm2, %v2806_v39  ;;  %v2798_v24 = vadd.f32 %v5368_v21, %v2797_v55 }
 0x2f4   :  { %v3709_v29 = vpop.f32.mrf.mxu1 }
 0x2f5   :  { %3015 = vst.msk [vmem:[%s5697_s7 + $0x68] sm:$0xff] %vm3001_vm2, %v2798_v24  ;;  %v2819_v44 = vadd.f32 %v3709_v29, %v5368_v21 }
 0x2f6   :  { %v2810_v38 = vpop.f32.mrf.mxu1 }
 0x2f7   :  { %3020 = vst.msk [vmem:[%s5697_s7 + $0x90] sm:$0xff] %vm3001_vm2, %v2819_v44  ;;  %v2811_v52 = vadd.f32 %v5368_v21, %v2810_v38 }
 0x2f8   :  { %v3710_v25 = vpop.f32.mrf.mxu1 }
 0x2f9   :  { %3018 = vst.msk [vmem:[%s5697_s7 + $0x80] sm:$0xff] %vm3001_vm2, %v2811_v52  ;;  %v2822_v46 = vadd.f32 %v3710_v25, %v5368_v21 }
 0x2fa   :  { %v2813_v59 = vpop.f32.mrf.mxu1 }
 0x2fb   :  { %3021 = vst.msk [vmem:[%s5697_s7 + $0x98] sm:$0xff] %vm3001_vm2, %v2822_v46  ;;  %v2814_v51 = vadd.f32 %v5368_v21, %v2813_v59 }
 0x2fc   :  { %v3713_v43 = vpop.f32.mrf.mxu1 }
 0x2fd   :  { %3019 = vst.msk [vmem:[%s5697_s7 + $0x88] sm:$0xff] %vm3001_vm2, %v2814_v51  ;;  %v2835_v33 = vadd.f32 %v3713_v43, %v5368_v21 }
 0x2fe   :  { %v2826_v48 = vpop.f32.mrf.mxu1 }
 0x2ff   :  { %3024 = vst.msk [vmem:[%s5697_s7 + $0xb0] sm:$0xff] %vm3001_vm2, %v2835_v33  ;;  %v2827_v19 = vadd.f32 %v5368_v21, %v2826_v48 }
 0x300   :  { %v3714_v53 = vpop.f32.mrf.mxu1 }
 0x301   :  { %3022 = vst.msk [vmem:[%s5697_s7 + $0xa0] sm:$0xff] %vm3001_vm2, %v2827_v19  ;;  %v2838_v0 = vadd.f32 %v3714_v53, %v5368_v21 }
 0x302   :  { %v2829_v1 = vpop.f32.mrf.mxu1 }
 0x303   :  { %3025 = vst.msk [vmem:[%s5697_s7 + $0xb8] sm:$0xff] %vm3001_vm2, %v2838_v0  ;;  %v2830_v32 = vadd.f32 %v5368_v21, %v2829_v1 }
 0x304   :  { %v3717_v60 = vpop.f32.mrf.mxu1 }
 0x305   :  { %3023 = vst.msk [vmem:[%s5697_s7 + $0xa8] sm:$0xff] %vm3001_vm2, %v2830_v32  ;;  %v2851_v6 = vadd.f32 %v3717_v60, %v5368_v21 }
 0x306   :  { %v2842_v8 = vpop.f32.mrf.mxu1 }
 0x307   :  { %3028 = vst.msk [vmem:[%s5697_s7 + $0xd0] sm:$0xff] %vm3001_vm2, %v2851_v6  ;;  %v2843_v3 = vadd.f32 %v5368_v21, %v2842_v8 }
 0x308   :  { %v3718_v36 = vpop.f32.mrf.mxu1 }
 0x309   :  { %3026 = vst.msk [vmem:[%s5697_s7 + $0xc0] sm:$0xff] %vm3001_vm2, %v2843_v3  ;;  %v2854_v62 = vadd.f32 %v3718_v36, %v5368_v21 }
 0x30a   :  { %v2845_v14 = vpop.f32.mrf.mxu1 }
 0x30b   :  { %3029 = vst.msk [vmem:[%s5697_s7 + $0xd8] sm:$0xff] %vm3001_vm2, %v2854_v62  ;;  %v2846_v9 = vadd.f32 %v5368_v21, %v2845_v14 }
 0x30c   :  { %v3721_v61 = vpop.f32.mrf.mxu1 }
 0x30d   :  { %3027 = vst.msk [vmem:[%s5697_s7 + $0xc8] sm:$0xff] %vm3001_vm2, %v2846_v9  ;;  %v2867_v5 = vadd.f32 %v3721_v61, %v5368_v21 }
 0x30e   :  { %v2858_v20 = vpop.f32.mrf.mxu1 }
 0x30f   :  { %3032 = vst.msk [vmem:[%s5697_s7 + $0xf0] sm:$0xff] %vm3001_vm2, %v2867_v5  ;;  %v2859_v15 = vadd.f32 %v5368_v21, %v2858_v20 }
 0x310   :  { %v3722_v4 = vpop.f32.mrf.mxu1 }
 0x311   :  { %3030 = vst.msk [vmem:[%s5697_s7 + $0xe0] sm:$0xff] %vm3001_vm2, %v2859_v15  ;;  %v2870_v11 = vadd.f32 %v3722_v4, %v5368_v21 }
 0x312   :  { %v2861_v26 = vpop.f32.mrf.mxu1 }
 0x313   :  { %3033 = vst.msk [vmem:[%s5697_s7 + $0xf8] sm:$0xff] %vm3001_vm2, %v2870_v11  ;;  %v2862_v10 = vadd.f32 %v5368_v21, %v2861_v26 }
 0x314   :  { %v3725_v17 = vpop.f32.mrf.mxu1 }
 0x315   :  { %3031 = vst.msk [vmem:[%s5697_s7 + $0xe8] sm:$0xff] %vm3001_vm2, %v2862_v10  ;;  %v2883_v35 = vadd.f32 %v3725_v17, %v5368_v21 }
 0x316   :  { %v2874_v27 = vpop.f32.mrf.mxu1 }
 0x317   :  { %3036 = vst.msk [vmem:[%s5697_s7 + $0x110] sm:$0xff] %vm3001_vm2, %v2883_v35  ;;  %v2875_v16 = vadd.f32 %v5368_v21, %v2874_v27 }
 0x318   :  { %v3726_v23 = vpop.f32.mrf.mxu1 }
 0x319   :  { %3034 = vst.msk [vmem:[%s5697_s7 + $0x100] sm:$0xff] %vm3001_vm2, %v2875_v16  ;;  %v2886_v47 = vadd.f32 %v3726_v23, %v5368_v21 }
 0x31a   :  { %v2877_v37 = vpop.f32.mrf.mxu1 }
 0x31b   :  { %3037 = vst.msk [vmem:[%s5697_s7 + $0x118] sm:$0xff] %vm3001_vm2, %v2886_v47  ;;  %v2878_v22 = vadd.f32 %v5368_v21, %v2877_v37 }
 0x31c   :  { %v3729_v31 = vpop.f32.mrf.mxu1 }
 0x31d   :  { %3035 = vst.msk [vmem:[%s5697_s7 + $0x108] sm:$0xff] %vm3001_vm2, %v2878_v22  ;;  %v2899_v2 = vadd.f32 %v3729_v31, %v5368_v21 }
 0x31e   :  { %v2890_v50 = vpop.f32.mrf.mxu1 }
 0x31f   :  { %3040 = vst.msk [vmem:[%s5697_s7 + $0x130] sm:$0xff] %vm3001_vm2, %v2899_v2  ;;  %v2891_v56 = vadd.f32 %v5368_v21, %v2890_v50 }
 0x320   :  { %v3730_v34 = vpop.f32.mrf.mxu1 }
 0x321   :  { %3038 = vst.msk [vmem:[%s5697_s7 + $0x120] sm:$0xff] %vm3001_vm2, %v2891_v56  ;;  %v2902_v13 = vadd.f32 %v3730_v34, %v5368_v21 }
 0x322   :  { %v2893_v58 = vpop.f32.mrf.mxu1 }
 0x323   :  { %3041 = vst.msk [vmem:[%s5697_s7 + $0x138] sm:$0xff] %vm3001_vm2, %v2902_v13  ;;  %v2894_v42 = vadd.f32 %v5368_v21, %v2893_v58 }
 0x324   :  { %v3733_v41 = vpop.f32.mrf.mxu1 }
 0x325   :  { %3039 = vst.msk [vmem:[%s5697_s7 + $0x128] sm:$0xff] %vm3001_vm2, %v2894_v42  ;;  %v2915_v12 = vadd.f32 %v3733_v41, %v5368_v21 }
 0x326   :  { %v2906_v40 = vpop.f32.mrf.mxu1 }
 0x327   :  { %3044 = vst.msk [vmem:[%s5697_s7 + $0x150] sm:$0xff] %vm3001_vm2, %v2915_v12  ;;  %v2907_v7 = vadd.f32 %v5368_v21, %v2906_v40 }
 0x328   :  { %v3734_v18 = vpop.f32.mrf.mxu1 }
 0x329   :  { %3042 = vst.msk [vmem:[%s5697_s7 + $0x140] sm:$0xff] %vm3001_vm2, %v2907_v7  ;;  %v2918_v45 = vadd.f32 %v3734_v18, %v5368_v21 }
 0x32a   :  { %v2909_v54 = vpop.f32.mrf.mxu1 }
 0x32b   :  { %3045 = vst.msk [vmem:[%s5697_s7 + $0x158] sm:$0xff] %vm3001_vm2, %v2918_v45  ;;  %v2910_v57 = vadd.f32 %v5368_v21, %v2909_v54 }
 0x32c   :  { %v3737_v63 = vpop.f32.mrf.mxu1 }
 0x32d   :  { %3043 = vst.msk [vmem:[%s5697_s7 + $0x148] sm:$0xff] %vm3001_vm2, %v2910_v57  ;;  %v2931_v28 = vadd.f32 %v3737_v63, %v5368_v21 }
 0x32e   :  { %v2922_v30 = vpop.f32.mrf.mxu1 }
 0x32f   :  { %3048 = vst.msk [vmem:[%s5697_s7 + $0x170] sm:$0xff] %vm3001_vm2, %v2931_v28  ;;  %v2923_v49 = vadd.f32 %v5368_v21, %v2922_v30 }
 0x330   :  { %v3738_v39 = vpop.f32.mrf.mxu1 }
 0x331   :  { %3046 = vst.msk [vmem:[%s5697_s7 + $0x160] sm:$0xff] %vm3001_vm2, %v2923_v49  ;;  %v2934_v55 = vadd.f32 %v3738_v39, %v5368_v21 }
 0x332   :  { %v2925_v24 = vpop.f32.mrf.mxu1 }
 0x333   :  { %3049 = vst.msk [vmem:[%s5697_s7 + $0x178] sm:$0xff] %vm3001_vm2, %v2934_v55  ;;  %v2926_v29 = vadd.f32 %v5368_v21, %v2925_v24 }
 0x334   :  { %v3741_v44 = vpop.f32.mrf.mxu1 }
 0x335   :  { %3047 = vst.msk [vmem:[%s5697_s7 + $0x168] sm:$0xff] %vm3001_vm2, %v2926_v29  ;;  %v2947_v38 = vadd.f32 %v3741_v44, %v5368_v21 }
 0x336   :  { %v2938_v52 = vpop.f32.mrf.mxu1 }
 0x337   :  { %3052 = vst.msk [vmem:[%s5697_s7 + $0x190] sm:$0xff] %vm3001_vm2, %v2947_v38  ;;  %v2939_v25 = vadd.f32 %v5368_v21, %v2938_v52 }
 0x338   :  { %v3742_v46 = vpop.f32.mrf.mxu1 }
 0x339   :  { %3050 = vst.msk [vmem:[%s5697_s7 + $0x180] sm:$0xff] %vm3001_vm2, %v2939_v25  ;;  %v2950_v59 = vadd.f32 %v3742_v46, %v5368_v21 }
 0x33a   :  { %v2941_v51 = vpop.f32.mrf.mxu1 }
 0x33b   :  { %3053 = vst.msk [vmem:[%s5697_s7 + $0x198] sm:$0xff] %vm3001_vm2, %v2950_v59  ;;  %v2942_v43 = vadd.f32 %v5368_v21, %v2941_v51 }
 0x33c   :  { %v3745_v33 = vpop.f32.mrf.mxu1 }
 0x33d   :  { %3051 = vst.msk [vmem:[%s5697_s7 + $0x188] sm:$0xff] %vm3001_vm2, %v2942_v43  ;;  %v2963_v48 = vadd.f32 %v3745_v33, %v5368_v21 }
 0x33e   :  { %v2954_v19 = vpop.f32.mrf.mxu1 }
 0x33f   :  { %3056 = vst.msk [vmem:[%s5697_s7 + $0x1b0] sm:$0xff] %vm3001_vm2, %v2963_v48  ;;  %v2955_v53 = vadd.f32 %v5368_v21, %v2954_v19 }
 0x340   :  { %v3746_v0 = vpop.f32.mrf.mxu1 }
 0x341   :  { %3054 = vst.msk [vmem:[%s5697_s7 + $0x1a0] sm:$0xff] %vm3001_vm2, %v2955_v53  ;;  %v2966_v1 = vadd.f32 %v3746_v0, %v5368_v21 }
 0x342   :  { %v2957_v32 = vpop.f32.mrf.mxu1 }
 0x343   :  { %3057 = vst.msk [vmem:[%s5697_s7 + $0x1b8] sm:$0xff] %vm3001_vm2, %v2966_v1  ;;  %v2958_v60 = vadd.f32 %v5368_v21, %v2957_v32 }
 0x344   :  { %v3749_v6 = vpop.f32.mrf.mxu1 }
 0x345   :  { %3055 = vst.msk [vmem:[%s5697_s7 + $0x1a8] sm:$0xff] %vm3001_vm2, %v2958_v60  ;;  %v2979_v8 = vadd.f32 %v3749_v6, %v5368_v21 }
 0x346   :  { %v2970_v3 = vpop.f32.mrf.mxu1 }
 0x347   :  { %3060 = vst.msk [vmem:[%s5697_s7 + $0x1d0] sm:$0xff] %vm3001_vm2, %v2979_v8  ;;  %v2971_v36 = vadd.f32 %v5368_v21, %v2970_v3 }
 0x348   :  { %v3750_v62 = vpop.f32.mrf.mxu1 }
 0x349   :  { %3058 = vst.msk [vmem:[%s5697_s7 + $0x1c0] sm:$0xff] %vm3001_vm2, %v2971_v36  ;;  %v2982_v14 = vadd.f32 %v3750_v62, %v5368_v21 }
 0x34a   :  { %v2973_v9 = vpop.f32.mrf.mxu1 }
 0x34b   :  { %3061 = vst.msk [vmem:[%s5697_s7 + $0x1d8] sm:$0xff] %vm3001_vm2, %v2982_v14  ;;  %v2974_v61 = vadd.f32 %v5368_v21, %v2973_v9 }
 0x34c   :  { %v3753_v5 = vpop.f32.mrf.mxu1 }
 0x34d   :  { %3059 = vst.msk [vmem:[%s5697_s7 + $0x1c8] sm:$0xff] %vm3001_vm2, %v2974_v61  ;;  %v2995_v20 = vadd.f32 %v3753_v5, %v5368_v21 }
 0x34e   :  { %v2986_v15 = vpop.f32.mrf.mxu1 }
 0x34f   :  { %3064 = vst.msk [vmem:[%s5697_s7 + $0x1f0] sm:$0xff] %vm3001_vm2, %v2995_v20  ;;  %v2987_v4 = vadd.f32 %v5368_v21, %v2986_v15 }
 0x350   :  { %v3754_v11 = vpop.f32.mrf.mxu1 }
 0x351   :  { %3062 = vst.msk [vmem:[%s5697_s7 + $0x1e0] sm:$0xff] %vm3001_vm2, %v2987_v4  ;;  %v2998_v26 = vadd.f32 %v3754_v11, %v5368_v21 }
 0x352   :  { %v2989_v10 = vpop.f32.mrf.mxu1 }
 0x353   :  { %3065 = vst.msk [vmem:[%s5697_s7 + $0x1f8] sm:$0xff] %vm3001_vm2, %v2998_v26  ;;  %v2990_v17 = vadd.f32 %v5368_v21, %v2989_v10 }
 0x355   :  { %3063 = vst.msk [vmem:[%s5697_s7 + $0x1e8] sm:$0xff] %vm3001_vm2, %v2990_v17 }

// kernel: deep_supervision_forward.16
= control target key start
LH: loop header
LB: loop body
LE: loop exit
PB: predicated region body
PF: predicated region fallthrough
CT: control target
= control target key end

     0   :  { %vm210_vm0 = vcmask 261120   ;;  %vm428_vm1 = vcmask 257024   ;;  %vm511_vm2 = vcmask 7168   ;;  %s832_s2 = inlined_call_operand.vmem [shape: bf16[288,32], index: 2, kind: input, shape index: {}]   ;;  %s833_s0 = inlined_call_operand.vmem [shape: bf16[32,288], index: 0, kind: input, shape index: {}]   ;;  %s834_s3 = inlined_call_operand.vmem [shape: bf16[32,32], index: 3, kind: input, shape index: {}]   ;;  %s835_s1 = inlined_call_operand.vmem [shape: bf16[32,32], index: 1, kind: input, shape index: {}]   ;;  %s836_s4 = inlined_call_operand.vmem [shape: bf16[32,1], index: 4, kind: input, shape index: {}]   ;;  %s837_s5 = inlined_call_operand.<no memory space> [shape: f32[1,1], index: 5, kind: input, shape index: {}]   ;;  %s838_s6 = inlined_call_operand.vmem [shape: bf16[32,32], index: 6, kind: output, shape index: {0}]   ;;  %s839_s7 = inlined_call_operand.vmem [shape: f32[32,1], index: 7, kind: output, shape index: {1}]  }
   0x1   :  { %v633_v0 = vld [vmem:[%s832_s2 + $0x78] sm:$0xff]   ;;  %v635_v2 = vld [vmem:[%s832_s2 + $0x70] sm:$0xff]   ;;  %v637_v4 = vld [vmem:[%s832_s2 + $0x68] sm:$0xff]   ;;  %v13_v30 = vstv %s837_s5 }
   0x2   :  { %v634_v1 = vld [vmem:[%s832_s2 + $0x38] sm:$0xff]   ;;  %569 = vmatprep.subr.bf16.mxu0 %v633_v0  ;;  %v636_v3 = vld [vmem:[%s832_s2 + $0x30] sm:$0xff]   ;;  %v638_v5 = vld [vmem:[%s832_s2 + $0x28] sm:$0xff]   ;;  %14 = vst [vmem:[#allocation2] sm:$0x1] %v13_v30 }
   0x3   :  { %570 = vmatpush3.bf16.msra.mxu0 %v634_v1  ;;  %v639_v6 = vld [vmem:[%s832_s2 + $0x60] sm:$0xff]   ;;  %v641_v8 = vld [vmem:[%s832_s2 + $0x58] sm:$0xff]   ;;  %v645_v9 = vld [vmem:[%s832_s2 + $0x88] sm:$0xff]  }
   0x4   :  { %571 = vmatprep.subr.bf16.mxu0 %v635_v2  ;;  %v640_v7 = vld [vmem:[%s832_s2 + $0x20] sm:$0xff]   ;;  %v642_v10 = vld [vmem:[%s832_s2 + $0x18] sm:$0xff]   ;;  %609 = vmatprep.subr.bf16.mxu1 %v645_v9  ;;  %v643_v12 = vld [vmem:[%s832_s2 + $0x50] sm:$0xff]  }
   0x5   :  { %610 = vmatpush3.bf16.msra.mxu1 %v645_v9  ;;  %v648_v11 = vld [vmem:[%s832_s2 + $0x80] sm:$0xff]   ;;  %v644_v13 = vld [vmem:[%s832_s2 + $0x10] sm:$0xff]   ;;  %v646_v14 = vld [vmem:[%s832_s2 + $0x48] sm:$0xff]  }
   0x6   :  { %611 = vmatprep.subr.bf16.mxu1 %v648_v11  ;;  %v651_v15 = vld [vmem:[%s833_s0 + $0x8] ss:$12 sps:$4 sm:$0xff]   ;;  %v652_v16 = vld [vmem:[%s833_s0 + $0x20] ss:$12 sps:$4 sm:$0xff]   ;;  %v656_v20 = vld [vmem:[%s833_s0 + $0x4] ss:$12 sps:$4 sm:$0xff]  }
   0x7   :  { %572 = vmatpush3.bf16.msra.mxu0 %v636_v3  ;;  %613 = vmatprep.mubr.msk.bf16.mxu1 %vm210_vm0, %v651_v15  ;;  %v653_v17 = vld [vmem:[%s834_s3 + $0x8] sm:$0xff]   ;;  %v649_v19 = vld [vmem:[%s832_s2 + $0x40] sm:$0xff]  }
   0x8   :  { %573 = vmatprep.subr.bf16.mxu0 %v637_v4  ;;  %v647_v18 = vld [vmem:[%s832_s2 + $0x8] sm:$0xff]   ;;  %v657_v21 = vld [vmem:[%s834_s3] sm:$0xff]   ;;  %249 = vmatprep.mubr.bf16.mxu0 %v656_v20 }
   0x9   :  { %612 = vmatpush3.bf16.msra.mxu1 %v648_v11  ;;  %v658_v22 = vld [vmem:[%s835_s1] sm:$0xff]   ;;  %v659_v23 = vld [vmem:[%s835_s1 + $0x8] sm:$0xff]  }
   0xa   :  { %617 = vmatprep.subr.bf16.mxu1 %v653_v17  ;;  %v650_v24 = vld [vmem:[%s832_s2] sm:$0xff]   ;;  %v660_v26 = vld [vmem:[%s833_s0 + $0x1c] ss:$12 sps:$4 sm:$0xff]  }
   0xb   :  { %574 = vmatpush3.bf16.msra.mxu0 %v638_v5  ;;  %v654_v25 = vld [vmem:[%s833_s0] ss:$12 sps:$4 sm:$0xff]   ;;  %v662_v27 = vld [vmem:[%s833_s0 + $0x18] ss:$12 sps:$4 sm:$0xff]  }
   0xc   :  { %575 = vmatprep.subr.bf16.mxu0 %v639_v6  ;;  %614 = vmatmul.mubr.msk.bf16.vlgmr.msra.gmra.mxu1 %vm210_vm0, %v652_v16  ;;  %v663_v28 = vld [vmem:[%s836_s4 + $0x8] sm:$0xff]   ;;  %v664_v29 = vld [vmem:[%s836_s4] sm:$0xff]  }
   0xd   :  { %618 = vmatpush3.bf16.msra.mxu1 %v653_v17  ;;  %621 = vmatprep.mubr.msk.bf16.mxu1 %vm210_vm0, %v658_v22  ;;  %v560_v9 = vld [vmem:[#allocation2] ss:$0 sm:$0xff] }
   0xe   :  { %619 = vmatprep.subr.bf16.mxu1 %v657_v21 }
   0xf   :  { %576 = vmatpush3.bf16.msra.mxu0 %v640_v7 }
  0x10   :  { %577 = vmatprep.subr.bf16.mxu0 %v641_v8 }
  0x11   :  { %620 = vmatpush3.bf16.msra.mxu1 %v657_v21 }
  0x12   :  { %625 = vmatprep.subr.bf16.mxu1 %v663_v28 }
  0x13   :  { %578 = vmatpush3.bf16.msra.mxu0 %v642_v10 }
  0x14   :  { %579 = vmatprep.subr.bf16.mxu0 %v643_v12  ;;  %622 = vmatmul.mubr.msk.bf16.vlgmr.msra.gmra.mxu1 %vm210_vm0, %v659_v23 }
  0x15   :  { %626 = vmatpush3.bf16.msra.mxu1 %v663_v28 }
  0x16   :  { %627 = vmatprep.subr.bf16.mxu1 %v664_v29 }
  0x17   :  { %580 = vmatpush3.bf16.msra.mxu0 %v644_v13 }
  0x18   :  { %581 = vmatprep.subr.bf16.mxu0 %v646_v14 }
  0x19   :  { %628 = vmatpush3.bf16.msra.mxu1 %v664_v29 }
  0x1b   :  { %582 = vmatpush3.bf16.msra.mxu0 %v647_v18 }
  0x1c   :  { %583 = vmatprep.subr.bf16.mxu0 %v649_v19 }
  0x1f   :  { %584 = vmatpush3.bf16.msra.mxu0 %v650_v24 }
  0x22   :  { %250 = vmatmul.mubr.bf16.vlgmr.msra.gmra.mxu0 %v654_v25 }
  0x23   :  { %257 = vmatprep.mubr.bf16.mxu0 %v660_v26 }
  0x2a   :  { %258 = vmatmul.mubr.bf16.gmra.mxu0 %v662_v27 }
  0xcc   :  { %v615_v31 = vpop.f32.mrf.mxu1 }
  0xce   :  { %v300_v32 = vpop.f32.mrf.mxu1 }
  0xd0   :  { %v616_v33 = vpop.f32.mrf.mxu1 }
  0xd2   :  { %v303_v34 = vpop.f32.mrf.mxu1 }
  0xd4   :  { %v623_v35 = vpop.f32.mrf.mxu1 }
  0xd6   :  { %v389_v38 = vpop.f32.mrf.mxu1 }
  0xd8   :  { %v624_v43 = vpop.f32.mrf.mxu1 }
  0xda   :  { %v392_v50 = vpop.f32.mrf.mxu1 }
  0xe2   :  { %v585_v36 = vpop.f32.mrf.mxu0 }
  0xe4   :  { %v586_v37 = vpop.f32.mrf.mxu0 }
  0xe5   :  { %v587_v39 = vadd.f32 %v586_v37, %v585_v36 }
  0xe6   :  { %v588_v40 = vpop.f32.mrf.mxu0 }
  0xe7   :  { %v301_v41 = vadd.f32 %v587_v39, %v300_v32 }
  0xe8   :  { %v589_v42 = vpop.f32.mrf.mxu0 }
  0xe9   :  { %v590_v44 = vadd.f32 %v589_v42, %v588_v40  ;;  %v315_v45 = vmax.f32 %v301_v41, 0.0 }
  0xea   :  { %v591_v46 = vpop.f32.mrf.mxu0 }
  0xeb   :  { %v304_v47 = vadd.f32 %v590_v44, %v303_v34  ;;  %v404_v48 = vadd.f32 %v389_v38, %v315_v45 }
  0xec   :  { %v592_v49 = vpop.f32.mrf.mxu0 }
  0xed   :  { %v408_v51 = vmax.f32 %v404_v48, 0.0  ;;  %v593_v52 = vadd.f32 %v592_v49, %v591_v46  ;;  %v316_v53 = vmax.f32 %v304_v47, 0.0 }
  0xee   :  { %v594_v54 = vpop.f32.mrf.mxu0 }
  0xef   :  { %v565_v55 = vpack.c.bf16 %v408_v51, %v408_v51  ;;  %v309_v56 = vadd.f32 %v615_v31, %v593_v52  ;;  %v405_v57 = vadd.f32 %v392_v50, %v316_v53 }
  0xf0   :  { %v595_v58 = vpop.f32.mrf.mxu0 }
  0xf1   :  { %429 = vst.msk [vmem:[%s838_s6] sm:$0xf] %vm428_vm1, %v565_v55  ;;  %v317_v59 = vmax.f32 %v309_v56, 0.0  ;;  %v409_v60 = vmax.f32 %v405_v57, 0.0  ;;  %v596_v61 = vadd.f32 %v595_v58, %v594_v54 }
  0xf3   :  { %v406_v62 = vadd.f32 %v623_v35, %v317_v59  ;;  %v412_v63 = vpack.c.bf16 %v409_v60, %v408_v51  ;;  %v566_v0 = vpack.c.bf16 %v409_v60, %v409_v60  ;;  %v312_v1 = vadd.f32 %v616_v33, %v596_v61 }
  0xf5   :  { %v410_v2 = vmax.f32 %v406_v62, 0.0  ;;  %430 = vst.msk [vmem:[%s838_s6 + $0x4] sm:$0xf] %vm428_vm1, %v566_v0  ;;  %v318_v3 = vmax.f32 %v312_v1, 0.0  ;;  %629 = vmatprep.mubr.msk.bf16.mxu1 %vm210_vm0, %v412_v63 }
  0xf7   :  { %v567_v4 = vpack.c.bf16 %v410_v2, %v410_v2  ;;  %v407_v5 = vadd.f32 %v624_v43, %v318_v3 }
  0xf9   :  { %431 = vst.msk [vmem:[%s838_s6 + $0x8] sm:$0xf] %vm428_vm1, %v567_v4  ;;  %v411_v6 = vmax.f32 %v407_v5, 0.0 }
  0xfb   :  { %v413_v7 = vpack.c.bf16 %v411_v6, %v410_v2  ;;  %v568_v8 = vpack.c.bf16 %v411_v6, %v411_v6 }
  0xfd   :  { %432 = vst.msk [vmem:[%s838_s6 + $0xc] sm:$0xf] %vm428_vm1, %v568_v8  ;;  %630 = vmatmul.mubr.msk.bf16.vlgmr.msra.gmra.mxu1 %vm210_vm0, %v413_v7 }
 0x1bd   :  { %v631_v10 = vpop.f32.mrf.mxu1 }
 0x1be   :  { %v505_v11 = vadd.f32 %v631_v10, %v560_v9 }
 0x1bf   :  { %v496_v12 = vpop.f32.mrf.mxu1 }
 0x1c0   :  { %514 = vst.msk [vmem:[%s839_s7 + $0x10] sm:$0xff] %vm511_vm2, %v505_v11  ;;  %v497_v13 = vadd.f32 %v560_v9, %v496_v12 }
 0x1c1   :  { %v632_v14 = vpop.f32.mrf.mxu1 }
 0x1c2   :  { %512 = vst.msk [vmem:[%s839_s7] sm:$0xff] %vm511_vm2, %v497_v13  ;;  %v508_v15 = vadd.f32 %v632_v14, %v560_v9 }
 0x1c3   :  { %v499_v16 = vpop.f32.mrf.mxu1 }
 0x1c4   :  { %515 = vst.msk [vmem:[%s839_s7 + $0x18] sm:$0xff] %vm511_vm2, %v508_v15  ;;  %v500_v17 = vadd.f32 %v560_v9, %v499_v16 }
 0x1c6   :  { %513 = vst.msk [vmem:[%s839_s7 + $0x8] sm:$0xff] %vm511_vm2, %v500_v17 }

// kernel: deep_supervision_forward.17
= control target key start
LH: loop header
LB: loop body
LE: loop exit
PB: predicated region body
PF: predicated region fallthrough
CT: control target
= control target key end

     0   :  { %v349_v1 = vmov 0.0   ;;  %vm350_vm0 = vmmov 0   ;;  %vm178_vm1 = vcmask 261120   ;;  %vm264_vm2 = vcmask 257024   ;;  %s437_s1 = inlined_call_operand.vmem [shape: bf16[288,32], index: 1, kind: input, shape index: {}]   ;;  %s438_s0 = inlined_call_operand.vmem [shape: bf16[8,288], index: 0, kind: input, shape index: {}]   ;;  %s439_s2 = inlined_call_operand.vmem [shape: f32[1,32], index: 2, kind: input, shape index: {}]   ;;  %s440_s3 = inlined_call_operand.vmem [shape: bf16[8,32], index: 3, kind: output, shape index: {}]  }
   0x1   :  { %v328_v0 = vld [vmem:[%s437_s1 + $0x78] sm:$0xff]   ;;  %318 = vmatprep.subr.bf16.mxu1 %v349_v1  ;;  %322 = vmatprep.mubr.msk.bf16.mxu1 %vm350_vm0, %v349_v1  ;;  %v330_v3 = vld [vmem:[%s437_s1 + $0x70] sm:$0xff]   ;;  %v332_v5 = vld [vmem:[%s437_s1 + $0x68] sm:$0xff]  }
   0x2   :  { %v329_v2 = vld [vmem:[%s437_s1 + $0x38] sm:$0xff]   ;;  %293 = vmatprep.subr.bf16.mxu0 %v328_v0  ;;  %v331_v4 = vld [vmem:[%s437_s1 + $0x30] sm:$0xff]   ;;  %v333_v6 = vld [vmem:[%s437_s1 + $0x28] sm:$0xff]  }
   0x3   :  { %294 = vmatpush3.bf16.msra.mxu0 %v329_v2  ;;  %v334_v7 = vld [vmem:[%s437_s1 + $0x60] sm:$0xff]   ;;  %v336_v9 = vld [vmem:[%s437_s1 + $0x58] sm:$0xff]   ;;  %v342_v10 = vld [vmem:[%s437_s1 + $0x88] sm:$0xff]  }
   0x4   :  { %295 = vmatprep.subr.bf16.mxu0 %v330_v3  ;;  %v335_v8 = vld [vmem:[%s437_s1 + $0x20] sm:$0xff]   ;;  %v337_v11 = vld [vmem:[%s437_s1 + $0x18] sm:$0xff]   ;;  %v338_v12 = vld [vmem:[%s437_s1 + $0x50] sm:$0xff]   ;;  %319 = vmatpush3.bf16.msra.mxu1 %v342_v10 }
   0x5   :  { %320 = vmatprep.subr.bf16.mxu1 %v349_v1  ;;  %v345_v13 = vld [vmem:[%s437_s1 + $0x80] sm:$0xff]   ;;  %v339_v15 = vld [vmem:[%s437_s1 + $0x10] sm:$0xff]   ;;  %v348_v17 = vld [vmem:[%s438_s0 + $0x8] ss:$0 sps:$4 sm:$0xff]  }
   0x6   :  { %v15_v14 = vld [vmem:[%s438_s0] sm:$0xff]  ;;  %v340_v18 = vld [vmem:[%s437_s1 + $0x48] sm:$0xff]  }
   0x7   :  { %296 = vmatpush3.bf16.msra.mxu0 %v331_v4  ;;  %v272_v16 = vcombine.high %v15_v14, %v15_v14  ;;  %v341_v19 = vld [vmem:[%s437_s1 + $0x8] sm:$0xff]   ;;  %v343_v20 = vld [vmem:[%s437_s1 + $0x40] sm:$0xff]   ;;  %v271_v22 = vcombine.low %v15_v14, %v15_v14 }
   0x8   :  { %297 = vmatprep.subr.bf16.mxu0 %v332_v5  ;;  %321 = vmatpush3.bf16.msra.mxu1 %v345_v13  ;;  %v344_v21 = vld [vmem:[%s437_s1] sm:$0xff]  }
   0x9   :  { %214 = vmatprep.mubr.bf16.mxu0 %v272_v16  ;;  %v270_v28 = vld [vmem:[%s439_s2] ss:$0 sm:$0xff] }
   0xb   :  { %298 = vmatpush3.bf16.msra.mxu0 %v333_v6  ;;  %323 = vmatmul.mubr.msk.bf16.vlgmr.msra.gmra.mxu1 %vm178_vm1, %v348_v17 }
   0xc   :  { %299 = vmatprep.subr.bf16.mxu0 %v334_v7 }
   0xf   :  { %300 = vmatpush3.bf16.msra.mxu0 %v335_v8 }
  0x10   :  { %301 = vmatprep.subr.bf16.mxu0 %v336_v9 }
  0x13   :  { %302 = vmatpush3.bf16.msra.mxu0 %v337_v11 }
  0x14   :  { %303 = vmatprep.subr.bf16.mxu0 %v338_v12 }
  0x17   :  { %304 = vmatpush3.bf16.msra.mxu0 %v339_v15 }
  0x18   :  { %305 = vmatprep.subr.bf16.mxu0 %v340_v18 }
  0x1b   :  { %306 = vmatpush3.bf16.msra.mxu0 %v341_v19 }
  0x1c   :  { %307 = vmatprep.subr.bf16.mxu0 %v343_v20 }
  0x1f   :  { %308 = vmatpush3.bf16.msra.mxu0 %v344_v21 }
  0x22   :  { %215 = vmatmul.mubr.bf16.vlgmr.msra.gmra.mxu0 %v271_v22 }
  0xcb   :  { %v256_v23 = vpop.f32.mrf.mxu1 }
  0xcd   :  { %v324_v24 = vpop.f32.mrf.mxu1 }
  0xcf   :  { %v259_v25 = vpop.f32.mrf.mxu1 }
  0xd1   :  { %v325_v26 = vpop.f32.mrf.mxu1 }
  0xe2   :  { %v309_v27 = vpop.f32.mrf.mxu0 }
  0xe4   :  { %v310_v29 = vpop.f32.mrf.mxu0 }
  0xe5   :  { %v311_v30 = vadd.f32 %v310_v29, %v309_v27 }
  0xe6   :  { %v312_v31 = vpop.f32.mrf.mxu0 }
  0xe7   :  { %v217_v32 = vadd.f32 %v311_v30, %v270_v28 }
  0xe8   :  { %v313_v33 = vpop.f32.mrf.mxu0 }
  0xe9   :  { %v257_v34 = vadd.f32 %v256_v23, %v217_v32 }
  0xeb   :  { %v262_v35 = vmax.f32 %v257_v34, 0.0 }
  0xed   :  { %v263_v36 = vpack.c.bf16 %v262_v35, %v262_v35 }
  0xef   :  { %265 = vst.msk [vmem:[%s440_s3] sm:$0xf] %vm264_vm2, %v263_v36 }

// kernel: deep_supervision_forward.18
= control target key start
LH: loop header
LB: loop body
LE: loop exit
PB: predicated region body
PF: predicated region fallthrough
CT: control target
= control target key end

     0   :  { %s688_s0 = inlined_call_operand.vmem [shape: bf16[8,288], index: 0, kind: input, shape index: {}]   ;;  %s689_s1 = inlined_call_operand.vmem [shape: bf16[8,32], index: 1, kind: input, shape index: {}]   ;;  %s690_s2 = inlined_call_operand.vmem [shape: bf16[288,32], index: 2, kind: input, shape index: {}]   ;;  %s691_s3 = inlined_call_operand.vmem [shape: bf16[32,32], index: 3, kind: input, shape index: {}]   ;;  %s692_s4 = inlined_call_operand.vmem [shape: bf16[32,1], index: 4, kind: input, shape index: {}]   ;;  %s693_s5 = inlined_call_operand.<no memory space> [shape: f32[1,1], index: 5, kind: input, shape index: {}]   ;;  %s694_s6 = inlined_call_operand.hbm [shape: bf16[8,32], index: 6, kind: output, shape index: {0}]   ;;  %s695_s7 = inlined_call_operand.vmem [shape: f32[8,1], index: 7, kind: output, shape index: {1}]  }
   0x1   :  { %v13_v0 = vstv %s693_s5 }
   0x2   :  { %14 = vst [vmem:[#allocation2] sm:$0x1] %v13_v0 }
   0x3   :  { %v508_v1 = vld [vmem:[%s690_s2 + $0x78] sm:$0xff]   ;;  %v555_v3 = vmov 0.0   ;;  %v510_v4 = vld [vmem:[%s690_s2 + $0x70] sm:$0xff]   ;;  %vm556_vm0 = vmmov 0   ;;  %v512_v6 = vld [vmem:[%s690_s2 + $0x68] sm:$0xff]   ;;  %vm185_vm1 = vcmask 261120  }
   0x4   :  { %v509_v2 = vld [vmem:[%s690_s2 + $0x38] sm:$0xff]   ;;  %481 = vmatprep.subr.bf16.mxu1 %v555_v3  ;;  %450 = vmatprep.subr.bf16.mxu0 %v508_v1  ;;  %v511_v5 = vld [vmem:[%s690_s2 + $0x30] sm:$0xff]   ;;  %v513_v7 = vld [vmem:[%s690_s2 + $0x28] sm:$0xff]  }
   0x5   :  { %485 = vmatprep.mubr.msk.bf16.mxu1 %vm556_vm0, %v555_v3  ;;  %451 = vmatpush3.bf16.msra.mxu0 %v509_v2  ;;  %v514_v8 = vld [vmem:[%s690_s2 + $0x60] sm:$0xff]   ;;  %v518_v9 = vld [vmem:[%s690_s2 + $0x88] sm:$0xff]   ;;  %v516_v11 = vld [vmem:[%s690_s2 + $0x58] sm:$0xff]  }
   0x6   :  { %452 = vmatprep.subr.bf16.mxu0 %v510_v4  ;;  %v515_v10 = vld [vmem:[%s690_s2 + $0x20] sm:$0xff]   ;;  %482 = vmatpush3.bf16.msra.mxu1 %v518_v9  ;;  %v517_v13 = vld [vmem:[%s690_s2 + $0x18] sm:$0xff]   ;;  %v519_v14 = vld [vmem:[%s690_s2 + $0x50] sm:$0xff]  }
   0x7   :  { %483 = vmatprep.subr.bf16.mxu1 %v555_v3  ;;  %v521_v12 = vld [vmem:[%s690_s2 + $0x80] sm:$0xff]   ;;  %v524_v15 = vld [vmem:[%s688_s0 + $0x8] ss:$0 sps:$4 sm:$0xff]   ;;  %v520_v17 = vld [vmem:[%s690_s2 + $0x10] sm:$0xff]  }
   0x8   :  { %v525_v16 = vld [vmem:[%s691_s3 + $0x8] sm:$0xff]   ;;  %v29_v19 = vld [vmem:[%s688_s0] sm:$0xff] }
   0x9   :  { %453 = vmatpush3.bf16.msra.mxu0 %v511_v5  ;;  %v522_v18 = vld [vmem:[%s690_s2 + $0x48] sm:$0xff]   ;;  %v422_v20 = vcombine.high %v29_v19, %v29_v19  ;;  %v530_v21 = vld [vmem:[%s691_s3] sm:$0xff]  }
   0xa   :  { %454 = vmatprep.subr.bf16.mxu0 %v512_v6  ;;  %484 = vmatpush3.bf16.msra.mxu1 %v521_v12 }
   0xb   :  { %489 = vmatprep.subr.bf16.mxu1 %v555_v3  ;;  %221 = vmatprep.mubr.bf16.mxu0 %v422_v20 }
   0xd   :  { %455 = vmatpush3.bf16.msra.mxu0 %v513_v7  ;;  %486 = vmatmul.mubr.msk.bf16.vlgmr.msra.gmra.mxu1 %vm185_vm1, %v524_v15 }
   0xe   :  { %456 = vmatprep.subr.bf16.mxu0 %v514_v8  ;;  %490 = vmatpush3.bf16.msra.mxu1 %v525_v16 }
   0xf   :  { %491 = vmatprep.subr.bf16.mxu1 %v555_v3  ;;  %493 = vmatprep.mubr.msk.bf16.mxu1 %vm556_vm0, %v555_v3 }
  0x11   :  { %457 = vmatpush3.bf16.msra.mxu0 %v515_v10 }
  0x12   :  { %458 = vmatprep.subr.bf16.mxu0 %v516_v11 }
  0x15   :  { %459 = vmatpush3.bf16.msra.mxu0 %v517_v13 }
  0x16   :  { %460 = vmatprep.subr.bf16.mxu0 %v519_v14 }
  0x17   :  { %15 = vsyncpa [#allocation4], 0  ;;  %v523_v22 = vld [vmem:[%s690_s2 + $0x8] sm:$0xff]   ;;  %v526_v23 = vld [vmem:[%s690_s2 + $0x40] sm:$0xff]   ;;  %492 = vmatpush3.bf16.msra.mxu1 %v530_v21  ;;  %v421_v26 = vcombine.low %v29_v19, %v29_v19  ;;  %vm333_vm2 = vcmask 257024  }
  0x18   :  { %v270_v24 = vld [vmem:[%s689_s1] sm:$0xf]  ;;  %497 = vmatprep.subr.bf16.mxu1 %v555_v3  ;;  %v531_v27 = vld [vmem:[%s692_s4 + $0x8] sm:$0xff]  }
  0x19   :  { %461 = vmatpush3.bf16.msra.mxu0 %v520_v17  ;;  %v527_v25 = vld [vmem:[%s690_s2] sm:$0xff]   ;;  %s557_s2 = smov [#allocation3]  }
  0x1a   :  { %462 = vmatprep.subr.bf16.mxu0 %v522_v18  ;;  %494 = vmatmul.mubr.msk.bf16.vlgmr.msra.gmra.mxu1 %vm185_vm1, %v270_v24  ;;  %v532_v28 = vld [vmem:[%s692_s4] sm:$0xff]   ;;  %s409_s4 = sshll.u32 %s557_s2, 4  ;;  %s410_s4 = int_to_ptr.vmem [resolvable:$true] %s409_s4 }
  0x1b   :  { %501 = vmatprep.mubr.msk.bf16.mxu1 %vm556_vm0, %v555_v3  ;;  %498 = vmatpush3.bf16.msra.mxu1 %v531_v27  ;;  %s533_s25 = scalar_lea.vmem %s410_s4, 64  ;;  %p538_p1 = scmp.lt.s32.totalorder %s410_s4, %s410_s4 }
  0x1c   :  { %499 = vmatprep.subr.bf16.mxu1 %v555_v3  ;;  %p534_p0 = scmp.ne.s32.totalorder %s410_s4, %s533_s25  ;;  %p539_p2 = scmp.lt.s32.totalorder %s533_s25, %s533_s25 }
  0x1d   :  { %463 = vmatpush3.bf16.msra.mxu0 %v523_v22 }
  0x1e   :  { %464 = vmatprep.subr.bf16.mxu0 %v526_v23  ;;  %p540_p3 = por %p539_p2, %p538_p1 }
  0x1f   :  { %500 = vmatpush3.bf16.msra.mxu1 %v532_v28 }
  0x20   :  { %p541_p4 = pnand %p540_p3, %p534_p0 }
  0x21   :  { %465 = vmatpush3.bf16.msra.mxu0 %v527_v25 }
  0x24   :  { %222 = vmatmul.mubr.bf16.vlgmr.msra.gmra.mxu0 %v421_v26 }
  0xcd   :  { %v263_v29 = vpop.f32.mrf.mxu1 }
  0xcf   :  { %v487_v30 = vpop.f32.mrf.mxu1 }
  0xd1   :  { %v266_v31 = vpop.f32.mrf.mxu1 }
  0xd3   :  { %v488_v32 = vpop.f32.mrf.mxu1 }
  0xda   :  { %v324_v33 = vpop.f32.mrf.mxu1 }
  0xdc   :  { %v495_v34 = vpop.f32.mrf.mxu1 }
  0xde   :  { %v327_v35 = vpop.f32.mrf.mxu1 }
  0xe0   :  { %v496_v36 = vpop.f32.mrf.mxu1 }
  0xe4   :  { %v466_v37 = vpop.f32.mrf.mxu0 }
  0xe6   :  { %v467_v38 = vpop.f32.mrf.mxu0 }
  0xe7   :  { %v468_v39 = vadd.f32 %v467_v38, %v466_v37 }
  0xe8   :  { %v469_v40 = vpop.f32.mrf.mxu0 }
  0xe9   :  { %v264_v41 = vadd.f32 %v468_v39, %v263_v29 }
  0xea   :  { %v470_v42 = vpop.f32.mrf.mxu0 }
  0xeb   :  { %v269_v43 = vmax.f32 %v264_v41, 0.0 }
  0xed   :  { %v330_v44 = vadd.f32 %v324_v33, %v269_v43 }
  0xef   :  { %v331_v45 = vmax.f32 %v330_v44, 0.0 }
  0xf1   :  { %v332_v46 = vpack.c.bf16 %v331_v45, %v331_v45 }
  0xf3   :  { %502 = vmatmul.mubr.msk.bf16.vlgmr.msra.gmra.mxu1 %vm185_vm1, %v332_v46  ;;  %334 = vst.msk [vmem:[#allocation3] sm:$0xf] %vm333_vm2, %v332_v46 }
  0xf4   :  { %544 = shalt.err (!%p541_p4)
}
  0xf5   :  { %412 = dma.vmem_to_hbm [thread:$0]  %s410_s4, 64, %s694_s6, [#allocation4]   ;;  %v446_v47 = vld [vmem:[#allocation2] ss:$0 sm:$0xff]  ;;  %vm401_vm3 = vcmask 7168  }
 0x1b3   :  { %v395_v48 = vpop.f32.mrf.mxu1 }
 0x1b4   :  { %v396_v49 = vadd.f32 %v446_v47, %v395_v48 }
 0x1b5   :  { %v503_v50 = vpop.f32.mrf.mxu1 }
 0x1b6   :  { %402 = vst.msk [vmem:[%s695_s7] sm:$0xff] %vm401_vm3, %v396_v49 }
 0x1b7   :  { %v398_v51 = vpop.f32.mrf.mxu1 }
 0x1b9   :  { %v504_v52 = vpop.f32.mrf.mxu1 }
 0x1ba   :  { %553 = dma.done.wait [#allocation4], 64  }
 0x1bb   :  { %554 = vsyncadd [#allocation4], 4294967232 }
 0x1bc   :  { %420 = vsyncpa [#allocation4], 1 }

// kernel: deep_supervision_forward.19
= control target key start
LH: loop header
LB: loop body
LE: loop exit
PB: predicated region body
PF: predicated region fallthrough
CT: control target
= control target key end

     0   :  { %s1565_s0 = inlined_call_operand.vmem [shape: f32[4], index: 0, kind: input, shape index: {}]   ;;  %s1566_s1 = inlined_call_operand.vmem [shape: f32[2,16,16], index: 1, kind: input, shape index: {}]   ;;  %s1567_s2 = inlined_call_operand.vmem [shape: f32[2,8,8], index: 2, kind: input, shape index: {}]   ;;  %s1568_s3 = inlined_call_operand.vmem [shape: f32[2,4,4], index: 3, kind: input, shape index: {}]   ;;  %s1569_s4 = inlined_call_operand.vmem [shape: f32[2,2,2], index: 4, kind: input, shape index: {}]   ;;  %s1570_s5 = inlined_call_operand.vmem [shape: f32[16,8], index: 5, kind: input, shape index: {}]   ;;  %s1571_s6 = inlined_call_operand.vmem [shape: f32[8,16], index: 6, kind: input, shape index: {}]   ;;  %s1572_s7 = inlined_call_operand.vmem [shape: f32[16,4], index: 7, kind: input, shape index: {}]   ;;  %s1573_s8 = inlined_call_operand.vmem [shape: f32[4,16], index: 8, kind: input, shape index: {}]   ;;  %s1574_s9 = inlined_call_operand.vmem [shape: f32[16,2], index: 9, kind: input, shape index: {}]   ;;  %s1575_s10 = inlined_call_operand.vmem [shape: f32[2,16], index: 10, kind: input, shape index: {}]   ;;  %s1576_s11 = inlined_call_operand.hbm [shape: f32[2,16,16], index: 11, kind: output, shape index: {}]  }
   0x1   :  { %1577 = sst [smem:[#allocation8_spill]] %s1565_s0 }
   0x2   :  { %1578 = sst [smem:[#allocation9_spill]] %s1571_s6 }
   0x3   :  { %16 = vsyncpa [#allocation4], 0 }
   0x4   :  { %17 = vsyncpa [#allocation3], 0 }
   0x5   :  { %19 = vsyncpa [#allocation3 + $0x1], 0  ;;  %s1385_s17 = smov 0   ;;  %s1387_s18 = smov 0  }
   0x6   :  { %s1389_s19 = smov 0   ;;  %s1391_s20 = smov 0  }
   0x7 LB: > { %s1406_s21 = sadd.s32 4294967295, %s1317_s20   ;;  %s1100_s22 = sadd.s32 4294967294, %s1317_s20   ;;  %s1317_s20 = sphi %s1391_s20, %s1587_s20   ;;  %s1313_s19 = sphi %s1389_s19, %s1586_s19   ;;  %s1309_s18 = sphi %s1387_s18, %s1585_s18   ;;  %s1305_s17 = sphi %s1385_s17, %s1584_s17  }
   0x8   : > { %s1410_s23 = sadd.s32 1, %s1317_s20   ;;  %s283_s24 = sadd.s32 1, %s1313_s19 }
   0x9   : > { %s280_s25 = ssub.s32 %s1317_s20, %s1410_s23  ;;  %p293_p0 = scmp.ne.s32.totalorder %s1313_s19, %s1309_s18 }
   0xa   : > { %p281_p1 = scmp.eq.s32.totalorder %s280_s25, 0  ;;  %p294_p2 = scmp.eq.s32.totalorder %s1406_s21, 1 }
   0xb   : > { %p299_p3 = scmp.ne.s32.totalorder %s1309_s18, %s1305_s17  ;;  %p300_p4 = scmp.eq.s32.totalorder %s1100_s22, 1 }
   0xc   : > { %s1421_s26 = scalar_select %p281_p1, %s1313_s19, %s283_s24  }
   0xd   : > { %p1423_p5 = por %p294_p2, %p293_p0  ;;  %p1427_p6 = por %p300_p4, %p299_p3 }
   0xe   : > { %p1101_p7 = scmp.ge.s32.totalorder %s1317_s20, 1  ;;  %p307_p8 = scmp.lt.s32.totalorder %s1317_s20, 3 }
   0xf   : > { %p1194_p9 = scmp.eq.s32.totalorder %s1406_s21, 0  ;;  %s1582_s0 = sld [smem:[#allocation8_spill]] }
  0x10   : > { %p1434_p10 = pnand %p1101_p7, %p307_p8 }
  0x12   : > { %p1186_p11 = pneg %p1434_p10 }
  0x14   : > { %p1187_p12 = pnand %p1194_p9, %p1186_p11 }
  0x15   : > { %s320_s13 = sshll.u32 %s1582_s0, 4  ;;  %s321_s13 = int_to_ptr.vmem [resolvable:$true] %s320_s13 }
  0x16   : > { %s1238_s14 = scalar_lea.vmem %s321_s13, 16  ;;  %p1240_p0 = pneg %p1187_p12 }
  0x17   : > { %p1239_p13 = scmp.ne.s32.totalorder %s321_s13, %s1238_s14  ;;  %p1246_p3 = scmp.lt.s32.totalorder %s321_s13, %s321_s13 }
  0x18   : > { %p1247_p4 = scmp.lt.s32.totalorder %s1238_s14, %s1238_s14 }
  0x19   : > { %p1241_p1 = pnand %p1240_p0, %p1239_p13 }
  0x1a   : > { %p1248_p7 = por %p1247_p4, %p1246_p3 }
  0x1b   : > { %p1242_p2 = pneg %p1241_p1 }
  0x1d   : > { %p1249_p8 = pnand %p1248_p7, %p1242_p2 }
  0x1f   : > { %1252 = shalt.err (!%p1249_p8)
}
  0x20   : > { %s1319_s15 = smov [#allocation2]   ;;  %380 = sbr.rel (%p1434_p10) target bundleno = 484 (0x1e4), region = 64 }
  0x21   : > { %1189 = dma.vmem_to_smem (!%p1187_p12), %s321_s13, 16, %s1319_s15, [#allocation4]  }
  0x25   : > { %1296 = dma.done.wait (%p1194_p9), [#allocation4], 16  }
  0x26   : > { %1298 = vsyncadd (%p1194_p9), [#allocation4], 4294967280 }
  0x27   : > { %386 = sfence }
  0x28   : > { %s1583_s6 = sld [smem:[#allocation9_spill]]  ;;  %p433_p11 = scmp.lt.s32.totalorder %s1406_s21, 1  ;;  %v1320_v1 = vmov 0.0   ;;  %vm1321_vm0 = vmmov 0   ;;  %vm459_vm1 = vcmask 64512   ;;  %vm628_vm2 = vcmask 1043456  }
  0x29   : > { %1150 = vmatprep.subr.mxu0 %v1320_v1  ;;  %1152 = vmatprep.mubr.msk.f32.mxu0 %vm1321_vm0, %v1320_v1  ;;  %v623_v2 = vld [vmem:[%s1573_s8] sm:$0xf]  ;;  %vm624_vm3 = vcmask 31744   ;;  %vm800_vm4 = vcmask 1041408   ;;  %vm796_vm5 = vcmask 15360   ;;  %v534_v9 = vld [vmem:[%s1570_s5 + $0x8] sm:$0xff] }
  0x2a   : > { %s1457_s24 = scalar_select %p433_p11, %s1406_s21, 1  ;;  %v795_v5 = vld [vmem:[%s1575_s10] sm:$0x3]  ;;  %v703_v13 = vld [vmem:[%s1572_s7 + $0x8] sm:$0xff]  ;;  %vm973_vm6 = vcmask 130048  }
  0x2b   : > { %v533_v7 = vld [vmem:[%s1570_s5] sm:$0xff]  ;;  %v875_v17 = vld [vmem:[%s1574_s9 + $0x8] sm:$0xff]  ;;  %s1112_s15 = sld [smem:[#allocation2 + $0x1]] }
  0x2c   : > { %s1109_s25 = sshll.u32 %s1457_s24, 3  ;;  %s1110_s29 = sshll.u32 %s1457_s24, 2  ;;  %1157 = vmatprep.mubr.msk.f32.mxu1 %vm459_vm1, %v533_v7  ;;  %v702_v10 = vld [vmem:[%s1572_s7] sm:$0xff] }
  0x2d   : > { %s441_s13 = scalar_lea.vmem %s1567_s2, %s1109_s25  ;;  %s445_s0 = scalar_lea.vmem %s1568_s3, %s1110_s29  ;;  %v874_v14 = vld [vmem:[%s1574_s9] sm:$0xff] }
  0x2e   : > { %v458_v0 = vld [vmem:[%s1583_s6] sm:$0xff]  ;;  %s1111_s6 = sshll.u32 %s1457_s24, 1  ;;  %s1133_s16 = sshll.u32 %s1457_s24, 4 }
  0x2f   : > { %1151 = vmatpush3.msra.mxu0 %v458_v0  ;;  %v457_v3 = vld [vmem:[%s441_s13] sm:$0xff]  ;;  %s449_s29 = scalar_lea.vmem %s1569_s4, %s1111_s6  ;;  %s450_s13 = sld [smem:[#allocation2]] }
  0x30   : > { %1160 = vmatprep.subr.mxu0 %v1320_v1  ;;  %1153 = vmatmul.mubr.msk.f32.vlgmr.msra.gmra.mxu0 %vm459_vm1, %v457_v3  ;;  %v622_v4 = vld [vmem:[%s445_s0] sm:$0xf]  ;;  %s1116_s6 = sld [smem:[#allocation2 + $0x2]]  ;;  %s437_s30 = scalar_lea.vmem %s1566_s1, %s1133_s16 }
  0x31   : > { %1161 = vmatpush3.msk.msra.mxu0 %vm628_vm2, %v623_v2  ;;  %1162 = vmatprep.mubr.msk.f32.mxu0 %vm1321_vm0, %v1320_v1  ;;  %v794_v6 = vld [vmem:[%s449_s29] sm:$0x3]  ;;  %s1122_s12 = sld [smem:[#allocation2 + $0x3]]  ;;  %v452_v19 = vld [vmem:[%s437_s30 + $0x8] sm:$0xff]  ;;  %v616_v22 = vstv %s1112_s15  ;;  %s430_s24 = sand.u32 1, %s1309_s18  }
  0x32   : > { %1170 = vmatprep.subr.mxu0 %v1320_v1  ;;  %v451_v23 = vld [vmem:[%s437_s30] sm:$0xff]  ;;  %s1106_s14 = sshll.u32 %s430_s24, 4  ;;  %s1134_s29 = sshll.u32 %s1406_s21, 8 }
  0x33   : > { %s432_s0 = scalar_lea.vmem [#allocation5], %s1106_s14  ;;  %s1525_s21 = scalar_lea.sflag [#allocation3], %s430_s24 }
  0x34   : > { %1163 = vmatmul.mubr.msk.f32.vlgmr.msra.gmra.mxu0 %vm624_vm3, %v622_v4  ;;  %s1322_s25 = smov [#allocation5]  }
  0x35   : > { %1171 = vmatpush3.msk.msra.mxu0 %vm800_vm4, %v795_v5  ;;  %1172 = vmatprep.mubr.msk.f32.mxu0 %vm1321_vm0, %v1320_v1  ;;  %v453_v20 = vstv %s450_s13  ;;  %s990_s13 = sshll.u32 %s432_s0, 4  ;;  %s1257_s30 = sshll.u32 %s1322_s25, 4  ;;  %s1523_s13 = int_to_ptr.vmem [resolvable:$true] %s990_s13  ;;  %s1258_s30 = int_to_ptr.vmem [resolvable:$false] %s1257_s30 }
  0x36   : > { %v788_v25 = vstv %s1116_s6  ;;  %v455_v26 = vmul.f32 %v453_v20, %v452_v19  ;;  %v454_v29 = vmul.f32 %v453_v20, %v451_v23  ;;  %s1521_s6 = scalar_lea.hbm %s1576_s11, %s1134_s29  ;;  %s1253_s22 = scalar_lea.vmem %s1523_s13, 256 }
  0x37   : > { %v960_v33 = vstv %s1122_s12  ;;  %p1254_p9 = scmp.ne.s32.totalorder %s1523_s13, %s1253_s22  ;;  %s1259_s12 = scalar_lea.vmem %s1258_s30, 512 }
  0x38   : > { %1173 = vmatmul.mubr.msk.f32.vlgmr.msra.gmra.mxu0 %vm796_vm5, %v794_v6  ;;  %p1260_p13 = scmp.lt.s32.totalorder %s1523_s13, %s1258_s30  ;;  %p1261_p0 = scmp.lt.s32.totalorder %s1259_s12, %s1253_s22 }
  0x39   : > { %p1255_p10 = pnand %p1254_p9, %p1423_p5 }
  0x3a   : > { %p1262_p1 = por %p1261_p0, %p1260_p13 }
  0x3b   : > { %p1256_p12 = pneg %p1255_p10 }
  0x3d   : > { %p1263_p2 = pnand %p1262_p1, %p1256_p12 }
  0xf0   : > { %v529_v8 = vpop.f32.mrf.mxu0 }
  0xf1   : > { %1155 = vmatprep.subr.mxu1 %v529_v8 }
  0xf2   : > { %v1154_v11 = vpop.f32.mrf.mxu0  ;;  %1156 = vmatpush3.msra.mxu1 %v529_v8 }
  0xf3   : > { %1158 = vmatmul.mubr.msk.f32.vlgmr.msra.gmra.mxu1 %vm459_vm1, %v534_v9 }
  0xf4   : > { %v698_v12 = vpop.f32.mrf.mxu0  ;;  %1167 = vmatprep.mubr.msk.f32.mxu1 %vm624_vm3, %v702_v10 }
  0xf5   : > { %1165 = vmatprep.subr.msk.mxu1 %vm628_vm2, %v698_v12 }
  0xf6   : > { %v1164_v15 = vpop.f32.mrf.mxu0  ;;  %1166 = vmatpush3.msk.msra.mxu1 %vm628_vm2, %v698_v12 }
  0xf7   : > { %1168 = vmatmul.mubr.msk.f32.vlgmr.msra.gmra.mxu1 %vm624_vm3, %v703_v13 }
  0xf8   : > { %v870_v16 = vpop.f32.mrf.mxu0  ;;  %1177 = vmatprep.mubr.msk.f32.mxu1 %vm796_vm5, %v874_v14 }
  0xf9   : > { %1175 = vmatprep.subr.msk.mxu1 %vm800_vm4, %v870_v16 }
  0xfa   : > { %v1174_v18 = vpop.f32.mrf.mxu0  ;;  %1176 = vmatpush3.msk.msra.mxu1 %vm800_vm4, %v870_v16 }
  0xfb   : > { %1178 = vmatmul.mubr.msk.f32.vlgmr.msra.gmra.mxu1 %vm796_vm5, %v875_v17 }
 0x1b3   : > { %v1159_v21 = vpop.f32.mrf.mxu1 }
 0x1b4   : > { %v618_v27 = vmul.f32 %v1159_v21, %v616_v22 }
 0x1b5   : > { %v607_v24 = vpop.f32.mrf.mxu1 }
 0x1b6   : > { %v617_v30 = vmul.f32 %v616_v22, %v607_v24  ;;  %v620_v34 = vadd.f32 %v618_v27, %v455_v26 }
 0x1b7   : > { %v1169_v28 = vpop.f32.mrf.mxu1 }
 0x1b8   : > { %v790_v31 = vmul.f32 %v1169_v28, %v788_v25  ;;  %v619_v37 = vadd.f32 %v617_v30, %v454_v29 }
 0x1b9   : > { %v779_v32 = vpop.f32.mrf.mxu1 }
 0x1ba   : > { %v789_v35 = vmul.f32 %v788_v25, %v779_v32  ;;  %v792_v38 = vadd.f32 %v790_v31, %v620_v34 }
 0x1bb   : > { %v1179_v36 = vpop.f32.mrf.mxu1 }
 0x1bc   : > { %v962_v39 = vmul.f32 %v1179_v36, %v960_v33  ;;  %v791_v41 = vadd.f32 %v789_v35, %v619_v37 }
 0x1bd   : > { %v951_v40 = vpop.f32.mrf.mxu1 }
 0x1be   : > { %v964_v42 = vadd.f32 %v962_v39, %v792_v38  ;;  %v961_v43 = vmul.f32 %v960_v33, %v951_v40 }
 0x1c0   : > { %v966_v44 = vmul.f32 0.5, %v964_v42  ;;  %v963_v45 = vadd.f32 %v961_v43, %v791_v41 }
 0x1c2   : > { %1234 = vtanh.f32 %v966_v44  ;;  %v965_v46 = vmul.f32 0.5, %v963_v45 }
 0x1c4   : > { %1236 = vtanh.f32 %v965_v46 }
 0x1cf   : > { %v1235_v47 = vpop.eup %1234 }
 0x1d0   : > { %v970_v48 = vadd.f32 1.0, %v1235_v47 }
 0x1d1   : > { %v1237_v49 = vpop.eup %1236 }
 0x1d2   : > { %v972_v50 = vmul.f32 0.5, %v970_v48  ;;  %v969_v51 = vadd.f32 1.0, %v1237_v49 }
 0x1d4   : > { %v971_v52 = vmul.f32 0.5, %v969_v51  ;;  %975 = vst.msk [vmem:[%s432_s0 + $0x8] sm:$0xff] %vm973_vm6, %v972_v50 }
 0x1d6   : > { %974 = vst.msk [vmem:[%s432_s0] sm:$0xff] %vm973_vm6, %v971_v52 }
 0x1d7   : > { %1266 = shalt.err (!%p1263_p2)
}
 0x1d8   : > { %s1267_s24 = scalar_lea.hbm %s1521_s6, 256  ;;  %s1271_s0 = scalar_lea.hbm %s1576_s11, 512 }
 0x1d9   : > { %p1268_p3 = scmp.ne.s32.totalorder %s1521_s6, %s1267_s24  ;;  %p1272_p8 = scmp.lt.s32.totalorder %s1521_s6, %s1576_s11 }
 0x1da   : > { %p1273_p11 = scmp.lt.s32.totalorder %s1271_s0, %s1267_s24 }
 0x1db   : > { %p1269_p4 = pnand %p1268_p3, %p1423_p5 }
 0x1dc   : > { %p1274_p9 = por %p1273_p11, %p1272_p8 }
 0x1dd   : > { %p1270_p7 = pneg %p1269_p4 }
 0x1df   : > { %p1275_p10 = pnand %p1274_p9, %p1270_p7 }
 0x1e1   : > { %1278 = shalt.err (!%p1275_p10)
}
 0x1e2   : > { %s1323_s22 = smov 128   ;;  %s1324_s25 = smov 8  }
 0x1e3   : > { %1184 = dma.vmem_to_hbm [thread:$0]  (%p1423_p5), %s1523_s13, 256, %s1521_s6, %s1525_s21, %s1323_s22, %s1323_s22, %s1324_s25  }
 0x1e4 PF: > { %p1196_p12 = scmp.ge.s32.totalorder %s1317_s20, 2  ;;  %s1005_s30 = sand.u32 1, %s1305_s17  }
 0x1e5   : > { %s1006_s12 = scalar_lea.sflag [#allocation3], %s1005_s30 }
 0x1e6   : > { %p1191_p13 = pnand %p1196_p12, %p1427_p6 }
 0x1e8   : > { %p1192_p0 = pneg %p1191_p13 }
 0x1ea   : > { %1300 = dma.done.wait (%p1192_p0), %s1006_s12, 256  }
 0x1eb   : > { %1302 = vsyncadd (%p1192_p0), %s1006_s12, 4294967040  ;;  %p22_p1 = scmp.ge.s32.totalorder %s1410_s23, 4   ;;  %s1584_s17 = smov %s1309_s18 }
 0x1ec   : > { %s1585_s18 = smov %s1313_s19  ;;  %s1586_s19 = smov %s1421_s26 }
 0x1ed   : > { %s1587_s20 = smov %s1410_s23  ;;  %24 = sbr.rel (!%p22_p1) target bundleno = 7 (0x7), region = 113 }
 0x1f2   :  { %1011 = vsyncpa [#allocation3], 1 }
 0x1f3   :  { %1013 = vsyncpa [#allocation3 + $0x1], 1 }
 0x1f4   :  { %1014 = vsyncpa [#allocation4], 1 }
 0x1f5   :  { %1016 = vsyncpa [#allocation4 + $0x1], 1 }

</bundles_post_ra>
